<compile_context>
chip_gen: v6e
topology: v6e:2x2x1
jax: 0.10.0
libtpu: 0.0.40
codegen_flags: <defaults>
</compile_context>

<pallas_src>
import jax
import jax.numpy as jnp
from jax import lax
from jax.experimental import pallas as pl
from jax.experimental.pallas import tpu as pltpu

C_OUT = 16
KH = KW = 3
H = W = 128            # fc = Linear(16*64*64, 2) implies 128x128 input images
HP = H + 2             # rows after zero row-padding (lane dim stays exactly 128)
PH, PW = H // 2, W // 2
N_CLS = 2
WCAT = C_OUT * W       # 2048: all 16 channels concatenated on the lane axis


# ------------------------------ fused kernel ----------------------------------
def fused_cnn_kernel(x_ref, t_ref, brow_ref, pe_ref, wexp_ref, fcb_ref, o_ref):
    # x_ref:    (1, HP, W)         bf16  row-padded single-channel image
    # t_ref:    (KH, W, WCAT)      bf16  banded conv weights (resident)
    # brow_ref: (1, WCAT)          f32   conv bias broadcast over channel blocks
    # pe_ref:   (2, PH, H)         bf16  one-hot even/odd row selectors
    # wexp_ref: (N_CLS, PH, WCAT)  f32   FC weight, zeros at odd lanes (resident)
    # fcb_ref:  (N_CLS,)           f32   FC bias (SMEM)
    # o_ref:    (1, 8, 128)        f32   logits live in lanes 0..1 of row 0
    f32 = jnp.float32

    # 3x3 conv as 3 banded MXU matmuls; acc[y, ch*W + x] = conv[ch, y, x].
    acc = jnp.dot(x_ref[0, 0:H, :], t_ref[0], preferred_element_type=f32)
    for ky in range(1, KH):
        acc = acc + jnp.dot(x_ref[0, ky:ky + H, :], t_ref[ky],
                            preferred_element_type=f32)

    # bias + ReLU, cast to bf16 for the pooling matmuls.
    acc = jnp.maximum(acc + brow_ref[...], 0.0).astype(jnp.bfloat16)

    # 2x2 max-pool, rows first: one-hot selector matmuls = exact row gather.
    rowmax = jnp.maximum(
        jnp.dot(pe_ref[0], acc, preferred_element_type=f32),
        jnp.dot(pe_ref[1], acc, preferred_element_type=f32))      # (PH, WCAT)
    # column pairs: bring lane c+1 next to lane c (roll by WCAT-1 == -1).
    # Odd lanes hold garbage, but wexp is zero there.
    pooled = jnp.maximum(rowmax, pltpu.roll(rowmax, WCAT - 1, axis=1))

    # fused Linear(16*64*64 -> 2): weighted full reduction per class (f32).
    l0 = jnp.sum(pooled * wexp_ref[0]) + fcb_ref[0]
    l1 = jnp.sum(pooled * wexp_ref[1]) + fcb_ref[1]

    lane = lax.broadcasted_iota(jnp.int32, (8, 128), 1)
    o_ref[0] = jnp.where(lane == 0, l0, jnp.where(lane == 1, l1, 0.0))


# --------------------------- host-side weight prep ----------------------------
def _banded_conv_weight(conv_w):
    # T[ky, j, ch*W + x] = conv_w[ch, 0, ky, j - x + 1] when 0 <= j-x+1 < KW,
    # else 0 (this also implements the zero column-padding exactly).
    w = conv_w[:, 0].astype(jnp.float32)                             # (C_OUT,KH,KW)
    delta = jnp.arange(W)[:, None] - jnp.arange(W)[None, :] + 1      # (W, W)
    band = ((delta >= 0) & (delta < KW)).astype(jnp.float32)
    taps = w[:, :, jnp.clip(delta, 0, KW - 1)] * band[None, None]    # (C_OUT,KH,W,W)
    return taps.transpose(1, 2, 0, 3).reshape(KH, W, WCAT).astype(jnp.bfloat16)


def _expanded_fc_weight(fc_w):
    # fc_w: (N_CLS, C_OUT*PH*PW) in torch .view order (ch-major, then y, then x).
    # -> (N_CLS, PH, WCAT) with the weight at even lanes of each 128-lane channel
    #    block and zeros at odd lanes (matches the rolled pooled slab layout).
    fcw = fc_w.reshape(N_CLS, C_OUT, PH, PW).astype(jnp.float32)
    wx = jnp.stack([fcw, jnp.zeros_like(fcw)], axis=-1).reshape(N_CLS, C_OUT, PH, W)
    return wx.transpose(0, 2, 1, 3).reshape(N_CLS, PH, WCAT)


def _row_pool_selectors():
    r = jnp.arange(PH)[:, None]
    c = jnp.arange(H)[None, :]
    return jnp.stack([c == 2 * r, c == 2 * r + 1]).astype(jnp.bfloat16)  # (2,PH,H)


# ------------------------------ full forward ----------------------------------
def simple_cnn_forward(x, params):
    # x: (B, 1, H, W) float32 NCHW, like PyTorch.
    B = x.shape[0]
    xp = jnp.pad(x[:, 0], ((0, 0), (1, 1), (0, 0))).astype(jnp.bfloat16)  # (B,HP,W)
    t = _banded_conv_weight(params["conv_w"])
    brow = jnp.repeat(params["conv_b"].astype(jnp.float32), W).reshape(1, WCAT)
    pe = _row_pool_selectors()
    wexp = _expanded_fc_weight(params["fc_w"])
    fcb = params["fc_b"].astype(jnp.float32)

    out = pl.pallas_call(
        fused_cnn_kernel,
        out_shape=jax.ShapeDtypeStruct((B, 8, 128), jnp.float32),
        grid_spec=pltpu.PrefetchScalarGridSpec(
            num_scalar_prefetch=0,
            grid=(B,),
            in_specs=[
                pl.BlockSpec((1, HP, W), lambda b: (b, 0, 0)),
                pl.BlockSpec((KH, W, WCAT), lambda b: (0, 0, 0)),
                pl.BlockSpec((1, WCAT), lambda b: (0, 0)),
                pl.BlockSpec((2, PH, H), lambda b: (0, 0, 0)),
                pl.BlockSpec((N_CLS, PH, WCAT), lambda b: (0, 0, 0)),
                pl.BlockSpec(memory_space=pltpu.MemorySpace.SMEM),
            ],
            out_specs=pl.BlockSpec((1, 8, 128), lambda b: (b, 0, 0)),
        ),
        compiler_params=pltpu.CompilerParams(
            dimension_semantics=("parallel",),
            vmem_limit_bytes=32 * 1024 * 1024),
    )(xp, t, brow, pe, wexp, fcb)
    return out[:, 0, :N_CLS]


def init_params(key):
    k1, k2, k3, k4 = jax.random.split(key, 4)
    fc_in = C_OUT * PH * PW
    return {
        "conv_w": jax.random.normal(k1, (C_OUT, 1, KH, KW), jnp.float32) * 0.1,
        "conv_b": jax.random.normal(k2, (C_OUT,), jnp.float32) * 0.1,
        "fc_w": jax.random.normal(k3, (N_CLS, fc_in), jnp.float32) * 0.01,
        "fc_b": jax.random.normal(k4, (N_CLS,), jnp.float32) * 0.01,
    }


def reference_forward(x, params):
    # Pure-JAX (f32) reference of the PyTorch forward, for a sanity check.
    y = lax.conv_general_dilated(
        x, params["conv_w"], window_strides=(1, 1), padding="SAME",
        dimension_numbers=("NCHW", "OIHW", "NCHW"),
        precision=lax.Precision.HIGHEST)
    y = y + params["conv_b"][None, :, None, None]
    y = jnp.maximum(y, 0.0)
    B = y.shape[0]
    y = y.reshape(B, C_OUT, PH, 2, PW, 2).max(axis=(3, 5))
    y = y.reshape(B, -1)
    return jnp.einsum("bk,nk->bn", y, params["fc_w"],
                      precision=lax.Precision.HIGHEST) + params["fc_b"]


if __name__ == "__main__":
    key = jax.random.PRNGKey(0)
    kx, kp = jax.random.split(key)
    x = jax.random.normal(kx, (2, 1, H, W), jnp.float32)   # NCHW input
    params = init_params(kp)

    out = jax.jit(simple_cnn_forward)(x, params)
    out = jax.block_until_ready(out)
    assert out.shape == (2, N_CLS)

    ref = jax.block_until_ready(reference_forward(x, params))
    # bf16 MXU path -> slightly loose tolerance (expected error ~5e-3 on O(1) logits).
    assert jnp.allclose(out, ref, atol=3e-2, rtol=3e-2), (out, ref)

    print("KERNEL_OK")
</pallas_src>

<mosaic_0001>
module attributes {stable_mosaic.version = 11 : i64} {
  func.func @fused_cnn_kernel(%arg0: i32, %arg1: memref<1x130x128xbf16, #tpu.memory_space<vmem>>, %arg2: memref<3x128x2048xbf16, #tpu.memory_space<vmem>>, %arg3: memref<1x2048xf32, #tpu.memory_space<vmem>>, %arg4: memref<2x64x128xbf16, #tpu.memory_space<vmem>>, %arg5: memref<2x64x2048xf32, #tpu.memory_space<vmem>>, %arg6: memref<2xf32, #tpu.memory_space<smem>>, %arg7: memref<1x8x128xf32, #tpu.memory_space<vmem>>) attributes {dimension_semantics = [#tpu.dimension_semantics<parallel>], iteration_bounds = array<i64: 2>, scalar_prefetch = 0 : i64, scratch_operands = 0 : i64, tpu.core_type = #tpu.core_type<tc>, window_params = [{transform_indices = @transform_0, window_bounds = array<i64: 1, 130, 128>}, {pipeline_mode = #tpu.pipeline_mode<synchronous>, transform_indices = @transform_1, window_bounds = array<i64: 3, 128, 2048>}, {pipeline_mode = #tpu.pipeline_mode<synchronous>, transform_indices = @transform_2, window_bounds = array<i64: 1, 2048>}, {pipeline_mode = #tpu.pipeline_mode<synchronous>, transform_indices = @transform_3, window_bounds = array<i64: 2, 64, 128>}, {pipeline_mode = #tpu.pipeline_mode<synchronous>, transform_indices = @transform_4, window_bounds = array<i64: 2, 64, 2048>}, {transform_indices = @transform_5, window_bounds = array<i64: 2>}, {transform_indices = @transform_6, window_bounds = array<i64: 1, 8, 128>}]} {
    %c0 = arith.constant 0 : index
    %c0_0 = arith.constant 0 : index
    %c0_1 = arith.constant 0 : index
    %0 = vector.load %arg1[%c0, %c0_0, %c0_1] : memref<1x130x128xbf16, #tpu.memory_space<vmem>>, vector<1x128x128xbf16>
    %1 = vector.shape_cast %0 : vector<1x128x128xbf16> to vector<128x128xbf16>
    %c0_2 = arith.constant 0 : index
    %c0_3 = arith.constant 0 : index
    %c0_4 = arith.constant 0 : index
    %2 = vector.load %arg2[%c0_2, %c0_3, %c0_4] : memref<3x128x2048xbf16, #tpu.memory_space<vmem>>, vector<1x128x2048xbf16>
    %3 = vector.shape_cast %2 : vector<1x128x2048xbf16> to vector<128x2048xbf16>
    %cst = arith.constant dense<0.000000e+00> : vector<128x2048xf32>
    %4 = tpu.matmul %1, %3, %cst {dimension_numbers = #tpu.dot_dimension_numbers<[1], [0], [0], [1], [0, 0, 1, 1], [], []>} : vector<128x128xbf16>, vector<128x2048xbf16>, vector<128x2048xf32> -> vector<128x2048xf32>
    %c0_5 = arith.constant 0 : index
    %c1 = arith.constant 1 : index
    %c0_6 = arith.constant 0 : index
    %5 = vector.load %arg1[%c0_5, %c1, %c0_6] : memref<1x130x128xbf16, #tpu.memory_space<vmem>>, vector<1x128x128xbf16>
    %6 = vector.shape_cast %5 : vector<1x128x128xbf16> to vector<128x128xbf16>
    %c1_7 = arith.constant 1 : index
    %c0_8 = arith.constant 0 : index
    %c0_9 = arith.constant 0 : index
    %7 = vector.load %arg2[%c1_7, %c0_8, %c0_9] : memref<3x128x2048xbf16, #tpu.memory_space<vmem>>, vector<1x128x2048xbf16>
    %8 = vector.shape_cast %7 : vector<1x128x2048xbf16> to vector<128x2048xbf16>
    %cst_10 = arith.constant dense<0.000000e+00> : vector<128x2048xf32>
    %9 = tpu.matmul %6, %8, %cst_10 {dimension_numbers = #tpu.dot_dimension_numbers<[1], [0], [0], [1], [0, 0, 1, 1], [], []>} : vector<128x128xbf16>, vector<128x2048xbf16>, vector<128x2048xf32> -> vector<128x2048xf32>
    %10 = arith.addf %4, %9 : vector<128x2048xf32>
    %c0_11 = arith.constant 0 : index
    %c2 = arith.constant 2 : index
    %c0_12 = arith.constant 0 : index
    %11 = vector.load %arg1[%c0_11, %c2, %c0_12] : memref<1x130x128xbf16, #tpu.memory_space<vmem>>, vector<1x128x128xbf16>
    %12 = vector.shape_cast %11 : vector<1x128x128xbf16> to vector<128x128xbf16>
    %c2_13 = arith.constant 2 : index
    %c0_14 = arith.constant 0 : index
    %c0_15 = arith.constant 0 : index
    %13 = vector.load %arg2[%c2_13, %c0_14, %c0_15] : memref<3x128x2048xbf16, #tpu.memory_space<vmem>>, vector<1x128x2048xbf16>
    %14 = vector.shape_cast %13 : vector<1x128x2048xbf16> to vector<128x2048xbf16>
    %cst_16 = arith.constant dense<0.000000e+00> : vector<128x2048xf32>
    %15 = tpu.matmul %12, %14, %cst_16 {dimension_numbers = #tpu.dot_dimension_numbers<[1], [0], [0], [1], [0, 0, 1, 1], [], []>} : vector<128x128xbf16>, vector<128x2048xbf16>, vector<128x2048xf32> -> vector<128x2048xf32>
    %16 = arith.addf %10, %15 : vector<128x2048xf32>
    %c0_17 = arith.constant 0 : index
    %c0_18 = arith.constant 0 : index
    %17 = vector.load %arg3[%c0_17, %c0_18] : memref<1x2048xf32, #tpu.memory_space<vmem>>, vector<1x2048xf32>
    %18 = vector.broadcast %17 : vector<1x2048xf32> to vector<128x2048xf32>
    %19 = arith.addf %16, %18 : vector<128x2048xf32>
    %cst_19 = arith.constant 0.000000e+00 : f32
    %20 = vector.broadcast %cst_19 : f32 to vector<128x2048xf32>
    %21 = arith.maximumf %19, %20 : vector<128x2048xf32>
    %22 = arith.truncf %21 : vector<128x2048xf32> to vector<128x2048xbf16>
    %c0_20 = arith.constant 0 : index
    %c0_21 = arith.constant 0 : index
    %c0_22 = arith.constant 0 : index
    %23 = vector.load %arg4[%c0_20, %c0_21, %c0_22] : memref<2x64x128xbf16, #tpu.memory_space<vmem>>, vector<1x64x128xbf16>
    %24 = vector.shape_cast %23 : vector<1x64x128xbf16> to vector<64x128xbf16>
    %cst_23 = arith.constant dense<0.000000e+00> : vector<64x2048xf32>
    %25 = tpu.matmul %24, %22, %cst_23 {dimension_numbers = #tpu.dot_dimension_numbers<[1], [0], [0], [1], [0, 0, 1, 1], [], []>} : vector<64x128xbf16>, vector<128x2048xbf16>, vector<64x2048xf32> -> vector<64x2048xf32>
    %c1_24 = arith.constant 1 : index
    %c0_25 = arith.constant 0 : index
    %c0_26 = arith.constant 0 : index
    %26 = vector.load %arg4[%c1_24, %c0_25, %c0_26] : memref<2x64x128xbf16, #tpu.memory_space<vmem>>, vector<1x64x128xbf16>
    %27 = vector.shape_cast %26 : vector<1x64x128xbf16> to vector<64x128xbf16>
    %cst_27 = arith.constant dense<0.000000e+00> : vector<64x2048xf32>
    %28 = tpu.matmul %27, %22, %cst_27 {dimension_numbers = #tpu.dot_dimension_numbers<[1], [0], [0], [1], [0, 0, 1, 1], [], []>} : vector<64x128xbf16>, vector<128x2048xbf16>, vector<64x2048xf32> -> vector<64x2048xf32>
    %29 = arith.maximumf %25, %28 : vector<64x2048xf32>
    %c2047_i32 = arith.constant 2047 : i32
    %30 = tpu.dynamic_rotate %29 by %c2047_i32 dim 1 : vector<64x2048xf32>, i32 -> vector<64x2048xf32>
    %31 = arith.maximumf %29, %30 : vector<64x2048xf32>
    %c0_28 = arith.constant 0 : index
    %c0_29 = arith.constant 0 : index
    %c0_30 = arith.constant 0 : index
    %32 = vector.load %arg5[%c0_28, %c0_29, %c0_30] : memref<2x64x2048xf32, #tpu.memory_space<vmem>>, vector<1x64x2048xf32>
    %33 = vector.shape_cast %32 : vector<1x64x2048xf32> to vector<64x2048xf32>
    %34 = arith.mulf %31, %33 : vector<64x2048xf32>
    %35 = vector.shape_cast %34 : vector<64x2048xf32> to vector<1x64x2048xf32>
    %cst_31 = arith.constant dense<0.000000e+00> : vector<1xf32>
    %36 = vector.multi_reduction <add>, %35, %cst_31 [1, 2] : vector<1x64x2048xf32> to vector<1xf32>
    %37 = vector.shape_cast %36 : vector<1xf32> to vector<1x1x1xf32>
    %38 = vector.extract %37[0, 0, 0] : f32 from vector<1x1x1xf32>
    %c0_32 = arith.constant 0 : index
    %39 = memref.load %arg6[%c0_32] : memref<2xf32, #tpu.memory_space<smem>>
    %40 = arith.addf %38, %39 : f32
    %c1_33 = arith.constant 1 : index
    %c0_34 = arith.constant 0 : index
    %c0_35 = arith.constant 0 : index
    %41 = vector.load %arg5[%c1_33, %c0_34, %c0_35] : memref<2x64x2048xf32, #tpu.memory_space<vmem>>, vector<1x64x2048xf32>
    %42 = vector.shape_cast %41 : vector<1x64x2048xf32> to vector<64x2048xf32>
    %43 = arith.mulf %31, %42 : vector<64x2048xf32>
    %44 = vector.shape_cast %43 : vector<64x2048xf32> to vector<1x64x2048xf32>
    %cst_36 = arith.constant dense<0.000000e+00> : vector<1xf32>
    %45 = vector.multi_reduction <add>, %44, %cst_36 [1, 2] : vector<1x64x2048xf32> to vector<1xf32>
    %46 = vector.shape_cast %45 : vector<1xf32> to vector<1x1x1xf32>
    %47 = vector.extract %46[0, 0, 0] : f32 from vector<1x1x1xf32>
    %c1_37 = arith.constant 1 : index
    %48 = memref.load %arg6[%c1_37] : memref<2xf32, #tpu.memory_space<smem>>
    %49 = arith.addf %47, %48 : f32
    %50 = tpu.iota {dimensions = array<i32: 1>} : vector<8x128xi32>
    %c0_i32 = arith.constant 0 : i32
    %51 = vector.broadcast %c0_i32 : i32 to vector<8x128xi32>
    %52 = arith.cmpi eq, %50, %51 : vector<8x128xi32>
    %c1_i32 = arith.constant 1 : i32
    %53 = vector.broadcast %c1_i32 : i32 to vector<8x128xi32>
    %54 = arith.cmpi eq, %50, %53 : vector<8x128xi32>
    %cst_38 = arith.constant 0.000000e+00 : f32
    %55 = vector.broadcast %49 : f32 to vector<8x128xf32>
    %56 = vector.broadcast %cst_38 : f32 to vector<8x128xf32>
    %57 = arith.select %54, %55, %56 : vector<8x128xi1>, vector<8x128xf32>
    %58 = vector.broadcast %40 : f32 to vector<8x128xf32>
    %59 = arith.select %52, %58, %57 : vector<8x128xi1>, vector<8x128xf32>
    %c0_39 = arith.constant 0 : index
    %c0_40 = arith.constant 0 : index
    %c0_41 = arith.constant 0 : index
    %60 = vector.load %arg7[%c0_39, %c0_40, %c0_41] : memref<1x8x128xf32, #tpu.memory_space<vmem>>, vector<1x8x128xf32>
    %61 = vector.shape_cast %60 : vector<1x8x128xf32> to vector<8x128xf32>
    %62 = vector.shape_cast %59 : vector<8x128xf32> to vector<1x8x128xf32>
    tpu.vector_store %arg7[%c0_39, %c0_40, %c0_41], %62 {strides = array<i32>} : memref<1x8x128xf32, #tpu.memory_space<vmem>>, vector<1x8x128xf32>,
    return
  }
  func.func @transform_0(%arg0: i32) -> (i32, i32, i32) {
    %c0_i32 = arith.constant 0 : i32
    %c0_i32_0 = arith.constant 0 : i32
    %c0_i32_1 = arith.constant 0 : i32
    return %arg0, %c0_i32, %c0_i32_0 : i32, i32, i32
  }
  func.func @transform_1(%arg0: i32) -> (i32, i32, i32) {
    %c0_i32 = arith.constant 0 : i32
    %c0_i32_0 = arith.constant 0 : i32
    %c0_i32_1 = arith.constant 0 : i32
    %c0_i32_2 = arith.constant 0 : i32
    return %c0_i32, %c0_i32_0, %c0_i32_1 : i32, i32, i32
  }
  func.func @transform_2(%arg0: i32) -> (i32, i32) {
    %c0_i32 = arith.constant 0 : i32
    %c0_i32_0 = arith.constant 0 : i32
    %c0_i32_1 = arith.constant 0 : i32
    return %c0_i32, %c0_i32_0 : i32, i32
  }
  func.func @transform_3(%arg0: i32) -> (i32, i32, i32) {
    %c0_i32 = arith.constant 0 : i32
    %c0_i32_0 = arith.constant 0 : i32
    %c0_i32_1 = arith.constant 0 : i32
    %c0_i32_2 = arith.constant 0 : i32
    return %c0_i32, %c0_i32_0, %c0_i32_1 : i32, i32, i32
  }
  func.func @transform_4(%arg0: i32) -> (i32, i32, i32) {
    %c0_i32 = arith.constant 0 : i32
    %c0_i32_0 = arith.constant 0 : i32
    %c0_i32_1 = arith.constant 0 : i32
    %c0_i32_2 = arith.constant 0 : i32
    return %c0_i32, %c0_i32_0, %c0_i32_1 : i32, i32, i32
  }
  func.func @transform_5(%arg0: i32) -> i32 {
    %c0_i32 = arith.constant 0 : i32
    %c0_i32_0 = arith.constant 0 : i32
    return %c0_i32 : i32
  }
  func.func @transform_6(%arg0: i32) -> (i32, i32, i32) {
    %c0_i32 = arith.constant 0 : i32
    %c0_i32_0 = arith.constant 0 : i32
    %c0_i32_1 = arith.constant 0 : i32
    return %arg0, %c0_i32, %c0_i32_0 : i32, i32, i32
  }
}

</mosaic_0001>

<bundles_post_ra>
// kernel: simple_cnn_forward.1
= control target key start
LH: loop header
LB: loop body
LE: loop exit
PB: predicated region body
PF: predicated region fallthrough
CT: control target
= control target key end

     0   :  { %11 = vsyncpa [#allocation3], 0  ;;  %s10110_s21 = smov 0   ;;  %s17622_s0 = inlined_call_operand.vmem [shape: bf16[2,130,128], index: 0, kind: input, shape index: {}]   ;;  %s17623_s1 = inlined_call_operand.vmem [shape: bf16[3,128,2048], index: 1, kind: input, shape index: {}]   ;;  %s17624_s2 = inlined_call_operand.vmem [shape: f32[1,2048], index: 2, kind: input, shape index: {}]   ;;  %s17625_s3 = inlined_call_operand.vmem [shape: bf16[2,64,128], index: 3, kind: input, shape index: {}]   ;;  %s17626_s4 = inlined_call_operand.vmem [shape: f32[2,64,2048], index: 4, kind: input, shape index: {}]   ;;  %s17627_s5 = inlined_call_operand.vmem [shape: f32[2], index: 5, kind: input, shape index: {}]   ;;  %s17628_s6 = inlined_call_operand.vmem [shape: f32[2,8,128], index: 6, kind: output, shape index: {}]  }
   0x1 LB: > { %s10116_s22 = sadd.s32 4294967295, %s10070_s21   ;;  %p9177_p0 = scmp.ge.s32.totalorder %s10070_s21, 1  ;;  %s10070_s21 = sphi %s10110_s21, %s17_s21  }
   0x2   : > { %p179_p1 = scmp.lt.s32.totalorder %s10070_s21, 3  ;;  %s204_s25 = sshll.u32 %s17627_s5, 4  ;;  %s205_s25 = int_to_ptr.vmem [resolvable:$true] %s204_s25 }
   0x3   : > { %p9994_p3 = scmp.eq.s32.totalorder %s10116_s22, 0  ;;  %s10045_s27 = scalar_lea.vmem %s205_s25, 16 }
   0x4   : > { %p10123_p2 = pnand %p9177_p0, %p179_p1  ;;  %p10046_p6 = scmp.ne.s32.totalorder %s205_s25, %s10045_s27 }
   0x5   : > { %p10053_p10 = scmp.lt.s32.totalorder %s205_s25, %s205_s25  ;;  %p10054_p11 = scmp.lt.s32.totalorder %s10045_s27, %s10045_s27 }
   0x6   : > { %p9990_p4 = pneg %p10123_p2 }
   0x7   : > { %p10055_p12 = por %p10054_p11, %p10053_p10 }
   0x8   : > { %p9991_p5 = pnand %p9994_p3, %p9990_p4 }
   0xa   : > { %p10047_p7 = pneg %p9991_p5 }
   0xc   : > { %p10048_p8 = pnand %p10047_p7, %p10046_p6 }
   0xe   : > { %p10049_p9 = pneg %p10048_p8 }
  0x10   : > { %p10056_p13 = pnand %p10055_p12, %p10049_p9 }
  0x12   : > { %10059 = shalt.err (!%p10056_p13)
}
  0x13   : > { %s10072_s28 = smov [#allocation2]   ;;  %225 = sbr.rel (%p10123_p2) target bundleno = 2025 (0x7e9), region = 44 }
  0x14   : > { %9993 = dma.vmem_to_smem (!%p9991_p5), %s205_s25, 16, %s10072_s28, [#allocation3]  }
  0x18   : > { %10065 = dma.done.wait (%p9994_p3), [#allocation3], 16  }
  0x19   : > { %10067 = vsyncadd (%p9994_p3), [#allocation3], 4294967280 }
  0x1a   : > { %231 = sfence }
  0x1b   : > { %v9296_v0 = vld [vmem:[%s17623_s1 + $0x780] sm:$0xff]  ;;  %v9297_v2 = vld [vmem:[%s17623_s1 + $0x788] sm:$0xff]  ;;  %p255_p0 = scmp.lt.s32.totalorder %s10116_s22, 1  ;;  %v17629_v8 = vmov 0   ;;  %vm582_vm0 = vsmask.f32 7424 }
  0x1c   : > { %v9304_v1 = vld [vmem:[%s17623_s1 + $0x7c0] sm:$0xff]  ;;  %v9305_v4 = vld [vmem:[%s17623_s1 + $0x7c8] sm:$0xff]  ;;  %1331 = vmatprep.mubr.bf16.mxu0 %v17629_v8  ;;  %1444 = vmatprep.mubr.bf16.mxu1 %v17629_v8  ;;  %vm3888_vm1 = vcmask 1046528   ;;  %s10074_s19 = smov 127   ;;  %s8706_s16 = sld [smem:[#allocation2]] }
  0x1d   : > { %v9434_v3 = vcombine.high %v9296_v0, %v9304_v1  ;;  %v9433_v5 = vcombine.low %v9296_v0, %v9304_v1  ;;  %v9280_v6 = vld [vmem:[%s17623_s1 + $0x700] sm:$0xff]  ;;  %v9436_v9 = vcombine.high %v9297_v2, %v9305_v4  ;;  %v9435_v10 = vcombine.low %v9297_v2, %v9305_v4  ;;  %v9281_v12 = vld [vmem:[%s17623_s1 + $0x708] sm:$0xff]  ;;  %s19761_s22 = smov (!%p255_p0, %s10116_s22), 1  ;;  %s9978_s17 = sld [smem:[#allocation2 + $0x1]] }
  0x1e   : > { %v9288_v7 = vld [vmem:[%s17623_s1 + $0x740] sm:$0xff]  ;;  %v9289_v13 = vld [vmem:[%s17623_s1 + $0x748] sm:$0xff]  ;;  %s9981_s11 = smul.u32 68, %s19761_s22  ;;  %s9183_s20 = sshll.u32 %s19761_s22, 3 }
  0x1f   : > { %v9418_v11 = vcombine.high %v9280_v6, %v9288_v7  ;;  %v9264_v14 = vld [vmem:[%s17623_s1 + $0x680] sm:$0xff]  ;;  %1299 = vmatprep.subr.bf16.mxu0 %v9434_v3  ;;  %v9420_v15 = vcombine.high %v9281_v12, %v9289_v13  ;;  %v9265_v17 = vld [vmem:[%s17623_s1 + $0x688] sm:$0xff]  ;;  %1412 = vmatprep.subr.bf16.mxu1 %v9436_v9  ;;  %v9417_v19 = vcombine.low %v9280_v6, %v9288_v7  ;;  %v9298_v7 = vld [vmem:[%s17623_s1 + $0x790] sm:$0xff]  ;;  %s263_s28 = scalar_lea.vmem %s17628_s6, %s9183_s20 }
  0x20   : > { %v9272_v16 = vld [vmem:[%s17623_s1 + $0x6c0] sm:$0xff]  ;;  %v9273_v18 = vld [vmem:[%s17623_s1 + $0x6c8] sm:$0xff]  ;;  %1300 = vmatpush1.bf16.msra.mxu0 %v9433_v5  ;;  %1413 = vmatpush1.bf16.msra.mxu1 %v9435_v10  ;;  %v9419_v20 = vcombine.low %v9281_v12, %v9289_v13  ;;  %s10207_s26 = scalar_lea.vmem %s17622_s0, %s9981_s11  ;;  %v9306_v9 = vld [vmem:[%s17623_s1 + $0x7d0] sm:$0xff] }
  0x21   : > { %1301 = vmatprep.subr.bf16.mxu0 %v9418_v11  ;;  %v9402_v21 = vcombine.high %v9264_v14, %v9272_v16  ;;  %1414 = vmatprep.subr.bf16.mxu1 %v9420_v15  ;;  %v9404_v22 = vcombine.high %v9265_v17, %v9273_v18  ;;  %v9248_v23 = vld [vmem:[%s17623_s1 + $0x600] sm:$0xff]  ;;  %v9249_v25 = vld [vmem:[%s17623_s1 + $0x608] sm:$0xff]  ;;  %v9401_v27 = vcombine.low %v9264_v14, %v9272_v16  ;;  %v9299_v10 = vld [vmem:[%s17623_s1 + $0x798] sm:$0xff] }
  0x22   : > { %v9256_v24 = vld [vmem:[%s17623_s1 + $0x640] sm:$0xff]  ;;  %v9257_v26 = vld [vmem:[%s17623_s1 + $0x648] sm:$0xff]  ;;  %v9403_v28 = vcombine.low %v9265_v17, %v9273_v18  ;;  %v9307_v11 = vld [vmem:[%s17623_s1 + $0x7d8] sm:$0xff]  ;;  %v9438_v17 = vcombine.high %v9298_v7, %v9306_v9 }
  0x23   : > { %v9386_v29 = vcombine.high %v9248_v23, %v9256_v24  ;;  %v9388_v30 = vcombine.high %v9249_v25, %v9257_v26  ;;  %v9232_v31 = vld [vmem:[%s17623_s1 + $0x580] sm:$0xff]  ;;  %v9233_v33 = vld [vmem:[%s17623_s1 + $0x588] sm:$0xff]  ;;  %v9385_v35 = vcombine.low %v9248_v23, %v9256_v24  ;;  %v9387_v36 = vcombine.low %v9249_v25, %v9257_v26  ;;  %v10268_v15 = vld [vmem:[%s10207_s26 + $0x10] sm:$0xff]  }
  0x24   : > { %1302 = vmatpush1.bf16.msra.mxu0 %v9417_v19  ;;  %1415 = vmatpush1.bf16.msra.mxu1 %v9419_v20  ;;  %v9240_v32 = vld [vmem:[%s17623_s1 + $0x5c0] sm:$0xff]  ;;  %v9241_v34 = vld [vmem:[%s17623_s1 + $0x5c8] sm:$0xff]  ;;  %v9440_v18 = vcombine.high %v9299_v10, %v9307_v11  ;;  %v9282_v19 = vld [vmem:[%s17623_s1 + $0x710] sm:$0xff]  ;;  %v599_v24 = vshll.u32 %v10268_v15, 16 }
  0x25   : > { %1303 = vmatprep.subr.bf16.mxu0 %v9402_v21  ;;  %1416 = vmatprep.subr.bf16.mxu1 %v9404_v22  ;;  %v9370_v37 = vcombine.high %v9232_v31, %v9240_v32  ;;  %v265_v38 = vld [vmem:[%s10207_s26] sm:$0xf]  ;;  %v266_v39 = vld [vmem:[%s10207_s26 + $0x4] sm:$0xf]  ;;  %v9372_v40 = vcombine.high %v9233_v33, %v9241_v34  ;;  %v9217_v43 = vld [vmem:[%s17623_s1 + $0x508] sm:$0xff]  ;;  %v9369_v45 = vcombine.low %v9232_v31, %v9240_v32 }
  0x26   : > { %v9216_v41 = vld [vmem:[%s17623_s1 + $0x500] sm:$0xff]  ;;  %v9225_v44 = vld [vmem:[%s17623_s1 + $0x548] sm:$0xff]  ;;  %v10226_v46 = vcombine.low %v265_v38, %v266_v39  ;;  %v9371_v47 = vcombine.low %v9233_v33, %v9241_v34  ;;  %v9290_v20 = vld [vmem:[%s17623_s1 + $0x750] sm:$0xff]  ;;  %v9437_v22 = vcombine.low %v9298_v7, %v9306_v9 }
  0x27   : > { %v9224_v42 = vld [vmem:[%s17623_s1 + $0x540] sm:$0xff]  ;;  %v9356_v49 = vcombine.high %v9217_v43, %v9225_v44  ;;  %v9201_v52 = vld [vmem:[%s17623_s1 + $0x488] sm:$0xff]  ;;  %v9355_v57 = vcombine.low %v9217_v43, %v9225_v44  ;;  %v9283_v25 = vld [vmem:[%s17623_s1 + $0x718] sm:$0xff]  ;;  %v603_v44 = vshrl.u32 %v10268_v15, 16 }
  0x28   : > { %1304 = vmatpush1.bf16.msra.mxu0 %v9401_v27  ;;  %1417 = vmatpush1.bf16.msra.mxu1 %v9403_v28  ;;  %v9354_v48 = vcombine.high %v9216_v41, %v9224_v42  ;;  %v9200_v50 = vld [vmem:[%s17623_s1 + $0x480] sm:$0xff]  ;;  %v9209_v53 = vld [vmem:[%s17623_s1 + $0x4c8] sm:$0xff]  ;;  %v9353_v54 = vcombine.low %v9216_v41, %v9224_v42  ;;  %v586_v56 = vshll.u32 %v10226_v46, 16  ;;  %v584_v0 = vshrl.u32 %v10226_v46, 16  ;;  %v9291_v26 = vld [vmem:[%s17623_s1 + $0x758] sm:$0xff] }
  0x29   : > { %1305 = vmatprep.subr.bf16.mxu0 %v9386_v29  ;;  %1418 = vmatprep.subr.bf16.mxu1 %v9388_v30  ;;  %v9208_v51 = vld [vmem:[%s17623_s1 + $0x4c0] sm:$0xff]  ;;  %v10008_v55 = vld [vmem:[%s10207_s26 + $0x8] sm:$0xff]   ;;  %v9340_v59 = vcombine.high %v9201_v52, %v9209_v53  ;;  %v9339_v4 = vcombine.low %v9201_v52, %v9209_v53  ;;  %v9439_v27 = vcombine.low %v9299_v10, %v9307_v11  ;;  %v9266_v29 = vld [vmem:[%s17623_s1 + $0x690] sm:$0xff] }
  0x2a   : > { %v9338_v58 = vcombine.high %v9200_v50, %v9208_v51  ;;  %v9184_v60 = vld [vmem:[%s17623_s1 + $0x400] sm:$0xff]  ;;  %v9185_v62 = vld [vmem:[%s17623_s1 + $0x408] sm:$0xff]  ;;  %v9337_v1 = vcombine.low %v9200_v50, %v9208_v51  ;;  %v588_v2 = vrot.slane %v586_v56, 1  ;;  %v591_v3 = vshll.u32 %v10008_v55, 16  ;;  %v9274_v30 = vld [vmem:[%s17623_s1 + $0x6d0] sm:$0xff] }
  0x2b   : > { %v9192_v61 = vld [vmem:[%s17623_s1 + $0x440] sm:$0xff]  ;;  %v9193_v63 = vld [vmem:[%s17623_s1 + $0x448] sm:$0xff]  ;;  %v595_v23 = vshrl.u32 %v10008_v55, 16  ;;  %v9422_v28 = vcombine.high %v9282_v19, %v9290_v20  ;;  %v9424_v31 = vcombine.high %v9283_v25, %v9291_v26  ;;  %v9267_v32 = vld [vmem:[%s17623_s1 + $0x698] sm:$0xff]  ;;  %v9423_v38 = vcombine.low %v9283_v25, %v9291_v26 }
  0x2c   : > { %1306 = vmatpush1.bf16.msra.mxu0 %v9385_v35  ;;  %1419 = vmatpush1.bf16.msra.mxu1 %v9387_v36  ;;  %v9322_v5 = vcombine.high %v9184_v60, %v9192_v61  ;;  %v9324_v6 = vcombine.high %v9185_v62, %v9193_v63  ;;  %v9321_v12 = vcombine.low %v9184_v60, %v9192_v61  ;;  %v593_v14 = vrot.slane %v591_v3, 1  ;;  %v9275_v33 = vld [vmem:[%s17623_s1 + $0x6d8] sm:$0xff]  ;;  %v9250_v41 = vld [vmem:[%s17623_s1 + $0x610] sm:$0xff]  ;;  %v10323_v50 = vld [vmem:[%s10207_s26 + $0x20] sm:$0xff]  }
  0x2d   : > { %1307 = vmatprep.subr.bf16.mxu0 %v9370_v37  ;;  %1420 = vmatprep.subr.bf16.mxu1 %v9372_v40  ;;  %v589_v13 = vor.u32 %v588_v2, %v584_v0  ;;  %v9323_v16 = vcombine.low %v9185_v62, %v9193_v63  ;;  %v601_v35 = vrot.slane %v599_v24, 1  ;;  %v9421_v36 = vcombine.low %v9282_v19, %v9290_v20  ;;  %v10301_v37 = vld [vmem:[%s10207_s26 + $0x18] sm:$0xff]   ;;  %v9258_v42 = vld [vmem:[%s17623_s1 + $0x650] sm:$0xff] }
  0x2e   : > { %v597_v34 = vor.u32 %v595_v23, %v593_v14  ;;  %v9406_v39 = vcombine.high %v9266_v29, %v9274_v30  ;;  %v9408_v40 = vcombine.high %v9267_v32, %v9275_v33  ;;  %v9407_v51 = vcombine.low %v9267_v32, %v9275_v33  ;;  %v9234_v53 = vld [vmem:[%s17623_s1 + $0x590] sm:$0xff]  ;;  %v9243_v60 = vld [vmem:[%s17623_s1 + $0x5d8] sm:$0xff] }
  0x2f   : > { %v10277_v21 = vsel %vm582_vm0, %v589_v13, %v593_v14  ;;  %v9390_v52 = vcombine.high %v9250_v41, %v9258_v42  ;;  %v605_v56 = vor.u32 %v603_v44, %v601_v35  ;;  %v615_v61 = vshll.u32 %v10323_v50, 16  ;;  %v9218_v63 = vld [vmem:[%s17623_s1 + $0x510] sm:$0xff]  ;;  %v9219_v3 = vld [vmem:[%s17623_s1 + $0x518] sm:$0xff] }
  0x30   : > { %1308 = vmatpush1.bf16.msra.mxu0 %v9369_v45  ;;  %1421 = vmatpush1.bf16.msra.mxu1 %v9371_v47  ;;  %v10312_v43 = vsel %vm582_vm0, %v597_v34, %v601_v35  ;;  %v607_v45 = vshll.u32 %v10301_v37, 16  ;;  %v9251_v47 = vld [vmem:[%s17623_s1 + $0x618] sm:$0xff]  ;;  %v9389_v62 = vcombine.low %v9250_v41, %v9258_v42  ;;  %v9226_v0 = vld [vmem:[%s17623_s1 + $0x550] sm:$0xff]  ;;  %v10395_v35 = vld [vmem:[%s17623_s1 + $0x7a0] sm:$0xff] }
  0x31   : > { %1309 = vmatprep.subr.bf16.mxu0 %v9354_v48  ;;  %1422 = vmatprep.subr.bf16.mxu1 %v9356_v49  ;;  %v9259_v48 = vld [vmem:[%s17623_s1 + $0x658] sm:$0xff]  ;;  %v9405_v49 = vcombine.low %v9266_v29, %v9274_v30  ;;  %v9358_v10 = vcombine.high %v9218_v63, %v9226_v0  ;;  %v9210_v13 = vld [vmem:[%s17623_s1 + $0x4d0] sm:$0xff]  ;;  %v617_v15 = vrot.slane %v615_v61, 1  ;;  %v9357_v19 = vcombine.low %v9218_v63, %v9226_v0  ;;  %v10413_v41 = vld [vmem:[%s17623_s1 + $0x7e8] sm:$0xff] }
  0x32   : > { %v9392_v55 = vcombine.high %v9251_v47, %v9259_v48  ;;  %v9186_v24 = vld [vmem:[%s17623_s1 + $0x410] sm:$0xff]  ;;  %v9187_v29 = vld [vmem:[%s17623_s1 + $0x418] sm:$0xff] }
  0x33   : > { %v9194_v25 = vld [vmem:[%s17623_s1 + $0x450] sm:$0xff]  ;;  %v9195_v30 = vld [vmem:[%s17623_s1 + $0x458] sm:$0xff] }
  0x34   : > { %1310 = vmatpush1.bf16.msra.mxu0 %v9353_v54  ;;  %1423 = vmatpush1.bf16.msra.mxu1 %v9355_v57  ;;  %v9242_v54 = vld [vmem:[%s17623_s1 + $0x5d0] sm:$0xff]  ;;  %v609_v57 = vrot.slane %v607_v45, 1  ;;  %v9326_v33 = vcombine.high %v9186_v24, %v9194_v25  ;;  %v9328_v34 = vcombine.high %v9187_v29, %v9195_v30  ;;  %v9325_v42 = vcombine.low %v9186_v24, %v9194_v25  ;;  %v9261_v24 = vld [vmem:[%s17623_s1 + $0x668] sm:$0xff] }
  0x35   : > { %1311 = vmatprep.subr.bf16.mxu0 %v9338_v58  ;;  %1424 = vmatprep.subr.bf16.mxu1 %v9340_v59  ;;  %v611_v58 = vshrl.u32 %v10301_v37, 16  ;;  %v9235_v59 = vld [vmem:[%s17623_s1 + $0x598] sm:$0xff]  ;;  %v9374_v2 = vcombine.high %v9234_v53, %v9242_v54  ;;  %v9373_v7 = vcombine.low %v9234_v53, %v9242_v54  ;;  %v9327_v44 = vcombine.low %v9187_v29, %v9195_v30  ;;  %v9236_v30 = vld [vmem:[%s17623_s1 + $0x5a0] sm:$0xff] }
  0x36   : > { %v9375_v9 = vcombine.low %v9235_v59, %v9243_v60  ;;  %v10014_v53 = vld [vmem:[%s10207_s26 + $0x38] sm:$0xff]  }
  0x37   : > { %v613_v14 = vor.u32 %v611_v58, %v609_v57  ;;  %v643_v61 = vshrl.u32 %v10014_v53, 16 }
  0x38   : > { %1312 = vmatpush1.bf16.msra.mxu0 %v9337_v1  ;;  %1425 = vmatpush1.bf16.msra.mxu1 %v9339_v4  ;;  %v9391_v1 = vcombine.low %v9251_v47, %v9259_v48  ;;  %v9227_v4 = vld [vmem:[%s17623_s1 + $0x558] sm:$0xff] }
  0x39   : > { %1313 = vmatprep.subr.bf16.mxu0 %v9322_v5  ;;  %1426 = vmatprep.subr.bf16.mxu1 %v9324_v6  ;;  %v9376_v5 = vcombine.high %v9235_v59, %v9243_v60  ;;  %v10356_v6 = vsel %vm582_vm0, %v605_v56, %v609_v57  ;;  %v9360_v11 = vcombine.high %v9219_v3, %v9227_v4  ;;  %v639_v56 = vshll.u32 %v10014_v53, 16  ;;  %v10015_v59 = vld [vmem:[%s10207_s26 + $0x40] ss:$0 sps:$4 sm:$0x11]  }
  0x3a   : > { %v9359_v20 = vcombine.low %v9219_v3, %v9227_v4  ;;  %v10382_v26 = vsel %vm582_vm0, %v613_v14, %v617_v15  ;;  %v9292_v3 = vld [vmem:[%s17623_s1 + $0x760] sm:$0xff]  ;;  %v9269_v14 = vld [vmem:[%s17623_s1 + $0x6a8] sm:$0xff] }
  0x3b   : > { %v641_v58 = vrot.slane %v639_v56, 1 }
  0x3c   : > { %1314 = vmatpush1.bf16.msra.mxu0 %v9321_v12  ;;  %1427 = vmatpush1.bf16.msra.mxu1 %v9323_v16  ;;  %v9202_v12 = vld [vmem:[%s17623_s1 + $0x490] sm:$0xff]  ;;  %v10012_v16 = vld [vmem:[%s10207_s26 + $0x28] sm:$0xff]  }
  0x3d   : > { %1525 = vmatprep.subr.bf16.mxu0 %v9438_v17  ;;  %1638 = vmatprep.subr.bf16.mxu1 %v9440_v18  ;;  %v9203_v17 = vld [vmem:[%s17623_s1 + $0x498] sm:$0xff]  ;;  %v645_v63 = vor.u32 %v643_v61, %v641_v58  ;;  %v9189_v61 = vld [vmem:[%s17623_s1 + $0x428] sm:$0xff] }
  0x3e   : > { %v9211_v18 = vld [vmem:[%s17623_s1 + $0x4d8] sm:$0xff] }
  0x3f   : > { %1332 = vmatmul.mubr.bf16.vlgmr.msra.gmra.mxu0 %v10277_v21  ;;  %1445 = vmatmul.mubr.bf16.vlgmr.msra.gmra.mxu1 %v10277_v21  ;;  %v9344_v23 = vcombine.high %v9203_v17, %v9211_v18  ;;  %v9343_v32 = vcombine.low %v9203_v17, %v9211_v18 }
  0x40   : > { %1526 = vmatpush1.bf16.msra.mxu0 %v9437_v22  ;;  %1639 = vmatpush1.bf16.msra.mxu1 %v9439_v27  ;;  %v9342_v22 = vcombine.high %v9202_v12, %v9210_v13  ;;  %v619_v27 = vshrl.u32 %v10323_v50, 16 }
  0x41   : > { %1341 = vmatprep.mubr.bf16.mxu0 %v17629_v8  ;;  %1454 = vmatprep.mubr.bf16.mxu1 %v17629_v8 }
  0x42   : > { %1527 = vmatprep.subr.bf16.mxu0 %v9422_v28  ;;  %1640 = vmatprep.subr.bf16.mxu1 %v9424_v31  ;;  %v623_v28 = vshll.u32 %v10012_v16, 16  ;;  %v9341_v31 = vcombine.low %v9202_v12, %v9210_v13  ;;  %v621_v37 = vor.u32 %v619_v27, %v617_v15  ;;  %v9276_v12 = vld [vmem:[%s17623_s1 + $0x6e0] sm:$0xff]  ;;  %v9277_v15 = vld [vmem:[%s17623_s1 + $0x6e8] sm:$0xff] }
  0x43   : > { %v9411_v27 = vcombine.low %v9269_v14, %v9277_v15 }
  0x44   : > { %1528 = vmatpush1.bf16.msra.mxu0 %v9421_v36  ;;  %1641 = vmatpush1.bf16.msra.mxu1 %v9423_v38  ;;  %v10400_v36 = vld [vmem:[%s17623_s1 + $0x7e0] sm:$0xff]  ;;  %v625_v38 = vrot.slane %v623_v28, 1 }
  0x45   : > { %1529 = vmatprep.subr.bf16.mxu0 %v9406_v39  ;;  %1642 = vmatprep.subr.bf16.mxu1 %v9408_v40  ;;  %v10013_v39 = vld [vmem:[%s10207_s26 + $0x30] sm:$0xff]   ;;  %v10408_v40 = vld [vmem:[%s17623_s1 + $0x7a8] sm:$0xff]  ;;  %v9442_v45 = vcombine.high %v10395_v35, %v10400_v36  ;;  %v9441_v4 = vcombine.low %v10395_v35, %v10400_v36 }
  0x46   : > { %v9444_v47 = vcombine.high %v10408_v40, %v10413_v41  ;;  %v10421_v48 = vsel %vm582_vm0, %v621_v37, %v625_v38  ;;  %v631_v50 = vshll.u32 %v10013_v39, 16 }
  0x47   : > { %1342 = vmatmul.mubr.bf16.gmra.mxu0 %v10312_v43  ;;  %1455 = vmatmul.mubr.bf16.gmra.mxu1 %v10312_v43 }
  0x48   : > { %1351 = vmatprep.mubr.bf16.mxu0 %v17629_v8  ;;  %1464 = vmatprep.mubr.bf16.mxu1 %v17629_v8 }
  0x49   : > { %1530 = vmatpush1.bf16.msra.mxu0 %v9405_v49  ;;  %1643 = vmatpush1.bf16.msra.mxu1 %v9407_v51  ;;  %v627_v49 = vshrl.u32 %v10012_v16, 16 }
  0x4a   : > { %1531 = vmatprep.subr.bf16.mxu0 %v9390_v52  ;;  %1644 = vmatprep.subr.bf16.mxu1 %v9392_v55  ;;  %v633_v52 = vrot.slane %v631_v50, 1  ;;  %v635_v55 = vshrl.u32 %v10013_v39, 16  ;;  %v9228_v39 = vld [vmem:[%s17623_s1 + $0x560] sm:$0xff] }
  0x4b   : > { %v629_v51 = vor.u32 %v627_v49, %v625_v38  ;;  %v9220_v38 = vld [vmem:[%s17623_s1 + $0x520] sm:$0xff] }
  0x4c   : > { %v637_v57 = vor.u32 %v635_v55, %v633_v52  ;;  %v9204_v49 = vld [vmem:[%s17623_s1 + $0x4a0] sm:$0xff]  ;;  %v9361_v53 = vcombine.low %v9220_v38, %v9228_v39 }
  0x4d   : > { %1532 = vmatpush1.bf16.msra.mxu0 %v9389_v62  ;;  %1645 = vmatpush1.bf16.msra.mxu1 %v9391_v1  ;;  %v10429_v54 = vsel %vm582_vm0, %v629_v51, %v633_v52  ;;  %v647_v62 = vshll.u32 %v10015_v59, 16  ;;  %v9212_v50 = vld [vmem:[%s17623_s1 + $0x4e0] sm:$0xff]  ;;  %v9205_v51 = vld [vmem:[%s17623_s1 + $0x4a8] sm:$0xff] }
  0x4e   : > { %1533 = vmatprep.subr.bf16.mxu0 %v9374_v2  ;;  %1646 = vmatprep.subr.bf16.mxu1 %v9376_v5  ;;  %v10437_v60 = vsel %vm582_vm0, %v637_v57, %v641_v58  ;;  %v9284_v2 = vld [vmem:[%s17623_s1 + $0x720] sm:$0xff]  ;;  %v9285_v5 = vld [vmem:[%s17623_s1 + $0x728] sm:$0xff]  ;;  %v9346_v56 = vcombine.high %v9204_v49, %v9212_v50 }
  0x4f   : > { %1352 = vmatmul.mubr.bf16.gmra.mxu0 %v10356_v6  ;;  %1465 = vmatmul.mubr.bf16.gmra.mxu1 %v10356_v6  ;;  %v649_v0 = vrot.slane %v647_v62, 1  ;;  %v9425_v16 = vcombine.low %v9284_v2, %v9292_v3  ;;  %v9213_v52 = vld [vmem:[%s17623_s1 + $0x4e8] sm:$0xff]  ;;  %v9188_v58 = vld [vmem:[%s17623_s1 + $0x420] sm:$0xff] }
  0x50   : > { %1361 = vmatprep.mubr.bf16.mxu0 %v17629_v8  ;;  %1474 = vmatprep.mubr.bf16.mxu1 %v17629_v8  ;;  %v9348_v57 = vcombine.high %v9205_v51, %v9213_v52  ;;  %v9196_v59 = vld [vmem:[%s17623_s1 + $0x460] sm:$0xff]  ;;  %v9197_v62 = vld [vmem:[%s17623_s1 + $0x468] sm:$0xff] }
  0x51   : > { %1534 = vmatpush1.bf16.msra.mxu0 %v9373_v7  ;;  %1647 = vmatpush1.bf16.msra.mxu1 %v9375_v9  ;;  %v10444_v1 = vsel %vm582_vm0, %v645_v63, %v649_v0  ;;  %v9293_v7 = vld [vmem:[%s17623_s1 + $0x768] sm:$0xff]  ;;  %v9443_v9 = vcombine.low %v10408_v40, %v10413_v41  ;;  %v9345_v63 = vcombine.low %v9204_v49, %v9212_v50 }
  0x52   : > { %1535 = vmatprep.subr.bf16.mxu0 %v9358_v10  ;;  %1648 = vmatprep.subr.bf16.mxu1 %v9360_v11  ;;  %v9426_v10 = vcombine.high %v9284_v2, %v9292_v3  ;;  %v9268_v11 = vld [vmem:[%s17623_s1 + $0x6a0] sm:$0xff]  ;;  %v9428_v13 = vcombine.high %v9285_v5, %v9293_v7  ;;  %v9427_v17 = vcombine.low %v9285_v5, %v9293_v7  ;;  %v9221_v40 = vld [vmem:[%s17623_s1 + $0x528] sm:$0xff]  ;;  %v9310_v5 = vld [vmem:[%s17623_s1 + $0x7f0] sm:$0xff] }
  0x53   : > { %v9410_v18 = vcombine.high %v9268_v11, %v9276_v12  ;;  %v9409_v25 = vcombine.low %v9268_v11, %v9276_v12  ;;  %v9229_v41 = vld [vmem:[%s17623_s1 + $0x568] sm:$0xff]  ;;  %v9347_v0 = vcombine.low %v9205_v51, %v9213_v52  ;;  %v9330_v2 = vcombine.high %v9188_v58, %v9196_v59  ;;  %v9303_v7 = vld [vmem:[%s17623_s1 + $0x7b8] sm:$0xff]  ;;  %v9222_v51 = vld [vmem:[%s17623_s1 + $0x530] sm:$0xff] }
  0x54   : > { %v9363_v55 = vcombine.low %v9221_v40, %v9229_v41  ;;  %v9332_v3 = vcombine.high %v9189_v61, %v9197_v62  ;;  %v9331_v11 = vcombine.low %v9189_v61, %v9197_v62  ;;  %v9230_v52 = vld [vmem:[%s17623_s1 + $0x570] sm:$0xff] }
  0x55   : > { %1536 = vmatpush1.bf16.msra.mxu0 %v9357_v19  ;;  %1649 = vmatpush1.bf16.msra.mxu1 %v9359_v20  ;;  %v9412_v19 = vcombine.high %v9269_v14, %v9277_v15  ;;  %v9252_v20 = vld [vmem:[%s17623_s1 + $0x620] sm:$0xff]  ;;  %v9286_v14 = vld [vmem:[%s17623_s1 + $0x730] sm:$0xff] }
  0x56   : > { %1537 = vmatprep.subr.bf16.mxu0 %v9342_v22  ;;  %1650 = vmatprep.subr.bf16.mxu1 %v9344_v23  ;;  %v9260_v22 = vld [vmem:[%s17623_s1 + $0x660] sm:$0xff]  ;;  %v9253_v23 = vld [vmem:[%s17623_s1 + $0x628] sm:$0xff]  ;;  %v9294_v15 = vld [vmem:[%s17623_s1 + $0x770] sm:$0xff] }
  0x57   : > { %1362 = vmatmul.mubr.bf16.gmra.mxu0 %v10382_v26  ;;  %1475 = vmatmul.mubr.bf16.gmra.mxu1 %v10382_v26  ;;  %v9394_v28 = vcombine.high %v9252_v20, %v9260_v22  ;;  %v9396_v29 = vcombine.high %v9253_v23, %v9261_v24  ;;  %v9395_v35 = vcombine.low %v9253_v23, %v9261_v24  ;;  %v9278_v23 = vld [vmem:[%s17623_s1 + $0x6f0] sm:$0xff] }
  0x58   : > { %1371 = vmatprep.mubr.bf16.mxu0 %v17629_v8  ;;  %1484 = vmatprep.mubr.bf16.mxu1 %v17629_v8  ;;  %v9206_v61 = vld [vmem:[%s17623_s1 + $0x4b0] sm:$0xff] }
  0x59   : > { %1538 = vmatpush1.bf16.msra.mxu0 %v9341_v31  ;;  %1651 = vmatpush1.bf16.msra.mxu1 %v9343_v32  ;;  %v9244_v31 = vld [vmem:[%s17623_s1 + $0x5e0] sm:$0xff]  ;;  %v9237_v32 = vld [vmem:[%s17623_s1 + $0x5a8] sm:$0xff]  ;;  %v9214_v62 = vld [vmem:[%s17623_s1 + $0x4f0] sm:$0xff] }
  0x5a   : > { %1539 = vmatprep.subr.bf16.mxu0 %v9326_v33  ;;  %1652 = vmatprep.subr.bf16.mxu1 %v9328_v34  ;;  %v9245_v33 = vld [vmem:[%s17623_s1 + $0x5e8] sm:$0xff]  ;;  %v9393_v34 = vcombine.low %v9252_v20, %v9260_v22  ;;  %v9378_v36 = vcombine.high %v9236_v30, %v9244_v31  ;;  %v9430_v20 = vcombine.high %v9286_v14, %v9294_v15  ;;  %v9270_v22 = vld [vmem:[%s17623_s1 + $0x6b0] sm:$0xff] }
  0x5b   : > { %v9380_v37 = vcombine.high %v9237_v32, %v9245_v33 }
  0x5d   : > { %1540 = vmatpush1.bf16.msra.mxu0 %v9325_v42  ;;  %1653 = vmatpush1.bf16.msra.mxu1 %v9327_v44  ;;  %v9377_v42 = vcombine.low %v9236_v30, %v9244_v31  ;;  %v9379_v44 = vcombine.low %v9237_v32, %v9245_v33  ;;  %v9414_v30 = vcombine.high %v9270_v22, %v9278_v23  ;;  %v9254_v32 = vld [vmem:[%s17623_s1 + $0x630] sm:$0xff] }
  0x5e   : > { %1751 = vmatprep.subr.bf16.mxu0 %v9442_v45  ;;  %1864 = vmatprep.subr.bf16.mxu1 %v9444_v47  ;;  %v9362_v45 = vcombine.high %v9220_v38, %v9228_v39  ;;  %v9364_v47 = vcombine.high %v9221_v40, %v9229_v41  ;;  %v9262_v33 = vld [vmem:[%s17623_s1 + $0x670] sm:$0xff] }
  0x5f   : > { %1372 = vmatmul.mubr.bf16.gmra.mxu0 %v10421_v48  ;;  %1485 = vmatmul.mubr.bf16.gmra.mxu1 %v10421_v48  ;;  %v9398_v38 = vcombine.high %v9254_v32, %v9262_v33  ;;  %v9238_v40 = vld [vmem:[%s17623_s1 + $0x5b0] sm:$0xff] }
  0x60   : > { %1381 = vmatprep.mubr.bf16.mxu0 %v17629_v8  ;;  %1494 = vmatprep.mubr.bf16.mxu1 %v17629_v8  ;;  %v9246_v41 = vld [vmem:[%s17623_s1 + $0x5f0] sm:$0xff] }
  0x61   : > { %v9382_v49 = vcombine.high %v9238_v40, %v9246_v41 }
  0x67   : > { %1382 = vmatmul.mubr.bf16.gmra.mxu0 %v10429_v54  ;;  %1495 = vmatmul.mubr.bf16.gmra.mxu1 %v10429_v54 }
  0x68   : > { %1391 = vmatprep.mubr.bf16.mxu0 %v17629_v8  ;;  %1504 = vmatprep.mubr.bf16.mxu1 %v17629_v8 }
  0x6f   : > { %1392 = vmatmul.mubr.bf16.gmra.mxu0 %v10437_v60  ;;  %1505 = vmatmul.mubr.bf16.gmra.mxu1 %v10437_v60 }
  0x70   : > { %1401 = vmatprep.mubr.bf16.mxu0 %v17629_v8  ;;  %1514 = vmatprep.mubr.bf16.mxu1 %v17629_v8 }
  0x77   : > { %1402 = vmatmul.mubr.bf16.gmra.mxu0 %v10444_v1  ;;  %1515 = vmatmul.mubr.bf16.gmra.mxu1 %v10444_v1 }
  0x78   : > { %1557 = vmatprep.mubr.bf16.mxu0 %v17629_v8  ;;  %1670 = vmatprep.mubr.bf16.mxu1 %v17629_v8 }
  0x7f   : > { %1558 = vmatmul.mubr.bf16.vlgmr.msra.gmra.mxu0 %v10277_v21  ;;  %1671 = vmatmul.mubr.bf16.vlgmr.msra.gmra.mxu1 %v10277_v21 }
  0x80   : > { %1752 = vmatpush1.bf16.msra.mxu0 %v9441_v4  ;;  %1865 = vmatpush1.bf16.msra.mxu1 %v9443_v9  ;;  %v9302_v4 = vld [vmem:[%s17623_s1 + $0x7b0] sm:$0xff]  ;;  %v9311_v9 = vld [vmem:[%s17623_s1 + $0x7f8] sm:$0xff] }
  0x81   : > { %1567 = vmatprep.mubr.bf16.mxu0 %v17629_v8  ;;  %1680 = vmatprep.mubr.bf16.mxu1 %v17629_v8  ;;  %v9446_v12 = vcombine.high %v9302_v4, %v9310_v5 }
  0x82   : > { %1753 = vmatprep.subr.bf16.mxu0 %v9426_v10  ;;  %1866 = vmatprep.subr.bf16.mxu1 %v9428_v13  ;;  %v9329_v10 = vcombine.low %v9188_v58, %v9196_v59  ;;  %v9448_v13 = vcombine.high %v9303_v7, %v9311_v9  ;;  %v9366_v58 = vcombine.high %v9222_v51, %v9230_v52 }
  0x84   : > { %1754 = vmatpush1.bf16.msra.mxu0 %v9425_v16  ;;  %1867 = vmatpush1.bf16.msra.mxu1 %v9427_v17  ;;  %v9445_v16 = vcombine.low %v9302_v4, %v9310_v5  ;;  %v9287_v17 = vld [vmem:[%s17623_s1 + $0x738] sm:$0xff]  ;;  %v9350_v4 = vcombine.high %v9206_v61, %v9214_v62 }
  0x85   : > { %1755 = vmatprep.subr.bf16.mxu0 %v9410_v18  ;;  %1868 = vmatprep.subr.bf16.mxu1 %v9412_v19  ;;  %v9295_v18 = vld [vmem:[%s17623_s1 + $0x778] sm:$0xff]  ;;  %v9447_v19 = vcombine.low %v9303_v7, %v9311_v9  ;;  %v9190_v7 = vld [vmem:[%s17623_s1 + $0x430] sm:$0xff] }
  0x86   : > { %v9432_v24 = vcombine.high %v9287_v17, %v9295_v18  ;;  %v9198_v9 = vld [vmem:[%s17623_s1 + $0x470] sm:$0xff] }
  0x87   : > { %1568 = vmatmul.mubr.bf16.gmra.mxu0 %v10312_v43  ;;  %1681 = vmatmul.mubr.bf16.gmra.mxu1 %v10312_v43 }
  0x88   : > { %1577 = vmatprep.mubr.bf16.mxu0 %v17629_v8  ;;  %1690 = vmatprep.mubr.bf16.mxu1 %v17629_v8 }
  0x89   : > { %1756 = vmatpush1.bf16.msra.mxu0 %v9409_v25  ;;  %1869 = vmatpush1.bf16.msra.mxu1 %v9411_v27  ;;  %v9271_v25 = vld [vmem:[%s17623_s1 + $0x6b8] sm:$0xff] }
  0x8a   : > { %1757 = vmatprep.subr.bf16.mxu0 %v9394_v28  ;;  %1870 = vmatprep.subr.bf16.mxu1 %v9396_v29  ;;  %v9279_v27 = vld [vmem:[%s17623_s1 + $0x6f8] sm:$0xff]  ;;  %v9429_v28 = vcombine.low %v9286_v14, %v9294_v15  ;;  %v9431_v29 = vcombine.low %v9287_v17, %v9295_v18  ;;  %v9334_v14 = vcombine.high %v9190_v7, %v9198_v9  ;;  %v401_v17 = vld [vmem:[%s17623_s1 + $0x3c0] sm:$0xff]  ;;  %v394_v18 = vld [vmem:[%s17623_s1 + $0x388] sm:$0xff] }
  0x8b   : > { %v9416_v31 = vcombine.high %v9271_v25, %v9279_v27 }
  0x8d   : > { %1758 = vmatpush1.bf16.msra.mxu0 %v9393_v34  ;;  %1871 = vmatpush1.bf16.msra.mxu1 %v9395_v35  ;;  %v9255_v34 = vld [vmem:[%s17623_s1 + $0x638] sm:$0xff] }
  0x8e   : > { %1759 = vmatprep.subr.bf16.mxu0 %v9378_v36  ;;  %1872 = vmatprep.subr.bf16.mxu1 %v9380_v37  ;;  %v9263_v35 = vld [vmem:[%s17623_s1 + $0x678] sm:$0xff]  ;;  %v9413_v36 = vcombine.low %v9270_v22, %v9278_v23  ;;  %v9415_v37 = vcombine.low %v9271_v25, %v9279_v27  ;;  %v377_v25 = vld [vmem:[%s17623_s1 + $0x300] sm:$0xff] }
  0x8f   : > { %1578 = vmatmul.mubr.bf16.gmra.mxu0 %v10356_v6  ;;  %1691 = vmatmul.mubr.bf16.gmra.mxu1 %v10356_v6  ;;  %v9400_v39 = vcombine.high %v9255_v34, %v9263_v35  ;;  %v385_v27 = vld [vmem:[%s17623_s1 + $0x340] sm:$0xff] }
  0x90   : > { %1587 = vmatprep.mubr.bf16.mxu0 %v17629_v8  ;;  %1700 = vmatprep.mubr.bf16.mxu1 %v17629_v8 }
  0x91   : > { %1760 = vmatpush1.bf16.msra.mxu0 %v9377_v42  ;;  %1873 = vmatpush1.bf16.msra.mxu1 %v9379_v44  ;;  %v9239_v42 = vld [vmem:[%s17623_s1 + $0x5b8] sm:$0xff] }
  0x92   : > { %1761 = vmatprep.subr.bf16.mxu0 %v9362_v45  ;;  %1874 = vmatprep.subr.bf16.mxu1 %v9364_v47  ;;  %v9247_v44 = vld [vmem:[%s17623_s1 + $0x5f8] sm:$0xff]  ;;  %v9397_v45 = vcombine.low %v9254_v32, %v9262_v33  ;;  %v9399_v47 = vcombine.low %v9255_v34, %v9263_v35  ;;  %v9546_v32 = vcombine.high %v377_v25, %v385_v27  ;;  %v361_v33 = vld [vmem:[%s17623_s1 + $0x280] sm:$0xff] }
  0x93   : > { %v9384_v50 = vcombine.high %v9239_v42, %v9247_v44  ;;  %v369_v34 = vld [vmem:[%s17623_s1 + $0x2c0] sm:$0xff] }
  0x95   : > { %1762 = vmatpush1.bf16.msra.mxu0 %v9361_v53  ;;  %1875 = vmatpush1.bf16.msra.mxu1 %v9363_v55  ;;  %v9223_v53 = vld [vmem:[%s17623_s1 + $0x538] sm:$0xff] }
  0x96   : > { %1763 = vmatprep.subr.bf16.mxu0 %v9346_v56  ;;  %1876 = vmatprep.subr.bf16.mxu1 %v9348_v57  ;;  %v9231_v55 = vld [vmem:[%s17623_s1 + $0x578] sm:$0xff]  ;;  %v9381_v56 = vcombine.low %v9238_v40, %v9246_v41  ;;  %v9383_v57 = vcombine.low %v9239_v42, %v9247_v44  ;;  %v9545_v40 = vcombine.low %v377_v25, %v385_v27  ;;  %v297_v27 = vld [vmem:[%s17623_s1 + $0x80] sm:$0xff] }
  0x97   : > { %1588 = vmatmul.mubr.bf16.gmra.mxu0 %v10382_v26  ;;  %1701 = vmatmul.mubr.bf16.gmra.mxu1 %v10382_v26  ;;  %v9368_v59 = vcombine.high %v9223_v53, %v9231_v55  ;;  %v9530_v44 = vcombine.high %v361_v33, %v369_v34 }
  0x98   : > { %1597 = vmatprep.mubr.bf16.mxu0 %v17629_v8  ;;  %1710 = vmatprep.mubr.bf16.mxu1 %v17629_v8 }
  0x99   : > { %1764 = vmatpush1.bf16.msra.mxu0 %v9345_v63  ;;  %1877 = vmatpush1.bf16.msra.mxu1 %v9347_v0  ;;  %v9207_v63 = vld [vmem:[%s17623_s1 + $0x4b8] sm:$0xff] }
  0x9a   : > { %1765 = vmatprep.subr.bf16.mxu0 %v9330_v2  ;;  %1878 = vmatprep.subr.bf16.mxu1 %v9332_v3  ;;  %v9215_v0 = vld [vmem:[%s17623_s1 + $0x4f8] sm:$0xff]  ;;  %v9365_v2 = vcombine.low %v9222_v51, %v9230_v52  ;;  %v9367_v3 = vcombine.low %v9223_v53, %v9231_v55  ;;  %v346_v52 = vld [vmem:[%s17623_s1 + $0x208] sm:$0xff] }
  0x9b   : > { %v9352_v5 = vcombine.high %v9207_v63, %v9215_v0  ;;  %v354_v53 = vld [vmem:[%s17623_s1 + $0x248] sm:$0xff] }
  0x9d   : > { %1766 = vmatpush1.bf16.msra.mxu0 %v9329_v10  ;;  %1879 = vmatpush1.bf16.msra.mxu1 %v9331_v11  ;;  %v9191_v10 = vld [vmem:[%s17623_s1 + $0x438] sm:$0xff] }
  0x9e   : > { %1977 = vmatprep.subr.bf16.mxu0 %v9446_v12  ;;  %2090 = vmatprep.subr.bf16.mxu1 %v9448_v13  ;;  %v9199_v11 = vld [vmem:[%s17623_s1 + $0x478] sm:$0xff]  ;;  %v9349_v12 = vcombine.low %v9206_v61, %v9214_v62  ;;  %v9351_v13 = vcombine.low %v9207_v63, %v9215_v0  ;;  %v9516_v62 = vcombine.high %v346_v52, %v354_v53  ;;  %v329_v63 = vld [vmem:[%s17623_s1 + $0x180] sm:$0xff] }
  0x9f   : > { %1598 = vmatmul.mubr.bf16.gmra.mxu0 %v10421_v48  ;;  %1711 = vmatmul.mubr.bf16.gmra.mxu1 %v10421_v48  ;;  %v9336_v15 = vcombine.high %v9191_v10, %v9199_v11  ;;  %v9335_v22 = vcombine.low %v9191_v10, %v9199_v11  ;;  %v337_v0 = vld [vmem:[%s17623_s1 + $0x1c0] sm:$0xff] }
  0xa0   : > { %1607 = vmatprep.mubr.bf16.mxu0 %v17629_v8  ;;  %1720 = vmatprep.mubr.bf16.mxu1 %v17629_v8  ;;  %v9498_v10 = vcombine.high %v329_v63, %v337_v0 }
  0xa7   : > { %1608 = vmatmul.mubr.bf16.gmra.mxu0 %v10429_v54  ;;  %1721 = vmatmul.mubr.bf16.gmra.mxu1 %v10429_v54 }
  0xa8   : > { %1617 = vmatprep.mubr.bf16.mxu0 %v17629_v8  ;;  %1730 = vmatprep.mubr.bf16.mxu1 %v17629_v8 }
  0xaf   : > { %1618 = vmatmul.mubr.bf16.gmra.mxu0 %v10437_v60  ;;  %1731 = vmatmul.mubr.bf16.gmra.mxu1 %v10437_v60 }
  0xb0   : > { %1627 = vmatprep.mubr.bf16.mxu0 %v17629_v8  ;;  %1740 = vmatprep.mubr.bf16.mxu1 %v17629_v8 }
  0xb7   : > { %1628 = vmatmul.mubr.bf16.gmra.mxu0 %v10444_v1  ;;  %1741 = vmatmul.mubr.bf16.gmra.mxu1 %v10444_v1 }
  0xb8   : > { %1783 = vmatprep.mubr.bf16.mxu0 %v17629_v8  ;;  %1896 = vmatprep.mubr.bf16.mxu1 %v17629_v8 }
  0xbf   : > { %1784 = vmatmul.mubr.bf16.vlgmr.msra.gmra.mxu0 %v10277_v21  ;;  %1897 = vmatmul.mubr.bf16.vlgmr.msra.gmra.mxu1 %v10277_v21 }
  0xc0   : > { %1978 = vmatpush1.bf16.msra.mxu0 %v9445_v16  ;;  %2091 = vmatpush1.bf16.msra.mxu1 %v9447_v19  ;;  %v393_v16 = vld [vmem:[%s17623_s1 + $0x380] sm:$0xff]  ;;  %v402_v19 = vld [vmem:[%s17623_s1 + $0x3c8] sm:$0xff] }
  0xc1   : > { %1793 = vmatprep.mubr.bf16.mxu0 %v17629_v8  ;;  %1906 = vmatprep.mubr.bf16.mxu1 %v17629_v8  ;;  %v9562_v23 = vcombine.high %v393_v16, %v401_v17 }
  0xc2   : > { %1979 = vmatprep.subr.bf16.mxu0 %v9430_v20  ;;  %2092 = vmatprep.subr.bf16.mxu1 %v9432_v24  ;;  %v9333_v20 = vcombine.low %v9190_v7, %v9198_v9  ;;  %v9564_v24 = vcombine.high %v394_v18, %v402_v19 }
  0xc4   : > { %1980 = vmatpush1.bf16.msra.mxu0 %v9429_v28  ;;  %2093 = vmatpush1.bf16.msra.mxu1 %v9431_v29  ;;  %v9561_v28 = vcombine.low %v393_v16, %v401_v17  ;;  %v378_v29 = vld [vmem:[%s17623_s1 + $0x308] sm:$0xff] }
  0xc5   : > { %1981 = vmatprep.subr.bf16.mxu0 %v9414_v30  ;;  %2094 = vmatprep.subr.bf16.mxu1 %v9416_v31  ;;  %v386_v30 = vld [vmem:[%s17623_s1 + $0x348] sm:$0xff]  ;;  %v9563_v31 = vcombine.low %v394_v18, %v402_v19  ;;  %v9497_v19 = vcombine.low %v329_v63, %v337_v0  ;;  %v10860_v63 = vld [vmem:[%s17623_s1 + $0x390] sm:$0xff] }
  0xc6   : > { %v9547_v42 = vcombine.low %v378_v29, %v386_v30  ;;  %v314_v16 = vld [vmem:[%s17623_s1 + $0x108] sm:$0xff]  ;;  %v10865_v0 = vld [vmem:[%s17623_s1 + $0x3d0] sm:$0xff] }
  0xc7   : > { %1794 = vmatmul.mubr.bf16.gmra.mxu0 %v10312_v43  ;;  %1907 = vmatmul.mubr.bf16.gmra.mxu1 %v10312_v43  ;;  %v322_v17 = vld [vmem:[%s17623_s1 + $0x148] sm:$0xff] }
  0xc8   : > { %1803 = vmatprep.mubr.bf16.mxu0 %v17629_v8  ;;  %1916 = vmatprep.mubr.bf16.mxu1 %v17629_v8  ;;  %v9484_v25 = vcombine.high %v314_v16, %v322_v17 }
  0xc9   : > { %1982 = vmatpush1.bf16.msra.mxu0 %v9413_v36  ;;  %2095 = vmatpush1.bf16.msra.mxu1 %v9415_v37  ;;  %v9548_v36 = vcombine.high %v378_v29, %v386_v30  ;;  %v362_v37 = vld [vmem:[%s17623_s1 + $0x288] sm:$0xff] }
  0xca   : > { %1983 = vmatprep.subr.bf16.mxu0 %v9398_v38  ;;  %2096 = vmatprep.subr.bf16.mxu1 %v9400_v39  ;;  %v370_v38 = vld [vmem:[%s17623_s1 + $0x2c8] sm:$0xff] }
  0xcb   : > { %v298_v30 = vld [vmem:[%s17623_s1 + $0x88] sm:$0xff] }
  0xcd   : > { %1984 = vmatpush1.bf16.msra.mxu0 %v9397_v45  ;;  %2097 = vmatpush1.bf16.msra.mxu1 %v9399_v47  ;;  %v9532_v47 = vcombine.high %v362_v37, %v370_v38 }
  0xce   : > { %1985 = vmatprep.subr.bf16.mxu0 %v9382_v49  ;;  %2098 = vmatprep.subr.bf16.mxu1 %v9384_v50  ;;  %v353_v50 = vld [vmem:[%s17623_s1 + $0x240] sm:$0xff] }
  0xcf   : > { %1804 = vmatmul.mubr.bf16.gmra.mxu0 %v10356_v6  ;;  %1917 = vmatmul.mubr.bf16.gmra.mxu1 %v10356_v6 }
  0xd0   : > { %1813 = vmatprep.mubr.bf16.mxu0 %v17629_v8  ;;  %1926 = vmatprep.mubr.bf16.mxu1 %v17629_v8 }
  0xd1   : > { %1986 = vmatpush1.bf16.msra.mxu0 %v9381_v56  ;;  %2099 = vmatpush1.bf16.msra.mxu1 %v9383_v57  ;;  %v9529_v56 = vcombine.low %v361_v33, %v369_v34 }
  0xd2   : > { %1987 = vmatprep.subr.bf16.mxu0 %v9366_v58  ;;  %2100 = vmatprep.subr.bf16.mxu1 %v9368_v59  ;;  %v9531_v58 = vcombine.low %v362_v37, %v370_v38 }
  0xd5   : > { %1988 = vmatpush1.bf16.msra.mxu0 %v9365_v2  ;;  %2101 = vmatpush1.bf16.msra.mxu1 %v9367_v3  ;;  %v330_v3 = vld [vmem:[%s17623_s1 + $0x188] sm:$0xff] }
  0xd6   : > { %1989 = vmatprep.subr.bf16.mxu0 %v9350_v4  ;;  %2102 = vmatprep.subr.bf16.mxu1 %v9352_v5  ;;  %v338_v4 = vld [vmem:[%s17623_s1 + $0x1c8] sm:$0xff] }
  0xd7   : > { %1814 = vmatmul.mubr.bf16.gmra.mxu0 %v10382_v26  ;;  %1927 = vmatmul.mubr.bf16.gmra.mxu1 %v10382_v26 }
  0xd8   : > { %1823 = vmatprep.mubr.bf16.mxu0 %v17629_v8  ;;  %1936 = vmatprep.mubr.bf16.mxu1 %v17629_v8 }
  0xd9   : > { %1990 = vmatpush1.bf16.msra.mxu0 %v9349_v12  ;;  %2103 = vmatpush1.bf16.msra.mxu1 %v9351_v13  ;;  %v9500_v12 = vcombine.high %v330_v3, %v338_v4  ;;  %v313_v13 = vld [vmem:[%s17623_s1 + $0x100] sm:$0xff] }
  0xda   : > { %1991 = vmatprep.subr.bf16.mxu0 %v9334_v14  ;;  %2104 = vmatprep.subr.bf16.mxu1 %v9336_v15  ;;  %v321_v14 = vld [vmem:[%s17623_s1 + $0x140] sm:$0xff] }
  0xdb   : > { %v9481_v33 = vcombine.low %v313_v13, %v321_v14 }
  0xdd   : > { %1992 = vmatpush1.bf16.msra.mxu0 %v9333_v20  ;;  %2105 = vmatpush1.bf16.msra.mxu1 %v9335_v22  ;;  %v9499_v22 = vcombine.low %v330_v3, %v338_v4  ;;  %v10874_v4 = vld [vmem:[%s17623_s1 + $0x398] sm:$0xff] }
  0xde   : > { %2851 = vmatprep.subr.bf16.mxu0 %v9562_v23  ;;  %2964 = vmatprep.subr.bf16.mxu1 %v9564_v24  ;;  %v9482_v23 = vcombine.high %v313_v13, %v321_v14  ;;  %v9566_v13 = vcombine.high %v10860_v63, %v10865_v0 }
  0xdf   : > { %1824 = vmatmul.mubr.bf16.gmra.mxu0 %v10421_v48  ;;  %1937 = vmatmul.mubr.bf16.gmra.mxu1 %v10421_v48 }
  0xe0   : > { %1833 = vmatprep.mubr.bf16.mxu0 %v17629_v8  ;;  %1946 = vmatprep.mubr.bf16.mxu1 %v17629_v8 }
  0xe7   : > { %1834 = vmatmul.mubr.bf16.gmra.mxu0 %v10429_v54  ;;  %1947 = vmatmul.mubr.bf16.gmra.mxu1 %v10429_v54 }
  0xe8   : > { %1843 = vmatprep.mubr.bf16.mxu0 %v17629_v8  ;;  %1956 = vmatprep.mubr.bf16.mxu1 %v17629_v8 }
  0xef   : > { %1844 = vmatmul.mubr.bf16.gmra.mxu0 %v10437_v60  ;;  %1957 = vmatmul.mubr.bf16.gmra.mxu1 %v10437_v60 }
  0xf0   : > { %1853 = vmatprep.mubr.bf16.mxu0 %v17629_v8  ;;  %1966 = vmatprep.mubr.bf16.mxu1 %v17629_v8 }
  0xf7   : > { %1854 = vmatmul.mubr.bf16.gmra.mxu0 %v10444_v1  ;;  %1967 = vmatmul.mubr.bf16.gmra.mxu1 %v10444_v1 }
  0xf8   : > { %2009 = vmatprep.mubr.bf16.mxu0 %v17629_v8  ;;  %2122 = vmatprep.mubr.bf16.mxu1 %v17629_v8 }
  0xff   : > { %v10728_v35 = vpop.f32.mrf.mxu0  ;;  %2010 = vmatmul.mubr.bf16.vlgmr.msra.gmra.mxu0 %v10277_v21  ;;  %v10737_v39 = vpop.f32.mrf.mxu1  ;;  %2123 = vmatmul.mubr.bf16.vlgmr.msra.gmra.mxu1 %v10277_v21  ;;  %v345_v21 = vld [vmem:[%s17623_s1 + $0x200] sm:$0xff] }
 0x100   : > { %2852 = vmatpush1.bf16.msra.mxu0 %v9561_v28  ;;  %2965 = vmatpush1.bf16.msra.mxu1 %v9563_v31  ;;  %v9514_v59 = vcombine.high %v345_v21, %v353_v50  ;;  %v9513_v7 = vcombine.low %v345_v21, %v353_v50  ;;  %v305_v28 = vld [vmem:[%s17623_s1 + $0xc0] sm:$0xff]  ;;  %v306_v31 = vld [vmem:[%s17623_s1 + $0xc8] sm:$0xff] }
 0x101   : > { %v10740_v41 = vpop.f32.mrf.mxu0  ;;  %2019 = vmatprep.mubr.bf16.mxu0 %v17629_v8  ;;  %v10743_v45 = vpop.f32.mrf.mxu1  ;;  %2132 = vmatprep.mubr.bf16.mxu1 %v17629_v8  ;;  %v9468_v38 = vcombine.high %v298_v30, %v306_v31  ;;  %v290_v21 = vld [vmem:[%s17623_s1 + $0x48] sm:$0xff] }
 0x102   : > { %2853 = vmatprep.subr.bf16.mxu0 %v9546_v32  ;;  %2966 = vmatprep.subr.bf16.mxu1 %v9548_v36  ;;  %v9466_v36 = vcombine.high %v297_v27, %v305_v28 }
 0x103   : > { %v10746_v49 = vpop.f32.mrf.mxu0  ;;  %v10754_v51 = vpop.f32.mrf.mxu1 }
 0x104   : > { %2854 = vmatpush1.bf16.msra.mxu0 %v9545_v40  ;;  %2967 = vmatpush1.bf16.msra.mxu1 %v9547_v42  ;;  %v281_v40 = vld [vmem:[%s17623_s1] sm:$0xff] }
 0x105   : > { %v10762_v55 = vpop.f32.mrf.mxu0  ;;  %2855 = vmatprep.subr.bf16.mxu0 %v9530_v44  ;;  %v10764_v57 = vpop.f32.mrf.mxu1  ;;  %2968 = vmatprep.subr.bf16.mxu1 %v9532_v47  ;;  %v289_v42 = vld [vmem:[%s17623_s1 + $0x40] sm:$0xff]  ;;  %v282_v47 = vld [vmem:[%s17623_s1 + $0x8] sm:$0xff] }
 0x107   : > { %v10766_v61 = vpop.f32.mrf.mxu0  ;;  %2020 = vmatmul.mubr.bf16.gmra.mxu0 %v10312_v43  ;;  %v10775_v2 = vpop.f32.mrf.mxu1  ;;  %2133 = vmatmul.mubr.bf16.gmra.mxu1 %v10312_v43  ;;  %v9515_v43 = vcombine.low %v346_v52, %v354_v53  ;;  %v9465_v52 = vcombine.low %v297_v27, %v305_v28 }
 0x108   : > { %2029 = vmatprep.mubr.bf16.mxu0 %v17629_v8  ;;  %2142 = vmatprep.mubr.bf16.mxu1 %v17629_v8 }
 0x109   : > { %v10785_v5 = vpop.f32.mrf.mxu0  ;;  %2856 = vmatpush1.bf16.msra.mxu0 %v9529_v56  ;;  %v10788_v9 = vpop.f32.mrf.mxu1  ;;  %2969 = vmatpush1.bf16.msra.mxu1 %v9531_v58  ;;  %v9467_v56 = vcombine.low %v298_v30, %v306_v31  ;;  %v9450_v58 = vcombine.high %v281_v40, %v289_v42 }
 0x10a   : > { %2857 = vmatprep.subr.bf16.mxu0 %v9514_v59  ;;  %2970 = vmatprep.subr.bf16.mxu1 %v9516_v62  ;;  %v9452_v62 = vcombine.high %v282_v47, %v290_v21 }
 0x10b   : > { %v10790_v11 = vpop.f32.mrf.mxu0  ;;  %v10798_v15 = vpop.f32.mrf.mxu1 }
 0x10d   : > { %v10806_v18 = vpop.f32.mrf.mxu0  ;;  %2858 = vmatpush1.bf16.msra.mxu0 %v9513_v7  ;;  %v10808_v20 = vpop.f32.mrf.mxu1  ;;  %2971 = vmatpush1.bf16.msra.mxu1 %v9515_v43  ;;  %v10879_v7 = vld [vmem:[%s17623_s1 + $0x3d8] sm:$0xff] }
 0x10e   : > { %2859 = vmatprep.subr.bf16.mxu0 %v9498_v10  ;;  %2972 = vmatprep.subr.bf16.mxu1 %v9500_v12  ;;  %v9449_v10 = vcombine.low %v281_v40, %v289_v42 }
 0x10f   : > { %v10810_v24 = vpop.f32.mrf.mxu0  ;;  %2030 = vmatmul.mubr.bf16.gmra.mxu0 %v10356_v6  ;;  %v10819_v29 = vpop.f32.mrf.mxu1  ;;  %2143 = vmatmul.mubr.bf16.gmra.mxu1 %v10356_v6  ;;  %v9483_v6 = vcombine.low %v314_v16, %v322_v17  ;;  %v9568_v16 = vcombine.high %v10874_v4, %v10879_v7 }
 0x110   : > { %2039 = vmatprep.mubr.bf16.mxu0 %v17629_v8  ;;  %2152 = vmatprep.mubr.bf16.mxu1 %v17629_v8 }
 0x111   : > { %v10829_v32 = vpop.f32.mrf.mxu0  ;;  %2860 = vmatpush1.bf16.msra.mxu0 %v9497_v19  ;;  %v10832_v34 = vpop.f32.mrf.mxu1  ;;  %2973 = vmatpush1.bf16.msra.mxu1 %v9499_v22 }
 0x112   : > { %17801 = vst [vmem:[#allocation5_spill] sm:$0xff] %v10829_v32  ;;  %17802 = vst [vmem:[#allocation6_spill] sm:$0xff] %v10832_v34  ;;  %2861 = vmatprep.subr.bf16.mxu0 %v9482_v23  ;;  %2974 = vmatprep.subr.bf16.mxu1 %v9484_v25 }
 0x113   : > { %v10834_v37 = vpop.f32.mrf.mxu0  ;;  %v10842_v44 = vpop.f32.mrf.mxu1 }
 0x114   : > { %17803 = vst [vmem:[#allocation7_spill] sm:$0xff] %v10834_v37  ;;  %17804 = vst [vmem:[#allocation8_spill] sm:$0xff] %v10842_v44 }
 0x115   : > { %v10850_v50 = vpop.f32.mrf.mxu0  ;;  %2862 = vmatpush1.bf16.msra.mxu0 %v9481_v33  ;;  %v10852_v53 = vpop.f32.mrf.mxu1  ;;  %2975 = vmatpush1.bf16.msra.mxu1 %v9483_v6 }
 0x116   : > { %17805 = vst [vmem:[#allocation9_spill] sm:$0xff] %v10850_v50  ;;  %17806 = vst [vmem:[#allocation10_spill] sm:$0xff] %v10852_v53  ;;  %2863 = vmatprep.subr.bf16.mxu0 %v9466_v36  ;;  %2976 = vmatprep.subr.bf16.mxu1 %v9468_v38  ;;  %v9577_v53 = vld [vmem:[%s17623_s1 + $0x800] sm:$0xff] }
 0x117   : > { %v10854_v59 = vpop.f32.mrf.mxu0  ;;  %2040 = vmatmul.mubr.bf16.gmra.mxu0 %v10382_v26  ;;  %v10867_v3 = vpop.f32.mrf.mxu1  ;;  %2153 = vmatmul.mubr.bf16.gmra.mxu1 %v10382_v26  ;;  %v9451_v26 = vcombine.low %v282_v47, %v290_v21 }
 0x118   : > { %17807 = vst [vmem:[#allocation11_spill] sm:$0xff] %v10854_v59  ;;  %17808 = vst [vmem:[#allocation12_spill] sm:$0xff] %v10867_v3  ;;  %2049 = vmatprep.mubr.bf16.mxu0 %v17629_v8  ;;  %2162 = vmatprep.mubr.bf16.mxu1 %v17629_v8 }
 0x119   : > { %v10881_v43 = vpop.f32.mrf.mxu0  ;;  %2864 = vmatpush1.bf16.msra.mxu0 %v9465_v52  ;;  %v10884_v12 = vpop.f32.mrf.mxu1  ;;  %2977 = vmatpush1.bf16.msra.mxu1 %v9467_v56 }
 0x11a   : > { %17809 = vst [vmem:[#allocation13_spill] sm:$0xff] %v10881_v43  ;;  %17810 = vst [vmem:[#allocation14_spill] sm:$0xff] %v10884_v12  ;;  %2865 = vmatprep.subr.bf16.mxu0 %v9450_v58  ;;  %2978 = vmatprep.subr.bf16.mxu1 %v9452_v62  ;;  %v9593_v12 = vld [vmem:[%s17623_s1 + $0x880] sm:$0xff] }
 0x11b   : > { %v10888_v14 = vpop.f32.mrf.mxu0  ;;  %v10892_v17 = vpop.f32.mrf.mxu1 }
 0x11c   : > { %17811 = vst [vmem:[#allocation15_spill] sm:$0xff] %v10888_v14  ;;  %17812 = vst [vmem:[#allocation16_spill] sm:$0xff] %v10892_v17  ;;  %v11925_v17 = vld [vmem:[%s10207_s26 + $0x10] sm:$0xff]  }
 0x11d   : > { %v10894_v19 = vpop.f32.mrf.mxu0  ;;  %2866 = vmatpush1.bf16.msra.mxu0 %v9449_v10  ;;  %v10896_v22 = vpop.f32.mrf.mxu1  ;;  %2979 = vmatpush1.bf16.msra.mxu1 %v9451_v26 }
 0x11e   : > { %17813 = vst [vmem:[#allocation17_spill] sm:$0xff] %v10894_v19  ;;  %17814 = vst [vmem:[#allocation18_spill] sm:$0xff] %v10896_v22  ;;  %3077 = vmatprep.subr.bf16.mxu0 %v9566_v13  ;;  %3190 = vmatprep.subr.bf16.mxu1 %v9568_v16 }
 0x11f   : > { %v10898_v23 = vpop.f32.mrf.mxu0  ;;  %2050 = vmatmul.mubr.bf16.gmra.mxu0 %v10421_v48  ;;  %v10901_v25 = vpop.f32.mrf.mxu1  ;;  %2163 = vmatmul.mubr.bf16.gmra.mxu1 %v10421_v48 }
 0x120   : > { %17815 = vst [vmem:[#allocation19_spill] sm:$0xff] %v10898_v23  ;;  %17816 = vst [vmem:[#allocation20_spill] sm:$0xff] %v10901_v25  ;;  %2059 = vmatprep.mubr.bf16.mxu0 %v17629_v8  ;;  %2172 = vmatprep.mubr.bf16.mxu1 %v17629_v8  ;;  %v9609_v23 = vld [vmem:[%s17623_s1 + $0x900] sm:$0xff] }
 0x121   : > { %v10905_v27 = vpop.f32.mrf.mxu0  ;;  %v10908_v28 = vpop.f32.mrf.mxu1 }
 0x122   : > { %17817 = vst [vmem:[#allocation21_spill] sm:$0xff] %v10905_v27  ;;  %17818 = vst [vmem:[#allocation22_spill] sm:$0xff] %v10908_v28 }
 0x123   : > { %v10910_v30 = vpop.f32.mrf.mxu0  ;;  %v10912_v31 = vpop.f32.mrf.mxu1 }
 0x124   : > { %17819 = vst [vmem:[#allocation23_spill] sm:$0xff] %v10910_v30  ;;  %17820 = vst [vmem:[#allocation24_spill] sm:$0xff] %v10912_v31 }
 0x125   : > { %v10914_v33 = vpop.f32.mrf.mxu0  ;;  %v10916_v6 = vpop.f32.mrf.mxu1 }
 0x126   : > { %17821 = vst [vmem:[#allocation25_spill] sm:$0xff] %v10914_v33  ;;  %17822 = vst [vmem:[#allocation26_spill] sm:$0xff] %v10916_v6 }
 0x127   : > { %v10918_v36 = vpop.f32.mrf.mxu0  ;;  %2060 = vmatmul.mubr.bf16.gmra.mxu0 %v10429_v54  ;;  %v10921_v48 = vpop.f32.mrf.mxu1  ;;  %2173 = vmatmul.mubr.bf16.gmra.mxu1 %v10429_v54 }
 0x128   : > { %17823 = vst [vmem:[#allocation27_spill] sm:$0xff] %v10918_v36  ;;  %17824 = vst [vmem:[#allocation28_spill] sm:$0xff] %v10921_v48  ;;  %2069 = vmatprep.mubr.bf16.mxu0 %v17629_v8  ;;  %2182 = vmatprep.mubr.bf16.mxu1 %v17629_v8  ;;  %v315_v48 = vld [vmem:[%s17623_s1 + $0x110] sm:$0xff] }
 0x129   : > { %v10925_v38 = vpop.f32.mrf.mxu0  ;;  %v10928_v40 = vpop.f32.mrf.mxu1  ;;  %v283_v36 = vld [vmem:[%s17623_s1 + $0x10] sm:$0xff] }
 0x12a   : > { %17825 = vst [vmem:[#allocation29_spill] sm:$0xff] %v10925_v38  ;;  %17826 = vst [vmem:[#allocation30_spill] sm:$0xff] %v10928_v40 }
 0x12b   : > { %v10930_v42 = vpop.f32.mrf.mxu0  ;;  %v10932_v47 = vpop.f32.mrf.mxu1 }
 0x12c   : > { %17827 = vst [vmem:[#allocation31_spill] sm:$0xff] %v10930_v42  ;;  %17828 = vst [vmem:[#allocation32_spill] sm:$0xff] %v10932_v47 }
 0x12d   : > { %v10934_v21 = vpop.f32.mrf.mxu0  ;;  %v10936_v52 = vpop.f32.mrf.mxu1 }
 0x12e   : > { %17829 = vst [vmem:[#allocation33_spill] sm:$0xff] %v10934_v21  ;;  %17830 = vst [vmem:[#allocation34_spill] sm:$0xff] %v10936_v52 }
 0x12f   : > { %v10938_v56 = vpop.f32.mrf.mxu0  ;;  %2070 = vmatmul.mubr.bf16.gmra.mxu0 %v10437_v60  ;;  %v10941_v54 = vpop.f32.mrf.mxu1  ;;  %2183 = vmatmul.mubr.bf16.gmra.mxu1 %v10437_v60 }
 0x130   : > { %17831 = vst [vmem:[#allocation35_spill] sm:$0xff] %v10938_v56  ;;  %17832 = vst [vmem:[#allocation36_spill] sm:$0xff] %v10941_v54  ;;  %2079 = vmatprep.mubr.bf16.mxu0 %v17629_v8  ;;  %2192 = vmatprep.mubr.bf16.mxu1 %v17629_v8 }
 0x131   : > { %v10945_v58 = vpop.f32.mrf.mxu0  ;;  %v10948_v62 = vpop.f32.mrf.mxu1 }
 0x132   : > { %17833 = vst [vmem:[#allocation37_spill] sm:$0xff] %v10945_v58  ;;  %17834 = vst [vmem:[#allocation38_spill] sm:$0xff] %v10948_v62 }
 0x133   : > { %v10950_v10 = vpop.f32.mrf.mxu0  ;;  %v10952_v26 = vpop.f32.mrf.mxu1 }
 0x134   : > { %17835 = vst [vmem:[#allocation39_spill] sm:$0xff] %v10950_v10  ;;  %17836 = vst [vmem:[#allocation40_spill] sm:$0xff] %v10952_v26 }
 0x135   : > { %v10954_v13 = vpop.f32.mrf.mxu0  ;;  %v10956_v16 = vpop.f32.mrf.mxu1 }
 0x136   : > { %17837 = vst [vmem:[#allocation41_spill] sm:$0xff] %v10954_v13  ;;  %17838 = vst [vmem:[#allocation42_spill] sm:$0xff] %v10956_v16 }
 0x137   : > { %v10958_v56 = vpop.f32.mrf.mxu0  ;;  %2080 = vmatmul.mubr.bf16.gmra.mxu0 %v10444_v1  ;;  %v10961_v60 = vpop.f32.mrf.mxu1  ;;  %2193 = vmatmul.mubr.bf16.gmra.mxu1 %v10444_v1  ;;  %v9565_v1 = vcombine.low %v10860_v63, %v10865_v0  ;;  %v363_v63 = vld [vmem:[%s17623_s1 + $0x290] sm:$0xff] }
 0x138   : > { %17839 = vst [vmem:[#allocation43_spill] sm:$0xff] %v10958_v56  ;;  %17840 = vst [vmem:[#allocation44_spill] sm:$0xff] %v10961_v60  ;;  %2883 = vmatprep.mubr.bf16.mxu0 %v17629_v8  ;;  %2996 = vmatprep.mubr.bf16.mxu1 %v17629_v8  ;;  %v379_v56 = vld [vmem:[%s17623_s1 + $0x310] sm:$0xff]  ;;  %v380_v8 = vld [vmem:[%s17623_s1 + $0x318] sm:$0xff] }
 0x139   : > { %v10965_v58 = vpop.f32.mrf.mxu0  ;;  %v10968_v10 = vpop.f32.mrf.mxu1  ;;  %v387_v60 = vld [vmem:[%s17623_s1 + $0x350] sm:$0xff] }
 0x13a   : > { %17841 = vst [vmem:[#allocation45_spill] sm:$0xff] %v10965_v58  ;;  %17842 = vst [vmem:[#allocation46_spill] sm:$0xff] %v10968_v10  ;;  %v9567_v58 = vcombine.low %v10874_v4, %v10879_v7  ;;  %v9550_v62 = vcombine.high %v379_v56, %v387_v60  ;;  %v371_v0 = vld [vmem:[%s17623_s1 + $0x2d0] sm:$0xff]  ;;  %v364_v4 = vld [vmem:[%s17623_s1 + $0x298] sm:$0xff] }
 0x13b   : > { %v10970_v26 = vpop.f32.mrf.mxu0  ;;  %v10978_v16 = vpop.f32.mrf.mxu1  ;;  %v372_v7 = vld [vmem:[%s17623_s1 + $0x2d8] sm:$0xff]  ;;  %v9534_v47 = vcombine.high %v363_v63, %v371_v0 }
 0x13c   : > { %17843 = vst [vmem:[#allocation47_spill] sm:$0xff] %v10970_v26  ;;  %17844 = vst [vmem:[#allocation48_spill] sm:$0xff] %v10978_v16  ;;  %v388_v26 = vld [vmem:[%s17623_s1 + $0x358] sm:$0xff]  ;;  %v9536_v40 = vcombine.high %v364_v4, %v372_v7 }
 0x13d   : > { %v10988_v10 = vpop.f32.mrf.mxu0  ;;  %v10992_v13 = vpop.f32.mrf.mxu1  ;;  %v9552_v54 = vcombine.high %v380_v8, %v388_v26  ;;  %v9551_v21 = vcombine.low %v380_v8, %v388_v26 }
 0x13e   : > { %17845 = vst [vmem:[#allocation49_spill] sm:$0xff] %v10988_v10  ;;  %17846 = vst [vmem:[#allocation50_spill] sm:$0xff] %v10992_v13  ;;  %v9549_v10 = vcombine.low %v379_v56, %v387_v60  ;;  %v347_v56 = vld [vmem:[%s17623_s1 + $0x210] sm:$0xff]  ;;  %v9533_v60 = vcombine.low %v363_v63, %v371_v0  ;;  %v340_v63 = vld [vmem:[%s17623_s1 + $0x1d8] sm:$0xff] }
 0x13f   : > { %v11000_v16 = vpop.f32.mrf.mxu0  ;;  %2884 = vmatmul.mubr.bf16.vlgmr.msra.gmra.mxu0 %v10226_v46  ;;  %v11009_v13 = vpop.f32.mrf.mxu1  ;;  %2997 = vmatmul.mubr.bf16.vlgmr.msra.gmra.mxu1 %v10226_v46 }
 0x140   : > { %17847 = vst [vmem:[#allocation51_spill] sm:$0xff] %v11000_v16  ;;  %17848 = vst [vmem:[#allocation52_spill] sm:$0xff] %v11009_v13  ;;  %3078 = vmatpush1.bf16.msra.mxu0 %v9565_v1  ;;  %3191 = vmatpush1.bf16.msra.mxu1 %v9567_v58  ;;  %v17850_v16 = vmov 0   ;;  %v355_v58 = vld [vmem:[%s17623_s1 + $0x250] sm:$0xff] }
 0x141   : > { %v11012_v52 = vpop.f32.mrf.mxu0  ;;  %2893 = vmatprep.mubr.bf16.mxu0 %v17850_v16  ;;  %v11015_v42 = vpop.f32.mrf.mxu1  ;;  %3006 = vmatprep.mubr.bf16.mxu1 %v17850_v16  ;;  %v331_v13 = vld [vmem:[%s17623_s1 + $0x190] sm:$0xff] }
 0x142   : > { %17849 = vst [vmem:[#allocation53_spill] sm:$0xff] %v11012_v52  ;;  %17851 = vst [vmem:[#allocation54_spill] sm:$0xff] %v11015_v42  ;;  %3079 = vmatprep.subr.bf16.mxu0 %v9550_v62  ;;  %3192 = vmatprep.subr.bf16.mxu1 %v9552_v54  ;;  %v348_v62 = vld [vmem:[%s17623_s1 + $0x218] sm:$0xff]  ;;  %v9518_v42 = vcombine.high %v347_v56, %v355_v58 }
 0x143   : > { %v11018_v38 = vpop.f32.mrf.mxu0  ;;  %v11026_v8 = vpop.f32.mrf.mxu1  ;;  %v356_v54 = vld [vmem:[%s17623_s1 + $0x258] sm:$0xff] }
 0x144   : > { %17852 = vst [vmem:[#allocation55_spill] sm:$0xff] %v11018_v38  ;;  %17853 = vst [vmem:[#allocation56_spill] sm:$0xff] %v11026_v8  ;;  %3080 = vmatpush1.bf16.msra.mxu0 %v9549_v10  ;;  %3193 = vmatpush1.bf16.msra.mxu1 %v9551_v21  ;;  %v9535_v38 = vcombine.low %v364_v4, %v372_v7  ;;  %v11041_v10 = vld [vmem:[%s10207_s26 + $0x8] sm:$0xff]   ;;  %v9520_v52 = vcombine.high %v348_v62, %v356_v54 }
 0x145   : > { %v11034_v26 = vpop.f32.mrf.mxu0  ;;  %3081 = vmatprep.subr.bf16.mxu0 %v9534_v47  ;;  %v11036_v1 = vpop.f32.mrf.mxu1  ;;  %3194 = vmatprep.subr.bf16.mxu1 %v9536_v40  ;;  %v339_v47 = vld [vmem:[%s17623_s1 + $0x1d0] sm:$0xff]  ;;  %v332_v40 = vld [vmem:[%s17623_s1 + $0x198] sm:$0xff]  ;;  %v9517_v4 = vcombine.low %v347_v56, %v355_v58 }
 0x146   : > { %17854 = vst [vmem:[#allocation57_spill] sm:$0xff] %v11034_v26  ;;  %17855 = vst [vmem:[#allocation58_spill] sm:$0xff] %v11036_v1  ;;  %v9504_v26 = vcombine.high %v332_v40, %v340_v63  ;;  %v9501_v58 = vcombine.low %v331_v13, %v339_v47 }
 0x147   : > { %v11038_v8 = vpop.f32.mrf.mxu0  ;;  %2894 = vmatmul.mubr.bf16.gmra.mxu0 %v11041_v10  ;;  %v11050_v21 = vpop.f32.mrf.mxu1  ;;  %3007 = vmatmul.mubr.bf16.gmra.mxu1 %v11041_v10 }
 0x148   : > { %17856 = vst [vmem:[#allocation59_spill] sm:$0xff] %v11038_v8  ;;  %17857 = vst [vmem:[#allocation60_spill] sm:$0xff] %v11050_v21  ;;  %2903 = vmatprep.mubr.bf16.mxu0 %v17850_v16  ;;  %3016 = vmatprep.mubr.bf16.mxu1 %v17850_v16  ;;  %v9519_v21 = vcombine.low %v348_v62, %v356_v54  ;;  %v9502_v8 = vcombine.high %v331_v13, %v339_v47  ;;  %v307_v13 = vld [vmem:[%s17623_s1 + $0xd0] sm:$0xff] }
 0x149   : > { %v11060_v0 = vpop.f32.mrf.mxu0  ;;  %3082 = vmatpush1.bf16.msra.mxu0 %v9533_v60  ;;  %v11063_v7 = vpop.f32.mrf.mxu1  ;;  %3195 = vmatpush1.bf16.msra.mxu1 %v9535_v38  ;;  %v323_v60 = vld [vmem:[%s17623_s1 + $0x150] sm:$0xff]  ;;  %v316_v38 = vld [vmem:[%s17623_s1 + $0x118] sm:$0xff]  ;;  %v9503_v54 = vcombine.low %v332_v40, %v340_v63 }
 0x14a   : > { %17858 = vst [vmem:[#allocation61_spill] sm:$0xff] %v11060_v0  ;;  %17859 = vst [vmem:[#allocation62_spill] sm:$0xff] %v11063_v7  ;;  %3083 = vmatprep.subr.bf16.mxu0 %v9518_v42  ;;  %3196 = vmatprep.subr.bf16.mxu1 %v9520_v52  ;;  %v324_v42 = vld [vmem:[%s17623_s1 + $0x158] sm:$0xff]  ;;  %v9485_v40 = vcombine.low %v315_v48, %v323_v60 }
 0x14b   : > { %v11065_v1 = vpop.f32.mrf.mxu0  ;;  %v11073_v56 = vpop.f32.mrf.mxu1  ;;  %v9488_v0 = vcombine.high %v316_v38, %v324_v42 }
 0x14c   : > { %17860 = vst [vmem:[#allocation63_spill] sm:$0xff] %v11065_v1  ;;  %17861 = vst [vmem:[#allocation64_spill] sm:$0xff] %v11073_v56  ;;  %v9486_v1 = vcombine.high %v315_v48, %v323_v60  ;;  %v11088_v56 = vld [vmem:[%s10207_s26 + $0x10] sm:$0xff]  }
 0x14d   : > { %v11081_v52 = vpop.f32.mrf.mxu0  ;;  %3084 = vmatpush1.bf16.msra.mxu0 %v9517_v4  ;;  %v11083_v62 = vpop.f32.mrf.mxu1  ;;  %3197 = vmatpush1.bf16.msra.mxu1 %v9519_v21  ;;  %v9487_v4 = vcombine.low %v316_v38, %v324_v42 }
 0x14e   : > { %17862 = vst [vmem:[#allocation65_spill] sm:$0xff] %v11081_v52  ;;  %17863 = vst [vmem:[#allocation66_spill] sm:$0xff] %v11083_v62  ;;  %3085 = vmatprep.subr.bf16.mxu0 %v9502_v8  ;;  %3198 = vmatprep.subr.bf16.mxu1 %v9504_v26  ;;  %v299_v52 = vld [vmem:[%s17623_s1 + $0x90] sm:$0xff]  ;;  %v300_v8 = vld [vmem:[%s17623_s1 + $0x98] sm:$0xff] }
 0x14f   : > { %v11085_v7 = vpop.f32.mrf.mxu0  ;;  %2904 = vmatmul.mubr.bf16.gmra.mxu0 %v11088_v56  ;;  %v11097_v47 = vpop.f32.mrf.mxu1  ;;  %3017 = vmatmul.mubr.bf16.gmra.mxu1 %v11088_v56  ;;  %v308_v26 = vld [vmem:[%s17623_s1 + $0xd8] sm:$0xff]  ;;  %v9469_v38 = vcombine.low %v299_v52, %v307_v13 }
 0x150   : > { %17864 = vst [vmem:[#allocation67_spill] sm:$0xff] %v11085_v7  ;;  %17865 = vst [vmem:[#allocation68_spill] sm:$0xff] %v11097_v47  ;;  %2913 = vmatprep.mubr.bf16.mxu0 %v17850_v16  ;;  %3026 = vmatprep.mubr.bf16.mxu1 %v17850_v16  ;;  %v9470_v47 = vcombine.high %v299_v52, %v307_v13  ;;  %v9472_v62 = vcombine.high %v300_v8, %v308_v26  ;;  %v11146_v52 = vld [vmem:[%s17623_s1 + $0x3e0] sm:$0xff] }
 0x151   : > { %v11107_v21 = vpop.f32.mrf.mxu0  ;;  %3086 = vmatpush1.bf16.msra.mxu0 %v9501_v58  ;;  %v11110_v63 = vpop.f32.mrf.mxu1  ;;  %3199 = vmatpush1.bf16.msra.mxu1 %v9503_v54  ;;  %v291_v58 = vld [vmem:[%s17623_s1 + $0x50] sm:$0xff]  ;;  %v9471_v54 = vcombine.low %v300_v8, %v308_v26 }
 0x152   : > { %17866 = vst [vmem:[#allocation69_spill] sm:$0xff] %v11107_v21  ;;  %17867 = vst [vmem:[#allocation70_spill] sm:$0xff] %v11110_v63  ;;  %3087 = vmatprep.subr.bf16.mxu0 %v9486_v1  ;;  %3200 = vmatprep.subr.bf16.mxu1 %v9488_v0  ;;  %v284_v1 = vld [vmem:[%s17623_s1 + $0x18] sm:$0xff]  ;;  %v9453_v26 = vcombine.low %v283_v36, %v291_v58 }
 0x153   : > { %v11112_v7 = vpop.f32.mrf.mxu0  ;;  %v11120_v48 = vpop.f32.mrf.mxu1  ;;  %v292_v0 = vld [vmem:[%s17623_s1 + $0x58] sm:$0xff] }
 0x154   : > { %17868 = vst [vmem:[#allocation71_spill] sm:$0xff] %v11112_v7  ;;  %17869 = vst [vmem:[#allocation72_spill] sm:$0xff] %v11120_v48  ;;  %v9454_v7 = vcombine.high %v283_v36, %v291_v58  ;;  %v11135_v48 = vld [vmem:[%s10207_s26 + $0x18] sm:$0xff]   ;;  %v9456_v21 = vcombine.high %v284_v1, %v292_v0  ;;  %v11182_v58 = vld [vmem:[%s10207_s26 + $0x20] sm:$0xff]  }
 0x155   : > { %v11128_v60 = vpop.f32.mrf.mxu0  ;;  %3088 = vmatpush1.bf16.msra.mxu0 %v9485_v40  ;;  %v11130_v42 = vpop.f32.mrf.mxu1  ;;  %3201 = vmatpush1.bf16.msra.mxu1 %v9487_v4  ;;  %v9455_v4 = vcombine.low %v284_v1, %v292_v0 }
 0x156   : > { %17870 = vst [vmem:[#allocation73_spill] sm:$0xff] %v11128_v60  ;;  %17871 = vst [vmem:[#allocation74_spill] sm:$0xff] %v11130_v42  ;;  %3089 = vmatprep.subr.bf16.mxu0 %v9470_v47  ;;  %3202 = vmatprep.subr.bf16.mxu1 %v9472_v62  ;;  %v11141_v60 = vld [vmem:[%s17623_s1 + $0x3a0] sm:$0xff]  ;;  %v11155_v62 = vld [vmem:[%s17623_s1 + $0x3a8] sm:$0xff] }
 0x157   : > { %v11132_v63 = vpop.f32.mrf.mxu0  ;;  %2914 = vmatmul.mubr.bf16.gmra.mxu0 %v11135_v48  ;;  %v11148_v13 = vpop.f32.mrf.mxu1  ;;  %3027 = vmatmul.mubr.bf16.gmra.mxu1 %v11135_v48  ;;  %v11160_v47 = vld [vmem:[%s17623_s1 + $0x3e8] sm:$0xff] }
 0x158   : > { %17872 = vst [vmem:[#allocation75_spill] sm:$0xff] %v11132_v63  ;;  %17873 = vst [vmem:[#allocation76_spill] sm:$0xff] %v11148_v13  ;;  %2923 = vmatprep.mubr.bf16.mxu0 %v17850_v16  ;;  %3036 = vmatprep.mubr.bf16.mxu1 %v17850_v16  ;;  %v9570_v13 = vcombine.high %v11141_v60, %v11146_v52  ;;  %v9572_v42 = vcombine.high %v11155_v62, %v11160_v47 }
 0x159   : > { %v11162_v8 = vpop.f32.mrf.mxu0  ;;  %3090 = vmatpush1.bf16.msra.mxu0 %v9469_v38  ;;  %v11165_v40 = vpop.f32.mrf.mxu1  ;;  %3203 = vmatpush1.bf16.msra.mxu1 %v9471_v54 }
 0x15a   : > { %17874 = vst [vmem:[#allocation77_spill] sm:$0xff] %v11162_v8  ;;  %17875 = vst [vmem:[#allocation78_spill] sm:$0xff] %v11165_v40  ;;  %3091 = vmatprep.subr.bf16.mxu0 %v9454_v7  ;;  %3204 = vmatprep.subr.bf16.mxu1 %v9456_v21 }
 0x15b   : > { %v11169_v63 = vpop.f32.mrf.mxu0  ;;  %v11173_v8 = vpop.f32.mrf.mxu1 }
 0x15c   : > { %17876 = vst [vmem:[#allocation79_spill] sm:$0xff] %v11169_v63  ;;  %17877 = vst [vmem:[#allocation80_spill] sm:$0xff] %v11173_v8 }
 0x15d   : > { %v11175_v6 = vpop.f32.mrf.mxu0  ;;  %3092 = vmatpush1.bf16.msra.mxu0 %v9453_v26  ;;  %v11177_v36 = vpop.f32.mrf.mxu1  ;;  %3205 = vmatpush1.bf16.msra.mxu1 %v9455_v4  ;;  %v11205_v4 = vld [vmem:[%s10207_s26 + $0x28] sm:$0xff]  }
 0x15e   : > { %17878 = vst [vmem:[#allocation81_spill] sm:$0xff] %v11175_v6  ;;  %17879 = vst [vmem:[#allocation82_spill] sm:$0xff] %v11177_v36  ;;  %3303 = vmatprep.subr.bf16.mxu0 %v9570_v13  ;;  %3416 = vmatprep.subr.bf16.mxu1 %v9572_v42 }
 0x15f   : > { %v11179_v7 = vpop.f32.mrf.mxu0  ;;  %2924 = vmatmul.mubr.bf16.gmra.mxu0 %v11182_v58  ;;  %v11185_v21 = vpop.f32.mrf.mxu1  ;;  %3037 = vmatmul.mubr.bf16.gmra.mxu1 %v11182_v58 }
 0x160   : > { %17880 = vst [vmem:[#allocation83_spill] sm:$0xff] %v11179_v7  ;;  %17881 = vst [vmem:[#allocation84_spill] sm:$0xff] %v11185_v21  ;;  %2933 = vmatprep.mubr.bf16.mxu0 %v17850_v16  ;;  %3046 = vmatprep.mubr.bf16.mxu1 %v17850_v16  ;;  %v11228_v21 = vld [vmem:[%s10207_s26 + $0x30] sm:$0xff]  }
 0x161   : > { %v11189_v1 = vpop.f32.mrf.mxu0  ;;  %v11192_v0 = vpop.f32.mrf.mxu1 }
 0x162   : > { %17882 = vst [vmem:[#allocation85_spill] sm:$0xff] %v11189_v1  ;;  %17883 = vst [vmem:[#allocation86_spill] sm:$0xff] %v11192_v0 }
 0x163   : > { %v11194_v38 = vpop.f32.mrf.mxu0  ;;  %v11196_v54 = vpop.f32.mrf.mxu1 }
 0x164   : > { %17884 = vst [vmem:[#allocation87_spill] sm:$0xff] %v11194_v38  ;;  %17885 = vst [vmem:[#allocation88_spill] sm:$0xff] %v11196_v54 }
 0x165   : > { %v11198_v13 = vpop.f32.mrf.mxu0  ;;  %v11200_v42 = vpop.f32.mrf.mxu1 }
 0x166   : > { %17886 = vst [vmem:[#allocation89_spill] sm:$0xff] %v11198_v13  ;;  %17887 = vst [vmem:[#allocation90_spill] sm:$0xff] %v11200_v42 }
 0x167   : > { %v11202_v26 = vpop.f32.mrf.mxu0  ;;  %2934 = vmatmul.mubr.bf16.gmra.mxu0 %v11205_v4  ;;  %v11208_v1 = vpop.f32.mrf.mxu1  ;;  %3047 = vmatmul.mubr.bf16.gmra.mxu1 %v11205_v4 }
 0x168   : > { %17888 = vst [vmem:[#allocation91_spill] sm:$0xff] %v11202_v26  ;;  %17889 = vst [vmem:[#allocation92_spill] sm:$0xff] %v11208_v1  ;;  %2943 = vmatprep.mubr.bf16.mxu0 %v17850_v16  ;;  %3056 = vmatprep.mubr.bf16.mxu1 %v17850_v16 }
 0x169   : > { %v11212_v38 = vpop.f32.mrf.mxu0  ;;  %v11215_v13 = vpop.f32.mrf.mxu1 }
 0x16a   : > { %17890 = vst [vmem:[#allocation93_spill] sm:$0xff] %v11212_v38  ;;  %17891 = vst [vmem:[#allocation94_spill] sm:$0xff] %v11215_v13 }
 0x16b   : > { %v11217_v54 = vpop.f32.mrf.mxu0  ;;  %v11219_v42 = vpop.f32.mrf.mxu1 }
 0x16c   : > { %17892 = vst [vmem:[#allocation95_spill] sm:$0xff] %v11217_v54  ;;  %17893 = vst [vmem:[#allocation96_spill] sm:$0xff] %v11219_v42 }
 0x16d   : > { %v11221_v26 = vpop.f32.mrf.mxu0  ;;  %v11223_v0 = vpop.f32.mrf.mxu1 }
 0x16e   : > { %17894 = vst [vmem:[#allocation97_spill] sm:$0xff] %v11221_v26  ;;  %17895 = vst [vmem:[#allocation98_spill] sm:$0xff] %v11223_v0 }
 0x16f   : > { %v11225_v1 = vpop.f32.mrf.mxu0  ;;  %2944 = vmatmul.mubr.bf16.gmra.mxu0 %v11228_v21  ;;  %v11231_v38 = vpop.f32.mrf.mxu1  ;;  %3057 = vmatmul.mubr.bf16.gmra.mxu1 %v11228_v21 }
 0x170   : > { %17896 = vst [vmem:[#allocation99_spill] sm:$0xff] %v11225_v1  ;;  %17897 = vst [vmem:[#allocation100_spill] sm:$0xff] %v11231_v38  ;;  %2953 = vmatprep.mubr.bf16.mxu0 %v17850_v16  ;;  %3066 = vmatprep.mubr.bf16.mxu1 %v17850_v16  ;;  %v11251_v38 = vld [vmem:[%s10207_s26 + $0x38] sm:$0xff]  }
 0x171   : > { %v11235_v54 = vpop.f32.mrf.mxu0  ;;  %v11238_v26 = vpop.f32.mrf.mxu1 }
 0x172   : > { %17898 = vst [vmem:[#allocation101_spill] sm:$0xff] %v11235_v54  ;;  %17899 = vst [vmem:[#allocation102_spill] sm:$0xff] %v11238_v26  ;;  %v9571_v54 = vcombine.low %v11155_v62, %v11160_v47  ;;  %v366_v62 = vld [vmem:[%s17623_s1 + $0x2a8] sm:$0xff] }
 0x173   : > { %v11240_v42 = vpop.f32.mrf.mxu0  ;;  %v11242_v0 = vpop.f32.mrf.mxu1  ;;  %v374_v47 = vld [vmem:[%s17623_s1 + $0x2e8] sm:$0xff] }
 0x174   : > { %17900 = vst [vmem:[#allocation103_spill] sm:$0xff] %v11240_v42  ;;  %17901 = vst [vmem:[#allocation104_spill] sm:$0xff] %v11242_v0  ;;  %v9569_v42 = vcombine.low %v11141_v60, %v11146_v52  ;;  %v365_v60 = vld [vmem:[%s17623_s1 + $0x2a0] sm:$0xff]  ;;  %v9540_v30 = vcombine.high %v366_v62, %v374_v47 }
 0x175   : > { %v11244_v1 = vpop.f32.mrf.mxu0  ;;  %v11246_v13 = vpop.f32.mrf.mxu1  ;;  %v373_v52 = vld [vmem:[%s17623_s1 + $0x2e0] sm:$0xff] }
 0x176   : > { %17902 = vst [vmem:[#allocation105_spill] sm:$0xff] %v11244_v1  ;;  %17903 = vst [vmem:[#allocation106_spill] sm:$0xff] %v11246_v13  ;;  %v9538_v33 = vcombine.high %v365_v60, %v373_v52 }
 0x177   : > { %v11248_v7 = vpop.f32.mrf.mxu0  ;;  %2954 = vmatmul.mubr.bf16.gmra.mxu0 %v11251_v38  ;;  %v11254_v36 = vpop.f32.mrf.mxu1  ;;  %3067 = vmatmul.mubr.bf16.gmra.mxu1 %v11251_v38 }
 0x178   : > { %17904 = vst [vmem:[#allocation107_spill] sm:$0xff] %v11248_v7  ;;  %17905 = vst [vmem:[#allocation108_spill] sm:$0xff] %v11254_v36  ;;  %3109 = vmatprep.mubr.bf16.mxu0 %v17850_v16  ;;  %3222 = vmatprep.mubr.bf16.mxu1 %v17850_v16  ;;  %v381_v7 = vld [vmem:[%s17623_s1 + $0x320] sm:$0xff] }
 0x179   : > { %v11258_v26 = vpop.f32.mrf.mxu0  ;;  %v11261_v0 = vpop.f32.mrf.mxu1  ;;  %v389_v36 = vld [vmem:[%s17623_s1 + $0x360] sm:$0xff] }
 0x17a   : > { %17906 = vst [vmem:[#allocation109_spill] sm:$0xff] %v11258_v26  ;;  %17907 = vst [vmem:[#allocation110_spill] sm:$0xff] %v11261_v0  ;;  %v382_v26 = vld [vmem:[%s17623_s1 + $0x328] sm:$0xff]  ;;  %v9554_v8 = vcombine.high %v381_v7, %v389_v36 }
 0x17b   : > { %v11263_v1 = vpop.f32.mrf.mxu0  ;;  %v11271_v13 = vpop.f32.mrf.mxu1 }
 0x17c   : > { %17908 = vst [vmem:[#allocation111_spill] sm:$0xff] %v11263_v1  ;;  %17909 = vst [vmem:[#allocation112_spill] sm:$0xff] %v11271_v13  ;;  %v390_v1 = vld [vmem:[%s17623_s1 + $0x368] sm:$0xff] }
 0x17d   : > { %v11281_v0 = vpop.f32.mrf.mxu0  ;;  %v11285_v6 = vpop.f32.mrf.mxu1  ;;  %v9556_v63 = vcombine.high %v382_v26, %v390_v1 }
 0x17e   : > { %17910 = vst [vmem:[#allocation113_spill] sm:$0xff] %v11281_v0  ;;  %17911 = vst [vmem:[#allocation114_spill] sm:$0xff] %v11285_v6  ;;  %v9553_v0 = vcombine.low %v381_v7, %v389_v36  ;;  %v349_v36 = vld [vmem:[%s17623_s1 + $0x220] sm:$0xff] }
 0x17f   : > { %v11293_v13 = vpop.f32.mrf.mxu0  ;;  %3110 = vmatmul.mubr.bf16.vlgmr.msra.gmra.mxu0 %v10226_v46  ;;  %v11302_v6 = vpop.f32.mrf.mxu1  ;;  %3223 = vmatmul.mubr.bf16.vlgmr.msra.gmra.mxu1 %v10226_v46  ;;  %v357_v7 = vld [vmem:[%s17623_s1 + $0x260] sm:$0xff] }
 0x180   : > { %17912 = vst [vmem:[#allocation115_spill] sm:$0xff] %v11293_v13  ;;  %17913 = vst [vmem:[#allocation116_spill] sm:$0xff] %v11302_v6  ;;  %3304 = vmatpush1.bf16.msra.mxu0 %v9569_v42  ;;  %3417 = vmatpush1.bf16.msra.mxu1 %v9571_v54  ;;  %v9555_v13 = vcombine.low %v382_v26, %v390_v1  ;;  %v350_v1 = vld [vmem:[%s17623_s1 + $0x228] sm:$0xff]  ;;  %v9537_v42 = vcombine.low %v365_v60, %v373_v52  ;;  %v317_v6 = vld [vmem:[%s17623_s1 + $0x120] sm:$0xff] }
 0x181   : > { %v11305_v40 = vpop.f32.mrf.mxu0  ;;  %3119 = vmatprep.mubr.bf16.mxu0 %v17850_v16  ;;  %v11308_v31 = vpop.f32.mrf.mxu1  ;;  %3232 = vmatprep.mubr.bf16.mxu1 %v17850_v16 }
 0x182   : > { %17914 = vst [vmem:[#allocation117_spill] sm:$0xff] %v11305_v40  ;;  %17915 = vst [vmem:[#allocation118_spill] sm:$0xff] %v11308_v31  ;;  %3305 = vmatprep.subr.bf16.mxu0 %v9554_v8  ;;  %3418 = vmatprep.subr.bf16.mxu1 %v9556_v63  ;;  %v358_v8 = vld [vmem:[%s17623_s1 + $0x268] sm:$0xff]  ;;  %v9522_v31 = vcombine.high %v349_v36, %v357_v7  ;;  %v333_v40 = vld [vmem:[%s17623_s1 + $0x1a0] sm:$0xff] }
 0x183   : > { %v11311_v28 = vpop.f32.mrf.mxu0  ;;  %v11319_v54 = vpop.f32.mrf.mxu1 }
 0x184   : > { %17916 = vst [vmem:[#allocation119_spill] sm:$0xff] %v11311_v28  ;;  %17917 = vst [vmem:[#allocation120_spill] sm:$0xff] %v11319_v54  ;;  %3306 = vmatpush1.bf16.msra.mxu0 %v9553_v0  ;;  %3419 = vmatpush1.bf16.msra.mxu1 %v9555_v13  ;;  %v9539_v28 = vcombine.low %v366_v62, %v374_v47  ;;  %v9524_v0 = vcombine.high %v350_v1, %v358_v8  ;;  %v341_v13 = vld [vmem:[%s17623_s1 + $0x1e0] sm:$0xff] }
 0x185   : > { %v11327_v63 = vpop.f32.mrf.mxu0  ;;  %3307 = vmatprep.subr.bf16.mxu0 %v9538_v33  ;;  %v11329_v26 = vpop.f32.mrf.mxu1  ;;  %3420 = vmatprep.subr.bf16.mxu1 %v9540_v30  ;;  %v334_v30 = vld [vmem:[%s17623_s1 + $0x1a8] sm:$0xff]  ;;  %v9521_v62 = vcombine.low %v349_v36, %v357_v7  ;;  %v9505_v7 = vcombine.low %v333_v40, %v341_v13 }
 0x186   : > { %17918 = vst [vmem:[#allocation121_spill] sm:$0xff] %v11327_v63  ;;  %17919 = vst [vmem:[#allocation122_spill] sm:$0xff] %v11329_v26  ;;  %v342_v33 = vld [vmem:[%s17623_s1 + $0x1e8] sm:$0xff] }
 0x187   : > { %v11331_v54 = vpop.f32.mrf.mxu0  ;;  %3120 = vmatmul.mubr.bf16.gmra.mxu0 %v11041_v10  ;;  %v11340_v60 = vpop.f32.mrf.mxu1  ;;  %3233 = vmatmul.mubr.bf16.gmra.mxu1 %v11041_v10  ;;  %v9508_v63 = vcombine.high %v334_v30, %v342_v33 }
 0x188   : > { %17920 = vst [vmem:[#allocation123_spill] sm:$0xff] %v11331_v54  ;;  %17921 = vst [vmem:[#allocation124_spill] sm:$0xff] %v11340_v60  ;;  %3129 = vmatprep.mubr.bf16.mxu0 %v17850_v16  ;;  %3242 = vmatprep.mubr.bf16.mxu1 %v17850_v16  ;;  %v9523_v60 = vcombine.low %v350_v1, %v358_v8  ;;  %v9506_v54 = vcombine.high %v333_v40, %v341_v13  ;;  %v309_v40 = vld [vmem:[%s17623_s1 + $0xe0] sm:$0xff] }
 0x189   : > { %v11350_v52 = vpop.f32.mrf.mxu0  ;;  %3308 = vmatpush1.bf16.msra.mxu0 %v9537_v42  ;;  %v11353_v47 = vpop.f32.mrf.mxu1  ;;  %3421 = vmatpush1.bf16.msra.mxu1 %v9539_v28  ;;  %v318_v28 = vld [vmem:[%s17623_s1 + $0x128] sm:$0xff]  ;;  %v9507_v8 = vcombine.low %v334_v30, %v342_v33 }
 0x18a   : > { %17922 = vst [vmem:[#allocation125_spill] sm:$0xff] %v11350_v52  ;;  %17923 = vst [vmem:[#allocation126_spill] sm:$0xff] %v11353_v47  ;;  %3309 = vmatprep.subr.bf16.mxu0 %v9522_v31  ;;  %3422 = vmatprep.subr.bf16.mxu1 %v9524_v0  ;;  %v325_v52 = vld [vmem:[%s17623_s1 + $0x160] sm:$0xff]  ;;  %v326_v31 = vld [vmem:[%s17623_s1 + $0x168] sm:$0xff] }
 0x18b   : > { %v11355_v26 = vpop.f32.mrf.mxu0  ;;  %v11363_v42 = vpop.f32.mrf.mxu1  ;;  %v9490_v0 = vcombine.high %v317_v6, %v325_v52  ;;  %v301_v47 = vld [vmem:[%s17623_s1 + $0xa0] sm:$0xff]  ;;  %v9489_v30 = vcombine.low %v317_v6, %v325_v52  ;;  %v286_v6 = vld [vmem:[%s17623_s1 + $0x28] sm:$0xff] }
 0x18c   : > { %17924 = vst [vmem:[#allocation127_spill] sm:$0xff] %v11355_v26  ;;  %17925 = vst [vmem:[#allocation128_spill] sm:$0xff] %v11363_v42  ;;  %v9492_v42 = vcombine.high %v318_v28, %v326_v31  ;;  %v294_v52 = vld [vmem:[%s17623_s1 + $0x68] sm:$0xff] }
 0x18d   : > { %v11371_v36 = vpop.f32.mrf.mxu0  ;;  %3310 = vmatpush1.bf16.msra.mxu0 %v9521_v62  ;;  %v11373_v1 = vpop.f32.mrf.mxu1  ;;  %3423 = vmatpush1.bf16.msra.mxu1 %v9523_v60  ;;  %v9491_v62 = vcombine.low %v318_v28, %v326_v31  ;;  %v9473_v28 = vcombine.low %v301_v47, %v309_v40 }
 0x18e   : > { %17926 = vst [vmem:[#allocation129_spill] sm:$0xff] %v11371_v36  ;;  %17927 = vst [vmem:[#allocation130_spill] sm:$0xff] %v11373_v1  ;;  %3311 = vmatprep.subr.bf16.mxu0 %v9506_v54  ;;  %3424 = vmatprep.subr.bf16.mxu1 %v9508_v63  ;;  %v302_v54 = vld [vmem:[%s17623_s1 + $0xa8] sm:$0xff]  ;;  %v285_v36 = vld [vmem:[%s17623_s1 + $0x20] sm:$0xff] }
 0x18f   : > { %v11375_v26 = vpop.f32.mrf.mxu0  ;;  %3130 = vmatmul.mubr.bf16.gmra.mxu0 %v11088_v56  ;;  %v11384_v13 = vpop.f32.mrf.mxu1  ;;  %3243 = vmatmul.mubr.bf16.gmra.mxu1 %v11088_v56  ;;  %v310_v63 = vld [vmem:[%s17623_s1 + $0xe8] sm:$0xff] }
 0x190   : > { %17928 = vst [vmem:[#allocation131_spill] sm:$0xff] %v11375_v26  ;;  %17929 = vst [vmem:[#allocation132_spill] sm:$0xff] %v11384_v13  ;;  %3139 = vmatprep.mubr.bf16.mxu0 %v17850_v16  ;;  %3252 = vmatprep.mubr.bf16.mxu1 %v17850_v16  ;;  %v9474_v13 = vcombine.high %v301_v47, %v309_v40  ;;  %v9476_v1 = vcombine.high %v302_v54, %v310_v63  ;;  %v11430_v47 = vld [vmem:[%s17623_s1 + $0x3f0] sm:$0xff] }
 0x191   : > { %v11394_v60 = vpop.f32.mrf.mxu0  ;;  %3312 = vmatpush1.bf16.msra.mxu0 %v9505_v7  ;;  %v11397_v33 = vpop.f32.mrf.mxu1  ;;  %3425 = vmatpush1.bf16.msra.mxu1 %v9507_v8  ;;  %v9475_v8 = vcombine.low %v302_v54, %v310_v63 }
 0x192   : > { %17930 = vst [vmem:[#allocation133_spill] sm:$0xff] %v11394_v60  ;;  %17931 = vst [vmem:[#allocation134_spill] sm:$0xff] %v11397_v33  ;;  %3313 = vmatprep.subr.bf16.mxu0 %v9490_v0  ;;  %3426 = vmatprep.subr.bf16.mxu1 %v9492_v42  ;;  %v293_v60 = vld [vmem:[%s17623_s1 + $0x60] sm:$0xff]  ;;  %v11425_v33 = vld [vmem:[%s17623_s1 + $0x3b0] sm:$0xff] }
 0x193   : > { %v11399_v26 = vpop.f32.mrf.mxu0  ;;  %v11407_v7 = vpop.f32.mrf.mxu1  ;;  %v9458_v0 = vcombine.high %v285_v36, %v293_v60  ;;  %v9457_v63 = vcombine.low %v285_v36, %v293_v60 }
 0x194   : > { %17932 = vst [vmem:[#allocation135_spill] sm:$0xff] %v11399_v26  ;;  %17933 = vst [vmem:[#allocation136_spill] sm:$0xff] %v11407_v7  ;;  %v9460_v7 = vcombine.high %v286_v6, %v294_v52 }
 0x195   : > { %v11415_v42 = vpop.f32.mrf.mxu0  ;;  %3314 = vmatpush1.bf16.msra.mxu0 %v9489_v30  ;;  %v11417_v31 = vpop.f32.mrf.mxu1  ;;  %3427 = vmatpush1.bf16.msra.mxu1 %v9491_v62  ;;  %v9459_v62 = vcombine.low %v286_v6, %v294_v52 }
 0x196   : > { %17934 = vst [vmem:[#allocation137_spill] sm:$0xff] %v11415_v42  ;;  %17935 = vst [vmem:[#allocation138_spill] sm:$0xff] %v11417_v31  ;;  %3315 = vmatprep.subr.bf16.mxu0 %v9474_v13  ;;  %3428 = vmatprep.subr.bf16.mxu1 %v9476_v1  ;;  %v11439_v1 = vld [vmem:[%s17623_s1 + $0x3b8] sm:$0xff] }
 0x197   : > { %v11419_v26 = vpop.f32.mrf.mxu0  ;;  %3140 = vmatmul.mubr.bf16.gmra.mxu0 %v11135_v48  ;;  %v11432_v40 = vpop.f32.mrf.mxu1  ;;  %3253 = vmatmul.mubr.bf16.gmra.mxu1 %v11135_v48  ;;  %v11444_v13 = vld [vmem:[%s17623_s1 + $0x3f8] sm:$0xff] }
 0x198   : > { %17936 = vst [vmem:[#allocation139_spill] sm:$0xff] %v11419_v26  ;;  %17937 = vst [vmem:[#allocation140_spill] sm:$0xff] %v11432_v40  ;;  %3149 = vmatprep.mubr.bf16.mxu0 %v17850_v16  ;;  %3262 = vmatprep.mubr.bf16.mxu1 %v17850_v16  ;;  %v9574_v40 = vcombine.high %v11425_v33, %v11430_v47  ;;  %v9576_v31 = vcombine.high %v11439_v1, %v11444_v13 }
 0x199   : > { %v11446_v54 = vpop.f32.mrf.mxu0  ;;  %3316 = vmatpush1.bf16.msra.mxu0 %v9473_v28  ;;  %v11449_v30 = vpop.f32.mrf.mxu1  ;;  %3429 = vmatpush1.bf16.msra.mxu1 %v9475_v8 }
 0x19a   : > { %17938 = vst [vmem:[#allocation141_spill] sm:$0xff] %v11446_v54  ;;  %17939 = vst [vmem:[#allocation142_spill] sm:$0xff] %v11449_v30  ;;  %3317 = vmatprep.subr.bf16.mxu0 %v9458_v0  ;;  %3430 = vmatprep.subr.bf16.mxu1 %v9460_v7 }
 0x19b   : > { %v11453_v26 = vpop.f32.mrf.mxu0  ;;  %v11457_v42 = vpop.f32.mrf.mxu1 }
 0x19c   : > { %17940 = vst [vmem:[#allocation143_spill] sm:$0xff] %v11453_v26  ;;  %17941 = vst [vmem:[#allocation144_spill] sm:$0xff] %v11457_v42 }
 0x19d   : > { %v11459_v54 = vpop.f32.mrf.mxu0  ;;  %3318 = vmatpush1.bf16.msra.mxu0 %v9457_v63  ;;  %v11461_v36 = vpop.f32.mrf.mxu1  ;;  %3431 = vmatpush1.bf16.msra.mxu1 %v9459_v62 }
 0x19e   : > { %17942 = vst [vmem:[#allocation145_spill] sm:$0xff] %v11459_v54  ;;  %17943 = vst [vmem:[#allocation146_spill] sm:$0xff] %v11461_v36  ;;  %3529 = vmatprep.subr.bf16.mxu0 %v9574_v40  ;;  %3642 = vmatprep.subr.bf16.mxu1 %v9576_v31 }
 0x19f   : > { %v11463_v60 = vpop.f32.mrf.mxu0  ;;  %3150 = vmatmul.mubr.bf16.gmra.mxu0 %v11182_v58  ;;  %v11466_v6 = vpop.f32.mrf.mxu1  ;;  %3263 = vmatmul.mubr.bf16.gmra.mxu1 %v11182_v58 }
 0x1a0   : > { %17944 = vst [vmem:[#allocation147_spill] sm:$0xff] %v11463_v60  ;;  %17945 = vst [vmem:[#allocation148_spill] sm:$0xff] %v11466_v6  ;;  %3159 = vmatprep.mubr.bf16.mxu0 %v17850_v16  ;;  %3272 = vmatprep.mubr.bf16.mxu1 %v17850_v16 }
 0x1a1   : > { %v11470_v7 = vpop.f32.mrf.mxu0  ;;  %v11473_v52 = vpop.f32.mrf.mxu1 }
 0x1a2   : > { %17946 = vst [vmem:[#allocation149_spill] sm:$0xff] %v11470_v7  ;;  %17947 = vst [vmem:[#allocation150_spill] sm:$0xff] %v11473_v52 }
 0x1a3   : > { %v11475_v28 = vpop.f32.mrf.mxu0  ;;  %v11477_v8 = vpop.f32.mrf.mxu1 }
 0x1a4   : > { %17948 = vst [vmem:[#allocation151_spill] sm:$0xff] %v11475_v28  ;;  %17949 = vst [vmem:[#allocation152_spill] sm:$0xff] %v11477_v8 }
 0x1a5   : > { %v11479_v0 = vpop.f32.mrf.mxu0  ;;  %v11481_v40 = vpop.f32.mrf.mxu1 }
 0x1a6   : > { %17950 = vst [vmem:[#allocation153_spill] sm:$0xff] %v11479_v0  ;;  %17951 = vst [vmem:[#allocation154_spill] sm:$0xff] %v11481_v40 }
 0x1a7   : > { %v11483_v31 = vpop.f32.mrf.mxu0  ;;  %3160 = vmatmul.mubr.bf16.gmra.mxu0 %v11205_v4  ;;  %v11486_v63 = vpop.f32.mrf.mxu1  ;;  %3273 = vmatmul.mubr.bf16.gmra.mxu1 %v11205_v4 }
 0x1a8   : > { %17952 = vst [vmem:[#allocation155_spill] sm:$0xff] %v11483_v31  ;;  %17953 = vst [vmem:[#allocation156_spill] sm:$0xff] %v11486_v63  ;;  %3169 = vmatprep.mubr.bf16.mxu0 %v17850_v16  ;;  %3282 = vmatprep.mubr.bf16.mxu1 %v17850_v16 }
 0x1a9   : > { %v11490_v62 = vpop.f32.mrf.mxu0  ;;  %v11493_v28 = vpop.f32.mrf.mxu1 }
 0x1aa   : > { %17954 = vst [vmem:[#allocation157_spill] sm:$0xff] %v11490_v62  ;;  %17955 = vst [vmem:[#allocation158_spill] sm:$0xff] %v11493_v28 }
 0x1ab   : > { %v11495_v8 = vpop.f32.mrf.mxu0  ;;  %v11497_v0 = vpop.f32.mrf.mxu1 }
 0x1ac   : > { %17956 = vst [vmem:[#allocation159_spill] sm:$0xff] %v11495_v8  ;;  %17957 = vst [vmem:[#allocation160_spill] sm:$0xff] %v11497_v0 }
 0x1ad   : > { %v11499_v40 = vpop.f32.mrf.mxu0  ;;  %v11501_v31 = vpop.f32.mrf.mxu1 }
 0x1ae   : > { %17958 = vst [vmem:[#allocation161_spill] sm:$0xff] %v11499_v40  ;;  %17959 = vst [vmem:[#allocation162_spill] sm:$0xff] %v11501_v31 }
 0x1af   : > { %v11503_v52 = vpop.f32.mrf.mxu0  ;;  %3170 = vmatmul.mubr.bf16.gmra.mxu0 %v11228_v21  ;;  %v11506_v63 = vpop.f32.mrf.mxu1  ;;  %3283 = vmatmul.mubr.bf16.gmra.mxu1 %v11228_v21 }
 0x1b0   : > { %17960 = vst [vmem:[#allocation163_spill] sm:$0xff] %v11503_v52  ;;  %17961 = vst [vmem:[#allocation164_spill] sm:$0xff] %v11506_v63  ;;  %3179 = vmatprep.mubr.bf16.mxu0 %v17850_v16  ;;  %3292 = vmatprep.mubr.bf16.mxu1 %v17850_v16 }
 0x1b1   : > { %v11510_v62 = vpop.f32.mrf.mxu0  ;;  %v11513_v8 = vpop.f32.mrf.mxu1 }
 0x1b2   : > { %17962 = vst [vmem:[#allocation165_spill] sm:$0xff] %v11510_v62  ;;  %17963 = vst [vmem:[#allocation166_spill] sm:$0xff] %v11513_v8  ;;  %v9575_v8 = vcombine.low %v11439_v1, %v11444_v13  ;;  %v368_v1 = vld [vmem:[%s17623_s1 + $0x2b8] sm:$0xff] }
 0x1b3   : > { %v11515_v0 = vpop.f32.mrf.mxu0  ;;  %v11517_v40 = vpop.f32.mrf.mxu1  ;;  %v376_v13 = vld [vmem:[%s17623_s1 + $0x2f8] sm:$0xff] }
 0x1b4   : > { %17964 = vst [vmem:[#allocation167_spill] sm:$0xff] %v11515_v0  ;;  %17965 = vst [vmem:[#allocation168_spill] sm:$0xff] %v11517_v40  ;;  %v9544_v26 = vcombine.high %v368_v1, %v376_v13 }
 0x1b5   : > { %v11519_v31 = vpop.f32.mrf.mxu0  ;;  %v11521_v52 = vpop.f32.mrf.mxu1 }
 0x1b6   : > { %17966 = vst [vmem:[#allocation169_spill] sm:$0xff] %v11519_v31  ;;  %17967 = vst [vmem:[#allocation170_spill] sm:$0xff] %v11521_v52  ;;  %v9573_v31 = vcombine.low %v11425_v33, %v11430_v47  ;;  %v367_v33 = vld [vmem:[%s17623_s1 + $0x2b0] sm:$0xff] }
 0x1b7   : > { %v11523_v28 = vpop.f32.mrf.mxu0  ;;  %3180 = vmatmul.mubr.bf16.gmra.mxu0 %v11251_v38  ;;  %v11526_v63 = vpop.f32.mrf.mxu1  ;;  %3293 = vmatmul.mubr.bf16.gmra.mxu1 %v11251_v38  ;;  %v375_v47 = vld [vmem:[%s17623_s1 + $0x2f0] sm:$0xff] }
 0x1b8   : > { %17968 = vst [vmem:[#allocation171_spill] sm:$0xff] %v11523_v28  ;;  %17969 = vst [vmem:[#allocation172_spill] sm:$0xff] %v11526_v63  ;;  %3335 = vmatprep.mubr.bf16.mxu0 %v17850_v16  ;;  %3448 = vmatprep.mubr.bf16.mxu1 %v17850_v16  ;;  %v383_v28 = vld [vmem:[%s17623_s1 + $0x330] sm:$0xff]  ;;  %v9542_v54 = vcombine.high %v367_v33, %v375_v47 }
 0x1b9   : > { %v11530_v62 = vpop.f32.mrf.mxu0  ;;  %v11533_v0 = vpop.f32.mrf.mxu1  ;;  %v391_v63 = vld [vmem:[%s17623_s1 + $0x370] sm:$0xff] }
 0x1ba   : > { %17970 = vst [vmem:[#allocation173_spill] sm:$0xff] %v11530_v62  ;;  %17971 = vst [vmem:[#allocation174_spill] sm:$0xff] %v11533_v0  ;;  %v384_v62 = vld [vmem:[%s17623_s1 + $0x338] sm:$0xff]  ;;  %v9558_v6 = vcombine.high %v383_v28, %v391_v63 }
 0x1bb   : > { %v11535_v40 = vpop.f32.mrf.mxu0  ;;  %v11543_v52 = vpop.f32.mrf.mxu1 }
 0x1bc   : > { %17972 = vst [vmem:[#allocation175_spill] sm:$0xff] %v11535_v40  ;;  %17973 = vst [vmem:[#allocation176_spill] sm:$0xff] %v11543_v52  ;;  %v392_v40 = vld [vmem:[%s17623_s1 + $0x378] sm:$0xff] }
 0x1bd   : > { %v11553_v0 = vpop.f32.mrf.mxu0  ;;  %v11557_v7 = vpop.f32.mrf.mxu1  ;;  %v9560_v60 = vcombine.high %v384_v62, %v392_v40 }
 0x1be   : > { %17974 = vst [vmem:[#allocation177_spill] sm:$0xff] %v11553_v0  ;;  %17975 = vst [vmem:[#allocation178_spill] sm:$0xff] %v11557_v7  ;;  %v9557_v0 = vcombine.low %v383_v28, %v391_v63  ;;  %v351_v28 = vld [vmem:[%s17623_s1 + $0x230] sm:$0xff]  ;;  %v9541_v63 = vcombine.low %v367_v33, %v375_v47 }
 0x1bf   : > { %v11565_v52 = vpop.f32.mrf.mxu0  ;;  %3336 = vmatmul.mubr.bf16.vlgmr.msra.gmra.mxu0 %v10226_v46  ;;  %v11574_v7 = vpop.f32.mrf.mxu1  ;;  %3449 = vmatmul.mubr.bf16.vlgmr.msra.gmra.mxu1 %v10226_v46 }
 0x1c0   : > { %17976 = vst [vmem:[#allocation179_spill] sm:$0xff] %v11565_v52  ;;  %17977 = vst [vmem:[#allocation180_spill] sm:$0xff] %v11574_v7  ;;  %3530 = vmatpush1.bf16.msra.mxu0 %v9573_v31  ;;  %3643 = vmatpush1.bf16.msra.mxu1 %v9575_v8  ;;  %v9559_v52 = vcombine.low %v384_v62, %v392_v40  ;;  %v359_v8 = vld [vmem:[%s17623_s1 + $0x270] sm:$0xff]  ;;  %v352_v40 = vld [vmem:[%s17623_s1 + $0x238] sm:$0xff] }
 0x1c1   : > { %v11577_v36 = vpop.f32.mrf.mxu0  ;;  %3345 = vmatprep.mubr.bf16.mxu0 %v17850_v16  ;;  %v11580_v42 = vpop.f32.mrf.mxu1  ;;  %3458 = vmatprep.mubr.bf16.mxu1 %v17850_v16 }
 0x1c2   : > { %17978 = vst [vmem:[#allocation181_spill] sm:$0xff] %v11577_v36  ;;  %17979 = vst [vmem:[#allocation182_spill] sm:$0xff] %v11580_v42  ;;  %3531 = vmatprep.subr.bf16.mxu0 %v9558_v6  ;;  %3644 = vmatprep.subr.bf16.mxu1 %v9560_v60  ;;  %v360_v6 = vld [vmem:[%s17623_s1 + $0x278] sm:$0xff]  ;;  %v9526_v42 = vcombine.high %v351_v28, %v359_v8  ;;  %v335_v36 = vld [vmem:[%s17623_s1 + $0x1b0] sm:$0xff] }
 0x1c3   : > { %v11583_v30 = vpop.f32.mrf.mxu0  ;;  %v11591_v31 = vpop.f32.mrf.mxu1 }
 0x1c4   : > { %17980 = vst [vmem:[#allocation183_spill] sm:$0xff] %v11583_v30  ;;  %17981 = vst [vmem:[#allocation184_spill] sm:$0xff] %v11591_v31  ;;  %3532 = vmatpush1.bf16.msra.mxu0 %v9557_v0  ;;  %3645 = vmatpush1.bf16.msra.mxu1 %v9559_v52  ;;  %v9543_v30 = vcombine.low %v368_v1, %v376_v13  ;;  %v9528_v0 = vcombine.high %v352_v40, %v360_v6  ;;  %v343_v52 = vld [vmem:[%s17623_s1 + $0x1f0] sm:$0xff] }
 0x1c5   : > { %v11599_v60 = vpop.f32.mrf.mxu0  ;;  %3533 = vmatprep.subr.bf16.mxu0 %v9542_v54  ;;  %v11601_v62 = vpop.f32.mrf.mxu1  ;;  %3646 = vmatprep.subr.bf16.mxu1 %v9544_v26  ;;  %v336_v26 = vld [vmem:[%s17623_s1 + $0x1b8] sm:$0xff]  ;;  %v9525_v1 = vcombine.low %v351_v28, %v359_v8  ;;  %v9509_v8 = vcombine.low %v335_v36, %v343_v52 }
 0x1c6   : > { %17982 = vst [vmem:[#allocation185_spill] sm:$0xff] %v11599_v60  ;;  %17983 = vst [vmem:[#allocation186_spill] sm:$0xff] %v11601_v62  ;;  %v344_v54 = vld [vmem:[%s17623_s1 + $0x1f8] sm:$0xff]  ;;  %v319_v60 = vld [vmem:[%s17623_s1 + $0x130] sm:$0xff] }
 0x1c7   : > { %v11603_v31 = vpop.f32.mrf.mxu0  ;;  %3346 = vmatmul.mubr.bf16.gmra.mxu0 %v11041_v10  ;;  %v11612_v33 = vpop.f32.mrf.mxu1  ;;  %3459 = vmatmul.mubr.bf16.gmra.mxu1 %v11041_v10  ;;  %v9527_v10 = vcombine.low %v352_v40, %v360_v6  ;;  %v9512_v62 = vcombine.high %v336_v26, %v344_v54  ;;  %v9511_v6 = vcombine.low %v336_v26, %v344_v54 }
 0x1c8   : > { %17984 = vst [vmem:[#allocation187_spill] sm:$0xff] %v11603_v31  ;;  %17985 = vst [vmem:[#allocation188_spill] sm:$0xff] %v11612_v33  ;;  %3355 = vmatprep.mubr.bf16.mxu0 %v17850_v16  ;;  %3468 = vmatprep.mubr.bf16.mxu1 %v17850_v16  ;;  %v9510_v33 = vcombine.high %v335_v36, %v343_v52  ;;  %v311_v36 = vld [vmem:[%s17623_s1 + $0xf0] sm:$0xff] }
 0x1c9   : > { %v11622_v47 = vpop.f32.mrf.mxu0  ;;  %3534 = vmatpush1.bf16.msra.mxu0 %v9541_v63  ;;  %v11625_v13 = vpop.f32.mrf.mxu1  ;;  %3647 = vmatpush1.bf16.msra.mxu1 %v9543_v30  ;;  %v328_v30 = vld [vmem:[%s17623_s1 + $0x178] sm:$0xff] }
 0x1ca   : > { %17986 = vst [vmem:[#allocation189_spill] sm:$0xff] %v11622_v47  ;;  %17987 = vst [vmem:[#allocation190_spill] sm:$0xff] %v11625_v13  ;;  %3535 = vmatprep.subr.bf16.mxu0 %v9526_v42  ;;  %3648 = vmatprep.subr.bf16.mxu1 %v9528_v0  ;;  %v327_v47 = vld [vmem:[%s17623_s1 + $0x170] sm:$0xff]  ;;  %v320_v42 = vld [vmem:[%s17623_s1 + $0x138] sm:$0xff] }
 0x1cb   : > { %v11627_v31 = vpop.f32.mrf.mxu0  ;;  %v11635_v63 = vpop.f32.mrf.mxu1  ;;  %v9494_v0 = vcombine.high %v319_v60, %v327_v47  ;;  %v303_v13 = vld [vmem:[%s17623_s1 + $0xb0] sm:$0xff]  ;;  %v9493_v54 = vcombine.low %v319_v60, %v327_v47  ;;  %v288_v60 = vld [vmem:[%s17623_s1 + $0x38] sm:$0xff] }
 0x1cc   : > { %17988 = vst [vmem:[#allocation191_spill] sm:$0xff] %v11627_v31  ;;  %17989 = vst [vmem:[#allocation192_spill] sm:$0xff] %v11635_v63  ;;  %v9496_v63 = vcombine.high %v320_v42, %v328_v30  ;;  %v296_v47 = vld [vmem:[%s17623_s1 + $0x78] sm:$0xff] }
 0x1cd   : > { %v11643_v28 = vpop.f32.mrf.mxu0  ;;  %3536 = vmatpush1.bf16.msra.mxu0 %v9525_v1  ;;  %v11645_v40 = vpop.f32.mrf.mxu1  ;;  %3649 = vmatpush1.bf16.msra.mxu1 %v9527_v10  ;;  %v9478_v10 = vcombine.high %v303_v13, %v311_v36 }
 0x1ce   : > { %17990 = vst [vmem:[#allocation193_spill] sm:$0xff] %v11643_v28  ;;  %17991 = vst [vmem:[#allocation194_spill] sm:$0xff] %v11645_v40  ;;  %3537 = vmatprep.subr.bf16.mxu0 %v9510_v33  ;;  %3650 = vmatprep.subr.bf16.mxu1 %v9512_v62  ;;  %v304_v33 = vld [vmem:[%s17623_s1 + $0xb8] sm:$0xff]  ;;  %v287_v40 = vld [vmem:[%s17623_s1 + $0x30] sm:$0xff] }
 0x1cf   : > { %v11647_v31 = vpop.f32.mrf.mxu0  ;;  %3356 = vmatmul.mubr.bf16.gmra.mxu0 %v11088_v56  ;;  %v11656_v52 = vpop.f32.mrf.mxu1  ;;  %3469 = vmatmul.mubr.bf16.gmra.mxu1 %v11088_v56  ;;  %v312_v62 = vld [vmem:[%s17623_s1 + $0xf8] sm:$0xff]  ;;  %v9495_v56 = vcombine.low %v320_v42, %v328_v30  ;;  %v9477_v42 = vcombine.low %v303_v13, %v311_v36  ;;  %v11702_v13 = vld [vmem:[%s17623_s1 + $0xbc0] sm:$0xff] }
 0x1d0   : > { %17992 = vst [vmem:[#allocation195_spill] sm:$0xff] %v11647_v31  ;;  %17993 = vst [vmem:[#allocation196_spill] sm:$0xff] %v11656_v52  ;;  %3365 = vmatprep.mubr.bf16.mxu0 %v17850_v16  ;;  %3478 = vmatprep.mubr.bf16.mxu1 %v17850_v16  ;;  %v9480_v31 = vcombine.high %v304_v33, %v312_v62 }
 0x1d1   : > { %v11666_v26 = vpop.f32.mrf.mxu0  ;;  %3538 = vmatpush1.bf16.msra.mxu0 %v9509_v8  ;;  %v11669_v1 = vpop.f32.mrf.mxu1  ;;  %3651 = vmatpush1.bf16.msra.mxu1 %v9511_v6  ;;  %v9479_v6 = vcombine.low %v304_v33, %v312_v62  ;;  %v11716_v33 = vld [vmem:[%s17623_s1 + $0xbc8] sm:$0xff] }
 0x1d2   : > { %17994 = vst [vmem:[#allocation197_spill] sm:$0xff] %v11666_v26  ;;  %17995 = vst [vmem:[#allocation198_spill] sm:$0xff] %v11669_v1  ;;  %3539 = vmatprep.subr.bf16.mxu0 %v9494_v0  ;;  %3652 = vmatprep.subr.bf16.mxu1 %v9496_v63  ;;  %v295_v26 = vld [vmem:[%s17623_s1 + $0x70] sm:$0xff]  ;;  %v11697_v1 = vld [vmem:[%s17623_s1 + $0xb80] sm:$0xff] }
 0x1d3   : > { %v11671_v52 = vpop.f32.mrf.mxu0  ;;  %v11679_v8 = vpop.f32.mrf.mxu1  ;;  %v9462_v0 = vcombine.high %v287_v40, %v295_v26 }
 0x1d4   : > { %17996 = vst [vmem:[#allocation199_spill] sm:$0xff] %v11671_v52  ;;  %17997 = vst [vmem:[#allocation200_spill] sm:$0xff] %v11679_v8  ;;  %v9464_v8 = vcombine.high %v288_v60, %v296_v47 }
 0x1d5   : > { %v11687_v63 = vpop.f32.mrf.mxu0  ;;  %3540 = vmatpush1.bf16.msra.mxu0 %v9493_v54  ;;  %v11689_v30 = vpop.f32.mrf.mxu1  ;;  %3653 = vmatpush1.bf16.msra.mxu1 %v9495_v56  ;;  %v9461_v54 = vcombine.low %v287_v40, %v295_v26 }
 0x1d6   : > { %17998 = vst [vmem:[#allocation201_spill] sm:$0xff] %v11687_v63  ;;  %17999 = vst [vmem:[#allocation202_spill] sm:$0xff] %v11689_v30  ;;  %3541 = vmatprep.subr.bf16.mxu0 %v9478_v10  ;;  %3654 = vmatprep.subr.bf16.mxu1 %v9480_v31  ;;  %v11711_v31 = vld [vmem:[%s17623_s1 + $0xb88] sm:$0xff]  ;;  %v9819_v10 = vcombine.high %v11697_v1, %v11702_v13  ;;  %v9625_v63 = vld [vmem:[%s17623_s1 + $0x980] sm:$0xff] }
 0x1d7   : > { %v11691_v52 = vpop.f32.mrf.mxu0  ;;  %3366 = vmatmul.mubr.bf16.gmra.mxu0 %v11135_v48  ;;  %v11704_v36 = vpop.f32.mrf.mxu1  ;;  %3479 = vmatmul.mubr.bf16.gmra.mxu1 %v11135_v48  ;;  %v9463_v48 = vcombine.low %v288_v60, %v296_v47 }
 0x1d8   : > { %18000 = vst [vmem:[#allocation203_spill] sm:$0xff] %v11691_v52  ;;  %18001 = vst [vmem:[#allocation204_spill] sm:$0xff] %v11704_v36  ;;  %3375 = vmatprep.mubr.bf16.mxu0 %v17850_v16  ;;  %3488 = vmatprep.mubr.bf16.mxu1 %v17850_v16  ;;  %v9821_v52 = vcombine.high %v11711_v31, %v11716_v33 }
 0x1d9   : > { %v11718_v62 = vpop.f32.mrf.mxu0  ;;  %3542 = vmatpush1.bf16.msra.mxu0 %v9477_v42  ;;  %v11721_v56 = vpop.f32.mrf.mxu1  ;;  %3655 = vmatpush1.bf16.msra.mxu1 %v9479_v6 }
 0x1da   : > { %18002 = vst [vmem:[#allocation205_spill] sm:$0xff] %v11718_v62  ;;  %18003 = vst [vmem:[#allocation206_spill] sm:$0xff] %v11721_v56  ;;  %3543 = vmatprep.subr.bf16.mxu0 %v9462_v0  ;;  %3656 = vmatprep.subr.bf16.mxu1 %v9464_v8 }
 0x1db   : > { %v11725_v36 = vpop.f32.mrf.mxu0  ;;  %v11729_v30 = vpop.f32.mrf.mxu1 }
 0x1dc   : > { %18004 = vst [vmem:[#allocation207_spill] sm:$0xff] %v11725_v36  ;;  %18005 = vst [vmem:[#allocation208_spill] sm:$0xff] %v11729_v30 }
 0x1dd   : > { %v11731_v62 = vpop.f32.mrf.mxu0  ;;  %3544 = vmatpush1.bf16.msra.mxu0 %v9461_v54  ;;  %v11733_v40 = vpop.f32.mrf.mxu1  ;;  %3657 = vmatpush1.bf16.msra.mxu1 %v9463_v48 }
 0x1de   : > { %18006 = vst [vmem:[#allocation209_spill] sm:$0xff] %v11731_v62  ;;  %18007 = vst [vmem:[#allocation210_spill] sm:$0xff] %v11733_v40  ;;  %4554 = vmatprep.subr.bf16.mxu0 %v9819_v10  ;;  %4667 = vmatprep.subr.bf16.mxu1 %v9821_v52 }
 0x1df   : > { %v11735_v26 = vpop.f32.mrf.mxu0  ;;  %3376 = vmatmul.mubr.bf16.gmra.mxu0 %v11182_v58  ;;  %v11738_v60 = vpop.f32.mrf.mxu1  ;;  %3489 = vmatmul.mubr.bf16.gmra.mxu1 %v11182_v58 }
 0x1e0   : > { %18008 = vst [vmem:[#allocation211_spill] sm:$0xff] %v11735_v26  ;;  %18009 = vst [vmem:[#allocation212_spill] sm:$0xff] %v11738_v60  ;;  %3385 = vmatprep.mubr.bf16.mxu0 %v17850_v16  ;;  %3498 = vmatprep.mubr.bf16.mxu1 %v17850_v16 }
 0x1e1   : > { %v11742_v8 = vpop.f32.mrf.mxu0  ;;  %v11745_v47 = vpop.f32.mrf.mxu1 }
 0x1e2   : > { %18010 = vst [vmem:[#allocation213_spill] sm:$0xff] %v11742_v8  ;;  %18011 = vst [vmem:[#allocation214_spill] sm:$0xff] %v11745_v47 }
 0x1e3   : > { %v11747_v42 = vpop.f32.mrf.mxu0  ;;  %v11749_v6 = vpop.f32.mrf.mxu1 }
 0x1e4   : > { %18012 = vst [vmem:[#allocation215_spill] sm:$0xff] %v11747_v42  ;;  %18013 = vst [vmem:[#allocation216_spill] sm:$0xff] %v11749_v6 }
 0x1e5   : > { %v11751_v0 = vpop.f32.mrf.mxu0  ;;  %v11753_v54 = vpop.f32.mrf.mxu1 }
 0x1e6   : > { %18014 = vst [vmem:[#allocation217_spill] sm:$0xff] %v11751_v0  ;;  %18015 = vst [vmem:[#allocation218_spill] sm:$0xff] %v11753_v54 }
 0x1e7   : > { %v11755_v52 = vpop.f32.mrf.mxu0  ;;  %3386 = vmatmul.mubr.bf16.gmra.mxu0 %v11205_v4  ;;  %v11758_v58 = vpop.f32.mrf.mxu1  ;;  %3499 = vmatmul.mubr.bf16.gmra.mxu1 %v11205_v4 }
 0x1e8   : > { %18016 = vst [vmem:[#allocation219_spill] sm:$0xff] %v11755_v52  ;;  %18017 = vst [vmem:[#allocation220_spill] sm:$0xff] %v11758_v58  ;;  %3395 = vmatprep.mubr.bf16.mxu0 %v17850_v16  ;;  %3508 = vmatprep.mubr.bf16.mxu1 %v17850_v16 }
 0x1e9   : > { %v11762_v48 = vpop.f32.mrf.mxu0  ;;  %v11765_v10 = vpop.f32.mrf.mxu1 }
 0x1ea   : > { %18018 = vst [vmem:[#allocation221_spill] sm:$0xff] %v11762_v48  ;;  %18019 = vst [vmem:[#allocation222_spill] sm:$0xff] %v11765_v10 }
 0x1eb   : > { %v11767_v6 = vpop.f32.mrf.mxu0  ;;  %v11769_v0 = vpop.f32.mrf.mxu1 }
 0x1ec   : > { %18020 = vst [vmem:[#allocation223_spill] sm:$0xff] %v11767_v6  ;;  %18021 = vst [vmem:[#allocation224_spill] sm:$0xff] %v11769_v0 }
 0x1ed   : > { %v11771_v54 = vpop.f32.mrf.mxu0  ;;  %v11773_v52 = vpop.f32.mrf.mxu1 }
 0x1ee   : > { %18022 = vst [vmem:[#allocation225_spill] sm:$0xff] %v11771_v54  ;;  %18023 = vst [vmem:[#allocation226_spill] sm:$0xff] %v11773_v52 }
 0x1ef   : > { %v11775_v42 = vpop.f32.mrf.mxu0  ;;  %3396 = vmatmul.mubr.bf16.gmra.mxu0 %v11228_v21  ;;  %v11778_v4 = vpop.f32.mrf.mxu1  ;;  %3509 = vmatmul.mubr.bf16.gmra.mxu1 %v11228_v21 }
 0x1f0   : > { %18024 = vst [vmem:[#allocation227_spill] sm:$0xff] %v11775_v42  ;;  %18025 = vst [vmem:[#allocation228_spill] sm:$0xff] %v11778_v4  ;;  %3405 = vmatprep.mubr.bf16.mxu0 %v17850_v16  ;;  %3518 = vmatprep.mubr.bf16.mxu1 %v17850_v16 }
 0x1f1   : > { %v11782_v48 = vpop.f32.mrf.mxu0  ;;  %v11785_v6 = vpop.f32.mrf.mxu1 }
 0x1f2   : > { %18026 = vst [vmem:[#allocation229_spill] sm:$0xff] %v11782_v48  ;;  %18027 = vst [vmem:[#allocation230_spill] sm:$0xff] %v11785_v6 }
 0x1f3   : > { %v11787_v0 = vpop.f32.mrf.mxu0  ;;  %v11789_v54 = vpop.f32.mrf.mxu1 }
 0x1f4   : > { %18028 = vst [vmem:[#allocation231_spill] sm:$0xff] %v11787_v0  ;;  %18029 = vst [vmem:[#allocation232_spill] sm:$0xff] %v11789_v54 }
 0x1f5   : > { %v11791_v52 = vpop.f32.mrf.mxu0  ;;  %v11793_v42 = vpop.f32.mrf.mxu1 }
 0x1f6   : > { %18030 = vst [vmem:[#allocation233_spill] sm:$0xff] %v11791_v52  ;;  %18031 = vst [vmem:[#allocation234_spill] sm:$0xff] %v11793_v42  ;;  %v9820_v52 = vcombine.low %v11711_v31, %v11716_v33  ;;  %v9658_v31 = vld [vmem:[%s17623_s1 + $0xa88] sm:$0xff] }
 0x1f7   : > { %v11795_v10 = vpop.f32.mrf.mxu0  ;;  %3406 = vmatmul.mubr.bf16.gmra.mxu0 %v11251_v38  ;;  %v11798_v21 = vpop.f32.mrf.mxu1  ;;  %3519 = vmatmul.mubr.bf16.gmra.mxu1 %v11251_v38  ;;  %v9818_v38 = vcombine.low %v11697_v1, %v11702_v13  ;;  %v9657_v1 = vld [vmem:[%s17623_s1 + $0xa80] sm:$0xff]  ;;  %v9666_v33 = vld [vmem:[%s17623_s1 + $0xac8] sm:$0xff] }
 0x1f8   : > { %18032 = vst [vmem:[#allocation235_spill] sm:$0xff] %v11795_v10  ;;  %18033 = vst [vmem:[#allocation236_spill] sm:$0xff] %v11798_v21  ;;  %3561 = vmatprep.mubr.bf16.mxu0 %v17850_v16  ;;  %3674 = vmatprep.mubr.bf16.mxu1 %v17850_v16  ;;  %v9673_v10 = vld [vmem:[%s17623_s1 + $0xb00] sm:$0xff]  ;;  %v9789_v40 = vcombine.high %v9658_v31, %v9666_v33 }
 0x1f9   : > { %v11802_v48 = vpop.f32.mrf.mxu0  ;;  %v11805_v0 = vpop.f32.mrf.mxu1  ;;  %v9681_v21 = vld [vmem:[%s17623_s1 + $0xb40] sm:$0xff] }
 0x1fa   : > { %18034 = vst [vmem:[#allocation237_spill] sm:$0xff] %v11802_v48  ;;  %18035 = vst [vmem:[#allocation238_spill] sm:$0xff] %v11805_v0  ;;  %v9674_v48 = vld [vmem:[%s17623_s1 + $0xb08] sm:$0xff]  ;;  %v9803_v4 = vcombine.high %v9673_v10, %v9681_v21  ;;  %v9665_v13 = vld [vmem:[%s17623_s1 + $0xac0] sm:$0xff] }
 0x1fb   : > { %v11807_v54 = vpop.f32.mrf.mxu0  ;;  %v11815_v42 = vpop.f32.mrf.mxu1  ;;  %v9787_v60 = vcombine.high %v9657_v1, %v9665_v13 }
 0x1fc   : > { %18036 = vst [vmem:[#allocation239_spill] sm:$0xff] %v11807_v54  ;;  %18037 = vst [vmem:[#allocation240_spill] sm:$0xff] %v11815_v42  ;;  %v9682_v54 = vld [vmem:[%s17623_s1 + $0xb48] sm:$0xff] }
 0x1fd   : > { %v11825_v0 = vpop.f32.mrf.mxu0  ;;  %v11829_v6 = vpop.f32.mrf.mxu1  ;;  %v9805_v58 = vcombine.high %v9674_v48, %v9682_v54  ;;  %v9804_v8 = vcombine.low %v9674_v48, %v9682_v54  ;;  %v9642_v48 = vld [vmem:[%s17623_s1 + $0xa08] sm:$0xff] }
 0x1fe   : > { %18038 = vst [vmem:[#allocation241_spill] sm:$0xff] %v11825_v0  ;;  %18039 = vst [vmem:[#allocation242_spill] sm:$0xff] %v11829_v6  ;;  %v9802_v0 = vcombine.low %v9673_v10, %v9681_v21 }
 0x1ff   : > { %v11837_v42 = vpop.f32.mrf.mxu0  ;;  %3562 = vmatmul.mubr.bf16.vlgmr.msra.gmra.mxu0 %v10226_v46  ;;  %v11846_v6 = vpop.f32.mrf.mxu1  ;;  %3675 = vmatmul.mubr.bf16.vlgmr.msra.gmra.mxu1 %v10226_v46  ;;  %v9641_v46 = vld [vmem:[%s17623_s1 + $0xa00] sm:$0xff] }
 0x200   : > { %4555 = vmatpush1.bf16.msra.mxu0 %v9818_v38  ;;  %4668 = vmatpush1.bf16.msra.mxu1 %v9820_v52  ;;  %v9649_v52 = vld [vmem:[%s17623_s1 + $0xa40] sm:$0xff]  ;;  %v9788_v38 = vcombine.low %v9658_v31, %v9666_v33 }
 0x201   : > { %v11849_v47 = vpop.f32.mrf.mxu0  ;;  %3571 = vmatprep.mubr.bf16.mxu0 %v17850_v16  ;;  %v11852_v26 = vpop.f32.mrf.mxu1  ;;  %3684 = vmatprep.mubr.bf16.mxu1 %v17850_v16  ;;  %v9771_v30 = vcombine.high %v9641_v46, %v9649_v52  ;;  %v9770_v31 = vcombine.low %v9641_v46, %v9649_v52 }
 0x202   : > { %4556 = vmatprep.subr.bf16.mxu0 %v9803_v4  ;;  %4669 = vmatprep.subr.bf16.mxu1 %v9805_v58  ;;  %v9650_v58 = vld [vmem:[%s17623_s1 + $0xa48] sm:$0xff]  ;;  %v9786_v4 = vcombine.low %v9657_v1, %v9665_v13 }
 0x203   : > { %v11855_v62 = vpop.f32.mrf.mxu0  ;;  %v11863_v54 = vpop.f32.mrf.mxu1  ;;  %v9773_v56 = vcombine.high %v9642_v48, %v9650_v58  ;;  %v9634_v1 = vld [vmem:[%s17623_s1 + $0x9c8] sm:$0xff]  ;;  %v9772_v28 = vcombine.low %v9642_v48, %v9650_v58 }
 0x204   : > { %4557 = vmatpush1.bf16.msra.mxu0 %v9802_v0  ;;  %4670 = vmatpush1.bf16.msra.mxu1 %v9804_v8  ;;  %v11878_v0 = vld [vmem:[%s10207_s26 + $0x8] sm:$0xff]  }
 0x205   : > { %v11871_v10 = vpop.f32.mrf.mxu0  ;;  %4558 = vmatprep.subr.bf16.mxu0 %v9787_v60  ;;  %v11873_v21 = vpop.f32.mrf.mxu1  ;;  %4671 = vmatprep.subr.bf16.mxu1 %v9789_v40  ;;  %v9633_v60 = vld [vmem:[%s17623_s1 + $0x9c0] sm:$0xff]  ;;  %v9626_v40 = vld [vmem:[%s17623_s1 + $0x988] sm:$0xff] }
 0x206   : > { %v9755_v7 = vcombine.high %v9625_v63, %v9633_v60  ;;  %v9757_v25 = vcombine.high %v9626_v40, %v9634_v1  ;;  %v9754_v48 = vcombine.low %v9625_v63, %v9633_v60  ;;  %v9601_v63 = vld [vmem:[%s17623_s1 + $0x8c0] sm:$0xff] }
 0x207   : > { %v11875_v36 = vpop.f32.mrf.mxu0  ;;  %3572 = vmatmul.mubr.bf16.gmra.mxu0 %v11878_v0  ;;  %v11887_v8 = vpop.f32.mrf.mxu1  ;;  %3685 = vmatmul.mubr.bf16.gmra.mxu1 %v11878_v0  ;;  %v9723_v43 = vcombine.high %v9593_v12, %v9601_v63 }
 0x208   : > { %3581 = vmatprep.mubr.bf16.mxu0 %v17850_v16  ;;  %3694 = vmatprep.mubr.bf16.mxu1 %v17850_v16 }
 0x209   : > { %v11897_v13 = vpop.f32.mrf.mxu0  ;;  %4559 = vmatpush1.bf16.msra.mxu0 %v9786_v4  ;;  %v11900_v33 = vpop.f32.mrf.mxu1  ;;  %4672 = vmatpush1.bf16.msra.mxu1 %v9788_v38  ;;  %v9617_v4 = vld [vmem:[%s17623_s1 + $0x940] sm:$0xff]  ;;  %v9756_v38 = vcombine.low %v9626_v40, %v9634_v1 }
 0x20a   : > { %4560 = vmatprep.subr.bf16.mxu0 %v9771_v30  ;;  %4673 = vmatprep.subr.bf16.mxu1 %v9773_v56  ;;  %v9610_v30 = vld [vmem:[%s17623_s1 + $0x908] sm:$0xff]  ;;  %v9739_v22 = vcombine.high %v9609_v23, %v9617_v4  ;;  %v9738_v40 = vcombine.low %v9609_v23, %v9617_v4 }
 0x20b   : > { %v11902_v27 = vpop.f32.mrf.mxu0  ;;  %v11910_v46 = vpop.f32.mrf.mxu1  ;;  %v9618_v56 = vld [vmem:[%s17623_s1 + $0x948] sm:$0xff] }
 0x20c   : > { %v9741_v14 = vcombine.high %v9610_v30, %v9618_v56 }
 0x20d   : > { %v11918_v52 = vpop.f32.mrf.mxu0  ;;  %4561 = vmatpush1.bf16.msra.mxu0 %v9770_v31  ;;  %v11920_v58 = vpop.f32.mrf.mxu1  ;;  %4674 = vmatpush1.bf16.msra.mxu1 %v9772_v28  ;;  %v9740_v31 = vcombine.low %v9610_v30, %v9618_v56  ;;  %v9722_v30 = vcombine.low %v9593_v12, %v9601_v63  ;;  %v11983_v12 = vld [vmem:[%s17623_s1 + $0xbd0] sm:$0xff]  ;;  %v11997_v63 = vld [vmem:[%s17623_s1 + $0xbd8] sm:$0xff] }
 0x20e   : > { %4562 = vmatprep.subr.bf16.mxu0 %v9755_v7  ;;  %4675 = vmatprep.subr.bf16.mxu1 %v9757_v25  ;;  %v9594_v7 = vld [vmem:[%s17623_s1 + $0x888] sm:$0xff] }
 0x20f   : > { %v11922_v19 = vpop.f32.mrf.mxu0  ;;  %3582 = vmatmul.mubr.bf16.gmra.mxu0 %v11925_v17  ;;  %v11934_v28 = vpop.f32.mrf.mxu1  ;;  %3695 = vmatmul.mubr.bf16.gmra.mxu1 %v11925_v17  ;;  %v9602_v25 = vld [vmem:[%s17623_s1 + $0x8c8] sm:$0xff] }
 0x210   : > { %18040 = vst [vmem:[#allocation243_spill] sm:$0xff] %v11934_v28  ;;  %3591 = vmatprep.mubr.bf16.mxu0 %v17850_v16  ;;  %3704 = vmatprep.mubr.bf16.mxu1 %v17850_v16  ;;  %v9725_v59 = vcombine.high %v9594_v7, %v9602_v25 }
 0x211   : > { %v11944_v60 = vpop.f32.mrf.mxu0  ;;  %4563 = vmatpush1.bf16.msra.mxu0 %v9754_v48  ;;  %v11947_v1 = vpop.f32.mrf.mxu1  ;;  %4676 = vmatpush1.bf16.msra.mxu1 %v9756_v38  ;;  %v9585_v48 = vld [vmem:[%s17623_s1 + $0x840] sm:$0xff]  ;;  %v9724_v38 = vcombine.low %v9594_v7, %v9602_v25 }
 0x212   : > { %18041 = vst [vmem:[#allocation244_spill] sm:$0xff] %v11944_v60  ;;  %18042 = vst [vmem:[#allocation245_spill] sm:$0xff] %v11947_v1  ;;  %4564 = vmatprep.subr.bf16.mxu0 %v9739_v22  ;;  %4677 = vmatprep.subr.bf16.mxu1 %v9741_v14  ;;  %v9578_v22 = vld [vmem:[%s17623_s1 + $0x808] sm:$0xff]  ;;  %v9707_v50 = vcombine.high %v9577_v53, %v9585_v48  ;;  %v9706_v25 = vcombine.low %v9577_v53, %v9585_v48  ;;  %v12019_v48 = vld [vmem:[%s10207_s26 + $0x20] sm:$0xff]  }
 0x213   : > { %v11949_v3 = vpop.f32.mrf.mxu0  ;;  %v11957_v23 = vpop.f32.mrf.mxu1  ;;  %v9586_v14 = vld [vmem:[%s17623_s1 + $0x848] sm:$0xff] }
 0x214   : > { %18043 = vst [vmem:[#allocation246_spill] sm:$0xff] %v11949_v3  ;;  %18044 = vst [vmem:[#allocation247_spill] sm:$0xff] %v11957_v23  ;;  %v11972_v23 = vld [vmem:[%s10207_s26 + $0x18] sm:$0xff]   ;;  %v9709_v3 = vcombine.high %v9578_v22, %v9586_v14 }
 0x215   : > { %v11965_v4 = vpop.f32.mrf.mxu0  ;;  %4565 = vmatpush1.bf16.msra.mxu0 %v9738_v40  ;;  %v11967_v56 = vpop.f32.mrf.mxu1  ;;  %4678 = vmatpush1.bf16.msra.mxu1 %v9740_v31  ;;  %v9708_v31 = vcombine.low %v9578_v22, %v9586_v14 }
 0x216   : > { %18045 = vst [vmem:[#allocation248_spill] sm:$0xff] %v11965_v4  ;;  %18046 = vst [vmem:[#allocation249_spill] sm:$0xff] %v11967_v56  ;;  %4566 = vmatprep.subr.bf16.mxu0 %v9723_v43  ;;  %4679 = vmatprep.subr.bf16.mxu1 %v9725_v59  ;;  %v11978_v4 = vld [vmem:[%s17623_s1 + $0xb90] sm:$0xff]  ;;  %v11992_v59 = vld [vmem:[%s17623_s1 + $0xb98] sm:$0xff] }
 0x217   : > { %v11969_v44 = vpop.f32.mrf.mxu0  ;;  %3592 = vmatmul.mubr.bf16.gmra.mxu0 %v11972_v23  ;;  %v11985_v43 = vpop.f32.mrf.mxu1  ;;  %3705 = vmatmul.mubr.bf16.gmra.mxu1 %v11972_v23  ;;  %v9825_v56 = vcombine.high %v11992_v59, %v11997_v63 }
 0x218   : > { %18047 = vst [vmem:[#allocation250_spill] sm:$0xff] %v11969_v44  ;;  %18048 = vst [vmem:[#allocation251_spill] sm:$0xff] %v11985_v43  ;;  %3601 = vmatprep.mubr.bf16.mxu0 %v17850_v16  ;;  %3714 = vmatprep.mubr.bf16.mxu1 %v17850_v16  ;;  %v9823_v43 = vcombine.high %v11978_v4, %v11983_v12 }
 0x219   : > { %v11999_v7 = vpop.f32.mrf.mxu0  ;;  %4567 = vmatpush1.bf16.msra.mxu0 %v9722_v30  ;;  %v12002_v40 = vpop.f32.mrf.mxu1  ;;  %4680 = vmatpush1.bf16.msra.mxu1 %v9724_v38 }
 0x21a   : > { %18049 = vst [vmem:[#allocation252_spill] sm:$0xff] %v11999_v7  ;;  %18050 = vst [vmem:[#allocation253_spill] sm:$0xff] %v12002_v40  ;;  %4568 = vmatprep.subr.bf16.mxu0 %v9707_v50  ;;  %4681 = vmatprep.subr.bf16.mxu1 %v9709_v3 }
 0x21b   : > { %v12006_v44 = vpop.f32.mrf.mxu0  ;;  %v12010_v7 = vpop.f32.mrf.mxu1 }
 0x21c   : > { %18051 = vst [vmem:[#allocation254_spill] sm:$0xff] %v12006_v44  ;;  %18052 = vst [vmem:[#allocation255_spill] sm:$0xff] %v12010_v7  ;;  %v12090_v7 = vld [vmem:[%s10207_s26 + $0x38] sm:$0xff]  }
 0x21d   : > { %v12012_v37 = vpop.f32.mrf.mxu0  ;;  %4569 = vmatpush1.bf16.msra.mxu0 %v9706_v25  ;;  %v12014_v53 = vpop.f32.mrf.mxu1  ;;  %4682 = vmatpush1.bf16.msra.mxu1 %v9708_v31  ;;  %v12042_v31 = vld [vmem:[%s10207_s26 + $0x28] sm:$0xff]  }
 0x21e   : > { %18053 = vst [vmem:[#allocation256_spill] sm:$0xff] %v12012_v37  ;;  %18054 = vst [vmem:[#allocation257_spill] sm:$0xff] %v12014_v53  ;;  %4780 = vmatprep.subr.bf16.mxu0 %v9823_v43  ;;  %4893 = vmatprep.subr.bf16.mxu1 %v9825_v56 }
 0x21f   : > { %v12016_v50 = vpop.f32.mrf.mxu0  ;;  %3602 = vmatmul.mubr.bf16.gmra.mxu0 %v12019_v48  ;;  %v12022_v3 = vpop.f32.mrf.mxu1  ;;  %3715 = vmatmul.mubr.bf16.gmra.mxu1 %v12019_v48 }
 0x220   : > { %18055 = vst [vmem:[#allocation258_spill] sm:$0xff] %v12016_v50  ;;  %18056 = vst [vmem:[#allocation259_spill] sm:$0xff] %v12022_v3  ;;  %3611 = vmatprep.mubr.bf16.mxu0 %v17850_v16  ;;  %3724 = vmatprep.mubr.bf16.mxu1 %v17850_v16  ;;  %v12065_v3 = vld [vmem:[%s10207_s26 + $0x30] sm:$0xff]  }
 0x221   : > { %v12026_v22 = vpop.f32.mrf.mxu0  ;;  %v12029_v14 = vpop.f32.mrf.mxu1 }
 0x222   : > { %18057 = vst [vmem:[#allocation260_spill] sm:$0xff] %v12026_v22  ;;  %18058 = vst [vmem:[#allocation261_spill] sm:$0xff] %v12029_v14 }
 0x223   : > { %v12031_v30 = vpop.f32.mrf.mxu0  ;;  %v12033_v38 = vpop.f32.mrf.mxu1 }
 0x224   : > { %18059 = vst [vmem:[#allocation262_spill] sm:$0xff] %v12031_v30  ;;  %18060 = vst [vmem:[#allocation263_spill] sm:$0xff] %v12033_v38 }
 0x225   : > { %v12035_v43 = vpop.f32.mrf.mxu0  ;;  %v12037_v56 = vpop.f32.mrf.mxu1 }
 0x226   : > { %18061 = vst [vmem:[#allocation264_spill] sm:$0xff] %v12035_v43  ;;  %18062 = vst [vmem:[#allocation265_spill] sm:$0xff] %v12037_v56 }
 0x227   : > { %v12039_v25 = vpop.f32.mrf.mxu0  ;;  %3612 = vmatmul.mubr.bf16.gmra.mxu0 %v12042_v31  ;;  %v12045_v22 = vpop.f32.mrf.mxu1  ;;  %3725 = vmatmul.mubr.bf16.gmra.mxu1 %v12042_v31 }
 0x228   : > { %18063 = vst [vmem:[#allocation266_spill] sm:$0xff] %v12039_v25  ;;  %18064 = vst [vmem:[#allocation267_spill] sm:$0xff] %v12045_v22  ;;  %3621 = vmatprep.mubr.bf16.mxu0 %v17850_v16  ;;  %3734 = vmatprep.mubr.bf16.mxu1 %v17850_v16 }
 0x229   : > { %v12049_v30 = vpop.f32.mrf.mxu0  ;;  %v12052_v43 = vpop.f32.mrf.mxu1 }
 0x22a   : > { %18065 = vst [vmem:[#allocation268_spill] sm:$0xff] %v12049_v30  ;;  %18066 = vst [vmem:[#allocation269_spill] sm:$0xff] %v12052_v43  ;;  %v10038_v43 = vld [vmem:[%s10207_s26 + $0x4] sm:$0xf] }
 0x22b   : > { %v12054_v56 = vpop.f32.mrf.mxu0  ;;  %v12056_v25 = vpop.f32.mrf.mxu1 }
 0x22c   : > { %18067 = vst [vmem:[#allocation270_spill] sm:$0xff] %v12054_v56  ;;  %18068 = vst [vmem:[#allocation271_spill] sm:$0xff] %v12056_v25 }
 0x22d   : > { %v12058_v38 = vpop.f32.mrf.mxu0  ;;  %v12060_v14 = vpop.f32.mrf.mxu1 }
 0x22e   : > { %18069 = vst [vmem:[#allocation272_spill] sm:$0xff] %v12058_v38  ;;  %18070 = vst [vmem:[#allocation273_spill] sm:$0xff] %v12060_v14  ;;  %v3755_v38 = vld [vmem:[%s10207_s26] sm:$0xe] }
 0x22f   : > { %v12062_v22 = vpop.f32.mrf.mxu0  ;;  %3622 = vmatmul.mubr.bf16.gmra.mxu0 %v12065_v3  ;;  %v12068_v30 = vpop.f32.mrf.mxu1  ;;  %3735 = vmatmul.mubr.bf16.gmra.mxu1 %v12065_v3  ;;  %v9705_v50 = vcombine.low %v3755_v38, %v10038_v43 }
 0x230   : > { %18071 = vst [vmem:[#allocation274_spill] sm:$0xff] %v12062_v22  ;;  %18072 = vst [vmem:[#allocation275_spill] sm:$0xff] %v12068_v30  ;;  %3631 = vmatprep.mubr.bf16.mxu0 %v17850_v16  ;;  %3744 = vmatprep.mubr.bf16.mxu1 %v17850_v16 }
 0x231   : > { %v12072_v56 = vpop.f32.mrf.mxu0  ;;  %v12076_v25 = vpop.f32.mrf.mxu1 }
 0x232   : > { %18073 = vst [vmem:[#allocation276_spill] sm:$0xff] %v12072_v56  ;;  %18074 = vst [vmem:[#allocation277_spill] sm:$0xff] %v12076_v25  ;;  %v9824_v25 = vcombine.low %v11992_v59, %v11997_v63  ;;  %v9660_v59 = vld [vmem:[%s17623_s1 + $0xa98] sm:$0xff] }
 0x233   : > { %v12078_v14 = vpop.f32.mrf.mxu0  ;;  %v12080_v22 = vpop.f32.mrf.mxu1  ;;  %v9668_v63 = vld [vmem:[%s17623_s1 + $0xad8] sm:$0xff] }
 0x234   : > { %18075 = vst [vmem:[#allocation278_spill] sm:$0xff] %v12078_v14  ;;  %18076 = vst [vmem:[#allocation279_spill] sm:$0xff] %v12080_v22  ;;  %v3889_v14 = vrot.slane %v9705_v50, 1  ;;  %v3890_v22 = vrot.slane %v11878_v0, 1  ;;  %v9793_v28 = vcombine.high %v9660_v59, %v9668_v63 }
 0x235   : > { %v12083_v53 = vpop.f32.mrf.mxu0  ;;  %v12085_v30 = vpop.f32.mrf.mxu1 }
 0x236   : > { %18077 = vst [vmem:[#allocation280_spill] sm:$0xff] %v12083_v53  ;;  %18078 = vst [vmem:[#allocation281_spill] sm:$0xff] %v12085_v30  ;;  %v9683_v30 = vld [vmem:[%s17623_s1 + $0xb50] sm:$0xff]  ;;  %v12114_v0 = vsel %vm3888_vm1, %v3889_v14, %v3890_v22 }
 0x237   : > { %v12087_v37 = vpop.f32.mrf.mxu0  ;;  %3632 = vmatmul.mubr.bf16.gmra.mxu0 %v12090_v7  ;;  %v12093_v56 = vpop.f32.mrf.mxu1  ;;  %3745 = vmatmul.mubr.bf16.gmra.mxu1 %v12090_v7 }
 0x238   : > { %18079 = vst [vmem:[#allocation282_spill] sm:$0xff] %v12087_v37  ;;  %18080 = vst [vmem:[#allocation283_spill] sm:$0xff] %v12093_v56  ;;  %4586 = vmatprep.mubr.bf16.mxu0 %v17850_v16  ;;  %4699 = vmatprep.mubr.bf16.mxu1 %v17850_v16  ;;  %v9675_v56 = vld [vmem:[%s17623_s1 + $0xb10] sm:$0xff] }
 0x239   : > { %v12098_v38 = vpop.f32.mrf.mxu0  ;;  %v12101_v43 = vpop.f32.mrf.mxu1  ;;  %v9807_v14 = vcombine.high %v9675_v56, %v9683_v30  ;;  %v9806_v1 = vcombine.low %v9675_v56, %v9683_v30  ;;  %v9651_v30 = vld [vmem:[%s17623_s1 + $0xa50] sm:$0xff] }
 0x23a   : > { %18081 = vst [vmem:[#allocation284_spill] sm:$0xff] %v12098_v38  ;;  %18082 = vst [vmem:[#allocation285_spill] sm:$0xff] %v12101_v43  ;;  %v9822_v38 = vcombine.low %v11978_v4, %v11983_v12  ;;  %v9684_v43 = vld [vmem:[%s17623_s1 + $0xb58] sm:$0xff]  ;;  %v9659_v4 = vld [vmem:[%s17623_s1 + $0xa90] sm:$0xff] }
 0x23b   : > { %v12103_v37 = vpop.f32.mrf.mxu0  ;;  %v12111_v50 = vpop.f32.mrf.mxu1  ;;  %v9667_v12 = vld [vmem:[%s17623_s1 + $0xad0] sm:$0xff] }
 0x23c   : > { %18083 = vst [vmem:[#allocation286_spill] sm:$0xff] %v12103_v37  ;;  %18084 = vst [vmem:[#allocation287_spill] sm:$0xff] %v12111_v50  ;;  %v9676_v37 = vld [vmem:[%s17623_s1 + $0xb18] sm:$0xff]  ;;  %v9791_v60 = vcombine.high %v9659_v4, %v9667_v12 }
 0x23d   : > { %v12124_v53 = vpop.f32.mrf.mxu0  ;;  %v12128_v50 = vpop.f32.mrf.mxu1  ;;  %v9809_v40 = vcombine.high %v9676_v37, %v9684_v43  ;;  %v9808_v34 = vcombine.low %v9676_v37, %v9684_v43  ;;  %v9790_v43 = vcombine.low %v9659_v4, %v9667_v12  ;;  %v9636_v12 = vld [vmem:[%s17623_s1 + $0x9d8] sm:$0xff] }
 0x23e   : > { %18085 = vst [vmem:[#allocation288_spill] sm:$0xff] %v12124_v53  ;;  %18086 = vst [vmem:[#allocation289_spill] sm:$0xff] %v12128_v50  ;;  %v3892_v53 = vrot.slane %v11925_v17, 1  ;;  %v9643_v17 = vld [vmem:[%s17623_s1 + $0xa10] sm:$0xff] }
 0x23f   : > { %v12136_v44 = vpop.f32.mrf.mxu0  ;;  %4587 = vmatmul.mubr.bf16.vlgmr.msra.gmra.mxu0 %v12114_v0  ;;  %v12145_v50 = vpop.f32.mrf.mxu1  ;;  %4700 = vmatmul.mubr.bf16.vlgmr.msra.gmra.mxu1 %v12114_v0 }
 0x240   : > { %18087 = vst [vmem:[#allocation290_spill] sm:$0xff] %v12136_v44  ;;  %18088 = vst [vmem:[#allocation291_spill] sm:$0xff] %v12145_v50  ;;  %4781 = vmatpush1.bf16.msra.mxu0 %v9822_v38  ;;  %4894 = vmatpush1.bf16.msra.mxu1 %v9824_v25  ;;  %v12166_v37 = vsel %vm3888_vm1, %v3890_v22, %v3892_v53  ;;  %v9644_v25 = vld [vmem:[%s17623_s1 + $0xa18] sm:$0xff]  ;;  %v9775_v22 = vcombine.high %v9643_v17, %v9651_v30 }
 0x241   : > { %v12149_v44 = vpop.f32.mrf.mxu0  ;;  %4596 = vmatprep.mubr.bf16.mxu0 %v17850_v16  ;;  %v12152_v32 = vpop.f32.mrf.mxu1  ;;  %4709 = vmatprep.mubr.bf16.mxu1 %v17850_v16 }
 0x242   : > { %18089 = vst [vmem:[#allocation292_spill] sm:$0xff] %v12149_v44  ;;  %18090 = vst [vmem:[#allocation293_spill] sm:$0xff] %v12152_v32  ;;  %4782 = vmatprep.subr.bf16.mxu0 %v9807_v14  ;;  %4895 = vmatprep.subr.bf16.mxu1 %v9809_v40  ;;  %v9652_v40 = vld [vmem:[%s17623_s1 + $0xa58] sm:$0xff]  ;;  %v9627_v32 = vld [vmem:[%s17623_s1 + $0x990] sm:$0xff] }
 0x243   : > { %v12155_v50 = vpop.f32.mrf.mxu0  ;;  %v12163_v56 = vpop.f32.mrf.mxu1  ;;  %v9611_v44 = vld [vmem:[%s17623_s1 + $0x910] sm:$0xff] }
 0x244   : > { %18091 = vst [vmem:[#allocation294_spill] sm:$0xff] %v12155_v50  ;;  %18092 = vst [vmem:[#allocation295_spill] sm:$0xff] %v12163_v56  ;;  %4783 = vmatpush1.bf16.msra.mxu0 %v9806_v1  ;;  %4896 = vmatpush1.bf16.msra.mxu1 %v9808_v34  ;;  %v9792_v56 = vcombine.low %v9660_v59, %v9668_v63  ;;  %v9777_v1 = vcombine.high %v9644_v25, %v9652_v40  ;;  %v9635_v34 = vld [vmem:[%s17623_s1 + $0x9d0] sm:$0xff] }
 0x245   : > { %v12174_v38 = vpop.f32.mrf.mxu0  ;;  %4784 = vmatprep.subr.bf16.mxu0 %v9791_v60  ;;  %v12176_v14 = vpop.f32.mrf.mxu1  ;;  %4897 = vmatprep.subr.bf16.mxu1 %v9793_v28  ;;  %v3894_v28 = vrot.slane %v11972_v23, 1  ;;  %v9628_v60 = vld [vmem:[%s17623_s1 + $0x998] sm:$0xff]  ;;  %v9774_v63 = vcombine.low %v9643_v17, %v9651_v30  ;;  %v9759_v23 = vcombine.high %v9627_v32, %v9635_v34 }
 0x246   : > { %18093 = vst [vmem:[#allocation296_spill] sm:$0xff] %v12174_v38  ;;  %18094 = vst [vmem:[#allocation297_spill] sm:$0xff] %v12176_v14  ;;  %v9761_v38 = vcombine.high %v9628_v60, %v9636_v12  ;;  %v9612_v30 = vld [vmem:[%s17623_s1 + $0x918] sm:$0xff] }
 0x247   : > { %v12178_v50 = vpop.f32.mrf.mxu0  ;;  %4597 = vmatmul.mubr.bf16.gmra.mxu0 %v12166_v37  ;;  %v12187_v4 = vpop.f32.mrf.mxu1  ;;  %4710 = vmatmul.mubr.bf16.gmra.mxu1 %v12166_v37  ;;  %v12214_v17 = vsel %vm3888_vm1, %v3892_v53, %v3894_v28 }
 0x248   : > { %18095 = vst [vmem:[#allocation298_spill] sm:$0xff] %v12178_v50  ;;  %18096 = vst [vmem:[#allocation299_spill] sm:$0xff] %v12187_v4  ;;  %4606 = vmatprep.mubr.bf16.mxu0 %v17850_v16  ;;  %4719 = vmatprep.mubr.bf16.mxu1 %v17850_v16  ;;  %v9776_v50 = vcombine.low %v9644_v25, %v9652_v40  ;;  %v9758_v40 = vcombine.low %v9627_v32, %v9635_v34  ;;  %v9603_v32 = vld [vmem:[%s17623_s1 + $0x8d0] sm:$0xff] }
 0x249   : > { %v12198_v59 = vpop.f32.mrf.mxu0  ;;  %4785 = vmatpush1.bf16.msra.mxu0 %v9790_v43  ;;  %v12201_v4 = vpop.f32.mrf.mxu1  ;;  %4898 = vmatpush1.bf16.msra.mxu1 %v9792_v56  ;;  %v9620_v56 = vld [vmem:[%s17623_s1 + $0x958] sm:$0xff] }
 0x24a   : > { %18097 = vst [vmem:[#allocation300_spill] sm:$0xff] %v12198_v59  ;;  %18098 = vst [vmem:[#allocation301_spill] sm:$0xff] %v12201_v4  ;;  %4786 = vmatprep.subr.bf16.mxu0 %v9775_v22  ;;  %4899 = vmatprep.subr.bf16.mxu1 %v9777_v1  ;;  %v9619_v59 = vld [vmem:[%s17623_s1 + $0x950] sm:$0xff]  ;;  %v9760_v1 = vcombine.low %v9628_v60, %v9636_v12  ;;  %v9604_v60 = vld [vmem:[%s17623_s1 + $0x8d8] sm:$0xff] }
 0x24b   : > { %v12203_v14 = vpop.f32.mrf.mxu0  ;;  %v12211_v43 = vpop.f32.mrf.mxu1  ;;  %v9595_v4 = vld [vmem:[%s17623_s1 + $0x890] sm:$0xff] }
 0x24c   : > { %18099 = vst [vmem:[#allocation302_spill] sm:$0xff] %v12203_v14  ;;  %18100 = vst [vmem:[#allocation303_spill] sm:$0xff] %v12211_v43  ;;  %v9743_v43 = vcombine.high %v9611_v44, %v9619_v59  ;;  %v9745_v14 = vcombine.high %v9612_v30, %v9620_v56 }
 0x24d   : > { %v12222_v25 = vpop.f32.mrf.mxu0  ;;  %4787 = vmatpush1.bf16.msra.mxu0 %v9774_v63  ;;  %v12224_v22 = vpop.f32.mrf.mxu1  ;;  %4900 = vmatpush1.bf16.msra.mxu1 %v9776_v50  ;;  %v3896_v50 = vrot.slane %v12019_v48, 1  ;;  %v9742_v63 = vcombine.low %v9611_v44, %v9619_v59  ;;  %v9727_v48 = vcombine.high %v9595_v4, %v9603_v32  ;;  %v9580_v59 = vld [vmem:[%s17623_s1 + $0x818] sm:$0xff] }
 0x24e   : > { %18101 = vst [vmem:[#allocation304_spill] sm:$0xff] %v12222_v25  ;;  %18102 = vst [vmem:[#allocation305_spill] sm:$0xff] %v12224_v22  ;;  %4788 = vmatprep.subr.bf16.mxu0 %v9759_v23  ;;  %4901 = vmatprep.subr.bf16.mxu1 %v9761_v38  ;;  %v9596_v38 = vld [vmem:[%s17623_s1 + $0x898] sm:$0xff]  ;;  %v9579_v25 = vld [vmem:[%s17623_s1 + $0x810] sm:$0xff] }
 0x24f   : > { %v12226_v53 = vpop.f32.mrf.mxu0  ;;  %4607 = vmatmul.mubr.bf16.gmra.mxu0 %v12214_v17  ;;  %v12235_v34 = vpop.f32.mrf.mxu1  ;;  %4720 = vmatmul.mubr.bf16.gmra.mxu1 %v12214_v17  ;;  %v9729_v22 = vcombine.high %v9596_v38, %v9604_v60  ;;  %v12262_v44 = vsel %vm3888_vm1, %v3894_v28, %v3896_v50 }
 0x250   : > { %18103 = vst [vmem:[#allocation306_spill] sm:$0xff] %v12226_v53  ;;  %18104 = vst [vmem:[#allocation307_spill] sm:$0xff] %v12235_v34  ;;  %4616 = vmatprep.mubr.bf16.mxu0 %v17850_v16  ;;  %4729 = vmatprep.mubr.bf16.mxu1 %v17850_v16  ;;  %v9744_v34 = vcombine.low %v9612_v30, %v9620_v56  ;;  %v9726_v30 = vcombine.low %v9595_v4, %v9603_v32  ;;  %v12285_v4 = vld [vmem:[%s17623_s1 + $0xbe0] sm:$0xff] }
 0x251   : > { %v12246_v12 = vpop.f32.mrf.mxu0  ;;  %4789 = vmatpush1.bf16.msra.mxu0 %v9758_v40  ;;  %v12249_v23 = vpop.f32.mrf.mxu1  ;;  %4902 = vmatpush1.bf16.msra.mxu1 %v9760_v1  ;;  %v9728_v1 = vcombine.low %v9596_v38, %v9604_v60  ;;  %v12300_v38 = vld [vmem:[%s17623_s1 + $0xbe8] sm:$0xff] }
 0x252   : > { %18105 = vst [vmem:[#allocation308_spill] sm:$0xff] %v12246_v12  ;;  %18106 = vst [vmem:[#allocation309_spill] sm:$0xff] %v12249_v23  ;;  %4790 = vmatprep.subr.bf16.mxu0 %v9743_v43  ;;  %4903 = vmatprep.subr.bf16.mxu1 %v9745_v14  ;;  %v9587_v12 = vld [vmem:[%s17623_s1 + $0x850] sm:$0xff]  ;;  %v9588_v14 = vld [vmem:[%s17623_s1 + $0x858] sm:$0xff] }
 0x253   : > { %v12251_v53 = vpop.f32.mrf.mxu0  ;;  %v12259_v40 = vpop.f32.mrf.mxu1  ;;  %v12280_v23 = vld [vmem:[%s17623_s1 + $0xba0] sm:$0xff] }
 0x254   : > { %18107 = vst [vmem:[#allocation310_spill] sm:$0xff] %v12251_v53  ;;  %18108 = vst [vmem:[#allocation311_spill] sm:$0xff] %v12259_v40  ;;  %v9711_v40 = vcombine.high %v9579_v25, %v9587_v12  ;;  %v9713_v53 = vcombine.high %v9580_v59, %v9588_v14 }
 0x255   : > { %v12270_v43 = vpop.f32.mrf.mxu0  ;;  %4791 = vmatpush1.bf16.msra.mxu0 %v9742_v63  ;;  %v12272_v56 = vpop.f32.mrf.mxu1  ;;  %4904 = vmatpush1.bf16.msra.mxu1 %v9744_v34  ;;  %v3898_v34 = vrot.slane %v12042_v31, 1  ;;  %v9710_v63 = vcombine.low %v9579_v25, %v9587_v12  ;;  %v9712_v31 = vcombine.low %v9580_v59, %v9588_v14 }
 0x256   : > { %18109 = vst [vmem:[#allocation312_spill] sm:$0xff] %v12270_v43  ;;  %18110 = vst [vmem:[#allocation313_spill] sm:$0xff] %v12272_v56  ;;  %4792 = vmatprep.subr.bf16.mxu0 %v9727_v48  ;;  %4905 = vmatprep.subr.bf16.mxu1 %v9729_v22  ;;  %v12295_v22 = vld [vmem:[%s17623_s1 + $0xba8] sm:$0xff] }
 0x257   : > { %v12274_v28 = vpop.f32.mrf.mxu0  ;;  %4617 = vmatmul.mubr.bf16.gmra.mxu0 %v12262_v44  ;;  %v12287_v32 = vpop.f32.mrf.mxu1  ;;  %4730 = vmatmul.mubr.bf16.gmra.mxu1 %v12262_v44  ;;  %v9829_v56 = vcombine.high %v12295_v22, %v12300_v38 }
 0x258   : > { %18111 = vst [vmem:[#allocation314_spill] sm:$0xff] %v12274_v28  ;;  %18112 = vst [vmem:[#allocation315_spill] sm:$0xff] %v12287_v32  ;;  %4626 = vmatprep.mubr.bf16.mxu0 %v17850_v16  ;;  %4739 = vmatprep.mubr.bf16.mxu1 %v17850_v16  ;;  %v9827_v32 = vcombine.high %v12280_v23, %v12285_v4 }
 0x259   : > { %v12302_v60 = vpop.f32.mrf.mxu0  ;;  %4793 = vmatpush1.bf16.msra.mxu0 %v9726_v30  ;;  %v12305_v48 = vpop.f32.mrf.mxu1  ;;  %4906 = vmatpush1.bf16.msra.mxu1 %v9728_v1 }
 0x25a   : > { %18113 = vst [vmem:[#allocation316_spill] sm:$0xff] %v12302_v60  ;;  %18114 = vst [vmem:[#allocation317_spill] sm:$0xff] %v12305_v48  ;;  %4794 = vmatprep.subr.bf16.mxu0 %v9711_v40  ;;  %4907 = vmatprep.subr.bf16.mxu1 %v9713_v53  ;;  %v12316_v60 = vsel %vm3888_vm1, %v3896_v50, %v3898_v34  ;;  %v3900_v50 = vrot.slane %v12065_v3, 1 }
 0x25b   : > { %v12309_v28 = vpop.f32.mrf.mxu0  ;;  %v12313_v43 = vpop.f32.mrf.mxu1 }
 0x25c   : > { %18115 = vst [vmem:[#allocation318_spill] sm:$0xff] %v12309_v28  ;;  %18116 = vst [vmem:[#allocation319_spill] sm:$0xff] %v12313_v43 }
 0x25d   : > { %v12318_v25 = vpop.f32.mrf.mxu0  ;;  %4795 = vmatpush1.bf16.msra.mxu0 %v9710_v63  ;;  %v12320_v12 = vpop.f32.mrf.mxu1  ;;  %4908 = vmatpush1.bf16.msra.mxu1 %v9712_v31 }
 0x25e   : > { %18117 = vst [vmem:[#allocation320_spill] sm:$0xff] %v12318_v25  ;;  %18118 = vst [vmem:[#allocation321_spill] sm:$0xff] %v12320_v12  ;;  %5006 = vmatprep.subr.bf16.mxu0 %v9827_v32  ;;  %5119 = vmatprep.subr.bf16.mxu1 %v9829_v56  ;;  %v12340_v56 = vsel %vm3888_vm1, %v3898_v34, %v3900_v50 }
 0x25f   : > { %v12322_v40 = vpop.f32.mrf.mxu0  ;;  %4627 = vmatmul.mubr.bf16.gmra.mxu0 %v12316_v60  ;;  %v12325_v53 = vpop.f32.mrf.mxu1  ;;  %4740 = vmatmul.mubr.bf16.gmra.mxu1 %v12316_v60  ;;  %18125 = vst [vmem:[#allocation328_spill] sm:$0xff] %v12340_v56 }
 0x260   : > { %18119 = vst [vmem:[#allocation322_spill] sm:$0xff] %v12322_v40  ;;  %18120 = vst [vmem:[#allocation323_spill] sm:$0xff] %v12325_v53  ;;  %4636 = vmatprep.mubr.bf16.mxu0 %v17850_v16  ;;  %4749 = vmatprep.mubr.bf16.mxu1 %v17850_v16 }
 0x261   : > { %v12330_v59 = vpop.f32.mrf.mxu0  ;;  %v12333_v14 = vpop.f32.mrf.mxu1 }
 0x262   : > { %18121 = vst [vmem:[#allocation324_spill] sm:$0xff] %v12330_v59  ;;  %18122 = vst [vmem:[#allocation325_spill] sm:$0xff] %v12333_v14 }
 0x263   : > { %v12335_v30 = vpop.f32.mrf.mxu0  ;;  %v12337_v1 = vpop.f32.mrf.mxu1 }
 0x264   : > { %18123 = vst [vmem:[#allocation326_spill] sm:$0xff] %v12335_v30  ;;  %18124 = vst [vmem:[#allocation327_spill] sm:$0xff] %v12337_v1  ;;  %v3902_v1 = vrot.slane %v12090_v7, 1 }
 0x265   : > { %v12342_v32 = vpop.f32.mrf.mxu0  ;;  %v12344_v63 = vpop.f32.mrf.mxu1 }
 0x266   : > { %18126 = vst [vmem:[#allocation329_spill] sm:$0xff] %v12342_v32  ;;  %18127 = vst [vmem:[#allocation330_spill] sm:$0xff] %v12344_v63  ;;  %v12364_v32 = vsel %vm3888_vm1, %v3900_v50, %v3902_v1 }
 0x267   : > { %v12346_v31 = vpop.f32.mrf.mxu0  ;;  %4637 = vmatmul.mubr.bf16.gmra.mxu0 %v12340_v56  ;;  %v12349_v3 = vpop.f32.mrf.mxu1  ;;  %4750 = vmatmul.mubr.bf16.gmra.mxu1 %v12340_v56  ;;  %18134 = vst [vmem:[#allocation337_spill] sm:$0xff] %v12364_v32 }
 0x268   : > { %18128 = vst [vmem:[#allocation331_spill] sm:$0xff] %v12346_v31  ;;  %18129 = vst [vmem:[#allocation332_spill] sm:$0xff] %v12349_v3  ;;  %4646 = vmatprep.mubr.bf16.mxu0 %v17850_v16  ;;  %4759 = vmatprep.mubr.bf16.mxu1 %v17850_v16 }
 0x269   : > { %v12354_v30 = vpop.f32.mrf.mxu0  ;;  %v12357_v34 = vpop.f32.mrf.mxu1 }
 0x26a   : > { %18130 = vst [vmem:[#allocation333_spill] sm:$0xff] %v12354_v30  ;;  %18131 = vst [vmem:[#allocation334_spill] sm:$0xff] %v12357_v34 }
 0x26b   : > { %v12359_v63 = vpop.f32.mrf.mxu0  ;;  %v12361_v31 = vpop.f32.mrf.mxu1 }
 0x26c   : > { %18132 = vst [vmem:[#allocation335_spill] sm:$0xff] %v12359_v63  ;;  %18133 = vst [vmem:[#allocation336_spill] sm:$0xff] %v12361_v31  ;;  %v10040_v63 = vld [vmem:[%s10207_s26 + $0x40] ss:$0 sps:$4 sm:$0x11]  }
 0x26d   : > { %v12366_v3 = vpop.f32.mrf.mxu0  ;;  %v12368_v14 = vpop.f32.mrf.mxu1  ;;  %v3904_v34 = vrot.slane %v10040_v63, 1 }
 0x26e   : > { %18135 = vst [vmem:[#allocation338_spill] sm:$0xff] %v12366_v3  ;;  %18136 = vst [vmem:[#allocation339_spill] sm:$0xff] %v12368_v14 }
 0x26f   : > { %v12370_v59 = vpop.f32.mrf.mxu0  ;;  %4647 = vmatmul.mubr.bf16.gmra.mxu0 %v12364_v32  ;;  %v12373_v7 = vpop.f32.mrf.mxu1  ;;  %4760 = vmatmul.mubr.bf16.gmra.mxu1 %v12364_v32 }
 0x270   : > { %18137 = vst [vmem:[#allocation340_spill] sm:$0xff] %v12370_v59  ;;  %18138 = vst [vmem:[#allocation341_spill] sm:$0xff] %v12373_v7  ;;  %4656 = vmatprep.mubr.bf16.mxu0 %v17850_v16  ;;  %4769 = vmatprep.mubr.bf16.mxu1 %v17850_v16  ;;  %v12388_v59 = vsel %vm3888_vm1, %v3902_v1, %v3904_v34 }
 0x271   : > { %v12378_v31 = vpop.f32.mrf.mxu0  ;;  %v12381_v50 = vpop.f32.mrf.mxu1  ;;  %18143 = vst [vmem:[#allocation346_spill] sm:$0xff] %v12388_v59 }
 0x272   : > { %18139 = vst [vmem:[#allocation342_spill] sm:$0xff] %v12378_v31  ;;  %18140 = vst [vmem:[#allocation343_spill] sm:$0xff] %v12381_v50 }
 0x273   : > { %v12383_v3 = vpop.f32.mrf.mxu0  ;;  %v12385_v14 = vpop.f32.mrf.mxu1 }
 0x274   : > { %18141 = vst [vmem:[#allocation344_spill] sm:$0xff] %v12383_v3  ;;  %18142 = vst [vmem:[#allocation345_spill] sm:$0xff] %v12385_v14  ;;  %v9828_v14 = vcombine.low %v12295_v22, %v12300_v38  ;;  %v9662_v22 = vld [vmem:[%s17623_s1 + $0xaa8] sm:$0xff] }
 0x275   : > { %v12390_v7 = vpop.f32.mrf.mxu0  ;;  %v12392_v30 = vpop.f32.mrf.mxu1  ;;  %v9670_v38 = vld [vmem:[%s17623_s1 + $0xae8] sm:$0xff] }
 0x276   : > { %18144 = vst [vmem:[#allocation347_spill] sm:$0xff] %v12390_v7  ;;  %18145 = vst [vmem:[#allocation348_spill] sm:$0xff] %v12392_v30  ;;  %v9826_v7 = vcombine.low %v12280_v23, %v12285_v4  ;;  %v9661_v23 = vld [vmem:[%s17623_s1 + $0xaa0] sm:$0xff]  ;;  %v9797_v28 = vcombine.high %v9662_v22, %v9670_v38 }
 0x277   : > { %v12394_v53 = vpop.f32.mrf.mxu0  ;;  %4657 = vmatmul.mubr.bf16.gmra.mxu0 %v12388_v59  ;;  %v12397_v63 = vpop.f32.mrf.mxu1  ;;  %4770 = vmatmul.mubr.bf16.gmra.mxu1 %v12388_v59  ;;  %v9669_v4 = vld [vmem:[%s17623_s1 + $0xae0] sm:$0xff] }
 0x278   : > { %18146 = vst [vmem:[#allocation349_spill] sm:$0xff] %v12394_v53  ;;  %18147 = vst [vmem:[#allocation350_spill] sm:$0xff] %v12397_v63  ;;  %4812 = vmatprep.mubr.bf16.mxu0 %v17850_v16  ;;  %4925 = vmatprep.mubr.bf16.mxu1 %v17850_v16  ;;  %v9677_v53 = vld [vmem:[%s17623_s1 + $0xb20] sm:$0xff]  ;;  %v9795_v25 = vcombine.high %v9661_v23, %v9669_v4 }
 0x279   : > { %v12401_v3 = vpop.f32.mrf.mxu0  ;;  %v12404_v1 = vpop.f32.mrf.mxu1  ;;  %v9685_v63 = vld [vmem:[%s17623_s1 + $0xb60] sm:$0xff] }
 0x27a   : > { %18148 = vst [vmem:[#allocation351_spill] sm:$0xff] %v12401_v3  ;;  %18149 = vst [vmem:[#allocation352_spill] sm:$0xff] %v12404_v1  ;;  %v9678_v3 = vld [vmem:[%s17623_s1 + $0xb28] sm:$0xff]  ;;  %v9811_v31 = vcombine.high %v9677_v53, %v9685_v63 }
 0x27b   : > { %v12406_v34 = vpop.f32.mrf.mxu0  ;;  %v12414_v30 = vpop.f32.mrf.mxu1 }
 0x27c   : > { %18150 = vst [vmem:[#allocation353_spill] sm:$0xff] %v12406_v34  ;;  %18151 = vst [vmem:[#allocation354_spill] sm:$0xff] %v12414_v30  ;;  %v9686_v34 = vld [vmem:[%s17623_s1 + $0xb68] sm:$0xff] }
 0x27d   : > { %v12424_v1 = vpop.f32.mrf.mxu0  ;;  %v12428_v50 = vpop.f32.mrf.mxu1  ;;  %v9813_v40 = vcombine.high %v9678_v3, %v9686_v34 }
 0x27e   : > { %18152 = vst [vmem:[#allocation355_spill] sm:$0xff] %v12424_v1  ;;  %18153 = vst [vmem:[#allocation356_spill] sm:$0xff] %v12428_v50  ;;  %v9810_v1 = vcombine.low %v9677_v53, %v9685_v63  ;;  %v9645_v53 = vld [vmem:[%s17623_s1 + $0xa20] sm:$0xff]  ;;  %v9794_v63 = vcombine.low %v9661_v23, %v9669_v4 }
 0x27f   : > { %v12436_v30 = vpop.f32.mrf.mxu0  ;;  %4813 = vmatmul.mubr.bf16.vlgmr.msra.gmra.mxu0 %v12114_v0  ;;  %v12445_v50 = vpop.f32.mrf.mxu1  ;;  %4926 = vmatmul.mubr.bf16.vlgmr.msra.gmra.mxu1 %v12114_v0 }
 0x280   : > { %18154 = vst [vmem:[#allocation357_spill] sm:$0xff] %v12436_v30  ;;  %18155 = vst [vmem:[#allocation358_spill] sm:$0xff] %v12445_v50  ;;  %5007 = vmatpush1.bf16.msra.mxu0 %v9826_v7  ;;  %5120 = vmatpush1.bf16.msra.mxu1 %v9828_v14  ;;  %v9812_v30 = vcombine.low %v9678_v3, %v9686_v34  ;;  %v9653_v14 = vld [vmem:[%s17623_s1 + $0xa60] sm:$0xff]  ;;  %v9646_v3 = vld [vmem:[%s17623_s1 + $0xa28] sm:$0xff] }
 0x281   : > { %v12448_v12 = vpop.f32.mrf.mxu0  ;;  %4822 = vmatprep.mubr.bf16.mxu0 %v17850_v16  ;;  %v12451_v43 = vpop.f32.mrf.mxu1  ;;  %4935 = vmatprep.mubr.bf16.mxu1 %v17850_v16  ;;  %v9613_v50 = vld [vmem:[%s17623_s1 + $0x920] sm:$0xff] }
 0x282   : > { %18156 = vst [vmem:[#allocation359_spill] sm:$0xff] %v12448_v12  ;;  %18157 = vst [vmem:[#allocation360_spill] sm:$0xff] %v12451_v43  ;;  %5008 = vmatprep.subr.bf16.mxu0 %v9811_v31  ;;  %5121 = vmatprep.subr.bf16.mxu1 %v9813_v40  ;;  %v9654_v31 = vld [vmem:[%s17623_s1 + $0xa68] sm:$0xff]  ;;  %v9779_v43 = vcombine.high %v9645_v53, %v9653_v14  ;;  %v9629_v12 = vld [vmem:[%s17623_s1 + $0x9a0] sm:$0xff] }
 0x283   : > { %v12454_v48 = vpop.f32.mrf.mxu0  ;;  %v12462_v7 = vpop.f32.mrf.mxu1 }
 0x284   : > { %18158 = vst [vmem:[#allocation361_spill] sm:$0xff] %v12454_v48  ;;  %18159 = vst [vmem:[#allocation362_spill] sm:$0xff] %v12462_v7  ;;  %5009 = vmatpush1.bf16.msra.mxu0 %v9810_v1  ;;  %5122 = vmatpush1.bf16.msra.mxu1 %v9812_v30  ;;  %v9796_v48 = vcombine.low %v9662_v22, %v9670_v38  ;;  %v9781_v1 = vcombine.high %v9646_v3, %v9654_v31  ;;  %v9637_v30 = vld [vmem:[%s17623_s1 + $0x9e0] sm:$0xff] }
 0x285   : > { %v12470_v40 = vpop.f32.mrf.mxu0  ;;  %5010 = vmatprep.subr.bf16.mxu0 %v9795_v25  ;;  %v12472_v34 = vpop.f32.mrf.mxu1  ;;  %5123 = vmatprep.subr.bf16.mxu1 %v9797_v28  ;;  %v9630_v28 = vld [vmem:[%s17623_s1 + $0x9a8] sm:$0xff]  ;;  %v9778_v22 = vcombine.low %v9645_v53, %v9653_v14  ;;  %v9762_v14 = vcombine.low %v9629_v12, %v9637_v30 }
 0x286   : > { %18160 = vst [vmem:[#allocation363_spill] sm:$0xff] %v12470_v40  ;;  %18161 = vst [vmem:[#allocation364_spill] sm:$0xff] %v12472_v34  ;;  %v9638_v25 = vld [vmem:[%s17623_s1 + $0x9e8] sm:$0xff] }
 0x287   : > { %v12474_v7 = vpop.f32.mrf.mxu0  ;;  %4823 = vmatmul.mubr.bf16.gmra.mxu0 %v12166_v37  ;;  %v12483_v23 = vpop.f32.mrf.mxu1  ;;  %4936 = vmatmul.mubr.bf16.gmra.mxu1 %v12166_v37  ;;  %v9765_v40 = vcombine.high %v9630_v28, %v9638_v25 }
 0x288   : > { %18162 = vst [vmem:[#allocation365_spill] sm:$0xff] %v12474_v7  ;;  %18163 = vst [vmem:[#allocation366_spill] sm:$0xff] %v12483_v23  ;;  %4832 = vmatprep.mubr.bf16.mxu0 %v17850_v16  ;;  %4945 = vmatprep.mubr.bf16.mxu1 %v17850_v16  ;;  %v9780_v23 = vcombine.low %v9646_v3, %v9654_v31  ;;  %v9763_v7 = vcombine.high %v9629_v12, %v9637_v30  ;;  %v9605_v12 = vld [vmem:[%s17623_s1 + $0x8e0] sm:$0xff] }
 0x289   : > { %v12493_v4 = vpop.f32.mrf.mxu0  ;;  %5011 = vmatpush1.bf16.msra.mxu0 %v9794_v63  ;;  %v12496_v38 = vpop.f32.mrf.mxu1  ;;  %5124 = vmatpush1.bf16.msra.mxu1 %v9796_v48  ;;  %v9622_v48 = vld [vmem:[%s17623_s1 + $0x968] sm:$0xff]  ;;  %v9764_v31 = vcombine.low %v9630_v28, %v9638_v25 }
 0x28a   : > { %18164 = vst [vmem:[#allocation367_spill] sm:$0xff] %v12493_v4  ;;  %18165 = vst [vmem:[#allocation368_spill] sm:$0xff] %v12496_v38  ;;  %5012 = vmatprep.subr.bf16.mxu0 %v9779_v43  ;;  %5125 = vmatprep.subr.bf16.mxu1 %v9781_v1  ;;  %v9621_v4 = vld [vmem:[%s17623_s1 + $0x960] sm:$0xff]  ;;  %v9614_v43 = vld [vmem:[%s17623_s1 + $0x928] sm:$0xff] }
 0x28b   : > { %v12498_v34 = vpop.f32.mrf.mxu0  ;;  %v12506_v63 = vpop.f32.mrf.mxu1  ;;  %v9747_v1 = vcombine.high %v9613_v50, %v9621_v4  ;;  %v9597_v38 = vld [vmem:[%s17623_s1 + $0x8a0] sm:$0xff]  ;;  %v9746_v28 = vcombine.low %v9613_v50, %v9621_v4  ;;  %v9582_v50 = vld [vmem:[%s17623_s1 + $0x828] sm:$0xff] }
 0x28c   : > { %18166 = vst [vmem:[#allocation369_spill] sm:$0xff] %v12498_v34  ;;  %18167 = vst [vmem:[#allocation370_spill] sm:$0xff] %v12506_v63  ;;  %v9749_v63 = vcombine.high %v9614_v43, %v9622_v48  ;;  %v9590_v4 = vld [vmem:[%s17623_s1 + $0x868] sm:$0xff] }
 0x28d   : > { %v12514_v53 = vpop.f32.mrf.mxu0  ;;  %5013 = vmatpush1.bf16.msra.mxu0 %v9778_v22  ;;  %v12516_v3 = vpop.f32.mrf.mxu1  ;;  %5126 = vmatpush1.bf16.msra.mxu1 %v9780_v23  ;;  %v9748_v22 = vcombine.low %v9614_v43, %v9622_v48  ;;  %v9730_v43 = vcombine.low %v9597_v38, %v9605_v12 }
 0x28e   : > { %18168 = vst [vmem:[#allocation371_spill] sm:$0xff] %v12514_v53  ;;  %18169 = vst [vmem:[#allocation372_spill] sm:$0xff] %v12516_v3  ;;  %5014 = vmatprep.subr.bf16.mxu0 %v9763_v7  ;;  %5127 = vmatprep.subr.bf16.mxu1 %v9765_v40  ;;  %v9598_v7 = vld [vmem:[%s17623_s1 + $0x8a8] sm:$0xff]  ;;  %v9581_v53 = vld [vmem:[%s17623_s1 + $0x820] sm:$0xff] }
 0x28f   : > { %v12518_v34 = vpop.f32.mrf.mxu0  ;;  %4833 = vmatmul.mubr.bf16.gmra.mxu0 %v12214_v17  ;;  %v12527_v30 = vpop.f32.mrf.mxu1  ;;  %4946 = vmatmul.mubr.bf16.gmra.mxu1 %v12214_v17  ;;  %v9606_v40 = vld [vmem:[%s17623_s1 + $0x8e8] sm:$0xff] }
 0x290   : > { %18170 = vst [vmem:[#allocation373_spill] sm:$0xff] %v12518_v34  ;;  %18171 = vst [vmem:[#allocation374_spill] sm:$0xff] %v12527_v30  ;;  %4842 = vmatprep.mubr.bf16.mxu0 %v17850_v16  ;;  %4955 = vmatprep.mubr.bf16.mxu1 %v17850_v16  ;;  %v9731_v30 = vcombine.high %v9597_v38, %v9605_v12  ;;  %v9733_v3 = vcombine.high %v9598_v7, %v9606_v40  ;;  %v12573_v38 = vld [vmem:[%s17623_s1 + $0xbf0] sm:$0xff] }
 0x291   : > { %v12537_v23 = vpop.f32.mrf.mxu0  ;;  %5015 = vmatpush1.bf16.msra.mxu0 %v9762_v14  ;;  %v12540_v25 = vpop.f32.mrf.mxu1  ;;  %5128 = vmatpush1.bf16.msra.mxu1 %v9764_v31  ;;  %v9732_v31 = vcombine.low %v9598_v7, %v9606_v40 }
 0x292   : > { %18172 = vst [vmem:[#allocation375_spill] sm:$0xff] %v12537_v23  ;;  %18173 = vst [vmem:[#allocation376_spill] sm:$0xff] %v12540_v25  ;;  %5016 = vmatprep.subr.bf16.mxu0 %v9747_v1  ;;  %5129 = vmatprep.subr.bf16.mxu1 %v9749_v63  ;;  %v9589_v23 = vld [vmem:[%s17623_s1 + $0x860] sm:$0xff]  ;;  %v12568_v25 = vld [vmem:[%s17623_s1 + $0xbb0] sm:$0xff] }
 0x293   : > { %v12542_v34 = vpop.f32.mrf.mxu0  ;;  %v12550_v14 = vpop.f32.mrf.mxu1  ;;  %v9715_v1 = vcombine.high %v9581_v53, %v9589_v23  ;;  %v9714_v40 = vcombine.low %v9581_v53, %v9589_v23 }
 0x294   : > { %18174 = vst [vmem:[#allocation377_spill] sm:$0xff] %v12542_v34  ;;  %18175 = vst [vmem:[#allocation378_spill] sm:$0xff] %v12550_v14  ;;  %v9717_v14 = vcombine.high %v9582_v50, %v9590_v4 }
 0x295   : > { %v12558_v63 = vpop.f32.mrf.mxu0  ;;  %5017 = vmatpush1.bf16.msra.mxu0 %v9746_v28  ;;  %v12560_v48 = vpop.f32.mrf.mxu1  ;;  %5130 = vmatpush1.bf16.msra.mxu1 %v9748_v22  ;;  %v9716_v22 = vcombine.low %v9582_v50, %v9590_v4 }
 0x296   : > { %18176 = vst [vmem:[#allocation379_spill] sm:$0xff] %v12558_v63  ;;  %18177 = vst [vmem:[#allocation380_spill] sm:$0xff] %v12560_v48  ;;  %5018 = vmatprep.subr.bf16.mxu0 %v9731_v30  ;;  %5131 = vmatprep.subr.bf16.mxu1 %v9733_v3  ;;  %v12582_v3 = vld [vmem:[%s17623_s1 + $0xbb8] sm:$0xff] }
 0x297   : > { %v12562_v34 = vpop.f32.mrf.mxu0  ;;  %4843 = vmatmul.mubr.bf16.gmra.mxu0 %v12262_v44  ;;  %v12575_v12 = vpop.f32.mrf.mxu1  ;;  %4956 = vmatmul.mubr.bf16.gmra.mxu1 %v12262_v44  ;;  %v12587_v30 = vld [vmem:[%s17623_s1 + $0xbf8] sm:$0xff] }
 0x298   : > { %18178 = vst [vmem:[#allocation381_spill] sm:$0xff] %v12562_v34  ;;  %18179 = vst [vmem:[#allocation382_spill] sm:$0xff] %v12575_v12  ;;  %4852 = vmatprep.mubr.bf16.mxu0 %v17850_v16  ;;  %4965 = vmatprep.mubr.bf16.mxu1 %v17850_v16  ;;  %v9831_v12 = vcombine.high %v12568_v25, %v12573_v38  ;;  %v9833_v48 = vcombine.high %v12582_v3, %v12587_v30 }
 0x299   : > { %v12589_v7 = vpop.f32.mrf.mxu0  ;;  %5019 = vmatpush1.bf16.msra.mxu0 %v9730_v43  ;;  %v12592_v28 = vpop.f32.mrf.mxu1  ;;  %5132 = vmatpush1.bf16.msra.mxu1 %v9732_v31 }
 0x29a   : > { %18180 = vst [vmem:[#allocation383_spill] sm:$0xff] %v12589_v7  ;;  %18181 = vst [vmem:[#allocation384_spill] sm:$0xff] %v12592_v28  ;;  %5020 = vmatprep.subr.bf16.mxu0 %v9715_v1  ;;  %5133 = vmatprep.subr.bf16.mxu1 %v9717_v14 }
 0x29b   : > { %v12596_v34 = vpop.f32.mrf.mxu0  ;;  %v12600_v63 = vpop.f32.mrf.mxu1 }
 0x29c   : > { %18182 = vst [vmem:[#allocation385_spill] sm:$0xff] %v12596_v34  ;;  %18183 = vst [vmem:[#allocation386_spill] sm:$0xff] %v12600_v63 }
 0x29d   : > { %v12602_v7 = vpop.f32.mrf.mxu0  ;;  %5021 = vmatpush1.bf16.msra.mxu0 %v9714_v40  ;;  %v12604_v53 = vpop.f32.mrf.mxu1  ;;  %5134 = vmatpush1.bf16.msra.mxu1 %v9716_v22 }
 0x29e   : > { %18184 = vst [vmem:[#allocation387_spill] sm:$0xff] %v12602_v7  ;;  %18185 = vst [vmem:[#allocation388_spill] sm:$0xff] %v12604_v53  ;;  %5232 = vmatprep.subr.bf16.mxu0 %v9831_v12  ;;  %5345 = vmatprep.subr.bf16.mxu1 %v9833_v48 }
 0x29f   : > { %v12606_v23 = vpop.f32.mrf.mxu0  ;;  %4853 = vmatmul.mubr.bf16.gmra.mxu0 %v12316_v60  ;;  %v12609_v50 = vpop.f32.mrf.mxu1  ;;  %4966 = vmatmul.mubr.bf16.gmra.mxu1 %v12316_v60 }
 0x2a0   : > { %18186 = vst [vmem:[#allocation389_spill] sm:$0xff] %v12606_v23  ;;  %18187 = vst [vmem:[#allocation390_spill] sm:$0xff] %v12609_v50  ;;  %4862 = vmatprep.mubr.bf16.mxu0 %v17850_v16  ;;  %4975 = vmatprep.mubr.bf16.mxu1 %v17850_v16 }
 0x2a1   : > { %v12613_v14 = vpop.f32.mrf.mxu0  ;;  %v12616_v4 = vpop.f32.mrf.mxu1 }
 0x2a2   : > { %18188 = vst [vmem:[#allocation391_spill] sm:$0xff] %v12613_v14  ;;  %18189 = vst [vmem:[#allocation392_spill] sm:$0xff] %v12616_v4 }
 0x2a3   : > { %v12618_v43 = vpop.f32.mrf.mxu0  ;;  %v12620_v31 = vpop.f32.mrf.mxu1 }
 0x2a4   : > { %18190 = vst [vmem:[#allocation393_spill] sm:$0xff] %v12618_v43  ;;  %18191 = vst [vmem:[#allocation394_spill] sm:$0xff] %v12620_v31 }
 0x2a5   : > { %v12622_v1 = vpop.f32.mrf.mxu0  ;;  %v12624_v12 = vpop.f32.mrf.mxu1 }
 0x2a6   : > { %18192 = vst [vmem:[#allocation395_spill] sm:$0xff] %v12622_v1  ;;  %18193 = vst [vmem:[#allocation396_spill] sm:$0xff] %v12624_v12 }
 0x2a7   : > { %v12626_v48 = vpop.f32.mrf.mxu0  ;;  %4863 = vmatmul.mubr.bf16.gmra.mxu0 %v12340_v56  ;;  %v12629_v40 = vpop.f32.mrf.mxu1  ;;  %4976 = vmatmul.mubr.bf16.gmra.mxu1 %v12340_v56 }
 0x2a8   : > { %18194 = vst [vmem:[#allocation397_spill] sm:$0xff] %v12626_v48  ;;  %18195 = vst [vmem:[#allocation398_spill] sm:$0xff] %v12629_v40  ;;  %4872 = vmatprep.mubr.bf16.mxu0 %v17850_v16  ;;  %4985 = vmatprep.mubr.bf16.mxu1 %v17850_v16 }
 0x2a9   : > { %v12633_v22 = vpop.f32.mrf.mxu0  ;;  %v12636_v43 = vpop.f32.mrf.mxu1 }
 0x2aa   : > { %18196 = vst [vmem:[#allocation399_spill] sm:$0xff] %v12633_v22  ;;  %18197 = vst [vmem:[#allocation400_spill] sm:$0xff] %v12636_v43 }
 0x2ab   : > { %v12638_v31 = vpop.f32.mrf.mxu0  ;;  %v12640_v1 = vpop.f32.mrf.mxu1 }
 0x2ac   : > { %18198 = vst [vmem:[#allocation401_spill] sm:$0xff] %v12638_v31  ;;  %18199 = vst [vmem:[#allocation402_spill] sm:$0xff] %v12640_v1 }
 0x2ad   : > { %v12642_v12 = vpop.f32.mrf.mxu0  ;;  %v12644_v48 = vpop.f32.mrf.mxu1 }
 0x2ae   : > { %18200 = vst [vmem:[#allocation403_spill] sm:$0xff] %v12642_v12  ;;  %18201 = vst [vmem:[#allocation404_spill] sm:$0xff] %v12644_v48 }
 0x2af   : > { %v12646_v4 = vpop.f32.mrf.mxu0  ;;  %4873 = vmatmul.mubr.bf16.gmra.mxu0 %v12364_v32  ;;  %v12649_v40 = vpop.f32.mrf.mxu1  ;;  %4986 = vmatmul.mubr.bf16.gmra.mxu1 %v12364_v32 }
 0x2b0   : > { %18202 = vst [vmem:[#allocation405_spill] sm:$0xff] %v12646_v4  ;;  %18203 = vst [vmem:[#allocation406_spill] sm:$0xff] %v12649_v40  ;;  %4882 = vmatprep.mubr.bf16.mxu0 %v17850_v16  ;;  %4995 = vmatprep.mubr.bf16.mxu1 %v17850_v16 }
 0x2b1   : > { %v12653_v22 = vpop.f32.mrf.mxu0  ;;  %v12656_v31 = vpop.f32.mrf.mxu1 }
 0x2b2   : > { %18204 = vst [vmem:[#allocation407_spill] sm:$0xff] %v12653_v22  ;;  %18205 = vst [vmem:[#allocation408_spill] sm:$0xff] %v12656_v31  ;;  %v9832_v31 = vcombine.low %v12582_v3, %v12587_v30  ;;  %v9664_v3 = vld [vmem:[%s17623_s1 + $0xab8] sm:$0xff] }
 0x2b3   : > { %v12658_v1 = vpop.f32.mrf.mxu0  ;;  %v12660_v12 = vpop.f32.mrf.mxu1  ;;  %v9672_v30 = vld [vmem:[%s17623_s1 + $0xaf8] sm:$0xff] }
 0x2b4   : > { %18206 = vst [vmem:[#allocation409_spill] sm:$0xff] %v12658_v1  ;;  %18207 = vst [vmem:[#allocation410_spill] sm:$0xff] %v12660_v12  ;;  %v9801_v34 = vcombine.high %v9664_v3, %v9672_v30 }
 0x2b5   : > { %v12662_v48 = vpop.f32.mrf.mxu0  ;;  %v12664_v4 = vpop.f32.mrf.mxu1 }
 0x2b6   : > { %18208 = vst [vmem:[#allocation411_spill] sm:$0xff] %v12662_v48  ;;  %18209 = vst [vmem:[#allocation412_spill] sm:$0xff] %v12664_v4  ;;  %v9830_v48 = vcombine.low %v12568_v25, %v12573_v38  ;;  %v9663_v25 = vld [vmem:[%s17623_s1 + $0xab0] sm:$0xff] }
 0x2b7   : > { %v12666_v43 = vpop.f32.mrf.mxu0  ;;  %4883 = vmatmul.mubr.bf16.gmra.mxu0 %v12388_v59  ;;  %v12669_v40 = vpop.f32.mrf.mxu1  ;;  %4996 = vmatmul.mubr.bf16.gmra.mxu1 %v12388_v59  ;;  %v9671_v38 = vld [vmem:[%s17623_s1 + $0xaf0] sm:$0xff] }
 0x2b8   : > { %18210 = vst [vmem:[#allocation413_spill] sm:$0xff] %v12666_v43  ;;  %18211 = vst [vmem:[#allocation414_spill] sm:$0xff] %v12669_v40  ;;  %5038 = vmatprep.mubr.bf16.mxu0 %v17850_v16  ;;  %5151 = vmatprep.mubr.bf16.mxu1 %v17850_v16  ;;  %v9679_v43 = vld [vmem:[%s17623_s1 + $0xb30] sm:$0xff]  ;;  %v9799_v7 = vcombine.high %v9663_v25, %v9671_v38 }
 0x2b9   : > { %v12673_v22 = vpop.f32.mrf.mxu0  ;;  %v12676_v1 = vpop.f32.mrf.mxu1  ;;  %v9687_v40 = vld [vmem:[%s17623_s1 + $0xb70] sm:$0xff] }
 0x2ba   : > { %18212 = vst [vmem:[#allocation415_spill] sm:$0xff] %v12673_v22  ;;  %18213 = vst [vmem:[#allocation416_spill] sm:$0xff] %v12676_v1  ;;  %v9680_v22 = vld [vmem:[%s17623_s1 + $0xb38] sm:$0xff]  ;;  %v9815_v50 = vcombine.high %v9679_v43, %v9687_v40 }
 0x2bb   : > { %v12678_v12 = vpop.f32.mrf.mxu0  ;;  %v12686_v4 = vpop.f32.mrf.mxu1 }
 0x2bc   : > { %18214 = vst [vmem:[#allocation417_spill] sm:$0xff] %v12678_v12  ;;  %18215 = vst [vmem:[#allocation418_spill] sm:$0xff] %v12686_v4  ;;  %v9688_v12 = vld [vmem:[%s17623_s1 + $0xb78] sm:$0xff] }
 0x2bd   : > { %v12696_v1 = vpop.f32.mrf.mxu0  ;;  %v12700_v14 = vpop.f32.mrf.mxu1  ;;  %v9817_v23 = vcombine.high %v9680_v22, %v9688_v12 }
 0x2be   : > { %18216 = vst [vmem:[#allocation419_spill] sm:$0xff] %v12696_v1  ;;  %18217 = vst [vmem:[#allocation420_spill] sm:$0xff] %v12700_v14  ;;  %v9814_v1 = vcombine.low %v9679_v43, %v9687_v40  ;;  %v9647_v43 = vld [vmem:[%s17623_s1 + $0xa30] sm:$0xff]  ;;  %v9798_v40 = vcombine.low %v9663_v25, %v9671_v38 }
 0x2bf   : > { %v12708_v4 = vpop.f32.mrf.mxu0  ;;  %5039 = vmatmul.mubr.bf16.vlgmr.msra.gmra.mxu0 %v12114_v0  ;;  %v12717_v14 = vpop.f32.mrf.mxu1  ;;  %5152 = vmatmul.mubr.bf16.vlgmr.msra.gmra.mxu1 %v12114_v0 }
 0x2c0   : > { %18218 = vst [vmem:[#allocation421_spill] sm:$0xff] %v12708_v4  ;;  %18219 = vst [vmem:[#allocation422_spill] sm:$0xff] %v12717_v14  ;;  %5233 = vmatpush1.bf16.msra.mxu0 %v9830_v48  ;;  %5346 = vmatpush1.bf16.msra.mxu1 %v9832_v31  ;;  %v9816_v4 = vcombine.low %v9680_v22, %v9688_v12  ;;  %v9655_v31 = vld [vmem:[%s17623_s1 + $0xa70] sm:$0xff]  ;;  %v9648_v12 = vld [vmem:[%s17623_s1 + $0xa38] sm:$0xff] }
 0x2c1   : > { %v12720_v53 = vpop.f32.mrf.mxu0  ;;  %5048 = vmatprep.mubr.bf16.mxu0 %v17850_v16  ;;  %v12723_v63 = vpop.f32.mrf.mxu1  ;;  %5161 = vmatprep.mubr.bf16.mxu1 %v17850_v16  ;;  %v9615_v14 = vld [vmem:[%s17623_s1 + $0x930] sm:$0xff] }
 0x2c2   : > { %18220 = vst [vmem:[#allocation423_spill] sm:$0xff] %v12720_v53  ;;  %18221 = vst [vmem:[#allocation424_spill] sm:$0xff] %v12723_v63  ;;  %5234 = vmatprep.subr.bf16.mxu0 %v9815_v50  ;;  %5347 = vmatprep.subr.bf16.mxu1 %v9817_v23  ;;  %v9656_v50 = vld [vmem:[%s17623_s1 + $0xa78] sm:$0xff]  ;;  %v9783_v63 = vcombine.high %v9647_v43, %v9655_v31  ;;  %v9631_v53 = vld [vmem:[%s17623_s1 + $0x9b0] sm:$0xff] }
 0x2c3   : > { %v12726_v28 = vpop.f32.mrf.mxu0  ;;  %v12734_v48 = vpop.f32.mrf.mxu1 }
 0x2c4   : > { %18222 = vst [vmem:[#allocation425_spill] sm:$0xff] %v12726_v28  ;;  %18223 = vst [vmem:[#allocation426_spill] sm:$0xff] %v12734_v48  ;;  %5235 = vmatpush1.bf16.msra.mxu0 %v9814_v1  ;;  %5348 = vmatpush1.bf16.msra.mxu1 %v9816_v4  ;;  %v9800_v28 = vcombine.low %v9664_v3, %v9672_v30  ;;  %v9785_v1 = vcombine.high %v9648_v12, %v9656_v50  ;;  %v9639_v4 = vld [vmem:[%s17623_s1 + $0x9f0] sm:$0xff] }
 0x2c5   : > { %v12742_v23 = vpop.f32.mrf.mxu0  ;;  %5236 = vmatprep.subr.bf16.mxu0 %v9799_v7  ;;  %v12744_v22 = vpop.f32.mrf.mxu1  ;;  %5349 = vmatprep.subr.bf16.mxu1 %v9801_v34  ;;  %v9632_v34 = vld [vmem:[%s17623_s1 + $0x9b8] sm:$0xff]  ;;  %v9782_v3 = vcombine.low %v9647_v43, %v9655_v31  ;;  %v9766_v31 = vcombine.low %v9631_v53, %v9639_v4 }
 0x2c6   : > { %18224 = vst [vmem:[#allocation427_spill] sm:$0xff] %v12742_v23  ;;  %18225 = vst [vmem:[#allocation428_spill] sm:$0xff] %v12744_v22  ;;  %v9640_v7 = vld [vmem:[%s17623_s1 + $0x9f8] sm:$0xff] }
 0x2c7   : > { %v12746_v48 = vpop.f32.mrf.mxu0  ;;  %5049 = vmatmul.mubr.bf16.gmra.mxu0 %v12166_v37  ;;  %v12755_v25 = vpop.f32.mrf.mxu1  ;;  %5162 = vmatmul.mubr.bf16.gmra.mxu1 %v12166_v37  ;;  %v9769_v23 = vcombine.high %v9632_v34, %v9640_v7 }
 0x2c8   : > { %18226 = vst [vmem:[#allocation429_spill] sm:$0xff] %v12746_v48  ;;  %18227 = vst [vmem:[#allocation430_spill] sm:$0xff] %v12755_v25  ;;  %5058 = vmatprep.mubr.bf16.mxu0 %v17850_v16  ;;  %5171 = vmatprep.mubr.bf16.mxu1 %v17850_v16  ;;  %v9784_v25 = vcombine.low %v9648_v12, %v9656_v50  ;;  %v9767_v48 = vcombine.high %v9631_v53, %v9639_v4  ;;  %v9607_v53 = vld [vmem:[%s17623_s1 + $0x8f0] sm:$0xff] }
 0x2c9   : > { %v12765_v38 = vpop.f32.mrf.mxu0  ;;  %5237 = vmatpush1.bf16.msra.mxu0 %v9798_v40  ;;  %v12768_v30 = vpop.f32.mrf.mxu1  ;;  %5350 = vmatpush1.bf16.msra.mxu1 %v9800_v28  ;;  %v9624_v28 = vld [vmem:[%s17623_s1 + $0x978] sm:$0xff]  ;;  %v9768_v50 = vcombine.low %v9632_v34, %v9640_v7  ;;  %v12814_v7 = vadd.f32 %v11837_v42, %v10728_v35 }
 0x2ca   : > { %18228 = vst [vmem:[#allocation431_spill] sm:$0xff] %v12765_v38  ;;  %18229 = vst [vmem:[#allocation432_spill] sm:$0xff] %v12768_v30  ;;  %5238 = vmatprep.subr.bf16.mxu0 %v9783_v63  ;;  %5351 = vmatprep.subr.bf16.mxu1 %v9785_v1  ;;  %v9623_v38 = vld [vmem:[%s17623_s1 + $0x970] sm:$0xff]  ;;  %v9616_v63 = vld [vmem:[%s17623_s1 + $0x938] sm:$0xff] }
 0x2cb   : > { %v12770_v22 = vpop.f32.mrf.mxu0  ;;  %v12778_v40 = vpop.f32.mrf.mxu1  ;;  %v9751_v1 = vcombine.high %v9615_v14, %v9623_v38  ;;  %v9599_v30 = vld [vmem:[%s17623_s1 + $0x8b0] sm:$0xff]  ;;  %v9750_v34 = vcombine.low %v9615_v14, %v9623_v38  ;;  %v12828_v14 = vadd.f32 %v11852_v26, %v10743_v45  ;;  %v12844_v45 = vadd.f32 %v11863_v54, %v10754_v51 }
 0x2cc   : > { %18230 = vst [vmem:[#allocation433_spill] sm:$0xff] %v12770_v22  ;;  %18231 = vst [vmem:[#allocation434_spill] sm:$0xff] %v12778_v40  ;;  %v9753_v40 = vcombine.high %v9616_v63, %v9624_v28  ;;  %v9583_v38 = vld [vmem:[%s17623_s1 + $0x830] sm:$0xff]  ;;  %v12848_v26 = vadd.f32 %v11871_v10, %v10762_v55  ;;  %v12864_v51 = vadd.f32 %v11875_v36, %v10766_v61 }
 0x2cd   : > { %v12786_v43 = vpop.f32.mrf.mxu0  ;;  %5239 = vmatpush1.bf16.msra.mxu0 %v9782_v3  ;;  %v12788_v12 = vpop.f32.mrf.mxu1  ;;  %5352 = vmatpush1.bf16.msra.mxu1 %v9784_v25  ;;  %v12868_v55 = vadd.f32 %v11887_v8, %v10775_v2  ;;  %v9734_v54 = vcombine.low %v9599_v30, %v9607_v53  ;;  %v12878_v10 = vadd.f32 %v11900_v33, %v10788_v9 }
 0x2ce   : > { %18232 = vst [vmem:[#allocation435_spill] sm:$0xff] %v12786_v43  ;;  %18233 = vst [vmem:[#allocation436_spill] sm:$0xff] %v12788_v12  ;;  %5240 = vmatprep.subr.bf16.mxu0 %v9767_v48  ;;  %5353 = vmatprep.subr.bf16.mxu1 %v9769_v23  ;;  %v9600_v48 = vld [vmem:[%s17623_s1 + $0x8b8] sm:$0xff]  ;;  %v12820_v12 = vadd.f32 %v11846_v6, %v10737_v39  ;;  %v9591_v39 = vld [vmem:[%s17623_s1 + $0x870] sm:$0xff]  ;;  %v12884_v2 = vadd.f32 %v11902_v27, %v10790_v11 }
 0x2cf   : > { %v12790_v22 = vpop.f32.mrf.mxu0  ;;  %5059 = vmatmul.mubr.bf16.gmra.mxu0 %v12214_v17  ;;  %v12799_v4 = vpop.f32.mrf.mxu1  ;;  %5172 = vmatmul.mubr.bf16.gmra.mxu1 %v12214_v17  ;;  %v9608_v23 = vld [vmem:[%s17623_s1 + $0x8f8] sm:$0xff]  ;;  %v9719_v36 = vcombine.high %v9583_v38, %v9591_v39  ;;  %v12899_v33 = vadd.f32 %v11920_v58, %v10808_v20  ;;  %v12903_v11 = vadd.f32 %v11922_v19, %v10810_v24  ;;  %v18244_v27 = vld [vmem:[#allocation243_spill] sm:$0xff]  ;;  %v18248_v19 = vld [vmem:[#allocation6_spill] sm:$0xff] }
 0x2d0   : > { %18234 = vst [vmem:[#allocation437_spill] sm:$0xff] %v12790_v22  ;;  %18235 = vst [vmem:[#allocation438_spill] sm:$0xff] %v12799_v4  ;;  %5068 = vmatprep.mubr.bf16.mxu0 %v17850_v16  ;;  %5181 = vmatprep.mubr.bf16.mxu1 %v17850_v16  ;;  %v9752_v4 = vcombine.low %v9616_v63, %v9624_v28  ;;  %v9735_v22 = vcombine.high %v9599_v30, %v9607_v53  ;;  %v18249_v58 = vld [vmem:[#allocation245_spill] sm:$0xff]  ;;  %v18250_v63 = vld [vmem:[#allocation7_spill] sm:$0xff] }
 0x2d1   : > { %v12809_v25 = vpop.f32.mrf.mxu0  ;;  %5241 = vmatpush1.bf16.msra.mxu0 %v9766_v31  ;;  %v12816_v3 = vpop.f32.mrf.mxu1  ;;  %5354 = vmatpush1.bf16.msra.mxu1 %v9768_v50  ;;  %v9737_v42 = vcombine.high %v9600_v48, %v9608_v23  ;;  %v9736_v61 = vcombine.low %v9600_v48, %v9608_v23  ;;  %v9718_v24 = vcombine.low %v9583_v38, %v9591_v39  ;;  %v18251_v28 = vld [vmem:[#allocation246_spill] sm:$0xff]  ;;  %v18254_v53 = vld [vmem:[#allocation247_spill] sm:$0xff]  ;;  %v18255_v48 = vld [vmem:[#allocation9_spill] sm:$0xff] }
 0x2d2   : > { %18236 = vst [vmem:[#allocation439_spill] sm:$0xff] %v12809_v25  ;;  %18237 = vst [vmem:[#allocation440_spill] sm:$0xff] %v12816_v3  ;;  %5242 = vmatprep.subr.bf16.mxu0 %v9751_v1  ;;  %v12824_v25 = vadd.f32 %v11849_v47, %v10740_v41  ;;  %5355 = vmatprep.subr.bf16.mxu1 %v9753_v40  ;;  %v12840_v41 = vadd.f32 %v11855_v62, %v10746_v49  ;;  %v9584_v40 = vld [vmem:[%s17623_s1 + $0x838] sm:$0xff]  ;;  %v18258_v38 = vld [vmem:[#allocation249_spill] sm:$0xff] }
 0x2d3   : > { %v12830_v35 = vpop.f32.mrf.mxu0  ;;  %v12852_v47 = vadd.f32 %v11873_v21, %v10764_v57  ;;  %v12854_v6 = vpop.f32.mrf.mxu1  ;;  %v9592_v49 = vld [vmem:[%s17623_s1 + $0x878] sm:$0xff]  ;;  %v12872_v57 = vadd.f32 %v11897_v13, %v10785_v5  ;;  %v12888_v5 = vadd.f32 %v11910_v46, %v10798_v15  ;;  %v12895_v13 = vadd.f32 %v11918_v52, %v10806_v18  ;;  %v18245_v18 = vld [vmem:[#allocation5_spill] sm:$0xff] }
 0x2d4   : > { %18238 = vst [vmem:[#allocation441_spill] sm:$0xff] %v12830_v35  ;;  %18239 = vst [vmem:[#allocation442_spill] sm:$0xff] %v12854_v6  ;;  %v9721_v9 = vcombine.high %v9584_v40, %v9592_v49  ;;  %v12911_v46 = vadd.f32 %v18244_v27, %v10819_v29  ;;  %v18246_v52 = vld [vmem:[#allocation244_spill] sm:$0xff]  ;;  %v12922_v30 = vadd.f32 %v18249_v58, %v18248_v19  ;;  %v18260_v27 = vld [vmem:[#allocation250_spill] sm:$0xff] }
 0x2d5   : > { %v12874_v62 = vpop.f32.mrf.mxu0  ;;  %5243 = vmatpush1.bf16.msra.mxu0 %v9750_v34  ;;  %v12880_v21 = vpop.f32.mrf.mxu1  ;;  %5356 = vmatpush1.bf16.msra.mxu1 %v9752_v4  ;;  %v12926_v31 = vadd.f32 %v18251_v28, %v18250_v63  ;;  %v9720_v50 = vcombine.low %v9584_v40, %v9592_v49  ;;  %v18253_v1 = vld [vmem:[#allocation8_spill] sm:$0xff]  ;;  %v18263_v49 = vld [vmem:[#allocation251_spill] sm:$0xff]  ;;  %v18266_v63 = vld [vmem:[#allocation14_spill] sm:$0xff] }
 0x2d6   : > { %18240 = vst [vmem:[#allocation443_spill] sm:$0xff] %v12874_v62  ;;  %18241 = vst [vmem:[#allocation444_spill] sm:$0xff] %v12880_v21  ;;  %5244 = vmatprep.subr.bf16.mxu0 %v9735_v22  ;;  %5357 = vmatprep.subr.bf16.mxu1 %v9737_v42  ;;  %v12915_v22 = vadd.f32 %v18246_v52, %v18245_v18  ;;  %v12932_v4 = vadd.f32 %v18254_v53, %v18253_v1  ;;  %v18256_v23 = vld [vmem:[#allocation248_spill] sm:$0xff]  ;;  %v18257_v42 = vld [vmem:[#allocation10_spill] sm:$0xff] }
 0x2d7   : > { %v12890_v8 = vpop.f32.mrf.mxu0  ;;  %5069 = vmatmul.mubr.bf16.gmra.mxu0 %v12262_v44  ;;  %v12905_v15 = vpop.f32.mrf.mxu1  ;;  %5182 = vmatmul.mubr.bf16.gmra.mxu1 %v12262_v44  ;;  %v12936_v34 = vadd.f32 %v18256_v23, %v18255_v48  ;;  %v12940_v39 = vadd.f32 %v18258_v38, %v18257_v42  ;;  %v18262_v40 = vld [vmem:[#allocation12_spill] sm:$0xff]  ;;  %v18267_v28 = vld [vmem:[#allocation253_spill] sm:$0xff]  ;;  %v18268_v53 = vld [vmem:[#allocation15_spill] sm:$0xff] }
 0x2d8   : > { %18242 = vst [vmem:[#allocation445_spill] sm:$0xff] %v12890_v8  ;;  %18243 = vst [vmem:[#allocation446_spill] sm:$0xff] %v12905_v15  ;;  %5078 = vmatprep.mubr.bf16.mxu0 %v17850_v16  ;;  %5191 = vmatprep.mubr.bf16.mxu1 %v17850_v16  ;;  %v18265_v19 = vld [vmem:[#allocation252_spill] sm:$0xff]  ;;  %v12958_v1 = vadd.f32 %v18267_v28, %v18266_v63  ;;  %v18269_v48 = vld [vmem:[#allocation254_spill] sm:$0xff] }
 0x2d9   : > { %v12917_v20 = vpop.f32.mrf.mxu0  ;;  %5245 = vmatpush1.bf16.msra.mxu0 %v9734_v54  ;;  %v12928_v29 = vpop.f32.mrf.mxu1  ;;  %5358 = vmatpush1.bf16.msra.mxu1 %v9736_v61  ;;  %v18259_v54 = vld [vmem:[#allocation11_spill] sm:$0xff]  ;;  %v12950_v61 = vadd.f32 %v18263_v49, %v18262_v40  ;;  %v12962_v23 = vadd.f32 %v18269_v48, %v18268_v53  ;;  %v18271_v38 = vld [vmem:[#allocation16_spill] sm:$0xff]  ;;  %v18278_v28 = vld [vmem:[#allocation258_spill] sm:$0xff] }
 0x2da   : > { %18247 = vst [vmem:[#allocation243_spill] sm:$0xff] %v12917_v20  ;;  %18252 = vst [vmem:[#allocation5_spill] sm:$0xff] %v12928_v29  ;;  %5246 = vmatprep.subr.bf16.mxu0 %v9719_v36  ;;  %v12944_v18 = vadd.f32 %v18260_v27, %v18259_v54  ;;  %5359 = vmatprep.subr.bf16.mxu1 %v9721_v9  ;;  %v18264_v36 = vld [vmem:[#allocation13_spill] sm:$0xff]  ;;  %v18272_v9 = vld [vmem:[#allocation255_spill] sm:$0xff] }
 0x2db   : > { %v12946_v52 = vpop.f32.mrf.mxu0  ;;  %v12954_v58 = vadd.f32 %v18265_v19, %v18264_v36  ;;  %v12964_v42 = vpop.f32.mrf.mxu1  ;;  %v12968_v54 = vadd.f32 %v18272_v9, %v18271_v38  ;;  %v18273_v27 = vld [vmem:[#allocation17_spill] sm:$0xff]  ;;  %v18274_v40 = vld [vmem:[#allocation256_spill] sm:$0xff]  ;;  %v18275_v36 = vld [vmem:[#allocation18_spill] sm:$0xff] }
 0x2dc   : > { %18261 = vst [vmem:[#allocation244_spill] sm:$0xff] %v12946_v52  ;;  %18270 = vst [vmem:[#allocation6_spill] sm:$0xff] %v12964_v42  ;;  %v12972_v49 = vadd.f32 %v18274_v40, %v18273_v27  ;;  %v18276_v19 = vld [vmem:[#allocation257_spill] sm:$0xff]  ;;  %v18277_v63 = vld [vmem:[#allocation19_spill] sm:$0xff] }
 0x2dd   : > { %v12976_v52 = vadd.f32 %v18276_v19, %v18275_v36  ;;  %v12980_v29 = vadd.f32 %v18278_v28, %v18277_v63  ;;  %v12982_v53 = vpop.f32.mrf.mxu0  ;;  %5247 = vmatpush1.bf16.msra.mxu0 %v9718_v24  ;;  %v18280_v48 = vld [vmem:[#allocation20_spill] sm:$0xff]  ;;  %v18281_v42 = vld [vmem:[#allocation259_spill] sm:$0xff]  ;;  %v18282_v38 = vld [vmem:[#allocation21_spill] sm:$0xff]  ;;  %v13000_v63 = vpop.f32.mrf.mxu1  ;;  %5360 = vmatpush1.bf16.msra.mxu1 %v9720_v50 }
 0x2de   : > { %18279 = vst [vmem:[#allocation245_spill] sm:$0xff] %v12982_v53  ;;  %v12986_v20 = vadd.f32 %v18281_v42, %v18280_v48  ;;  %v18283_v9 = vld [vmem:[#allocation260_spill] sm:$0xff]  ;;  %v18284_v27 = vld [vmem:[#allocation22_spill] sm:$0xff]  ;;  %v18285_v40 = vld [vmem:[#allocation261_spill] sm:$0xff] }
 0x2df   : > { %v12990_v15 = vadd.f32 %v18283_v9, %v18282_v38  ;;  %v12994_v8 = vadd.f32 %v18285_v40, %v18284_v27  ;;  %v18286_v36 = vld [vmem:[#allocation23_spill] sm:$0xff]  ;;  %v18287_v19 = vld [vmem:[#allocation262_spill] sm:$0xff]  ;;  %18288 = vst [vmem:[#allocation7_spill] sm:$0xff] %v13000_v63  ;;  %v18289_v24 = vld [vmem:[#allocation24_spill] sm:$0xff]  ;;  %5079 = vmatmul.mubr.bf16.gmra.mxu0 %v12316_v60  ;;  %5192 = vmatmul.mubr.bf16.gmra.mxu1 %v12316_v60 }
 0x2e0   : > { %v12998_v21 = vadd.f32 %v18287_v19, %v18286_v36  ;;  %v18290_v28 = vld [vmem:[#allocation263_spill] sm:$0xff]  ;;  %v18292_v42 = vld [vmem:[#allocation25_spill] sm:$0xff]  ;;  %v18293_v48 = vld [vmem:[#allocation264_spill] sm:$0xff]  ;;  %v13018_v36 = vpop.f32.mrf.mxu0  ;;  %5088 = vmatprep.mubr.bf16.mxu0 %v17850_v16  ;;  %5201 = vmatprep.mubr.bf16.mxu1 %v17850_v16 }
 0x2e1   : > { %v13004_v53 = vadd.f32 %v18290_v28, %v18289_v24  ;;  %v13008_v62 = vadd.f32 %v18293_v48, %v18292_v42  ;;  %v18295_v38 = vld [vmem:[#allocation26_spill] sm:$0xff]  ;;  %v18296_v9 = vld [vmem:[#allocation265_spill] sm:$0xff]  ;;  %v18298_v27 = vld [vmem:[#allocation27_spill] sm:$0xff]  ;;  %18301 = vst [vmem:[#allocation248_spill] sm:$0xff] %v13018_v36 }
 0x2e2   : > { %v13012_v6 = vadd.f32 %v18296_v9, %v18295_v38  ;;  %v18299_v40 = vld [vmem:[#allocation266_spill] sm:$0xff]  ;;  %v18302_v50 = vld [vmem:[#allocation28_spill] sm:$0xff]  ;;  %v18303_v19 = vld [vmem:[#allocation267_spill] sm:$0xff]  ;;  %v13033_v9 = vpop.f32.mrf.mxu1 }
 0x2e3   : > { %18291 = vst [vmem:[#allocation246_spill] sm:$0xff] %v13004_v53  ;;  %18294 = vst [vmem:[#allocation8_spill] sm:$0xff] %v13008_v62  ;;  %v13016_v35 = vadd.f32 %v18299_v40, %v18298_v27  ;;  %v13023_v24 = vadd.f32 %v18303_v19, %v18302_v50  ;;  %v18305_v28 = vld [vmem:[#allocation29_spill] sm:$0xff]  ;;  %v18306_v63 = vld [vmem:[#allocation268_spill] sm:$0xff] }
 0x2e4   : > { %18297 = vst [vmem:[#allocation247_spill] sm:$0xff] %v13012_v6  ;;  %v13027_v42 = vadd.f32 %v18306_v63, %v18305_v28  ;;  %v18308_v48 = vld [vmem:[#allocation30_spill] sm:$0xff]  ;;  %v18309_v3 = vld [vmem:[#allocation269_spill] sm:$0xff]  ;;  %18311 = vst [vmem:[#allocation250_spill] sm:$0xff] %v13033_v9  ;;  %v13053_v9 = vpop.f32.mrf.mxu0 }
 0x2e5   : > { %18300 = vst [vmem:[#allocation9_spill] sm:$0xff] %v13016_v35  ;;  %18304 = vst [vmem:[#allocation10_spill] sm:$0xff] %v13023_v24  ;;  %v13031_v38 = vadd.f32 %v18309_v3, %v18308_v48  ;;  %v18312_v27 = vld [vmem:[#allocation31_spill] sm:$0xff]  ;;  %v18313_v40 = vld [vmem:[#allocation270_spill] sm:$0xff] }
 0x2e6   : > { %18307 = vst [vmem:[#allocation249_spill] sm:$0xff] %v13027_v42  ;;  %v13039_v36 = vadd.f32 %v18313_v40, %v18312_v27  ;;  %v18315_v50 = vld [vmem:[#allocation32_spill] sm:$0xff]  ;;  %v18316_v19 = vld [vmem:[#allocation271_spill] sm:$0xff]  ;;  %v18318_v63 = vld [vmem:[#allocation33_spill] sm:$0xff] }
 0x2e7   : > { %18310 = vst [vmem:[#allocation11_spill] sm:$0xff] %v13031_v38  ;;  %v13043_v43 = vadd.f32 %v18316_v19, %v18315_v50  ;;  %v18319_v28 = vld [vmem:[#allocation272_spill] sm:$0xff]  ;;  %v18321_v3 = vld [vmem:[#allocation34_spill] sm:$0xff]  ;;  %v18322_v48 = vld [vmem:[#allocation273_spill] sm:$0xff]  ;;  %5089 = vmatmul.mubr.bf16.gmra.mxu0 %v12340_v56  ;;  %5202 = vmatmul.mubr.bf16.gmra.mxu1 %v12340_v56 }
 0x2e8   : > { %18314 = vst [vmem:[#allocation12_spill] sm:$0xff] %v13039_v36  ;;  %v13047_v42 = vadd.f32 %v18319_v28, %v18318_v63  ;;  %v13051_v38 = vadd.f32 %v18322_v48, %v18321_v3  ;;  %18324 = vst [vmem:[#allocation14_spill] sm:$0xff] %v13053_v9  ;;  %v18325_v24 = vld [vmem:[#allocation35_spill] sm:$0xff]  ;;  %v18326_v35 = vld [vmem:[#allocation274_spill] sm:$0xff]  ;;  %v13072_v48 = vpop.f32.mrf.mxu1  ;;  %5098 = vmatprep.mubr.bf16.mxu0 %v17850_v16  ;;  %5211 = vmatprep.mubr.bf16.mxu1 %v17850_v16 }
 0x2e9   : > { %18317 = vst [vmem:[#allocation251_spill] sm:$0xff] %v13043_v43  ;;  %v13058_v27 = vadd.f32 %v18326_v35, %v18325_v24  ;;  %v18328_v40 = vld [vmem:[#allocation36_spill] sm:$0xff]  ;;  %v18329_v36 = vld [vmem:[#allocation275_spill] sm:$0xff]  ;;  %v18331_v19 = vld [vmem:[#allocation37_spill] sm:$0xff] }
 0x2ea   : > { %18320 = vst [vmem:[#allocation13_spill] sm:$0xff] %v13047_v42  ;;  %18323 = vst [vmem:[#allocation252_spill] sm:$0xff] %v13051_v38  ;;  %v13062_v50 = vadd.f32 %v18329_v36, %v18328_v40  ;;  %v18332_v43 = vld [vmem:[#allocation276_spill] sm:$0xff]  ;;  %v18334_v28 = vld [vmem:[#allocation38_spill] sm:$0xff] }
 0x2eb   : > { %18327 = vst [vmem:[#allocation253_spill] sm:$0xff] %v13058_v27  ;;  %v13066_v63 = vadd.f32 %v18332_v43, %v18331_v19  ;;  %v18335_v42 = vld [vmem:[#allocation277_spill] sm:$0xff]  ;;  %18337 = vst [vmem:[#allocation255_spill] sm:$0xff] %v13072_v48  ;;  %v18338_v9 = vld [vmem:[#allocation39_spill] sm:$0xff] }
 0x2ec   : > { %18330 = vst [vmem:[#allocation15_spill] sm:$0xff] %v13062_v50  ;;  %v13070_v3 = vadd.f32 %v18335_v42, %v18334_v28  ;;  %v18339_v38 = vld [vmem:[#allocation278_spill] sm:$0xff]  ;;  %v18341_v35 = vld [vmem:[#allocation40_spill] sm:$0xff]  ;;  %v18342_v24 = vld [vmem:[#allocation279_spill] sm:$0xff]  ;;  %v13090_v42 = vpop.f32.mrf.mxu0 }
 0x2ed   : > { %18333 = vst [vmem:[#allocation254_spill] sm:$0xff] %v13066_v63  ;;  %v13076_v6 = vadd.f32 %v18339_v38, %v18338_v9  ;;  %v13080_v27 = vadd.f32 %v18342_v24, %v18341_v35  ;;  %v18344_v36 = vld [vmem:[#allocation41_spill] sm:$0xff]  ;;  %v18345_v40 = vld [vmem:[#allocation280_spill] sm:$0xff]  ;;  %v18347_v43 = vld [vmem:[#allocation42_spill] sm:$0xff] }
 0x2ee   : > { %18336 = vst [vmem:[#allocation16_spill] sm:$0xff] %v13070_v3  ;;  %v13084_v50 = vadd.f32 %v18345_v40, %v18344_v36  ;;  %v18348_v19 = vld [vmem:[#allocation281_spill] sm:$0xff]  ;;  %18350 = vst [vmem:[#allocation19_spill] sm:$0xff] %v13090_v42  ;;  %v18351_v28 = vld [vmem:[#allocation43_spill] sm:$0xff] }
 0x2ef   : > { %18340 = vst [vmem:[#allocation17_spill] sm:$0xff] %v13076_v6  ;;  %18343 = vst [vmem:[#allocation256_spill] sm:$0xff] %v13080_v27  ;;  %v13088_v63 = vadd.f32 %v18348_v19, %v18347_v43  ;;  %v18352_v48 = vld [vmem:[#allocation282_spill] sm:$0xff]  ;;  %v18354_v38 = vld [vmem:[#allocation44_spill] sm:$0xff]  ;;  %v13108_v43 = vpop.f32.mrf.mxu1  ;;  %5099 = vmatmul.mubr.bf16.gmra.mxu0 %v12364_v32  ;;  %5212 = vmatmul.mubr.bf16.gmra.mxu1 %v12364_v32 }
 0x2f0   : > { %18346 = vst [vmem:[#allocation18_spill] sm:$0xff] %v13084_v50  ;;  %v13094_v3 = vadd.f32 %v18352_v48, %v18351_v28  ;;  %v18355_v9 = vld [vmem:[#allocation283_spill] sm:$0xff]  ;;  %v18357_v35 = vld [vmem:[#allocation45_spill] sm:$0xff]  ;;  %v18358_v24 = vld [vmem:[#allocation284_spill] sm:$0xff]  ;;  %5108 = vmatprep.mubr.bf16.mxu0 %v17850_v16  ;;  %5221 = vmatprep.mubr.bf16.mxu1 %v17850_v16 }
 0x2f1   : > { %18349 = vst [vmem:[#allocation257_spill] sm:$0xff] %v13088_v63  ;;  %v13098_v6 = vadd.f32 %v18355_v9, %v18354_v38  ;;  %v13102_v27 = vadd.f32 %v18358_v24, %v18357_v35  ;;  %v18360_v36 = vld [vmem:[#allocation46_spill] sm:$0xff]  ;;  %v18361_v40 = vld [vmem:[#allocation285_spill] sm:$0xff]  ;;  %18363 = vst [vmem:[#allocation260_spill] sm:$0xff] %v13108_v43 }
 0x2f2   : > { %18353 = vst [vmem:[#allocation258_spill] sm:$0xff] %v13094_v3  ;;  %v13106_v50 = vadd.f32 %v18361_v40, %v18360_v36  ;;  %v18364_v19 = vld [vmem:[#allocation47_spill] sm:$0xff]  ;;  %v18365_v42 = vld [vmem:[#allocation286_spill] sm:$0xff]  ;;  %v18367_v48 = vld [vmem:[#allocation48_spill] sm:$0xff]  ;;  %v13126_v36 = vpop.f32.mrf.mxu0 }
 0x2f3   : > { %18356 = vst [vmem:[#allocation20_spill] sm:$0xff] %v13098_v6  ;;  %18359 = vst [vmem:[#allocation259_spill] sm:$0xff] %v13102_v27  ;;  %v13112_v63 = vadd.f32 %v18365_v42, %v18364_v19  ;;  %v18368_v28 = vld [vmem:[#allocation287_spill] sm:$0xff]  ;;  %v18370_v38 = vld [vmem:[#allocation49_spill] sm:$0xff] }
 0x2f4   : > { %18362 = vst [vmem:[#allocation21_spill] sm:$0xff] %v13106_v50  ;;  %v13116_v3 = vadd.f32 %v18368_v28, %v18367_v48  ;;  %v18371_v9 = vld [vmem:[#allocation288_spill] sm:$0xff]  ;;  %v18373_v35 = vld [vmem:[#allocation50_spill] sm:$0xff]  ;;  %v18374_v24 = vld [vmem:[#allocation289_spill] sm:$0xff] }
 0x2f5   : > { %18366 = vst [vmem:[#allocation22_spill] sm:$0xff] %v13112_v63  ;;  %v13120_v6 = vadd.f32 %v18371_v9, %v18370_v38  ;;  %v13124_v27 = vadd.f32 %v18374_v24, %v18373_v35  ;;  %18376 = vst [vmem:[#allocation24_spill] sm:$0xff] %v13126_v36  ;;  %v18377_v40 = vld [vmem:[#allocation51_spill] sm:$0xff]  ;;  %v18378_v43 = vld [vmem:[#allocation290_spill] sm:$0xff]  ;;  %v13144_v35 = vpop.f32.mrf.mxu1 }
 0x2f6   : > { %18369 = vst [vmem:[#allocation261_spill] sm:$0xff] %v13116_v3  ;;  %v13130_v50 = vadd.f32 %v18378_v43, %v18377_v40  ;;  %v18380_v42 = vld [vmem:[#allocation52_spill] sm:$0xff]  ;;  %v18381_v19 = vld [vmem:[#allocation291_spill] sm:$0xff]  ;;  %v18383_v48 = vld [vmem:[#allocation53_spill] sm:$0xff] }
 0x2f7   : > { %18372 = vst [vmem:[#allocation23_spill] sm:$0xff] %v13120_v6  ;;  %18375 = vst [vmem:[#allocation262_spill] sm:$0xff] %v13124_v27  ;;  %v13134_v63 = vadd.f32 %v18381_v19, %v18380_v42  ;;  %v18384_v28 = vld [vmem:[#allocation292_spill] sm:$0xff]  ;;  %v18386_v38 = vld [vmem:[#allocation54_spill] sm:$0xff]  ;;  %5109 = vmatmul.mubr.bf16.gmra.mxu0 %v12388_v59  ;;  %5222 = vmatmul.mubr.bf16.gmra.mxu1 %v12388_v59 }
 0x2f8   : > { %18379 = vst [vmem:[#allocation263_spill] sm:$0xff] %v13130_v50  ;;  %v13138_v3 = vadd.f32 %v18384_v28, %v18383_v48  ;;  %v18387_v9 = vld [vmem:[#allocation293_spill] sm:$0xff]  ;;  %18389 = vst [vmem:[#allocation265_spill] sm:$0xff] %v13144_v35  ;;  %v18390_v24 = vld [vmem:[#allocation55_spill] sm:$0xff]  ;;  %5264 = vmatprep.mubr.bf16.mxu0 %v17850_v16  ;;  %5377 = vmatprep.mubr.bf16.mxu1 %v17850_v16 }
 0x2f9   : > { %18382 = vst [vmem:[#allocation25_spill] sm:$0xff] %v13134_v63  ;;  %v13142_v6 = vadd.f32 %v18387_v9, %v18386_v38  ;;  %v18391_v36 = vld [vmem:[#allocation294_spill] sm:$0xff]  ;;  %v18393_v43 = vld [vmem:[#allocation56_spill] sm:$0xff]  ;;  %v18394_v40 = vld [vmem:[#allocation295_spill] sm:$0xff]  ;;  %v13162_v38 = vpop.f32.mrf.mxu0 }
 0x2fa   : > { %18385 = vst [vmem:[#allocation264_spill] sm:$0xff] %v13138_v3  ;;  %v13148_v27 = vadd.f32 %v18391_v36, %v18390_v24  ;;  %v13152_v50 = vadd.f32 %v18394_v40, %v18393_v43  ;;  %v18396_v42 = vld [vmem:[#allocation57_spill] sm:$0xff]  ;;  %v18397_v19 = vld [vmem:[#allocation296_spill] sm:$0xff]  ;;  %v18399_v48 = vld [vmem:[#allocation58_spill] sm:$0xff] }
 0x2fb   : > { %18388 = vst [vmem:[#allocation26_spill] sm:$0xff] %v13142_v6  ;;  %v13156_v63 = vadd.f32 %v18397_v19, %v18396_v42  ;;  %v18400_v28 = vld [vmem:[#allocation297_spill] sm:$0xff]  ;;  %18402 = vst [vmem:[#allocation29_spill] sm:$0xff] %v13162_v38  ;;  %v18403_v9 = vld [vmem:[#allocation59_spill] sm:$0xff]  ;;  %v13177_v19 = vpop.f32.mrf.mxu1 }
 0x2fc   : > { %18392 = vst [vmem:[#allocation27_spill] sm:$0xff] %v13148_v27  ;;  %18395 = vst [vmem:[#allocation266_spill] sm:$0xff] %v13152_v50  ;;  %v13160_v3 = vadd.f32 %v18400_v28, %v18399_v48  ;;  %v18404_v35 = vld [vmem:[#allocation298_spill] sm:$0xff]  ;;  %v18406_v24 = vld [vmem:[#allocation60_spill] sm:$0xff] }
 0x2fd   : > { %18398 = vst [vmem:[#allocation28_spill] sm:$0xff] %v13156_v63  ;;  %v13167_v36 = vadd.f32 %v18404_v35, %v18403_v9  ;;  %v18407_v27 = vld [vmem:[#allocation299_spill] sm:$0xff]  ;;  %v18409_v40 = vld [vmem:[#allocation61_spill] sm:$0xff]  ;;  %v18410_v50 = vld [vmem:[#allocation300_spill] sm:$0xff] }
 0x2fe   : > { %18401 = vst [vmem:[#allocation267_spill] sm:$0xff] %v13160_v3  ;;  %v13171_v43 = vadd.f32 %v18407_v27, %v18406_v24  ;;  %v13175_v42 = vadd.f32 %v18410_v50, %v18409_v40  ;;  %18412 = vst [vmem:[#allocation31_spill] sm:$0xff] %v13177_v19  ;;  %v18413_v48 = vld [vmem:[#allocation62_spill] sm:$0xff]  ;;  %v18414_v28 = vld [vmem:[#allocation301_spill] sm:$0xff]  ;;  %v13197_v19 = vpop.f32.mrf.mxu0 }
 0x2ff   : > { %18405 = vst [vmem:[#allocation268_spill] sm:$0xff] %v13167_v36  ;;  %v13183_v38 = vadd.f32 %v18414_v28, %v18413_v48  ;;  %v18416_v35 = vld [vmem:[#allocation63_spill] sm:$0xff]  ;;  %v18417_v9 = vld [vmem:[#allocation302_spill] sm:$0xff]  ;;  %v18419_v27 = vld [vmem:[#allocation64_spill] sm:$0xff]  ;;  %5265 = vmatmul.mubr.bf16.vlgmr.msra.gmra.mxu0 %v12114_v0  ;;  %5378 = vmatmul.mubr.bf16.vlgmr.msra.gmra.mxu1 %v12114_v0 }
 0x300   : > { %18408 = vst [vmem:[#allocation30_spill] sm:$0xff] %v13171_v43  ;;  %18411 = vst [vmem:[#allocation269_spill] sm:$0xff] %v13175_v42  ;;  %v13187_v36 = vadd.f32 %v18417_v9, %v18416_v35  ;;  %v18420_v24 = vld [vmem:[#allocation303_spill] sm:$0xff]  ;;  %v18422_v50 = vld [vmem:[#allocation65_spill] sm:$0xff]  ;;  %5274 = vmatprep.mubr.bf16.mxu0 %v17850_v16  ;;  %5387 = vmatprep.mubr.bf16.mxu1 %v17850_v16 }
 0x301   : > { %18415 = vst [vmem:[#allocation270_spill] sm:$0xff] %v13183_v38  ;;  %v13191_v43 = vadd.f32 %v18420_v24, %v18419_v27  ;;  %v18423_v40 = vld [vmem:[#allocation304_spill] sm:$0xff]  ;;  %18425 = vst [vmem:[#allocation272_spill] sm:$0xff] %v13197_v19  ;;  %v18426_v3 = vld [vmem:[#allocation66_spill] sm:$0xff] }
 0x302   : > { %18418 = vst [vmem:[#allocation32_spill] sm:$0xff] %v13187_v36  ;;  %v13195_v42 = vadd.f32 %v18423_v40, %v18422_v50  ;;  %v18427_v63 = vld [vmem:[#allocation305_spill] sm:$0xff]  ;;  %v18429_v28 = vld [vmem:[#allocation67_spill] sm:$0xff]  ;;  %v18430_v38 = vld [vmem:[#allocation306_spill] sm:$0xff]  ;;  %v13216_v40 = vpop.f32.mrf.mxu1 }
 0x303   : > { %18421 = vst [vmem:[#allocation271_spill] sm:$0xff] %v13191_v43  ;;  %v13202_v48 = vadd.f32 %v18427_v63, %v18426_v3  ;;  %v13206_v35 = vadd.f32 %v18430_v38, %v18429_v28  ;;  %v18432_v9 = vld [vmem:[#allocation68_spill] sm:$0xff]  ;;  %v18433_v36 = vld [vmem:[#allocation307_spill] sm:$0xff]  ;;  %v18435_v24 = vld [vmem:[#allocation69_spill] sm:$0xff] }
 0x304   : > { %18424 = vst [vmem:[#allocation33_spill] sm:$0xff] %v13195_v42  ;;  %v13210_v27 = vadd.f32 %v18433_v36, %v18432_v9  ;;  %v18436_v43 = vld [vmem:[#allocation308_spill] sm:$0xff]  ;;  %18438 = vst [vmem:[#allocation36_spill] sm:$0xff] %v13216_v40  ;;  %v18439_v19 = vld [vmem:[#allocation70_spill] sm:$0xff] }
 0x305   : > { %18428 = vst [vmem:[#allocation34_spill] sm:$0xff] %v13202_v48  ;;  %18431 = vst [vmem:[#allocation273_spill] sm:$0xff] %v13206_v35  ;;  %v13214_v50 = vadd.f32 %v18436_v43, %v18435_v24  ;;  %v18440_v42 = vld [vmem:[#allocation309_spill] sm:$0xff]  ;;  %v18442_v63 = vld [vmem:[#allocation71_spill] sm:$0xff]  ;;  %v13234_v43 = vpop.f32.mrf.mxu0 }
 0x306   : > { %18434 = vst [vmem:[#allocation35_spill] sm:$0xff] %v13210_v27  ;;  %v13220_v6 = vadd.f32 %v18440_v42, %v18439_v19  ;;  %v18443_v3 = vld [vmem:[#allocation310_spill] sm:$0xff]  ;;  %v18445_v38 = vld [vmem:[#allocation72_spill] sm:$0xff]  ;;  %v18446_v28 = vld [vmem:[#allocation311_spill] sm:$0xff] }
 0x307   : > { %18437 = vst [vmem:[#allocation274_spill] sm:$0xff] %v13214_v50  ;;  %v13224_v48 = vadd.f32 %v18443_v3, %v18442_v63  ;;  %v13228_v35 = vadd.f32 %v18446_v28, %v18445_v38  ;;  %v18448_v36 = vld [vmem:[#allocation73_spill] sm:$0xff]  ;;  %v18449_v9 = vld [vmem:[#allocation312_spill] sm:$0xff]  ;;  %18451 = vst [vmem:[#allocation277_spill] sm:$0xff] %v13234_v43  ;;  %v13248_v38 = vpop.f32.mrf.mxu1 }
 0x308   : > { %18441 = vst [vmem:[#allocation275_spill] sm:$0xff] %v13220_v6  ;;  %v13232_v27 = vadd.f32 %v18449_v9, %v18448_v36  ;;  %v18452_v24 = vld [vmem:[#allocation74_spill] sm:$0xff]  ;;  %v18453_v40 = vld [vmem:[#allocation313_spill] sm:$0xff]  ;;  %v18455_v42 = vld [vmem:[#allocation75_spill] sm:$0xff] }
 0x309   : > { %18444 = vst [vmem:[#allocation37_spill] sm:$0xff] %v13224_v48  ;;  %18447 = vst [vmem:[#allocation276_spill] sm:$0xff] %v13228_v35  ;;  %v13238_v50 = vadd.f32 %v18453_v40, %v18452_v24  ;;  %v18456_v19 = vld [vmem:[#allocation314_spill] sm:$0xff]  ;;  %v18458_v63 = vld [vmem:[#allocation76_spill] sm:$0xff] }
 0x30a   : > { %18450 = vst [vmem:[#allocation38_spill] sm:$0xff] %v13232_v27  ;;  %v13242_v6 = vadd.f32 %v18456_v19, %v18455_v42  ;;  %v18459_v3 = vld [vmem:[#allocation315_spill] sm:$0xff]  ;;  %18461 = vst [vmem:[#allocation279_spill] sm:$0xff] %v13248_v38  ;;  %v18462_v35 = vld [vmem:[#allocation77_spill] sm:$0xff] }
 0x30b   : > { %18454 = vst [vmem:[#allocation39_spill] sm:$0xff] %v13238_v50  ;;  %v13246_v48 = vadd.f32 %v18459_v3, %v18458_v63  ;;  %v18463_v36 = vld [vmem:[#allocation316_spill] sm:$0xff]  ;;  %v18465_v43 = vld [vmem:[#allocation78_spill] sm:$0xff]  ;;  %v18466_v27 = vld [vmem:[#allocation317_spill] sm:$0xff]  ;;  %v13266_v63 = vpop.f32.mrf.mxu0  ;;  %5275 = vmatmul.mubr.bf16.gmra.mxu0 %v12166_v37 }
 0x30c   : > { %18457 = vst [vmem:[#allocation278_spill] sm:$0xff] %v13242_v6  ;;  %v13252_v9 = vadd.f32 %v18463_v36, %v18462_v35  ;;  %v13256_v56 = vadd.f32 %v18466_v27, %v18465_v43  ;;  %v18468_v40 = vld [vmem:[#allocation79_spill] sm:$0xff]  ;;  %v18469_v24 = vld [vmem:[#allocation318_spill] sm:$0xff]  ;;  %v18471_v42 = vld [vmem:[#allocation80_spill] sm:$0xff]  ;;  %5284 = vmatprep.mubr.bf16.mxu0 %v17850_v16 }
 0x30d   : > { %18460 = vst [vmem:[#allocation40_spill] sm:$0xff] %v13246_v48  ;;  %v13260_v50 = vadd.f32 %v18469_v24, %v18468_v40  ;;  %v18472_v19 = vld [vmem:[#allocation319_spill] sm:$0xff]  ;;  %18474 = vst [vmem:[#allocation43_spill] sm:$0xff] %v13266_v63  ;;  %v18475_v3 = vld [vmem:[#allocation81_spill] sm:$0xff] }
 0x30e   : > { %18464 = vst [vmem:[#allocation41_spill] sm:$0xff] %v13252_v9  ;;  %18467 = vst [vmem:[#allocation280_spill] sm:$0xff] %v13256_v56  ;;  %v13264_v6 = vadd.f32 %v18472_v19, %v18471_v42  ;;  %v18476_v28 = vld [vmem:[#allocation320_spill] sm:$0xff]  ;;  %v18478_v35 = vld [vmem:[#allocation82_spill] sm:$0xff]  ;;  %v13284_v42 = vpop.f32.mrf.mxu1  ;;  %5388 = vmatmul.mubr.bf16.gmra.mxu1 %v12166_v37 }
 0x30f   : > { %18470 = vst [vmem:[#allocation42_spill] sm:$0xff] %v13260_v50  ;;  %v13270_v38 = vadd.f32 %v18476_v28, %v18475_v3  ;;  %v18479_v36 = vld [vmem:[#allocation321_spill] sm:$0xff]  ;;  %v18481_v27 = vld [vmem:[#allocation83_spill] sm:$0xff]  ;;  %v18482_v43 = vld [vmem:[#allocation322_spill] sm:$0xff]  ;;  %5397 = vmatprep.mubr.bf16.mxu1 %v17850_v16 }
 0x310   : > { %18473 = vst [vmem:[#allocation281_spill] sm:$0xff] %v13264_v6  ;;  %v13274_v9 = vadd.f32 %v18479_v36, %v18478_v35  ;;  %v13278_v56 = vadd.f32 %v18482_v43, %v18481_v27  ;;  %v18484_v40 = vld [vmem:[#allocation84_spill] sm:$0xff]  ;;  %v18485_v24 = vld [vmem:[#allocation323_spill] sm:$0xff]  ;;  %18487 = vst [vmem:[#allocation284_spill] sm:$0xff] %v13284_v42 }
 0x311   : > { %18477 = vst [vmem:[#allocation282_spill] sm:$0xff] %v13270_v38  ;;  %v13282_v50 = vadd.f32 %v18485_v24, %v18484_v40  ;;  %v18488_v19 = vld [vmem:[#allocation85_spill] sm:$0xff]  ;;  %v18489_v63 = vld [vmem:[#allocation324_spill] sm:$0xff]  ;;  %v18491_v28 = vld [vmem:[#allocation86_spill] sm:$0xff]  ;;  %v13302_v40 = vpop.f32.mrf.mxu0 }
 0x312   : > { %18480 = vst [vmem:[#allocation44_spill] sm:$0xff] %v13274_v9  ;;  %18483 = vst [vmem:[#allocation283_spill] sm:$0xff] %v13278_v56  ;;  %v13288_v6 = vadd.f32 %v18489_v63, %v18488_v19  ;;  %v18492_v3 = vld [vmem:[#allocation325_spill] sm:$0xff]  ;;  %v18494_v35 = vld [vmem:[#allocation87_spill] sm:$0xff] }
 0x313   : > { %18486 = vst [vmem:[#allocation45_spill] sm:$0xff] %v13282_v50  ;;  %v13292_v38 = vadd.f32 %v18492_v3, %v18491_v28  ;;  %v18495_v36 = vld [vmem:[#allocation326_spill] sm:$0xff]  ;;  %v18497_v27 = vld [vmem:[#allocation88_spill] sm:$0xff]  ;;  %v18498_v43 = vld [vmem:[#allocation327_spill] sm:$0xff] }
 0x314   : > { %18490 = vst [vmem:[#allocation46_spill] sm:$0xff] %v13288_v6  ;;  %v13296_v9 = vadd.f32 %v18495_v36, %v18494_v35  ;;  %v13300_v56 = vadd.f32 %v18498_v43, %v18497_v27  ;;  %18500 = vst [vmem:[#allocation48_spill] sm:$0xff] %v13302_v40  ;;  %v18501_v24 = vld [vmem:[#allocation89_spill] sm:$0xff]  ;;  %v18504_v19 = vld [vmem:[#allocation90_spill] sm:$0xff]  ;;  %v13317_v36 = vpop.f32.mrf.mxu1  ;;  %v18511_v27 = vlaneseq }
 0x315   : > { %18493 = vst [vmem:[#allocation285_spill] sm:$0xff] %v13292_v38  ;;  %v18502_v42 = vld [vmem:[#allocation329_spill] sm:$0xff]  ;;  %v18505_v6 = vld [vmem:[#allocation330_spill] sm:$0xff]  ;;  %v18507_v3 = vld [vmem:[#allocation91_spill] sm:$0xff] }
 0x316   : > { %18496 = vst [vmem:[#allocation47_spill] sm:$0xff] %v13296_v9  ;;  %18499 = vst [vmem:[#allocation286_spill] sm:$0xff] %v13300_v56  ;;  %v13307_v63 = vadd.f32 %v18502_v42, %v18501_v24  ;;  %v13311_v28 = vadd.f32 %v18505_v6, %v18504_v19  ;;  %v18508_v38 = vld [vmem:[#allocation331_spill] sm:$0xff]  ;;  %v13322_v43 = vshrl.u32 %v18511_v27, 7  ;;  %v18513_v40 = vld [vmem:[#allocation92_spill] sm:$0xff]  ;;  %v13340_v9 = vpop.f32.mrf.mxu0 }
 0x317   : > { %v13315_v35 = vadd.f32 %v18508_v38, %v18507_v3  ;;  %18510 = vst [vmem:[#allocation50_spill] sm:$0xff] %v13317_v36  ;;  %v18514_v42 = vld [vmem:[#allocation332_spill] sm:$0xff]  ;;  %v18517_v6 = vld [vmem:[#allocation333_spill] sm:$0xff]  ;;  %v18520_v38 = vld [vmem:[#allocation334_spill] sm:$0xff] }
 0x318   : > { %18503 = vst [vmem:[#allocation287_spill] sm:$0xff] %v13307_v63  ;;  %18506 = vst [vmem:[#allocation49_spill] sm:$0xff] %v13311_v28  ;;  %v13326_v24 = vadd.f32 %v18514_v42, %v18513_v40  ;;  %v18516_v63 = vld [vmem:[#allocation93_spill] sm:$0xff]  ;;  %v18519_v28 = vld [vmem:[#allocation94_spill] sm:$0xff] }
 0x319   : > { %18509 = vst [vmem:[#allocation288_spill] sm:$0xff] %v13315_v35  ;;  %18512 = vst [vmem:[#allocation289_spill] sm:$0xff] %v13322_v43  ;;  %v13330_v19 = vadd.f32 %v18517_v6, %v18516_v63  ;;  %v13334_v3 = vadd.f32 %v18520_v38, %v18519_v28  ;;  %v18522_v36 = vld [vmem:[#allocation95_spill] sm:$0xff]  ;;  %v18526_v27 = vld [vmem:[#allocation96_spill] sm:$0xff] }
 0x31a   : > { %18515 = vst [vmem:[#allocation51_spill] sm:$0xff] %v13326_v24  ;;  %v18523_v35 = vld [vmem:[#allocation335_spill] sm:$0xff]  ;;  %18525 = vst [vmem:[#allocation53_spill] sm:$0xff] %v13340_v9  ;;  %v18527_v50 = vld [vmem:[#allocation336_spill] sm:$0xff] }
 0x31b   : > { %18518 = vst [vmem:[#allocation290_spill] sm:$0xff] %v13330_v19  ;;  %18521 = vst [vmem:[#allocation52_spill] sm:$0xff] %v13334_v3  ;;  %v13338_v56 = vadd.f32 %v18523_v35, %v18522_v36  ;;  %v13345_v40 = vadd.f32 %v18527_v50, %v18526_v27  ;;  %v18529_v42 = vld [vmem:[#allocation97_spill] sm:$0xff]  ;;  %v18530_v24 = vld [vmem:[#allocation338_spill] sm:$0xff]  ;;  %v13359_v36 = vpop.f32.mrf.mxu1 }
 0x31c   : > { %v13349_v63 = vadd.f32 %v18530_v24, %v18529_v42  ;;  %v18532_v6 = vld [vmem:[#allocation98_spill] sm:$0xff]  ;;  %v18533_v19 = vld [vmem:[#allocation339_spill] sm:$0xff]  ;;  %v18536_v3 = vld [vmem:[#allocation340_spill] sm:$0xff]  ;;  %18538 = vst [vmem:[#allocation294_spill] sm:$0xff] %v13359_v36 }
 0x31d   : > { %18524 = vst [vmem:[#allocation291_spill] sm:$0xff] %v13338_v56  ;;  %18528 = vst [vmem:[#allocation292_spill] sm:$0xff] %v13345_v40  ;;  %v13353_v28 = vadd.f32 %v18533_v19, %v18532_v6  ;;  %v18535_v38 = vld [vmem:[#allocation99_spill] sm:$0xff]  ;;  %v18539_v9 = vld [vmem:[#allocation100_spill] sm:$0xff] }
 0x31e   : > { %18531 = vst [vmem:[#allocation54_spill] sm:$0xff] %v13349_v63  ;;  %v13357_v35 = vadd.f32 %v18536_v3, %v18535_v38  ;;  %v18540_v56 = vld [vmem:[#allocation341_spill] sm:$0xff]  ;;  %v18543_v27 = vld [vmem:[#allocation342_spill] sm:$0xff]  ;;  %v18546_v42 = vld [vmem:[#allocation343_spill] sm:$0xff]  ;;  %v13377_v3 = vpop.f32.mrf.mxu0 }
 0x31f   : > { %18534 = vst [vmem:[#allocation293_spill] sm:$0xff] %v13353_v28  ;;  %v13363_v48 = vadd.f32 %v18540_v56, %v18539_v9  ;;  %v18542_v50 = vld [vmem:[#allocation101_spill] sm:$0xff]  ;;  %v18545_v24 = vld [vmem:[#allocation102_spill] sm:$0xff]  ;;  %v18548_v19 = vld [vmem:[#allocation103_spill] sm:$0xff] }
 0x320   : > { %18537 = vst [vmem:[#allocation55_spill] sm:$0xff] %v13357_v35  ;;  %v13367_v40 = vadd.f32 %v18543_v27, %v18542_v50  ;;  %v13371_v63 = vadd.f32 %v18546_v42, %v18545_v24  ;;  %v18549_v6 = vld [vmem:[#allocation344_spill] sm:$0xff]  ;;  %18551 = vst [vmem:[#allocation58_spill] sm:$0xff] %v13377_v3  ;;  %v18553_v36 = vld [vmem:[#allocation345_spill] sm:$0xff]  ;;  %v13387_v50 = vpop.f32.mrf.mxu1 }
 0x321   : > { %18541 = vst [vmem:[#allocation56_spill] sm:$0xff] %v13363_v48  ;;  %v13375_v28 = vadd.f32 %v18549_v6, %v18548_v19  ;;  %v18552_v38 = vld [vmem:[#allocation104_spill] sm:$0xff]  ;;  %v18555_v56 = vld [vmem:[#allocation105_spill] sm:$0xff]  ;;  %v18556_v9 = vld [vmem:[#allocation347_spill] sm:$0xff] }
 0x322   : > { %18544 = vst [vmem:[#allocation295_spill] sm:$0xff] %v13367_v40  ;;  %18547 = vst [vmem:[#allocation57_spill] sm:$0xff] %v13371_v63  ;;  %v13381_v35 = vadd.f32 %v18553_v36, %v18552_v38  ;;  %v13385_v48 = vadd.f32 %v18556_v9, %v18555_v56  ;;  %v18559_v42 = vld [vmem:[#allocation106_spill] sm:$0xff]  ;;  %v18560_v63 = vld [vmem:[#allocation348_spill] sm:$0xff]  ;;  %v13403_v56 = vpop.f32.mrf.mxu0  ;;  %5285 = vmatmul.mubr.bf16.gmra.mxu0 %v12214_v17 }
 0x323   : > { %18550 = vst [vmem:[#allocation296_spill] sm:$0xff] %v13375_v28  ;;  %18558 = vst [vmem:[#allocation298_spill] sm:$0xff] %v13387_v50  ;;  %v13393_v19 = vadd.f32 %v18560_v63, %v18559_v42  ;;  %v18562_v6 = vld [vmem:[#allocation107_spill] sm:$0xff]  ;;  %v18563_v3 = vld [vmem:[#allocation349_spill] sm:$0xff]  ;;  %5294 = vmatprep.mubr.bf16.mxu0 %v17850_v16 }
 0x324   : > { %18554 = vst [vmem:[#allocation297_spill] sm:$0xff] %v13381_v35  ;;  %18557 = vst [vmem:[#allocation59_spill] sm:$0xff] %v13385_v48  ;;  %v13397_v28 = vadd.f32 %v18563_v3, %v18562_v6  ;;  %v18565_v36 = vld [vmem:[#allocation108_spill] sm:$0xff]  ;;  %v18566_v38 = vld [vmem:[#allocation350_spill] sm:$0xff] }
 0x325   : > { %18561 = vst [vmem:[#allocation60_spill] sm:$0xff] %v13393_v19  ;;  %v13401_v35 = vadd.f32 %v18566_v38, %v18565_v36  ;;  %18568 = vst [vmem:[#allocation300_spill] sm:$0xff] %v13403_v56  ;;  %v13408_v9 = vld [vmem:[%s17624_s2] sm:$0xff]  ;;  %v18571_v63 = vld [vmem:[#allocation351_spill] sm:$0xff]  ;;  %v13423_v56 = vpop.f32.mrf.mxu1  ;;  %5398 = vmatmul.mubr.bf16.gmra.mxu1 %v12214_v17 }
 0x326   : > { %18564 = vst [vmem:[#allocation299_spill] sm:$0xff] %v13397_v28  ;;  %18569 = vst [vmem:[#allocation62_spill] sm:$0xff] %v13408_v9  ;;  %v18570_v27 = vld [vmem:[#allocation109_spill] sm:$0xff]  ;;  %v18573_v50 = vld [vmem:[#allocation110_spill] sm:$0xff]  ;;  %5407 = vmatprep.mubr.bf16.mxu1 %v17850_v16 }
 0x327   : > { %18567 = vst [vmem:[#allocation61_spill] sm:$0xff] %v13401_v35  ;;  %v13413_v42 = vadd.f32 %v18571_v63, %v18570_v27  ;;  %v18574_v3 = vld [vmem:[#allocation352_spill] sm:$0xff]  ;;  %v18576_v28 = vld [vmem:[#allocation111_spill] sm:$0xff]  ;;  %v18577_v36 = vld [vmem:[#allocation353_spill] sm:$0xff] }
 0x328   : > { %v13417_v6 = vadd.f32 %v18574_v3, %v18573_v50  ;;  %v13421_v38 = vadd.f32 %v18577_v36, %v18576_v28  ;;  %18579 = vst [vmem:[#allocation64_spill] sm:$0xff] %v13423_v56  ;;  %v18580_v19 = vld [vmem:[#allocation112_spill] sm:$0xff]  ;;  %v18581_v48 = vld [vmem:[#allocation354_spill] sm:$0xff]  ;;  %v18583_v24 = vld [vmem:[#allocation113_spill] sm:$0xff]  ;;  %v13442_v36 = vpop.f32.mrf.mxu0 }
 0x329   : > { %18572 = vst [vmem:[#allocation301_spill] sm:$0xff] %v13413_v42  ;;  %v13428_v40 = vadd.f32 %v18581_v48, %v18580_v19  ;;  %v18584_v32 = vld [vmem:[#allocation355_spill] sm:$0xff]  ;;  %v18586_v63 = vld [vmem:[#allocation114_spill] sm:$0xff]  ;;  %v18587_v42 = vld [vmem:[#allocation356_spill] sm:$0xff]  ;;  %v13449_v19 = vpop.f32.mrf.mxu1 }
 0x32a   : > { %18575 = vst [vmem:[#allocation63_spill] sm:$0xff] %v13417_v6  ;;  %18578 = vst [vmem:[#allocation302_spill] sm:$0xff] %v13421_v38  ;;  %v13432_v27 = vadd.f32 %v18584_v32, %v18583_v24  ;;  %v13436_v50 = vadd.f32 %v18587_v42, %v18586_v63  ;;  %v18589_v3 = vld [vmem:[#allocation115_spill] sm:$0xff]  ;;  %v18590_v6 = vld [vmem:[#allocation357_spill] sm:$0xff]  ;;  %v18597_v32 = vsub.s32 0, %v13322_v43  ;;  %v18598_v42 = vsub.s32 2, %v13322_v43 }
 0x32b   : > { %18582 = vst [vmem:[#allocation303_spill] sm:$0xff] %v13428_v40  ;;  %v13440_v28 = vadd.f32 %v18590_v6, %v18589_v3  ;;  %18592 = vst [vmem:[#allocation305_spill] sm:$0xff] %v13442_v36  ;;  %v18593_v35 = vld [vmem:[#allocation116_spill] sm:$0xff]  ;;  %v18594_v56 = vld [vmem:[#allocation358_spill] sm:$0xff] }
 0x32c   : > { %18585 = vst [vmem:[#allocation65_spill] sm:$0xff] %v13432_v27  ;;  %18588 = vst [vmem:[#allocation304_spill] sm:$0xff] %v13436_v50  ;;  %v13447_v48 = vadd.f32 %v18594_v56, %v18593_v35  ;;  %v13456_v24 = vrot.slane %v13408_v9, %v18597_v32  ;;  %v13461_v6 = vrot.slane %v13408_v9, %v18598_v42  ;;  %v18599_v63 = vld [vmem:[#allocation117_spill] sm:$0xff]  ;;  %v18600_v3 = vld [vmem:[#allocation359_spill] sm:$0xff]  ;;  %v13475_v27 = vpop.f32.mrf.mxu0  ;;  %v18609_v32 = vsub.s32 1, %v13322_v43 }
 0x32d   : > { %18591 = vst [vmem:[#allocation66_spill] sm:$0xff] %v13440_v28  ;;  %18596 = vst [vmem:[#allocation306_spill] sm:$0xff] %v13449_v19  ;;  %v13465_v35 = vadd.f32 %v18600_v3, %v18599_v63  ;;  %v18602_v56 = vld [vmem:[#allocation118_spill] sm:$0xff]  ;;  %v18603_v19 = vld [vmem:[#allocation360_spill] sm:$0xff] }
 0x32e   : > { %18595 = vst [vmem:[#allocation67_spill] sm:$0xff] %v13447_v48  ;;  %v13469_v36 = vadd.f32 %v18603_v19, %v18602_v56  ;;  %v18605_v48 = vld [vmem:[#allocation119_spill] sm:$0xff]  ;;  %v18606_v28 = vld [vmem:[#allocation361_spill] sm:$0xff]  ;;  %18608 = vst [vmem:[#allocation308_spill] sm:$0xff] %v13475_v27  ;;  %v13481_v42 = vrot.slane %v13408_v9, %v18609_v32  ;;  %v13495_v27 = vpop.f32.mrf.mxu1 }
 0x32f   : > { %18601 = vst [vmem:[#allocation68_spill] sm:$0xff] %v13465_v35  ;;  %v13473_v50 = vadd.f32 %v18606_v28, %v18605_v48  ;;  %v18610_v40 = vld [vmem:[#allocation120_spill] sm:$0xff]  ;;  %v18611_v63 = vld [vmem:[#allocation362_spill] sm:$0xff]  ;;  %v18613_v35 = vld [vmem:[#allocation121_spill] sm:$0xff] }
 0x330   : > { %18604 = vst [vmem:[#allocation307_spill] sm:$0xff] %v13469_v36  ;;  %v13485_v3 = vadd.f32 %v18611_v63, %v18610_v40  ;;  %v18614_v19 = vld [vmem:[#allocation363_spill] sm:$0xff]  ;;  %v18616_v36 = vld [vmem:[#allocation122_spill] sm:$0xff]  ;;  %v18617_v28 = vld [vmem:[#allocation364_spill] sm:$0xff] }
 0x331   : > { %18607 = vst [vmem:[#allocation69_spill] sm:$0xff] %v13473_v50  ;;  %v13489_v56 = vadd.f32 %v18614_v19, %v18613_v35  ;;  %v13493_v48 = vadd.f32 %v18617_v28, %v18616_v36  ;;  %18619 = vst [vmem:[#allocation310_spill] sm:$0xff] %v13495_v27  ;;  %v18620_v50 = vsub.s32 3, %v13322_v43  ;;  %v18621_v32 = vld [vmem:[#allocation123_spill] sm:$0xff]  ;;  %v18622_v59 = vld [vmem:[#allocation365_spill] sm:$0xff] }
 0x332   : > { %18612 = vst [vmem:[#allocation70_spill] sm:$0xff] %v13485_v3  ;;  %v13504_v62 = vadd.f32 %v18622_v59, %v18621_v32  ;;  %v18624_v40 = vld [vmem:[#allocation124_spill] sm:$0xff]  ;;  %v18625_v63 = vld [vmem:[#allocation366_spill] sm:$0xff]  ;;  %v18627_v35 = vld [vmem:[#allocation125_spill] sm:$0xff] }
 0x333   : > { %18615 = vst [vmem:[#allocation309_spill] sm:$0xff] %v13489_v56  ;;  %18618 = vst [vmem:[#allocation71_spill] sm:$0xff] %v13493_v48  ;;  %v13500_v38 = vrot.slane %v13408_v9, %v18620_v50  ;;  %v13508_v3 = vadd.f32 %v18625_v63, %v18624_v40  ;;  %v18628_v19 = vld [vmem:[#allocation367_spill] sm:$0xff]  ;;  %v18630_v36 = vld [vmem:[#allocation126_spill] sm:$0xff]  ;;  %v13518_v48 = vpop.f32.mrf.mxu0 }
 0x334   : > { %18623 = vst [vmem:[#allocation72_spill] sm:$0xff] %v13504_v62  ;;  %v13512_v56 = vadd.f32 %v18628_v19, %v18627_v35  ;;  %v18631_v28 = vld [vmem:[#allocation368_spill] sm:$0xff]  ;;  %18633 = vst [vmem:[#allocation74_spill] sm:$0xff] %v13518_v48  ;;  %v18634_v50 = vld [vmem:[#allocation127_spill] sm:$0xff] }
 0x335   : > { %18626 = vst [vmem:[#allocation311_spill] sm:$0xff] %v13508_v3  ;;  %v13516_v27 = vadd.f32 %v18631_v28, %v18630_v36  ;;  %v18635_v9 = vld [vmem:[#allocation369_spill] sm:$0xff]  ;;  %v18637_v59 = vld [vmem:[#allocation128_spill] sm:$0xff]  ;;  %v18638_v32 = vld [vmem:[#allocation370_spill] sm:$0xff]  ;;  %v13536_v36 = vpop.f32.mrf.mxu1 }
 0x336   : > { %18629 = vst [vmem:[#allocation73_spill] sm:$0xff] %v13512_v56  ;;  %v13522_v43 = vadd.f32 %v18635_v9, %v18634_v50  ;;  %v13526_v62 = vadd.f32 %v18638_v32, %v18637_v59  ;;  %v18640_v40 = vld [vmem:[#allocation129_spill] sm:$0xff]  ;;  %v18641_v63 = vld [vmem:[#allocation371_spill] sm:$0xff]  ;;  %v18643_v35 = vld [vmem:[#allocation130_spill] sm:$0xff] }
 0x337   : > { %18632 = vst [vmem:[#allocation312_spill] sm:$0xff] %v13516_v27  ;;  %v13530_v3 = vadd.f32 %v18641_v63, %v18640_v40  ;;  %v18644_v19 = vld [vmem:[#allocation372_spill] sm:$0xff]  ;;  %18646 = vst [vmem:[#allocation315_spill] sm:$0xff] %v13536_v36  ;;  %v18647_v28 = vld [vmem:[#allocation131_spill] sm:$0xff] }
 0x338   : > { %18636 = vst [vmem:[#allocation313_spill] sm:$0xff] %v13522_v43  ;;  %18639 = vst [vmem:[#allocation75_spill] sm:$0xff] %v13526_v62  ;;  %v13534_v56 = vadd.f32 %v18644_v19, %v18643_v35  ;;  %v18648_v48 = vld [vmem:[#allocation373_spill] sm:$0xff]  ;;  %v18650_v9 = vld [vmem:[#allocation132_spill] sm:$0xff]  ;;  %v13554_v35 = vpop.f32.mrf.mxu0  ;;  %5295 = vmatmul.mubr.bf16.gmra.mxu0 %v12262_v44 }
 0x339   : > { %18642 = vst [vmem:[#allocation314_spill] sm:$0xff] %v13530_v3  ;;  %v13540_v27 = vadd.f32 %v18648_v48, %v18647_v28  ;;  %v18651_v50 = vld [vmem:[#allocation374_spill] sm:$0xff]  ;;  %v18653_v59 = vld [vmem:[#allocation133_spill] sm:$0xff]  ;;  %v18654_v32 = vld [vmem:[#allocation375_spill] sm:$0xff]  ;;  %5304 = vmatprep.mubr.bf16.mxu0 %v17850_v16 }
 0x33a   : > { %18645 = vst [vmem:[#allocation76_spill] sm:$0xff] %v13534_v56  ;;  %v13544_v43 = vadd.f32 %v18651_v50, %v18650_v9  ;;  %v13548_v62 = vadd.f32 %v18654_v32, %v18653_v59  ;;  %v18656_v40 = vld [vmem:[#allocation134_spill] sm:$0xff]  ;;  %v18657_v63 = vld [vmem:[#allocation376_spill] sm:$0xff]  ;;  %18659 = vst [vmem:[#allocation79_spill] sm:$0xff] %v13554_v35 }
 0x33b   : > { %18649 = vst [vmem:[#allocation77_spill] sm:$0xff] %v13540_v27  ;;  %v13552_v3 = vadd.f32 %v18657_v63, %v18656_v40  ;;  %v18660_v19 = vld [vmem:[#allocation135_spill] sm:$0xff]  ;;  %v18661_v36 = vld [vmem:[#allocation377_spill] sm:$0xff]  ;;  %v18663_v48 = vld [vmem:[#allocation136_spill] sm:$0xff]  ;;  %v13572_v40 = vpop.f32.mrf.mxu1  ;;  %5408 = vmatmul.mubr.bf16.gmra.mxu1 %v12262_v44 }
 0x33c   : > { %18652 = vst [vmem:[#allocation316_spill] sm:$0xff] %v13544_v43  ;;  %18655 = vst [vmem:[#allocation78_spill] sm:$0xff] %v13548_v62  ;;  %v13558_v56 = vadd.f32 %v18661_v36, %v18660_v19  ;;  %v18664_v28 = vld [vmem:[#allocation378_spill] sm:$0xff]  ;;  %v18666_v9 = vld [vmem:[#allocation137_spill] sm:$0xff]  ;;  %5417 = vmatprep.mubr.bf16.mxu1 %v17850_v16 }
 0x33d   : > { %18658 = vst [vmem:[#allocation317_spill] sm:$0xff] %v13552_v3  ;;  %v13562_v27 = vadd.f32 %v18664_v28, %v18663_v48  ;;  %v18667_v50 = vld [vmem:[#allocation379_spill] sm:$0xff]  ;;  %v18669_v59 = vld [vmem:[#allocation138_spill] sm:$0xff]  ;;  %v18670_v32 = vld [vmem:[#allocation380_spill] sm:$0xff] }
 0x33e   : > { %18662 = vst [vmem:[#allocation318_spill] sm:$0xff] %v13558_v56  ;;  %v13566_v43 = vadd.f32 %v18667_v50, %v18666_v9  ;;  %v13570_v62 = vadd.f32 %v18670_v32, %v18669_v59  ;;  %18672 = vst [vmem:[#allocation320_spill] sm:$0xff] %v13572_v40  ;;  %v18673_v63 = vld [vmem:[#allocation139_spill] sm:$0xff]  ;;  %v18674_v35 = vld [vmem:[#allocation381_spill] sm:$0xff]  ;;  %v4588_v59 = vpop.f32.mrf.mxu0 }
 0x33f   : > { %18665 = vst [vmem:[#allocation80_spill] sm:$0xff] %v13562_v27  ;;  %v13576_v3 = vadd.f32 %v18674_v35, %v18673_v63  ;;  %v18676_v36 = vld [vmem:[#allocation140_spill] sm:$0xff]  ;;  %v18677_v19 = vld [vmem:[#allocation382_spill] sm:$0xff]  ;;  %v18679_v48 = vld [vmem:[#allocation141_spill] sm:$0xff] }
 0x340   : > { %18668 = vst [vmem:[#allocation319_spill] sm:$0xff] %v13566_v43  ;;  %18671 = vst [vmem:[#allocation81_spill] sm:$0xff] %v13570_v62  ;;  %v13580_v56 = vadd.f32 %v18677_v19, %v18676_v36  ;;  %v18680_v28 = vld [vmem:[#allocation383_spill] sm:$0xff]  ;;  %v18682_v9 = vld [vmem:[#allocation142_spill] sm:$0xff]  ;;  %v5458_v36 = vadd.f32 %v4588_v59, %v12814_v7  ;;  %v4701_v19 = vpop.f32.mrf.mxu1  ;;  %v4590_v7 = vpop.f32.mrf.mxu0 }
 0x341   : > { %18675 = vst [vmem:[#allocation82_spill] sm:$0xff] %v13576_v3  ;;  %v13584_v27 = vadd.f32 %v18680_v28, %v18679_v48  ;;  %v18683_v50 = vld [vmem:[#allocation384_spill] sm:$0xff]  ;;  %v18685_v32 = vld [vmem:[#allocation143_spill] sm:$0xff]  ;;  %v18686_v40 = vld [vmem:[#allocation385_spill] sm:$0xff] }
 0x342   : > { %18678 = vst [vmem:[#allocation321_spill] sm:$0xff] %v13580_v56  ;;  %v13588_v43 = vadd.f32 %v18683_v50, %v18682_v9  ;;  %v13593_v62 = vadd.f32 %v18686_v40, %v18685_v32  ;;  %v18688_v35 = vld [vmem:[#allocation144_spill] sm:$0xff]  ;;  %v18689_v63 = vld [vmem:[#allocation386_spill] sm:$0xff]  ;;  %v18691_v48 = vld [vmem:[#allocation145_spill] sm:$0xff] }
 0x343   : > { %18681 = vst [vmem:[#allocation83_spill] sm:$0xff] %v13584_v27  ;;  %v13597_v3 = vadd.f32 %v18689_v63, %v18688_v35  ;;  %v18692_v28 = vld [vmem:[#allocation387_spill] sm:$0xff]  ;;  %v18694_v50 = vld [vmem:[#allocation146_spill] sm:$0xff]  ;;  %v18698_v32 = vld [vmem:[#allocation389_spill] sm:$0xff]  ;;  %v5460_v35 = vadd.f32 %v4701_v19, %v12820_v12 }
 0x344   : > { %18684 = vst [vmem:[#allocation322_spill] sm:$0xff] %v13588_v43  ;;  %18687 = vst [vmem:[#allocation84_spill] sm:$0xff] %v13593_v62  ;;  %v13604_v9 = vadd.f32 %v18692_v28, %v18691_v48  ;;  %v18695_v43 = vld [vmem:[#allocation388_spill] sm:$0xff]  ;;  %v18697_v40 = vld [vmem:[#allocation147_spill] sm:$0xff] }
 0x345   : > { %18690 = vst [vmem:[#allocation323_spill] sm:$0xff] %v13597_v3  ;;  %v13608_v27 = vadd.f32 %v18695_v43, %v18694_v50  ;;  %v13612_v62 = vadd.f32 %v18698_v32, %v18697_v40  ;;  %v18700_v0 = vld [vmem:[#allocation148_spill] sm:$0xff]  ;;  %v18701_v59 = vld [vmem:[#allocation390_spill] sm:$0xff]  ;;  %v18703_v3 = vld [vmem:[#allocation149_spill] sm:$0xff]  ;;  %v5459_v40 = vadd.f32 %v4590_v7, %v12824_v25  ;;  %v4703_v32 = vpop.f32.mrf.mxu1 }
 0x346   : > { %18693 = vst [vmem:[#allocation85_spill] sm:$0xff] %v13604_v9  ;;  %v13618_v63 = vadd.f32 %v18701_v59, %v18700_v0  ;;  %v18704_v48 = vld [vmem:[#allocation391_spill] sm:$0xff]  ;;  %v18706_v9 = vld [vmem:[#allocation150_spill] sm:$0xff]  ;;  %v18707_v43 = vld [vmem:[#allocation392_spill] sm:$0xff] }
 0x347   : > { %18696 = vst [vmem:[#allocation324_spill] sm:$0xff] %v13608_v27  ;;  %18699 = vst [vmem:[#allocation86_spill] sm:$0xff] %v13612_v62  ;;  %v13622_v28 = vadd.f32 %v18704_v48, %v18703_v3  ;;  %v13626_v50 = vadd.f32 %v18707_v43, %v18706_v9  ;;  %v18709_v62 = vld [vmem:[#allocation151_spill] sm:$0xff]  ;;  %v18710_v12 = vld [vmem:[#allocation393_spill] sm:$0xff]  ;;  %v5461_v3 = vadd.f32 %v4703_v32, %v12828_v14  ;;  %v4592_v48 = vpop.f32.mrf.mxu0 }
 0x348   : > { %18702 = vst [vmem:[#allocation325_spill] sm:$0xff] %v13618_v63  ;;  %v13631_v19 = vadd.f32 %v18710_v12, %v18709_v62  ;;  %v18711_v27 = vld [vmem:[#allocation152_spill] sm:$0xff]  ;;  %v18712_v56 = vld [vmem:[#allocation394_spill] sm:$0xff]  ;;  %v18714_v0 = vld [vmem:[#allocation153_spill] sm:$0xff]  ;;  %v5798_v62 = vadd.f32 %v13456_v24, %v5458_v36 }
 0x349   : > { %18705 = vst [vmem:[#allocation87_spill] sm:$0xff] %v13622_v28  ;;  %18708 = vst [vmem:[#allocation326_spill] sm:$0xff] %v13626_v50  ;;  %v13635_v53 = vadd.f32 %v18712_v56, %v18711_v27  ;;  %v18715_v59 = vld [vmem:[#allocation395_spill] sm:$0xff]  ;;  %v18717_v9 = vld [vmem:[#allocation154_spill] sm:$0xff]  ;;  %v5474_v27 = vadd.f32 %v4592_v48, %v12840_v41  ;;  %v4705_v56 = vpop.f32.mrf.mxu1  ;;  %v5799_v41 = vadd.f32 %v13481_v42, %v5459_v40 }
 0x34a   : > { %v13639_v63 = vadd.f32 %v18715_v59, %v18714_v0  ;;  %v18718_v43 = vld [vmem:[#allocation396_spill] sm:$0xff]  ;;  %v18720_v25 = vld [vmem:[#allocation155_spill] sm:$0xff]  ;;  %v18721_v7 = vld [vmem:[#allocation397_spill] sm:$0xff] }
 0x34b   : > { %18713 = vst [vmem:[#allocation88_spill] sm:$0xff] %v13635_v53  ;;  %v13644_v50 = vadd.f32 %v18718_v43, %v18717_v9  ;;  %v13648_v28 = vadd.f32 %v18721_v7, %v18720_v25  ;;  %v18723_v12 = vld [vmem:[#allocation156_spill] sm:$0xff]  ;;  %v18724_v53 = vld [vmem:[#allocation398_spill] sm:$0xff]  ;;  %v18726_v59 = vld [vmem:[#allocation157_spill] sm:$0xff]  ;;  %v5800_v9 = vadd.f32 %v13461_v6, %v5460_v35  ;;  %v5476_v43 = vadd.f32 %v4705_v56, %v12844_v45  ;;  %v4707_v48 = vpop.f32.mrf.mxu1 }
 0x34c   : > { %18716 = vst [vmem:[#allocation327_spill] sm:$0xff] %v13639_v63  ;;  %v13654_v0 = vadd.f32 %v18724_v53, %v18723_v12  ;;  %v18727_v14 = vld [vmem:[#allocation399_spill] sm:$0xff]  ;;  %v18729_v25 = vld [vmem:[#allocation158_spill] sm:$0xff]  ;;  %v18730_v7 = vld [vmem:[#allocation400_spill] sm:$0xff]  ;;  %v5814_v36 = vadd.f32 %v13456_v24, %v5474_v27  ;;  %v5801_v35 = vadd.f32 %v13500_v38, %v5461_v3  ;;  %v5477_v56 = vadd.f32 %v4707_v48, %v12852_v47 }
 0x34d   : > { %18719 = vst [vmem:[#allocation89_spill] sm:$0xff] %v13644_v50  ;;  %18722 = vst [vmem:[#allocation329_spill] sm:$0xff] %v13648_v28  ;;  %v13658_v32 = vadd.f32 %v18727_v14, %v18726_v59  ;;  %v4594_v50 = vpop.f32.mrf.mxu0  ;;  %v13664_v28 = vadd.f32 %v18730_v7, %v18729_v25  ;;  %v18732_v12 = vld [vmem:[#allocation159_spill] sm:$0xff]  ;;  %v5816_v45 = vadd.f32 %v13461_v6, %v5476_v43  ;;  %v6054_v25 = vmax.f32 %v5798_v62, 0.0 }
 0x34e   : > { %18725 = vst [vmem:[#allocation90_spill] sm:$0xff] %v13654_v0  ;;  %v5475_v53 = vadd.f32 %v4594_v50, %v12848_v26  ;;  %v18733_v0 = vld [vmem:[#allocation401_spill] sm:$0xff]  ;;  %v6070_v40 = vmax.f32 %v5814_v36, 0.0  ;;  %v4711_v50 = vpop.f32.mrf.mxu1  ;;  %v5817_v43 = vadd.f32 %v13500_v38, %v5477_v56  ;;  %v6055_v62 = vmax.f32 %v5799_v41, 0.0  ;;  %v18737_v56 = vld [vmem:[#allocation160_spill] sm:$0xff]  ;;  %5305 = vmatmul.mubr.bf16.gmra.mxu0 %v12316_v60  ;;  %5418 = vmatmul.mubr.bf16.gmra.mxu1 %v12316_v60 }
 0x34f   : > { %18728 = vst [vmem:[#allocation330_spill] sm:$0xff] %v13658_v32  ;;  %18731 = vst [vmem:[#allocation91_spill] sm:$0xff] %v13664_v28  ;;  %v13671_v59 = vadd.f32 %v18733_v0, %v18732_v12  ;;  %v4598_v14 = vpop.f32.mrf.mxu0  ;;  %v6056_v0 = vmax.f32 %v5800_v9, 0.0  ;;  %v6072_v3 = vmax.f32 %v5816_v45, 0.0  ;;  %v5492_v47 = vadd.f32 %v4711_v50, %v12868_v55  ;;  %5314 = vmatprep.mubr.bf16.mxu0 %v17850_v16 }
 0x350   : > { %v5815_v27 = vadd.f32 %v13481_v42, %v5475_v53  ;;  %v5490_v26 = vadd.f32 %v4598_v14, %v12864_v51  ;;  %v13684_v36 = vpack.c.bf16 %v6070_v40, %v6054_v25  ;;  %v4713_v48 = vpop.f32.mrf.mxu1  ;;  %v6057_v12 = vmax.f32 %v5801_v35, 0.0  ;;  %5427 = vmatprep.mubr.bf16.mxu1 %v17850_v16 }
 0x351   : > { %18734 = vst [vmem:[#allocation331_spill] sm:$0xff] %v13671_v59  ;;  %v4600_v7 = vpop.f32.mrf.mxu0  ;;  %v13687_v37 = vpack.c.bf16 %v6072_v3, %v6056_v0  ;;  %v6073_v14 = vmax.f32 %v5817_v43, 0.0  ;;  %v5493_v9 = vadd.f32 %v4713_v48, %v12878_v10  ;;  %v18738_v59 = vld [vmem:[#allocation402_spill] sm:$0xff]  ;;  %v5832_v0 = vadd.f32 %v13461_v6, %v5492_v47 }
 0x352   : > { %18735 = vst [vmem:[#allocation92_spill] sm:$0xff] %v13684_v36  ;;  %v6071_v53 = vmax.f32 %v5815_v27, 0.0  ;;  %v5491_v51 = vadd.f32 %v4600_v7, %v12872_v57  ;;  %v13692_v55 = vadd.f32 %v18738_v59, %v18737_v56  ;;  %v5830_v50 = vadd.f32 %v13456_v24, %v5490_v26  ;;  %v4715_v25 = vpop.f32.mrf.mxu1  ;;  %v18741_v57 = vld [vmem:[#allocation161_spill] sm:$0xff]  ;;  %v18742_v27 = vld [vmem:[#allocation403_spill] sm:$0xff]  ;;  %v18745_v59 = vld [vmem:[#allocation162_spill] sm:$0xff] }
 0x353   : > { %18736 = vst [vmem:[#allocation332_spill] sm:$0xff] %v13687_v37  ;;  %v4602_v45 = vpop.f32.mrf.mxu0  ;;  %v13700_v35 = vadd.f32 %v18742_v27, %v18741_v57  ;;  %v5508_v10 = vadd.f32 %v4715_v25, %v12888_v5  ;;  %v13704_v43 = vpack.c.bf16 %v6073_v14, %v6057_v12  ;;  %v18746_v7 = vld [vmem:[#allocation404_spill] sm:$0xff]  ;;  %v18749_v56 = vld [vmem:[#allocation405_spill] sm:$0xff]  ;;  %v5833_v5 = vadd.f32 %v13500_v38, %v5493_v9 }
 0x354   : > { %18739 = vst [vmem:[#allocation93_spill] sm:$0xff] %v13692_v55  ;;  %v5506_v41 = vadd.f32 %v4602_v45, %v12884_v2  ;;  %v13696_v40 = vpack.c.bf16 %v6071_v53, %v6055_v62  ;;  %v13708_v48 = vadd.f32 %v18746_v7, %v18745_v59  ;;  %v5831_v2 = vadd.f32 %v13481_v42, %v5491_v51  ;;  %v4717_v53 = vpop.f32.mrf.mxu1  ;;  %v18748_v45 = vld [vmem:[#allocation163_spill] sm:$0xff] }
 0x355   : > { %18743 = vst [vmem:[#allocation94_spill] sm:$0xff] %v13700_v35  ;;  %v4604_v3 = vpop.f32.mrf.mxu0  ;;  %18744 = vst [vmem:[#allocation334_spill] sm:$0xff] %v13704_v43  ;;  %v13715_v57 = vadd.f32 %v18749_v56, %v18748_v45  ;;  %v5848_v47 = vadd.f32 %v13461_v6, %v5508_v10  ;;  %v5509_v12 = vadd.f32 %v4717_v53, %v12899_v33  ;;  %v6086_v25 = vmax.f32 %v5830_v50, 0.0 }
 0x356   : > { %18740 = vst [vmem:[#allocation333_spill] sm:$0xff] %v13696_v40  ;;  %18747 = vst [vmem:[#allocation95_spill] sm:$0xff] %v13708_v48  ;;  %v5846_v26 = vadd.f32 %v13456_v24, %v5506_v41  ;;  %v5507_v62 = vadd.f32 %v4604_v3, %v12895_v13  ;;  %v4721_v27 = vpop.f32.mrf.mxu1  ;;  %v6088_v3 = vmax.f32 %v5832_v0, 0.0  ;;  %v6087_v50 = vmax.f32 %v5831_v2, 0.0 }
 0x357   : > { %18750 = vst [vmem:[#allocation335_spill] sm:$0xff] %v13715_v57  ;;  %v4608_v14 = vpop.f32.mrf.mxu0  ;;  %v6104_v9 = vmax.f32 %v5848_v47, 0.0  ;;  %v5849_v10 = vadd.f32 %v13500_v38, %v5509_v12  ;;  %v5524_v33 = vadd.f32 %v4721_v27, %v12911_v46  ;;  %v6089_v53 = vmax.f32 %v5833_v5, 0.0  ;;  %v18753_v47 = vld [vmem:[#allocation164_spill] sm:$0xff]  ;;  %v18754_v12 = vld [vmem:[#allocation406_spill] sm:$0xff] }
 0x358   : > { %v6102_v51 = vmax.f32 %v5846_v26, 0.0  ;;  %v5847_v41 = vadd.f32 %v13481_v42, %v5507_v62  ;;  %v5522_v13 = vadd.f32 %v4608_v14, %v12903_v11  ;;  %v4723_v62 = vpop.f32.mrf.mxu1  ;;  %v13736_v46 = vadd.f32 %v18754_v12, %v18753_v47  ;;  %v18765_v47 = vld [vmem:[#allocation409_spill] sm:$0xff] }
 0x359   : > { %v4610_v59 = vpop.f32.mrf.mxu0  ;;  %v13731_v17 = vpack.c.bf16 %v6104_v9, %v6088_v3  ;;  %v6105_v45 = vmax.f32 %v5849_v10, 0.0  ;;  %v5525_v0 = vadd.f32 %v4723_v62, %v12922_v30  ;;  %v5864_v27 = vadd.f32 %v13461_v6, %v5524_v33  ;;  %v18761_v10 = vld [vmem:[#allocation166_spill] sm:$0xff] }
 0x35a   : > { %v13728_v7 = vpack.c.bf16 %v6102_v51, %v6086_v25  ;;  %v6103_v26 = vmax.f32 %v5847_v41, 0.0  ;;  %v5523_v11 = vadd.f32 %v4610_v59, %v12915_v22  ;;  %18755 = vst [vmem:[#allocation97_spill] sm:$0xff] %v13736_v46  ;;  %v5862_v14 = vadd.f32 %v13456_v24, %v5522_v13  ;;  %v4725_v25 = vpop.f32.mrf.mxu1  ;;  %v18757_v22 = vld [vmem:[#allocation165_spill] sm:$0xff]  ;;  %v18758_v41 = vld [vmem:[#allocation407_spill] sm:$0xff]  ;;  %v18762_v59 = vld [vmem:[#allocation408_spill] sm:$0xff] }
 0x35b   : > { %18752 = vst [vmem:[#allocation336_spill] sm:$0xff] %v13731_v17  ;;  %v4612_v56 = vpop.f32.mrf.mxu0  ;;  %v13744_v5 = vadd.f32 %v18758_v41, %v18757_v22  ;;  %v5540_v30 = vadd.f32 %v4725_v25, %v12932_v4  ;;  %v13748_v9 = vpack.c.bf16 %v6105_v45, %v6089_v53  ;;  %v13752_v62 = vadd.f32 %v18762_v59, %v18761_v10 }
 0x35c   : > { %18751 = vst [vmem:[#allocation96_spill] sm:$0xff] %v13728_v7  ;;  %v5538_v2 = vadd.f32 %v4612_v56, %v12926_v31  ;;  %v13740_v51 = vpack.c.bf16 %v6103_v26, %v6087_v50  ;;  %v5863_v31 = vadd.f32 %v13481_v42, %v5523_v11  ;;  %v4727_v26 = vpop.f32.mrf.mxu1  ;;  %v18764_v56 = vld [vmem:[#allocation167_spill] sm:$0xff]  ;;  %v5865_v4 = vadd.f32 %v13500_v38, %v5525_v0 }
 0x35d   : > { %18759 = vst [vmem:[#allocation98_spill] sm:$0xff] %v13744_v5  ;;  %v4614_v3 = vpop.f32.mrf.mxu0  ;;  %18760 = vst [vmem:[#allocation339_spill] sm:$0xff] %v13748_v9  ;;  %v13759_v12 = vadd.f32 %v18765_v47, %v18764_v56  ;;  %v5880_v33 = vadd.f32 %v13461_v6, %v5540_v30  ;;  %v5541_v53 = vadd.f32 %v4727_v26, %v12940_v39  ;;  %v6118_v25 = vmax.f32 %v5862_v14, 0.0  ;;  %v18769_v47 = vld [vmem:[#allocation168_spill] sm:$0xff] }
 0x35e   : > { %18756 = vst [vmem:[#allocation338_spill] sm:$0xff] %v13740_v51  ;;  %18763 = vst [vmem:[#allocation99_spill] sm:$0xff] %v13752_v62  ;;  %v5878_v13 = vadd.f32 %v13456_v24, %v5538_v2  ;;  %v5539_v50 = vadd.f32 %v4614_v3, %v12936_v34  ;;  %v4731_v22 = vpop.f32.mrf.mxu1  ;;  %v6120_v41 = vmax.f32 %v5864_v27, 0.0  ;;  %v6119_v14 = vmax.f32 %v5863_v31, 0.0 }
 0x35f   : > { %18766 = vst [vmem:[#allocation340_spill] sm:$0xff] %v13759_v12  ;;  %v4618_v45 = vpop.f32.mrf.mxu0  ;;  %v6136_v0 = vmax.f32 %v5880_v33, 0.0  ;;  %v5881_v30 = vadd.f32 %v13500_v38, %v5541_v53  ;;  %v5556_v39 = vadd.f32 %v4731_v22, %v12950_v61  ;;  %v18770_v33 = vld [vmem:[#allocation410_spill] sm:$0xff] }
 0x360   : > { %v6134_v11 = vmax.f32 %v5878_v13, 0.0  ;;  %v5879_v2 = vadd.f32 %v13481_v42, %v5539_v50  ;;  %v5554_v34 = vadd.f32 %v4618_v45, %v12944_v18  ;;  %v4733_v13 = vpop.f32.mrf.mxu1  ;;  %v6121_v50 = vmax.f32 %v5865_v4, 0.0 }
 0x361   : > { %v4620_v3 = vpop.f32.mrf.mxu0  ;;  %v13775_v44 = vpack.c.bf16 %v6136_v0, %v6120_v41  ;;  %v6137_v26 = vmax.f32 %v5881_v30, 0.0  ;;  %v5557_v27 = vadd.f32 %v4733_v13, %v12958_v1  ;;  %v13780_v61 = vadd.f32 %v18770_v33, %v18769_v47  ;;  %v18777_v0 = vld [vmem:[#allocation170_spill] sm:$0xff]  ;;  %v18778_v30 = vld [vmem:[#allocation412_spill] sm:$0xff]  ;;  %v18780_v13 = vld [vmem:[#allocation171_spill] sm:$0xff] }
 0x362   : > { %v13772_v10 = vpack.c.bf16 %v6134_v11, %v6118_v25  ;;  %v6135_v59 = vmax.f32 %v5879_v2, 0.0  ;;  %v5555_v18 = vadd.f32 %v4620_v3, %v12954_v58  ;;  %v5894_v53 = vadd.f32 %v13456_v24, %v5554_v34  ;;  %v4735_v45 = vpop.f32.mrf.mxu1  ;;  %v18773_v58 = vld [vmem:[#allocation169_spill] sm:$0xff]  ;;  %v18774_v11 = vld [vmem:[#allocation411_spill] sm:$0xff] }
 0x363   : > { %18768 = vst [vmem:[#allocation341_spill] sm:$0xff] %v13775_v44  ;;  %v4622_v56 = vpop.f32.mrf.mxu0  ;;  %18771 = vst [vmem:[#allocation101_spill] sm:$0xff] %v13780_v61  ;;  %v13788_v4 = vadd.f32 %v18774_v11, %v18773_v58  ;;  %v5896_v2 = vadd.f32 %v13461_v6, %v5556_v39  ;;  %v5572_v1 = vadd.f32 %v4735_v45, %v12968_v54 }
 0x364   : > { %18767 = vst [vmem:[#allocation100_spill] sm:$0xff] %v13772_v10  ;;  %v5570_v31 = vadd.f32 %v4622_v56, %v12962_v23  ;;  %v13784_v25 = vpack.c.bf16 %v6135_v59, %v6119_v14  ;;  %v13792_v41 = vpack.c.bf16 %v6137_v26, %v6121_v50  ;;  %v13796_v3 = vadd.f32 %v18778_v30, %v18777_v0  ;;  %v4737_v59 = vpop.f32.mrf.mxu1  ;;  %v18781_v56 = vld [vmem:[#allocation413_spill] sm:$0xff] }
 0x365   : > { %18775 = vst [vmem:[#allocation102_spill] sm:$0xff] %v13788_v4  ;;  %v4624_v22 = vpop.f32.mrf.mxu0  ;;  %v5895_v23 = vadd.f32 %v13481_v42, %v5555_v18  ;;  %v13803_v47 = vadd.f32 %v18781_v56, %v18780_v13  ;;  %v5897_v54 = vadd.f32 %v13500_v38, %v5557_v27  ;;  %v5912_v39 = vadd.f32 %v13461_v6, %v5572_v1  ;;  %v18785_v13 = vld [vmem:[#allocation172_spill] sm:$0xff]  ;;  %v18786_v56 = vld [vmem:[#allocation414_spill] sm:$0xff] }
 0x366   : > { %18772 = vst [vmem:[#allocation342_spill] sm:$0xff] %v13784_v25  ;;  %18776 = vst [vmem:[#allocation343_spill] sm:$0xff] %v13792_v41  ;;  %v5910_v34 = vadd.f32 %v13456_v24, %v5570_v31  ;;  %v5571_v14 = vadd.f32 %v4624_v22, %v12972_v49  ;;  %v5573_v50 = vadd.f32 %v4737_v59, %v12976_v52  ;;  %v6150_v33 = vmax.f32 %v5894_v53, 0.0  ;;  %v4741_v45 = vpop.f32.mrf.mxu1 }
 0x367   : > { %18779 = vst [vmem:[#allocation103_spill] sm:$0xff] %v13796_v3  ;;  %18782 = vst [vmem:[#allocation344_spill] sm:$0xff] %v13803_v47  ;;  %v4628_v26 = vpop.f32.mrf.mxu0  ;;  %v6152_v58 = vmax.f32 %v5896_v2, 0.0  ;;  %v6168_v27 = vmax.f32 %v5912_v39, 0.0  ;;  %v5588_v52 = vadd.f32 %v4741_v45, %v12986_v20  ;;  %v6151_v53 = vmax.f32 %v5895_v23, 0.0 }
 0x368   : > { %v6166_v18 = vmax.f32 %v5910_v34, 0.0  ;;  %v5911_v31 = vadd.f32 %v13481_v42, %v5571_v14  ;;  %v5586_v49 = vadd.f32 %v4628_v26, %v12980_v29  ;;  %v5913_v11 = vadd.f32 %v13500_v38, %v5573_v50  ;;  %v4743_v30 = vpop.f32.mrf.mxu1 }
 0x369   : > { %v4630_v1 = vpop.f32.mrf.mxu0  ;;  %v6153_v34 = vmax.f32 %v5897_v54, 0.0  ;;  %v13819_v60 = vpack.c.bf16 %v6168_v27, %v6152_v58  ;;  %v5589_v2 = vadd.f32 %v4743_v30, %v12994_v8  ;;  %v13824_v20 = vadd.f32 %v18786_v56, %v18785_v13  ;;  %v18794_v27 = vld [vmem:[#allocation174_spill] sm:$0xff]  ;;  %v18799_v13 = vld [vmem:[#allocation417_spill] sm:$0xff] }
 0x36a   : > { %v13816_v22 = vpack.c.bf16 %v6166_v18, %v6150_v33  ;;  %v6167_v0 = vmax.f32 %v5911_v31, 0.0  ;;  %v5587_v29 = vadd.f32 %v4630_v1, %v12990_v15  ;;  %v6169_v14 = vmax.f32 %v5913_v11, 0.0  ;;  %v4745_v50 = vpop.f32.mrf.mxu1  ;;  %v18789_v15 = vld [vmem:[#allocation173_spill] sm:$0xff]  ;;  %v18790_v33 = vld [vmem:[#allocation415_spill] sm:$0xff]  ;;  %v18792_v31 = vld [vmem:[#allocation246_spill] sm:$0xff] }
 0x36b   : > { %18784 = vst [vmem:[#allocation345_spill] sm:$0xff] %v13819_v60  ;;  %v4632_v59 = vpop.f32.mrf.mxu0  ;;  %18787 = vst [vmem:[#allocation105_spill] sm:$0xff] %v13824_v20  ;;  %v5926_v39 = vadd.f32 %v13456_v24, %v5586_v49  ;;  %v13832_v54 = vadd.f32 %v18790_v33, %v18789_v15  ;;  %v5928_v18 = vadd.f32 %v13461_v6, %v5588_v52  ;;  %v18795_v11 = vld [vmem:[#allocation416_spill] sm:$0xff]  ;;  %v18810_v20 = vld [vmem:[#allocation418_spill] sm:$0xff] }
 0x36c   : > { %18783 = vst [vmem:[#allocation104_spill] sm:$0xff] %v13816_v22  ;;  %v5602_v23 = vadd.f32 %v4632_v59, %v12998_v21  ;;  %v13828_v26 = vpack.c.bf16 %v6167_v0, %v6151_v53  ;;  %v5604_v8 = vadd.f32 %v4745_v50, %v18792_v31  ;;  %v13836_v58 = vpack.c.bf16 %v6169_v14, %v6153_v34  ;;  %v18797_v53 = vld [vmem:[#allocation8_spill] sm:$0xff]  ;;  %v4747_v30 = vpop.f32.mrf.mxu1  ;;  %v18798_v59 = vld [vmem:[#allocation175_spill] sm:$0xff] }
 0x36d   : > { %18791 = vst [vmem:[#allocation106_spill] sm:$0xff] %v13832_v54  ;;  %v4634_v45 = vpop.f32.mrf.mxu0  ;;  %v13840_v1 = vadd.f32 %v18795_v11, %v18794_v27  ;;  %v5927_v21 = vadd.f32 %v13481_v42, %v5587_v29  ;;  %v13847_v56 = vadd.f32 %v18799_v13, %v18798_v59  ;;  %v5929_v52 = vadd.f32 %v13500_v38, %v5589_v2  ;;  %v18801_v14 = vld [vmem:[#allocation247_spill] sm:$0xff]  ;;  %v18802_v33 = vld [vmem:[#allocation328_spill] sm:$0xff]  ;;  %v18803_v27 = vld [vmem:[#allocation9_spill] sm:$0xff] }
 0x36e   : > { %18788 = vst [vmem:[#allocation347_spill] sm:$0xff] %v13828_v26  ;;  %18793 = vst [vmem:[#allocation348_spill] sm:$0xff] %v13836_v58  ;;  %v5942_v49 = vadd.f32 %v13456_v24, %v5602_v23  ;;  %v5603_v0 = vadd.f32 %v4634_v45, %v18797_v53  ;;  %v5944_v34 = vadd.f32 %v13461_v6, %v5604_v8  ;;  %5315 = vmatmul.mubr.bf16.gmra.mxu0 %v18802_v33  ;;  %v4751_v11 = vpop.f32.mrf.mxu1  ;;  %v18804_v59 = vld [vmem:[#allocation10_spill] sm:$0xff] }
 0x36f   : > { %18796 = vst [vmem:[#allocation107_spill] sm:$0xff] %v13840_v1  ;;  %18800 = vst [vmem:[#allocation349_spill] sm:$0xff] %v13847_v56  ;;  %v5605_v50 = vadd.f32 %v4747_v30, %v18801_v14  ;;  %v4638_v15 = vpop.f32.mrf.mxu0  ;;  %v6182_v31 = vmax.f32 %v5926_v39, 0.0  ;;  %5428 = vmatmul.mubr.bf16.gmra.mxu1 %v18802_v33  ;;  %5324 = vmatprep.mubr.bf16.mxu0 %v17850_v16  ;;  %v6184_v53 = vmax.f32 %v5928_v18, 0.0  ;;  %v6183_v39 = vmax.f32 %v5927_v21, 0.0  ;;  %v18806_v14 = vld [vmem:[#allocation249_spill] sm:$0xff] }
 0x370   : > { %v6198_v29 = vmax.f32 %v5942_v49, 0.0  ;;  %v5943_v23 = vadd.f32 %v13481_v42, %v5603_v0  ;;  %v5618_v45 = vadd.f32 %v4638_v15, %v18803_v27  ;;  %v6200_v2 = vmax.f32 %v5944_v34, 0.0  ;;  %5437 = vmatprep.mubr.bf16.mxu1 %v17850_v16  ;;  %v4753_v27 = vpop.f32.mrf.mxu1  ;;  %v18808_v18 = vld [vmem:[#allocation11_spill] sm:$0xff]  ;;  %v18812_v21 = vld [vmem:[#allocation12_spill] sm:$0xff] }
 0x371   : > { %v5945_v8 = vadd.f32 %v13500_v38, %v5605_v50  ;;  %v5620_v30 = vadd.f32 %v4751_v11, %v18804_v59  ;;  %v4640_v13 = vpop.f32.mrf.mxu0  ;;  %v6185_v56 = vmax.f32 %v5929_v52, 0.0  ;;  %v5621_v34 = vadd.f32 %v4753_v27, %v18808_v18  ;;  %v18809_v50 = vld [vmem:[#allocation176_spill] sm:$0xff] }
 0x372   : > { %v13860_v49 = vpack.c.bf16 %v6198_v29, %v6182_v31  ;;  %v6199_v0 = vmax.f32 %v5943_v23, 0.0  ;;  %v5619_v15 = vadd.f32 %v4640_v13, %v18806_v14  ;;  %v13863_v33 = vpack.c.bf16 %v6200_v2, %v6184_v53  ;;  %v4755_v29 = vpop.f32.mrf.mxu1  ;;  %v18814_v13 = vld [vmem:[#allocation177_spill] sm:$0xff]  ;;  %v18815_v14 = vld [vmem:[#allocation419_spill] sm:$0xff] }
 0x373   : > { %v6201_v1 = vmax.f32 %v5945_v8, 0.0  ;;  %v4642_v54 = vpop.f32.mrf.mxu0  ;;  %v13868_v11 = vadd.f32 %v18810_v20, %v18809_v50  ;;  %v5958_v59 = vadd.f32 %v13456_v24, %v5618_v45  ;;  %v13876_v52 = vadd.f32 %v18815_v14, %v18814_v13  ;;  %v18817_v2 = vld [vmem:[#allocation251_spill] sm:$0xff]  ;;  %v18819_v20 = vld [vmem:[#allocation178_spill] sm:$0xff]  ;;  %v18820_v50 = vld [vmem:[#allocation420_spill] sm:$0xff] }
 0x374   : > { %18805 = vst [vmem:[#allocation108_spill] sm:$0xff] %v13860_v49  ;;  %18807 = vst [vmem:[#allocation350_spill] sm:$0xff] %v13863_v33  ;;  %v5634_v31 = vadd.f32 %v4642_v54, %v18812_v21  ;;  %v13872_v23 = vpack.c.bf16 %v6199_v0, %v6183_v39  ;;  %v5960_v53 = vadd.f32 %v13461_v6, %v5620_v30  ;;  %v18822_v39 = vld [vmem:[#allocation13_spill] sm:$0xff]  ;;  %v4757_v21 = vpop.f32.mrf.mxu1  ;;  %v18823_v14 = vld [vmem:[#allocation252_spill] sm:$0xff] }
 0x375   : > { %18811 = vst [vmem:[#allocation109_spill] sm:$0xff] %v13868_v11  ;;  %18816 = vst [vmem:[#allocation110_spill] sm:$0xff] %v13876_v52  ;;  %v5636_v8 = vadd.f32 %v4755_v29, %v18817_v2  ;;  %v4644_v27 = vpop.f32.mrf.mxu0  ;;  %v13880_v18 = vpack.c.bf16 %v6201_v1, %v6185_v56  ;;  %v13884_v11 = vadd.f32 %v18820_v50, %v18819_v20  ;;  %v18824_v1 = vld [vmem:[#allocation337_spill] sm:$0xff]  ;;  %v6214_v20 = vmax.f32 %v5958_v59, 0.0  ;;  %v18829_v52 = vld [vmem:[#allocation254_spill] sm:$0xff] }
 0x376   : > { %18813 = vst [vmem:[#allocation351_spill] sm:$0xff] %v13872_v23  ;;  %v5959_v54 = vadd.f32 %v13481_v42, %v5619_v15  ;;  %v5974_v45 = vadd.f32 %v13456_v24, %v5634_v31  ;;  %v5635_v0 = vadd.f32 %v4644_v27, %v18822_v39  ;;  %v5961_v13 = vadd.f32 %v13500_v38, %v5621_v34  ;;  %v18825_v56 = vld [vmem:[#allocation289_spill] sm:$0xff]  ;;  %v4761_v47 = vpop.f32.mrf.mxu1  ;;  %v18827_v39 = vld [vmem:[#allocation15_spill] sm:$0xff] }
 0x377   : > { %18818 = vst [vmem:[#allocation352_spill] sm:$0xff] %v13880_v18  ;;  %18821 = vst [vmem:[#allocation111_spill] sm:$0xff] %v13884_v11  ;;  %v5976_v30 = vadd.f32 %v13461_v6, %v5636_v8  ;;  %v5637_v29 = vadd.f32 %v4757_v21, %v18823_v14  ;;  %v4648_v2 = vpop.f32.mrf.mxu0  ;;  %5325 = vmatmul.mubr.bf16.gmra.mxu0 %v18824_v1  ;;  %v18826_v11 = vld [vmem:[#allocation253_spill] sm:$0xff]  ;;  %5438 = vmatmul.mubr.bf16.gmra.mxu1 %v18824_v1  ;;  %v6216_v34 = vmax.f32 %v5960_v53, 0.0  ;;  %v18831_v53 = vld [vmem:[#allocation16_spill] sm:$0xff] }
 0x378   : > { %v6230_v50 = vmax.f32 %v5974_v45, 0.0  ;;  %v5975_v15 = vadd.f32 %v13481_v42, %v5635_v0  ;;  %v5650_v31 = vadd.f32 %v4648_v2, %v18826_v11  ;;  %5334 = vmatprep.mubr.bf16.mxu0 %v17850_v16  ;;  %v5652_v21 = vadd.f32 %v4761_v47, %v18827_v39  ;;  %5447 = vmatprep.mubr.bf16.mxu1 %v17850_v16  ;;  %v4763_v2 = vpop.f32.mrf.mxu1  ;;  %v18832_v47 = vld [vmem:[#allocation17_spill] sm:$0xff] }
 0x379   : > { %v6232_v8 = vmax.f32 %v5976_v30, 0.0  ;;  %v5977_v27 = vadd.f32 %v13500_v38, %v5637_v29  ;;  %v4650_v14 = vpop.f32.mrf.mxu0  ;;  %v6215_v59 = vmax.f32 %v5959_v54, 0.0  ;;  %v6217_v3 = vmax.f32 %v5961_v13, 0.0 }
 0x37a   : > { %v13901_v45 = vpack.c.bf16 %v6230_v50, %v6214_v20  ;;  %v6231_v0 = vmax.f32 %v5975_v15, 0.0  ;;  %v5651_v11 = vadd.f32 %v4650_v14, %v18829_v52  ;;  %v5653_v30 = vadd.f32 %v4763_v2, %v18831_v53  ;;  %v4765_v12 = vpop.f32.mrf.mxu1  ;;  %v18834_v50 = vld [vmem:[#allocation179_spill] sm:$0xff]  ;;  %v18835_v15 = vld [vmem:[#allocation421_spill] sm:$0xff]  ;;  %v18839_v2 = vld [vmem:[#allocation18_spill] sm:$0xff] }
 0x37b   : > { %v13904_v1 = vpack.c.bf16 %v6232_v8, %v6216_v34  ;;  %v6233_v4 = vmax.f32 %v5977_v27, 0.0  ;;  %v4652_v61 = vpop.f32.mrf.mxu0  ;;  %v5990_v29 = vadd.f32 %v13456_v24, %v5650_v31  ;;  %v13914_v52 = vadd.f32 %v18835_v15, %v18834_v50  ;;  %v18837_v34 = vld [vmem:[#allocation256_spill] sm:$0xff]  ;;  %v18840_v15 = vld [vmem:[#allocation257_spill] sm:$0xff] }
 0x37c   : > { %18828 = vst [vmem:[#allocation353_spill] sm:$0xff] %v13901_v45  ;;  %v5666_v39 = vadd.f32 %v4652_v61, %v18832_v47  ;;  %v13910_v20 = vpack.c.bf16 %v6231_v0, %v6215_v59  ;;  %v5992_v13 = vadd.f32 %v13461_v6, %v5652_v21  ;;  %v5668_v8 = vadd.f32 %v4765_v12, %v18837_v34  ;;  %v4767_v47 = vpop.f32.mrf.mxu1  ;;  %v18841_v12 = vld [vmem:[#allocation346_spill] sm:$0xff] }
 0x37d   : > { %18830 = vst [vmem:[#allocation112_spill] sm:$0xff] %v13904_v1  ;;  %18836 = vst [vmem:[#allocation113_spill] sm:$0xff] %v13914_v52  ;;  %v4654_v27 = vpop.f32.mrf.mxu0  ;;  %v13918_v14 = vpack.c.bf16 %v6233_v4, %v6217_v3  ;;  %v5991_v31 = vadd.f32 %v13481_v42, %v5651_v11  ;;  %v5993_v0 = vadd.f32 %v13500_v38, %v5653_v30  ;;  %v6246_v3 = vmax.f32 %v5990_v29, 0.0  ;;  %v18842_v34 = vld [vmem:[#allocation258_spill] sm:$0xff]  ;;  %v18845_v4 = vld [vmem:[#allocation259_spill] sm:$0xff] }
 0x37e   : > { %18833 = vst [vmem:[#allocation354_spill] sm:$0xff] %v13910_v20  ;;  %v6006_v61 = vadd.f32 %v13456_v24, %v5666_v39  ;;  %v5667_v53 = vadd.f32 %v4654_v27, %v18839_v2  ;;  %v6008_v50 = vadd.f32 %v13461_v6, %v5668_v8  ;;  %v5669_v21 = vadd.f32 %v4767_v47, %v18840_v15  ;;  %v4771_v2 = vpop.f32.mrf.mxu1  ;;  %v18843_v15 = vld [vmem:[#allocation20_spill] sm:$0xff] }
 0x37f   : > { %18838 = vst [vmem:[#allocation355_spill] sm:$0xff] %v13918_v14  ;;  %v4658_v54 = vpop.f32.mrf.mxu0  ;;  %5335 = vmatmul.mubr.bf16.gmra.mxu0 %v18841_v12  ;;  %5448 = vmatmul.mubr.bf16.gmra.mxu1 %v18841_v12  ;;  %v6248_v30 = vmax.f32 %v5992_v13, 0.0  ;;  %v5684_v59 = vadd.f32 %v4771_v2, %v18843_v15  ;;  %v6247_v29 = vmax.f32 %v5991_v31, 0.0  ;;  %v6249_v62 = vmax.f32 %v5993_v0, 0.0  ;;  %v18847_v13 = vld [vmem:[#allocation21_spill] sm:$0xff]  ;;  %v18848_v2 = vld [vmem:[#allocation22_spill] sm:$0xff] }
 0x380   : > { %v6262_v11 = vmax.f32 %v6006_v61, 0.0  ;;  %v6007_v39 = vadd.f32 %v13481_v42, %v5667_v53  ;;  %v5682_v27 = vadd.f32 %v4658_v54, %v18842_v34  ;;  %6502 = vmatprep.mubr.bf16.mxu0 %v17850_v16  ;;  %v6264_v8 = vmax.f32 %v6008_v50, 0.0  ;;  %6575 = vmatprep.mubr.bf16.mxu1 %v17850_v16  ;;  %v4773_v34 = vpop.f32.mrf.mxu1  ;;  %v18852_v0 = vld [vmem:[#allocation261_spill] sm:$0xff] }
 0x381   : > { %v6009_v47 = vadd.f32 %v13500_v38, %v5669_v21  ;;  %v4660_v52 = vpop.f32.mrf.mxu0  ;;  %v5685_v50 = vadd.f32 %v4773_v34, %v18847_v13  ;;  %v18849_v31 = vsub.s32 4, %v18825_v56  ;;  %v18855_v13 = vld [vmem:[#allocation23_spill] sm:$0xff] }
 0x382   : > { %v13936_v61 = vpack.c.bf16 %v6262_v11, %v6246_v3  ;;  %v6263_v53 = vmax.f32 %v6007_v39, 0.0  ;;  %v5683_v54 = vadd.f32 %v4660_v52, %v18845_v4  ;;  %v13939_v12 = vpack.c.bf16 %v6264_v8, %v6248_v30  ;;  %v4775_v57 = vpop.f32.mrf.mxu1  ;;  %v18850_v3 = vld [vmem:[#allocation62_spill] sm:$0xff] }
 0x383   : > { %v6265_v5 = vmax.f32 %v6009_v47, 0.0  ;;  %v4662_v46 = vpop.f32.mrf.mxu0  ;;  %v6022_v21 = vadd.f32 %v13456_v24, %v5682_v27  ;;  %v13947_v11 = vrot.slane %v18850_v3, %v18849_v31  ;;  %v6024_v52 = vadd.f32 %v13461_v6, %v5684_v59 }
 0x384   : > { %18844 = vst [vmem:[#allocation114_spill] sm:$0xff] %v13936_v61  ;;  %18846 = vst [vmem:[#allocation356_spill] sm:$0xff] %v13939_v12  ;;  %v5698_v15 = vadd.f32 %v4662_v46, %v18848_v2  ;;  %v13949_v39 = vpack.c.bf16 %v6263_v53, %v6247_v29  ;;  %v5700_v4 = vadd.f32 %v4775_v57, %v18852_v0  ;;  %v18853_v8 = vsub.s32 6, %v18825_v56  ;;  %v4777_v29 = vpop.f32.mrf.mxu1  ;;  %v18857_v0 = vld [vmem:[#allocation262_spill] sm:$0xff] }
 0x385   : > { %v4664_v30 = vpop.f32.mrf.mxu0  ;;  %v13958_v27 = vpack.c.bf16 %v6265_v5, %v6249_v62  ;;  %v6023_v46 = vadd.f32 %v13481_v42, %v5683_v54  ;;  %v18856_v53 = vsub.s32 5, %v18825_v56  ;;  %v6025_v57 = vadd.f32 %v13500_v38, %v5685_v50 }
 0x386   : > { %18851 = vst [vmem:[#allocation115_spill] sm:$0xff] %v13949_v39  ;;  %v13956_v47 = vrot.slane %v18850_v3, %v18853_v8  ;;  %v6038_v34 = vadd.f32 %v13456_v24, %v5698_v15  ;;  %v5699_v2 = vadd.f32 %v4664_v30, %v18855_v13  ;;  %v6040_v31 = vadd.f32 %v13461_v6, %v5700_v4  ;;  %v18859_v13 = vld [vmem:[#allocation263_spill] sm:$0xff]  ;;  %v18860_v6 = vld [vmem:[#allocation25_spill] sm:$0xff] }
 0x387   : > { %18854 = vst [vmem:[#allocation357_spill] sm:$0xff] %v13958_v27  ;;  %v13966_v59 = vrot.slane %v18850_v3, %v18856_v53  ;;  %v5701_v8 = vadd.f32 %v4777_v29, %v18857_v0  ;;  %v4814_v5 = vpop.f32.mrf.mxu0  ;;  %v18858_v62 = vsub.s32 7, %v18825_v56  ;;  %v6278_v24 = vmax.f32 %v6022_v21, 0.0  ;;  %v4927_v53 = vpop.f32.mrf.mxu1 }
 0x388   : > { %v6294_v15 = vmax.f32 %v6038_v34, 0.0  ;;  %v6039_v30 = vadd.f32 %v13481_v42, %v5699_v2  ;;  %v5462_v48 = vadd.f32 %v4814_v5, %v18859_v13  ;;  %v6280_v35 = vmax.f32 %v6024_v52, 0.0  ;;  %v18864_v2 = vld [vmem:[#allocation26_spill] sm:$0xff] }
 0x389   : > { %v13974_v54 = vrot.slane %v18850_v3, %v18858_v62  ;;  %v6296_v55 = vmax.f32 %v6040_v31, 0.0  ;;  %v6041_v50 = vadd.f32 %v13500_v38, %v5701_v8  ;;  %v5464_v4 = vadd.f32 %v4927_v53, %v18860_v6  ;;  %v4816_v29 = vpop.f32.mrf.mxu0  ;;  %v18862_v3 = vld [vmem:[#allocation264_spill] sm:$0xff]  ;;  %v4929_v21 = vpop.f32.mrf.mxu1  ;;  %v18866_v13 = vld [vmem:[#allocation422_spill] sm:$0xff]  ;;  %v18870_v53 = vld [vmem:[#allocation181_spill] sm:$0xff] }
 0x38a   : > { %v6279_v0 = vmax.f32 %v6023_v46, 0.0  ;;  %v13980_v28 = vpack.c.bf16 %v6294_v15, %v6278_v24  ;;  %v6295_v32 = vmax.f32 %v6039_v30, 0.0  ;;  %v5463_v62 = vadd.f32 %v4816_v29, %v18862_v3  ;;  %v18865_v31 = vld [vmem:[#allocation180_spill] sm:$0xff]  ;;  %v18868_v46 = vld [vmem:[#allocation27_spill] sm:$0xff] }
 0x38b   : > { %v6281_v34 = vmax.f32 %v6025_v57, 0.0  ;;  %v13983_v63 = vpack.c.bf16 %v6296_v55, %v6280_v35  ;;  %v6297_v42 = vmax.f32 %v6041_v50, 0.0  ;;  %v5465_v5 = vadd.f32 %v4929_v21, %v18864_v2  ;;  %v4818_v52 = vpop.f32.mrf.mxu0  ;;  %v4931_v15 = vpop.f32.mrf.mxu1  ;;  %v18871_v6 = vld [vmem:[#allocation423_spill] sm:$0xff]  ;;  %v18873_v35 = vld [vmem:[#allocation266_spill] sm:$0xff]  ;;  %v18876_v2 = vld [vmem:[#allocation424_spill] sm:$0xff] }
 0x38c   : > { %18861 = vst [vmem:[#allocation116_spill] sm:$0xff] %v13980_v28  ;;  %v13988_v38 = vadd.f32 %v18866_v13, %v18865_v31  ;;  %v5802_v8 = vadd.f32 %v13947_v11, %v5462_v48  ;;  %v5478_v24 = vadd.f32 %v4818_v52, %v18868_v46  ;;  %v13992_v30 = vpack.c.bf16 %v6295_v32, %v6279_v0  ;;  %v18875_v21 = vld [vmem:[#allocation182_spill] sm:$0xff]  ;;  %v18878_v0 = vld [vmem:[#allocation28_spill] sm:$0xff] }
 0x38d   : > { %18863 = vst [vmem:[#allocation358_spill] sm:$0xff] %v13983_v63  ;;  %v13996_v57 = vadd.f32 %v18871_v6, %v18870_v53  ;;  %v5804_v55 = vadd.f32 %v13956_v47, %v5464_v4  ;;  %v5480_v50 = vadd.f32 %v4931_v15, %v18873_v35  ;;  %v4820_v29 = vpop.f32.mrf.mxu0  ;;  %v14000_v3 = vpack.c.bf16 %v6297_v42, %v6281_v34  ;;  %v4933_v13 = vpop.f32.mrf.mxu1  ;;  %v18879_v15 = vld [vmem:[#allocation267_spill] sm:$0xff]  ;;  %v18880_v6 = vld [vmem:[#allocation268_spill] sm:$0xff] }
 0x38e   : > { %18867 = vst [vmem:[#allocation117_spill] sm:$0xff] %v13988_v38  ;;  %18869 = vst [vmem:[#allocation359_spill] sm:$0xff] %v13992_v30  ;;  %v14004_v31 = vadd.f32 %v18876_v2, %v18875_v21  ;;  %v5803_v48 = vadd.f32 %v13966_v59, %v5463_v62  ;;  %v5818_v32 = vadd.f32 %v13947_v11, %v5478_v24  ;;  %6470 = vmatprep.subr.bf16.mxu0 %v13992_v30  ;;  %v18881_v2 = vld [vmem:[#allocation30_spill] sm:$0xff] }
 0x38f   : > { %18872 = vst [vmem:[#allocation118_spill] sm:$0xff] %v13996_v57  ;;  %18874 = vst [vmem:[#allocation360_spill] sm:$0xff] %v14000_v3  ;;  %v5479_v52 = vadd.f32 %v4820_v29, %v18878_v0  ;;  %v5805_v4 = vadd.f32 %v13974_v54, %v5465_v5  ;;  %v5820_v46 = vadd.f32 %v13956_v47, %v5480_v50  ;;  %6543 = vmatprep.subr.bf16.mxu1 %v14000_v3  ;;  %v4824_v42 = vpop.f32.mrf.mxu0  ;;  %v4937_v29 = vpop.f32.mrf.mxu1 }
 0x390   : > { %18877 = vst [vmem:[#allocation119_spill] sm:$0xff] %v14004_v31  ;;  %v5481_v34 = vadd.f32 %v4933_v13, %v18879_v15  ;;  %6471 = vmatpush1.bf16.msra.mxu0 %v13980_v28  ;;  %v6058_v53 = vmax.f32 %v5802_v8, 0.0  ;;  %v6074_v62 = vmax.f32 %v5818_v32, 0.0  ;;  %v5494_v35 = vadd.f32 %v4824_v42, %v18880_v6  ;;  %6544 = vmatpush1.bf16.msra.mxu1 %v13983_v63  ;;  %v18883_v15 = vld [vmem:[#allocation269_spill] sm:$0xff] }
 0x391   : > { %v5819_v24 = vadd.f32 %v13966_v59, %v5479_v52  ;;  %6472 = vmatprep.subr.bf16.mxu0 %v13949_v39  ;;  %v6060_v5 = vmax.f32 %v5804_v55, 0.0  ;;  %v6076_v50 = vmax.f32 %v5820_v46, 0.0  ;;  %v5496_v0 = vadd.f32 %v4937_v29, %v18881_v2  ;;  %6545 = vmatprep.subr.bf16.mxu1 %v13958_v27  ;;  %v4826_v13 = vpop.f32.mrf.mxu0  ;;  %v4939_v6 = vpop.f32.mrf.mxu1  ;;  %v18885_v55 = vld [vmem:[#allocation270_spill] sm:$0xff]  ;;  %v18886_v29 = vld [vmem:[#allocation32_spill] sm:$0xff] }
 0x392   : > { %v5821_v21 = vadd.f32 %v13974_v54, %v5481_v34  ;;  %v6059_v8 = vmax.f32 %v5803_v48, 0.0  ;;  %v14022_v32 = vpack.c.bf16 %v6074_v62, %v6058_v53  ;;  %v5495_v42 = vadd.f32 %v4826_v13, %v18883_v15  ;;  %v18889_v62 = vld [vmem:[#allocation425_spill] sm:$0xff]  ;;  %v18894_v15 = vld [vmem:[#allocation426_spill] sm:$0xff] }
 0x393   : > { %v6075_v52 = vmax.f32 %v5819_v24, 0.0  ;;  %v6061_v28 = vmax.f32 %v5805_v4, 0.0  ;;  %v14025_v63 = vpack.c.bf16 %v6076_v50, %v6060_v5  ;;  %v5497_v46 = vadd.f32 %v4939_v6, %v18885_v55  ;;  %v4828_v3 = vpop.f32.mrf.mxu0  ;;  %v4941_v48 = vpop.f32.mrf.mxu1  ;;  %v18888_v4 = vld [vmem:[#allocation183_spill] sm:$0xff]  ;;  %v18896_v55 = vld [vmem:[#allocation33_spill] sm:$0xff] }
 0x394   : > { %18882 = vst [vmem:[#allocation361_spill] sm:$0xff] %v14022_v32  ;;  %v6077_v39 = vmax.f32 %v5821_v21, 0.0  ;;  %6473 = vmatpush1.bf16.msra.mxu0 %v13936_v61  ;;  %v5834_v34 = vadd.f32 %v13947_v11, %v5494_v35  ;;  %v5510_v2 = vadd.f32 %v4828_v3, %v18886_v29  ;;  %6546 = vmatpush1.bf16.msra.mxu1 %v13939_v12  ;;  %v18891_v50 = vld [vmem:[#allocation271_spill] sm:$0xff]  ;;  %v18893_v3 = vld [vmem:[#allocation184_spill] sm:$0xff] }
 0x395   : > { %18884 = vst [vmem:[#allocation120_spill] sm:$0xff] %v14025_v63  ;;  %6474 = vmatprep.subr.bf16.mxu0 %v13910_v20  ;;  %v14033_v53 = vpack.c.bf16 %v6075_v52, %v6059_v8  ;;  %v14037_v24 = vadd.f32 %v18889_v62, %v18888_v4  ;;  %v5836_v5 = vadd.f32 %v13956_v47, %v5496_v0  ;;  %v4830_v35 = vpop.f32.mrf.mxu0  ;;  %v4943_v4 = vpop.f32.mrf.mxu1  ;;  %v18897_v62 = vld [vmem:[#allocation185_spill] sm:$0xff]  ;;  %v18898_v0 = vld [vmem:[#allocation427_spill] sm:$0xff] }
 0x396   : > { %v5512_v21 = vadd.f32 %v4941_v48, %v18891_v50  ;;  %6547 = vmatprep.subr.bf16.mxu1 %v13918_v14  ;;  %v14042_v13 = vpack.c.bf16 %v6077_v39, %v6061_v28  ;;  %v14046_v6 = vadd.f32 %v18894_v15, %v18893_v3  ;;  %v5835_v8 = vadd.f32 %v13966_v59, %v5495_v42  ;;  %v18900_v39 = vld [vmem:[#allocation34_spill] sm:$0xff]  ;;  %v18901_v15 = vld [vmem:[#allocation273_spill] sm:$0xff] }
 0x397   : > { %18887 = vst [vmem:[#allocation362_spill] sm:$0xff] %v14033_v53  ;;  %18890 = vst [vmem:[#allocation121_spill] sm:$0xff] %v14037_v24  ;;  %v5850_v52 = vadd.f32 %v13947_v11, %v5510_v2  ;;  %v5511_v29 = vadd.f32 %v4830_v35, %v18896_v55  ;;  %v14053_v20 = vadd.f32 %v18898_v0, %v18897_v62  ;;  %v4834_v14 = vpop.f32.mrf.mxu0  ;;  %v6090_v3 = vmax.f32 %v5834_v34, 0.0  ;;  %v4947_v55 = vpop.f32.mrf.mxu1  ;;  %v18902_v0 = vld [vmem:[#allocation35_spill] sm:$0xff] }
 0x398   : > { %18892 = vst [vmem:[#allocation363_spill] sm:$0xff] %v14042_v13  ;;  %18895 = vst [vmem:[#allocation122_spill] sm:$0xff] %v14046_v6  ;;  %v5837_v48 = vadd.f32 %v13974_v54, %v5497_v46  ;;  %v5852_v28 = vadd.f32 %v13956_v47, %v5512_v21  ;;  %v5513_v50 = vadd.f32 %v4943_v4, %v18900_v39  ;;  %6475 = vmatpush1.bf16.msra.mxu0 %v13901_v45  ;;  %v18904_v45 = vld [vmem:[#allocation274_spill] sm:$0xff] }
 0x399   : > { %18899 = vst [vmem:[#allocation364_spill] sm:$0xff] %v14053_v20  ;;  %v6106_v42 = vmax.f32 %v5850_v52, 0.0  ;;  %v5851_v2 = vadd.f32 %v13966_v59, %v5511_v29  ;;  %v5526_v35 = vadd.f32 %v4834_v14, %v18901_v15  ;;  %6548 = vmatpush1.bf16.msra.mxu1 %v13904_v1  ;;  %6476 = vmatprep.subr.bf16.mxu0 %v13872_v23  ;;  %v6092_v62 = vmax.f32 %v5836_v5, 0.0  ;;  %v4836_v39 = vpop.f32.mrf.mxu0  ;;  %v4949_v15 = vpop.f32.mrf.mxu1  ;;  %v18906_v5 = vld [vmem:[#allocation275_spill] sm:$0xff] }
 0x39a   : > { %v6108_v46 = vmax.f32 %v5852_v28, 0.0  ;;  %v5853_v21 = vadd.f32 %v13974_v54, %v5513_v50  ;;  %v5528_v4 = vadd.f32 %v4947_v55, %v18902_v0  ;;  %6549 = vmatprep.subr.bf16.mxu1 %v13880_v18  ;;  %v6091_v34 = vmax.f32 %v5835_v8, 0.0  ;;  %v18907_v55 = vld [vmem:[#allocation37_spill] sm:$0xff] }
 0x39b   : > { %v14066_v52 = vpack.c.bf16 %v6106_v42, %v6090_v3  ;;  %v6107_v29 = vmax.f32 %v5851_v2, 0.0  ;;  %v5527_v14 = vadd.f32 %v4836_v39, %v18904_v45  ;;  %v6093_v12 = vmax.f32 %v5837_v48, 0.0  ;;  %v4838_v61 = vpop.f32.mrf.mxu0  ;;  %v4951_v8 = vpop.f32.mrf.mxu1  ;;  %v18909_v48 = vld [vmem:[#allocation186_spill] sm:$0xff]  ;;  %v18910_v3 = vld [vmem:[#allocation428_spill] sm:$0xff]  ;;  %v18915_v39 = vld [vmem:[#allocation429_spill] sm:$0xff] }
 0x39c   : > { %v14069_v1 = vpack.c.bf16 %v6108_v46, %v6092_v62  ;;  %v6109_v23 = vmax.f32 %v5853_v21, 0.0  ;;  %v5529_v28 = vadd.f32 %v4949_v15, %v18906_v5  ;;  %6477 = vmatpush1.bf16.msra.mxu0 %v13860_v49  ;;  %v5866_v50 = vadd.f32 %v13947_v11, %v5526_v35  ;;  %v18912_v62 = vld [vmem:[#allocation276_spill] sm:$0xff]  ;;  %v18917_v5 = vld [vmem:[#allocation38_spill] sm:$0xff] }
 0x39d   : > { %18903 = vst [vmem:[#allocation123_spill] sm:$0xff] %v14066_v52  ;;  %v5542_v0 = vadd.f32 %v4838_v61, %v18907_v55  ;;  %6550 = vmatpush1.bf16.msra.mxu1 %v13863_v33  ;;  %6478 = vmatprep.subr.bf16.mxu0 %v13828_v26  ;;  %v14077_v45 = vpack.c.bf16 %v6107_v29, %v6091_v34  ;;  %v4840_v35 = vpop.f32.mrf.mxu0  ;;  %v18914_v61 = vld [vmem:[#allocation187_spill] sm:$0xff] }
 0x39e   : > { %18905 = vst [vmem:[#allocation365_spill] sm:$0xff] %v14069_v1  ;;  %v14081_v42 = vadd.f32 %v18910_v3, %v18909_v48  ;;  %v5868_v2 = vadd.f32 %v13956_v47, %v5528_v4  ;;  %v5544_v46 = vadd.f32 %v4951_v8, %v18912_v62  ;;  %6551 = vmatprep.subr.bf16.mxu1 %v13836_v58  ;;  %v4953_v48 = vpop.f32.mrf.mxu1  ;;  %v18918_v3 = vld [vmem:[#allocation188_spill] sm:$0xff]  ;;  %v18919_v4 = vld [vmem:[#allocation430_spill] sm:$0xff] }
 0x39f   : > { %18908 = vst [vmem:[#allocation124_spill] sm:$0xff] %v14077_v45  ;;  %v14086_v21 = vpack.c.bf16 %v6109_v23, %v6093_v12  ;;  %v14090_v15 = vadd.f32 %v18915_v39, %v18914_v61  ;;  %v5867_v34 = vadd.f32 %v13966_v59, %v5527_v14  ;;  %v5882_v29 = vadd.f32 %v13947_v11, %v5542_v0  ;;  %v18921_v12 = vld [vmem:[#allocation39_spill] sm:$0xff]  ;;  %v4844_v58 = vpop.f32.mrf.mxu0  ;;  %v18922_v39 = vld [vmem:[#allocation278_spill] sm:$0xff] }
 0x3a0   : > { %18911 = vst [vmem:[#allocation366_spill] sm:$0xff] %v14081_v42  ;;  %v5543_v55 = vadd.f32 %v4840_v35, %v18917_v5  ;;  %v14097_v26 = vadd.f32 %v18919_v4, %v18918_v3  ;;  %v5869_v8 = vadd.f32 %v13974_v54, %v5529_v28  ;;  %v5884_v23 = vadd.f32 %v13956_v47, %v5544_v46  ;;  %v4957_v5 = vpop.f32.mrf.mxu1  ;;  %v18923_v4 = vld [vmem:[#allocation40_spill] sm:$0xff] }
 0x3a1   : > { %18913 = vst [vmem:[#allocation125_spill] sm:$0xff] %v14086_v21  ;;  %18916 = vst [vmem:[#allocation367_spill] sm:$0xff] %v14090_v15  ;;  %v5545_v62 = vadd.f32 %v4953_v48, %v18921_v12  ;;  %6479 = vmatpush1.bf16.msra.mxu0 %v13816_v22  ;;  %v6122_v61 = vmax.f32 %v5866_v50, 0.0  ;;  %v6138_v14 = vmax.f32 %v5882_v29, 0.0  ;;  %v5558_v35 = vadd.f32 %v4844_v58, %v18922_v39  ;;  %v4846_v12 = vpop.f32.mrf.mxu0  ;;  %v18925_v22 = vld [vmem:[#allocation41_spill] sm:$0xff] }
 0x3a2   : > { %18920 = vst [vmem:[#allocation126_spill] sm:$0xff] %v14097_v26  ;;  %v5883_v0 = vadd.f32 %v13966_v59, %v5543_v55  ;;  %6552 = vmatpush1.bf16.msra.mxu1 %v13819_v60  ;;  %6480 = vmatprep.subr.bf16.mxu0 %v13784_v25  ;;  %v6124_v3 = vmax.f32 %v5868_v2, 0.0  ;;  %v6140_v28 = vmax.f32 %v5884_v23, 0.0  ;;  %v5560_v48 = vadd.f32 %v4957_v5, %v18923_v4  ;;  %v4959_v39 = vpop.f32.mrf.mxu1  ;;  %v18927_v2 = vld [vmem:[#allocation280_spill] sm:$0xff]  ;;  %v18928_v5 = vld [vmem:[#allocation42_spill] sm:$0xff] }
 0x3a3   : > { %v5885_v46 = vadd.f32 %v13974_v54, %v5545_v62  ;;  %6553 = vmatprep.subr.bf16.mxu1 %v13792_v41  ;;  %v6123_v50 = vmax.f32 %v5867_v34, 0.0  ;;  %v14110_v29 = vpack.c.bf16 %v6138_v14, %v6122_v61  ;;  %v5559_v58 = vadd.f32 %v4846_v12, %v18925_v22  ;;  %v4848_v49 = vpop.f32.mrf.mxu0  ;;  %v18931_v61 = vld [vmem:[#allocation431_spill] sm:$0xff]  ;;  %v18936_v12 = vld [vmem:[#allocation432_spill] sm:$0xff] }
 0x3a4   : > { %v6139_v55 = vmax.f32 %v5883_v0, 0.0  ;;  %v6125_v33 = vmax.f32 %v5869_v8, 0.0  ;;  %v14113_v60 = vpack.c.bf16 %v6140_v28, %v6124_v3  ;;  %v5561_v23 = vadd.f32 %v4959_v39, %v18927_v2  ;;  %v4961_v34 = vpop.f32.mrf.mxu1  ;;  %v18930_v8 = vld [vmem:[#allocation189_spill] sm:$0xff]  ;;  %v18938_v2 = vld [vmem:[#allocation282_spill] sm:$0xff] }
 0x3a5   : > { %18924 = vst [vmem:[#allocation368_spill] sm:$0xff] %v14110_v29  ;;  %v6141_v25 = vmax.f32 %v5885_v46, 0.0  ;;  %6481 = vmatpush1.bf16.msra.mxu0 %v13772_v10  ;;  %v5898_v62 = vadd.f32 %v13947_v11, %v5558_v35  ;;  %v5574_v4 = vadd.f32 %v4848_v49, %v18928_v5  ;;  %v14125_v14 = vadd.f32 %v18931_v61, %v18930_v8  ;;  %v18933_v3 = vld [vmem:[#allocation281_spill] sm:$0xff]  ;;  %v4850_v35 = vpop.f32.mrf.mxu0  ;;  %v18935_v49 = vld [vmem:[#allocation190_spill] sm:$0xff]  ;;  %v18939_v61 = vld [vmem:[#allocation191_spill] sm:$0xff] }
 0x3a6   : > { %18926 = vst [vmem:[#allocation127_spill] sm:$0xff] %v14113_v60  ;;  %6554 = vmatpush1.bf16.msra.mxu1 %v13775_v44  ;;  %6482 = vmatprep.subr.bf16.mxu0 %v13740_v51  ;;  %v14121_v22 = vpack.c.bf16 %v6139_v55, %v6123_v50  ;;  %v5900_v0 = vadd.f32 %v13956_v47, %v5560_v48  ;;  %v4963_v8 = vpop.f32.mrf.mxu1  ;;  %v18940_v48 = vld [vmem:[#allocation433_spill] sm:$0xff] }
 0x3a7   : > { %18932 = vst [vmem:[#allocation128_spill] sm:$0xff] %v14125_v14  ;;  %v5576_v28 = vadd.f32 %v4961_v34, %v18933_v3  ;;  %6555 = vmatprep.subr.bf16.mxu1 %v13748_v9  ;;  %v14130_v46 = vpack.c.bf16 %v6141_v25, %v6125_v33  ;;  %v14134_v39 = vadd.f32 %v18936_v12, %v18935_v49  ;;  %v18942_v33 = vld [vmem:[#allocation44_spill] sm:$0xff]  ;;  %v4854_v9 = vpop.f32.mrf.mxu0  ;;  %v6154_v49 = vmax.f32 %v5898_v62, 0.0  ;;  %v18943_v12 = vld [vmem:[#allocation283_spill] sm:$0xff]  ;;  %v19002_v14 = vld [vmem:[#allocation297_spill] sm:$0xff] }
 0x3a8   : > { %18929 = vst [vmem:[#allocation369_spill] sm:$0xff] %v14121_v22  ;;  %v5899_v50 = vadd.f32 %v13966_v59, %v5559_v58  ;;  %v5914_v55 = vadd.f32 %v13947_v11, %v5574_v4  ;;  %v5575_v5 = vadd.f32 %v4850_v35, %v18938_v2  ;;  %v14141_v51 = vadd.f32 %v18940_v48, %v18939_v61  ;;  %v4967_v2 = vpop.f32.mrf.mxu1  ;;  %v18944_v48 = vld [vmem:[#allocation45_spill] sm:$0xff] }
 0x3a9   : > { %18934 = vst [vmem:[#allocation370_spill] sm:$0xff] %v14130_v46  ;;  %18937 = vst [vmem:[#allocation129_spill] sm:$0xff] %v14134_v39  ;;  %v5901_v34 = vadd.f32 %v13974_v54, %v5561_v23  ;;  %v5916_v25 = vadd.f32 %v13956_v47, %v5576_v28  ;;  %v5577_v3 = vadd.f32 %v4963_v8, %v18942_v33  ;;  %6483 = vmatpush1.bf16.msra.mxu0 %v13728_v7  ;;  %v4856_v33 = vpop.f32.mrf.mxu0  ;;  %v18946_v7 = vld [vmem:[#allocation46_spill] sm:$0xff] }
 0x3aa   : > { %18941 = vst [vmem:[#allocation371_spill] sm:$0xff] %v14141_v51  ;;  %v6170_v58 = vmax.f32 %v5914_v55, 0.0  ;;  %v5915_v4 = vadd.f32 %v13966_v59, %v5575_v5  ;;  %v5590_v35 = vadd.f32 %v4854_v9, %v18943_v12  ;;  %6556 = vmatpush1.bf16.msra.mxu1 %v13731_v17  ;;  %6484 = vmatprep.subr.bf16.mxu0 %v13696_v40  ;;  %v6156_v61 = vmax.f32 %v5900_v0, 0.0  ;;  %v4969_v12 = vpop.f32.mrf.mxu1  ;;  %v14160_v40 = vld [vmem:[%s17625_s3] sm:$0xff]  }
 0x3ab   : > { %v6172_v23 = vmax.f32 %v5916_v25, 0.0  ;;  %v5917_v28 = vadd.f32 %v13974_v54, %v5577_v3  ;;  %v5592_v8 = vadd.f32 %v4967_v2, %v18944_v48  ;;  %6557 = vmatprep.subr.bf16.mxu1 %v13704_v43  ;;  %v6155_v62 = vmax.f32 %v5899_v50, 0.0  ;;  %v18948_v2 = vld [vmem:[#allocation285_spill] sm:$0xff]  ;;  %v4858_v43 = vpop.f32.mrf.mxu0  ;;  %v18949_v50 = vld [vmem:[#allocation192_spill] sm:$0xff] }
 0x3ac   : > { %v14154_v55 = vpack.c.bf16 %v6170_v58, %v6154_v49  ;;  %v6171_v5 = vmax.f32 %v5915_v4, 0.0  ;;  %v5591_v9 = vadd.f32 %v4856_v33, %v18946_v7  ;;  %v6157_v0 = vmax.f32 %v5901_v34, 0.0  ;;  %v18950_v49 = vld [vmem:[#allocation434_spill] sm:$0xff]  ;;  %v18952_v4 = vld [vmem:[#allocation47_spill] sm:$0xff]  ;;  %v4971_v17 = vpop.f32.mrf.mxu1 }
 0x3ad   : > { %v14162_v25 = vpack.c.bf16 %v6172_v23, %v6156_v61  ;;  %v6173_v3 = vmax.f32 %v5917_v28, 0.0  ;;  %v5593_v48 = vadd.f32 %v4969_v12, %v18948_v2  ;;  %6485 = vmatpush1.bf16.msra.mxu0 %v13684_v36  ;;  %v14168_v58 = vadd.f32 %v18950_v49, %v18949_v50  ;;  %v18954_v61 = vld [vmem:[#allocation193_spill] sm:$0xff]  ;;  %v18955_v23 = vld [vmem:[#allocation435_spill] sm:$0xff]  ;;  %v18957_v2 = vld [vmem:[#allocation286_spill] sm:$0xff]  ;;  %v4860_v44 = vpop.f32.mrf.mxu0 }
 0x3ae   : > { %18945 = vst [vmem:[#allocation130_spill] sm:$0xff] %v14154_v55  ;;  %v5930_v7 = vadd.f32 %v13947_v11, %v5590_v35  ;;  %v5606_v33 = vadd.f32 %v4858_v43, %v18952_v4  ;;  %6558 = vmatpush1.bf16.msra.mxu1 %v13687_v37  ;;  %v14173_v34 = vpack.c.bf16 %v6171_v5, %v6155_v62  ;;  %v18959_v49 = vld [vmem:[#allocation194_spill] sm:$0xff]  ;;  %v18960_v35 = vld [vmem:[#allocation436_spill] sm:$0xff]  ;;  %v18962_v5 = vld [vmem:[#allocation287_spill] sm:$0xff]  ;;  %v4973_v37 = vpop.f32.mrf.mxu1 }
 0x3af   : > { %18947 = vst [vmem:[#allocation372_spill] sm:$0xff] %v14162_v25  ;;  %18951 = vst [vmem:[#allocation131_spill] sm:$0xff] %v14168_v58  ;;  %v14177_v28 = vadd.f32 %v18955_v23, %v18954_v61  ;;  %v5932_v12 = vadd.f32 %v13956_v47, %v5592_v8  ;;  %v5608_v36 = vadd.f32 %v4971_v17, %v18957_v2  ;;  %v18963_v61 = vld [vmem:[#allocation49_spill] sm:$0xff]  ;;  %v18964_v2 = vld [vmem:[#allocation288_spill] sm:$0xff] }
 0x3b0   : > { %18953 = vst [vmem:[#allocation373_spill] sm:$0xff] %v14173_v34  ;;  %v14181_v50 = vpack.c.bf16 %v6173_v3, %v6157_v0  ;;  %v14185_v10 = vadd.f32 %v18960_v35, %v18959_v49  ;;  %v5931_v43 = vadd.f32 %v13966_v59, %v5591_v9  ;;  %v5946_v62 = vadd.f32 %v13947_v11, %v5606_v33  ;;  %v4864_v3 = vpop.f32.mrf.mxu0  ;;  %v4977_v49 = vpop.f32.mrf.mxu1  ;;  %v18977_v58 = vld [vmem:[#allocation438_spill] sm:$0xff] }
 0x3b1   : > { %18956 = vst [vmem:[#allocation132_spill] sm:$0xff] %v14177_v28  ;;  %v5607_v4 = vadd.f32 %v4860_v44, %v18962_v5  ;;  %6503 = vmatmul.mubr.bf16.vlgmr.msra.gmra.mxu0 %v14160_v40  ;;  %v5933_v8 = vadd.f32 %v13974_v54, %v5593_v48  ;;  %v5948_v17 = vadd.f32 %v13956_v47, %v5608_v36  ;;  %v6186_v23 = vmax.f32 %v5930_v7, 0.0  ;;  %v18965_v5 = vld [vmem:[#allocation51_spill] sm:$0xff]  ;;  %v18967_v7 = vld [vmem:[#allocation290_spill] sm:$0xff]  ;;  %v18976_v28 = vld [vmem:[#allocation196_spill] sm:$0xff] }
 0x3b2   : > { %18958 = vst [vmem:[#allocation374_spill] sm:$0xff] %v14181_v50  ;;  %18961 = vst [vmem:[#allocation133_spill] sm:$0xff] %v14185_v10  ;;  %v5609_v0 = vadd.f32 %v4973_v37, %v18963_v61  ;;  %6576 = vmatmul.mubr.bf16.vlgmr.msra.gmra.mxu1 %v14160_v40  ;;  %6512 = vmatprep.mubr.bf16.mxu0 %v17850_v16  ;;  %v6202_v9 = vmax.f32 %v5946_v62, 0.0  ;;  %v5622_v44 = vadd.f32 %v4864_v3, %v18964_v2  ;;  %v4866_v61 = vpop.f32.mrf.mxu0  ;;  %v4979_v30 = vpop.f32.mrf.mxu1 }
 0x3b3   : > { %v5947_v33 = vadd.f32 %v13966_v59, %v5607_v4  ;;  %6585 = vmatprep.mubr.bf16.mxu1 %v17850_v16  ;;  %v6188_v35 = vmax.f32 %v5932_v12, 0.0  ;;  %v6204_v48 = vmax.f32 %v5948_v17, 0.0  ;;  %v5624_v37 = vadd.f32 %v4977_v49, %v18965_v5  ;;  %v14207_v4 = vld [vmem:[%s17625_s3 + $0x8] sm:$0xff]   ;;  %v18971_v5 = vld [vmem:[#allocation195_spill] sm:$0xff] }
 0x3b4   : > { %v5949_v36 = vadd.f32 %v13974_v54, %v5609_v0  ;;  %v6187_v41 = vmax.f32 %v5931_v43, 0.0  ;;  %v14201_v18 = vpack.c.bf16 %v6202_v9, %v6186_v23  ;;  %v5623_v62 = vadd.f32 %v4866_v61, %v18967_v7  ;;  %18968 = vst [vmem:[#allocation134_spill] sm:$0xff] %v14207_v4  ;;  %v18970_v0 = vld [vmem:[#allocation52_spill] sm:$0xff]  ;;  %v4868_v49 = vpop.f32.mrf.mxu0  ;;  %v18972_v43 = vld [vmem:[#allocation437_spill] sm:$0xff]  ;;  %v4981_v7 = vpop.f32.mrf.mxu1 }
 0x3b5   : > { %v6203_v27 = vmax.f32 %v5947_v33, 0.0  ;;  %v6189_v3 = vmax.f32 %v5933_v8, 0.0  ;;  %v14209_v12 = vpack.c.bf16 %v6204_v48, %v6188_v35  ;;  %v5625_v2 = vadd.f32 %v4979_v30, %v18970_v0  ;;  %v18974_v33 = vld [vmem:[#allocation291_spill] sm:$0xff]  ;;  %v18979_v48 = vld [vmem:[#allocation292_spill] sm:$0xff] }
 0x3b6   : > { %18966 = vst [vmem:[#allocation375_spill] sm:$0xff] %v14201_v18  ;;  %v6205_v17 = vmax.f32 %v5949_v36, 0.0  ;;  %v14214_v23 = vadd.f32 %v18972_v43, %v18971_v5  ;;  %v5962_v9 = vadd.f32 %v13947_v11, %v5622_v44  ;;  %v5638_v61 = vadd.f32 %v4868_v49, %v18974_v33  ;;  %v4870_v36 = vpop.f32.mrf.mxu0  ;;  %v18981_v5 = vld [vmem:[#allocation197_spill] sm:$0xff]  ;;  %v18982_v43 = vld [vmem:[#allocation439_spill] sm:$0xff]  ;;  %v4983_v33 = vpop.f32.mrf.mxu1 }
 0x3b7   : > { %18969 = vst [vmem:[#allocation376_spill] sm:$0xff] %v14209_v12  ;;  %v14218_v10 = vpack.c.bf16 %v6203_v27, %v6187_v41  ;;  %v14222_v8 = vadd.f32 %v18977_v58, %v18976_v28  ;;  %v5964_v35 = vadd.f32 %v13956_v47, %v5624_v37  ;;  %v5640_v30 = vadd.f32 %v4981_v7, %v18979_v48  ;;  %v18984_v27 = vld [vmem:[#allocation54_spill] sm:$0xff]  ;;  %v18985_v37 = vld [vmem:[#allocation293_spill] sm:$0xff]  ;;  %v18986_v48 = vld [vmem:[#allocation55_spill] sm:$0xff] }
 0x3b8   : > { %18973 = vst [vmem:[#allocation135_spill] sm:$0xff] %v14214_v23  ;;  %v14226_v0 = vpack.c.bf16 %v6205_v17, %v6189_v3  ;;  %v14230_v23 = vadd.f32 %v18982_v43, %v18981_v5  ;;  %v5963_v44 = vadd.f32 %v13966_v59, %v5623_v62  ;;  %v5978_v41 = vadd.f32 %v13947_v11, %v5638_v61  ;;  %v4874_v17 = vpop.f32.mrf.mxu0  ;;  %v4987_v5 = vpop.f32.mrf.mxu1 }
 0x3b9   : > { %18975 = vst [vmem:[#allocation377_spill] sm:$0xff] %v14218_v10  ;;  %18978 = vst [vmem:[#allocation136_spill] sm:$0xff] %v14222_v8  ;;  %v5639_v49 = vadd.f32 %v4870_v36, %v18984_v27  ;;  %6513 = vmatmul.mubr.bf16.gmra.mxu0 %v14207_v4  ;;  %v5965_v58 = vadd.f32 %v13974_v54, %v5625_v2  ;;  %v5980_v28 = vadd.f32 %v13956_v47, %v5640_v30  ;;  %v18987_v27 = vld [vmem:[#allocation56_spill] sm:$0xff] }
 0x3ba   : > { %18980 = vst [vmem:[#allocation378_spill] sm:$0xff] %v14226_v0  ;;  %18983 = vst [vmem:[#allocation137_spill] sm:$0xff] %v14230_v23  ;;  %v5641_v3 = vadd.f32 %v4983_v33, %v18985_v37  ;;  %6586 = vmatmul.mubr.bf16.gmra.mxu1 %v14207_v4  ;;  %6522 = vmatprep.mubr.bf16.mxu0 %v17850_v16  ;;  %v6218_v7 = vmax.f32 %v5962_v9, 0.0  ;;  %v6234_v62 = vmax.f32 %v5978_v41, 0.0  ;;  %v6220_v43 = vmax.f32 %v5964_v35, 0.0  ;;  %v4876_v37 = vpop.f32.mrf.mxu0  ;;  %v18989_v9 = vld [vmem:[#allocation295_spill] sm:$0xff]  ;;  %v4989_v39 = vpop.f32.mrf.mxu1 }
 0x3bb   : > { %v5979_v61 = vadd.f32 %v13966_v59, %v5639_v49  ;;  %v5654_v36 = vadd.f32 %v4874_v17, %v18986_v48  ;;  %6595 = vmatprep.mubr.bf16.mxu1 %v17850_v16  ;;  %v6236_v2 = vmax.f32 %v5980_v28, 0.0  ;;  %v5656_v33 = vadd.f32 %v4987_v5, %v18987_v27  ;;  %v14252_v49 = vld [vmem:[%s17625_s3 + $0x10] sm:$0xff]   ;;  %v19030_v4 = vld [vmem:[#allocation442_spill] sm:$0xff] }
 0x3bc   : > { %v5981_v30 = vadd.f32 %v13974_v54, %v5641_v3  ;;  %v6219_v23 = vmax.f32 %v5963_v44, 0.0  ;;  %v14246_v8 = vpack.c.bf16 %v6234_v62, %v6218_v7  ;;  %v5655_v41 = vadd.f32 %v4876_v37, %v18989_v9  ;;  %18990 = vst [vmem:[#allocation138_spill] sm:$0xff] %v14252_v49  ;;  %v18992_v3 = vld [vmem:[#allocation57_spill] sm:$0xff]  ;;  %v4878_v5 = vpop.f32.mrf.mxu0  ;;  %v14260_v44 = vld [vmem:[%s17624_s2 + $0x8] sm:$0xff]  ;;  %v18995_v62 = vld [vmem:[#allocation440_spill] sm:$0xff] }
 0x3bd   : > { %v6235_v51 = vmax.f32 %v5979_v61, 0.0  ;;  %v6221_v17 = vmax.f32 %v5965_v58, 0.0  ;;  %v14254_v35 = vpack.c.bf16 %v6236_v2, %v6220_v43  ;;  %v5657_v48 = vadd.f32 %v4989_v39, %v18992_v3  ;;  %18993 = vst [vmem:[#allocation139_spill] sm:$0xff] %v14260_v44  ;;  %v18994_v7 = vld [vmem:[#allocation198_spill] sm:$0xff]  ;;  %v18997_v37 = vld [vmem:[#allocation296_spill] sm:$0xff]  ;;  %v4991_v58 = vpop.f32.mrf.mxu1  ;;  %v18999_v2 = vld [vmem:[#allocation199_spill] sm:$0xff] }
 0x3be   : > { %18988 = vst [vmem:[#allocation379_spill] sm:$0xff] %v14246_v8  ;;  %v6237_v28 = vmax.f32 %v5981_v30, 0.0  ;;  %v14264_v61 = vadd.f32 %v18995_v62, %v18994_v7  ;;  %v5994_v27 = vadd.f32 %v13947_v11, %v5654_v36  ;;  %v5670_v9 = vadd.f32 %v4878_v5, %v18997_v37  ;;  %v19000_v30 = vld [vmem:[#allocation441_spill] sm:$0xff]  ;;  %v4880_v15 = vpop.f32.mrf.mxu0  ;;  %v19004_v62 = vld [vmem:[#allocation59_spill] sm:$0xff] }
 0x3bf   : > { %18991 = vst [vmem:[#allocation380_spill] sm:$0xff] %v14254_v35  ;;  %v14268_v43 = vpack.c.bf16 %v6235_v51, %v6219_v23  ;;  %v14272_v39 = vadd.f32 %v19000_v30, %v18999_v2  ;;  %v5996_v3 = vadd.f32 %v13956_v47, %v5656_v33  ;;  %v5672_v26 = vadd.f32 %v4991_v58, %v19002_v14  ;;  %v4993_v37 = vpop.f32.mrf.mxu1  ;;  %v19007_v2 = vld [vmem:[#allocation299_spill] sm:$0xff] }
 0x3c0   : > { %18996 = vst [vmem:[#allocation381_spill] sm:$0xff] %v14264_v61  ;;  %v14276_v42 = vpack.c.bf16 %v6237_v28, %v6221_v17  ;;  %v5995_v7 = vadd.f32 %v13966_v59, %v5655_v41  ;;  %v6010_v36 = vadd.f32 %v13947_v11, %v5670_v9  ;;  %v5671_v5 = vadd.f32 %v4880_v15, %v19004_v62  ;;  %v19006_v17 = vld [vmem:[#allocation60_spill] sm:$0xff]  ;;  %v4884_v58 = vpop.f32.mrf.mxu0 }
 0x3c1   : > { %18998 = vst [vmem:[#allocation140_spill] sm:$0xff] %v14268_v43  ;;  %19001 = vst [vmem:[#allocation382_spill] sm:$0xff] %v14272_v39  ;;  %v19005_v51 = vsub.s32 0, %v18825_v56  ;;  %6523 = vmatmul.mubr.bf16.gmra.mxu0 %v14252_v49  ;;  %v5997_v33 = vadd.f32 %v13974_v54, %v5657_v48  ;;  %v6012_v14 = vadd.f32 %v13956_v47, %v5672_v26  ;;  %v6250_v15 = vmax.f32 %v5994_v27, 0.0  ;;  %v4997_v62 = vpop.f32.mrf.mxu1  ;;  %v19008_v39 = vld [vmem:[#allocation61_spill] sm:$0xff] }
 0x3c2   : > { %19003 = vst [vmem:[#allocation141_spill] sm:$0xff] %v14276_v42  ;;  %v5673_v28 = vadd.f32 %v4993_v37, %v19006_v17  ;;  %6596 = vmatmul.mubr.bf16.gmra.mxu1 %v14252_v49  ;;  %6532 = vmatprep.mubr.bf16.mxu0 %v17850_v16  ;;  %v6266_v41 = vmax.f32 %v6010_v36, 0.0  ;;  %v6011_v9 = vadd.f32 %v13966_v59, %v5671_v5  ;;  %v4886_v17 = vpop.f32.mrf.mxu0  ;;  %v6251_v61 = vmax.f32 %v5995_v7, 0.0  ;;  %v19010_v27 = vld [vmem:[#allocation301_spill] sm:$0xff]  ;;  %v14303_v5 = vld [vmem:[%s17625_s3 + $0x18] sm:$0xff]  }
 0x3c3   : > { %v14284_v23 = vrot.slane %v14260_v44, %v19005_v51  ;;  %v5686_v30 = vadd.f32 %v4884_v58, %v19007_v2  ;;  %6605 = vmatprep.mubr.bf16.mxu1 %v17850_v16  ;;  %v6252_v51 = vmax.f32 %v5996_v3, 0.0  ;;  %v6268_v48 = vmax.f32 %v6012_v14, 0.0  ;;  %v4999_v24 = vpop.f32.mrf.mxu1  ;;  %19011 = vst [vmem:[#allocation142_spill] sm:$0xff] %v14303_v5 }
 0x3c4   : > { %v6013_v26 = vadd.f32 %v13974_v54, %v5673_v28  ;;  %v5688_v37 = vadd.f32 %v4997_v62, %v19008_v39  ;;  %v14297_v20 = vpack.c.bf16 %v6266_v41, %v6250_v15  ;;  %v6267_v6 = vmax.f32 %v6011_v9, 0.0  ;;  %v19013_v28 = vld [vmem:[#allocation63_spill] sm:$0xff]  ;;  %v4888_v39 = vpop.f32.mrf.mxu0  ;;  %v19014_v15 = vld [vmem:[#allocation302_spill] sm:$0xff] }
 0x3c5   : > { %v5687_v36 = vadd.f32 %v4886_v17, %v19010_v27  ;;  %v6253_v58 = vmax.f32 %v5997_v33, 0.0  ;;  %v14305_v3 = vpack.c.bf16 %v6268_v48, %v6252_v51  ;;  %v5689_v2 = vadd.f32 %v4999_v24, %v19013_v28  ;;  %v5001_v9 = vpop.f32.mrf.mxu1  ;;  %v19017_v51 = vld [vmem:[#allocation303_spill] sm:$0xff] }
 0x3c6   : > { %19009 = vst [vmem:[#allocation383_spill] sm:$0xff] %v14297_v20  ;;  %v6269_v14 = vmax.f32 %v6013_v26, 0.0  ;;  %v6026_v7 = vadd.f32 %v13947_v11, %v5686_v30  ;;  %v5702_v41 = vadd.f32 %v4888_v39, %v19014_v15  ;;  %v19015_v62 = vsub.s32 2, %v18825_v56  ;;  %v4890_v26 = vpop.f32.mrf.mxu0 }
 0x3c7   : > { %19012 = vst [vmem:[#allocation384_spill] sm:$0xff] %v14305_v3  ;;  %v14315_v27 = vpack.c.bf16 %v6267_v6, %v6251_v61  ;;  %v6028_v33 = vadd.f32 %v13956_v47, %v5688_v37  ;;  %v5704_v48 = vadd.f32 %v5001_v9, %v19017_v51  ;;  %v19018_v24 = vsub.s32 1, %v18825_v56  ;;  %v5003_v6 = vpop.f32.mrf.mxu1 }
 0x3c8   : > { %v14313_v17 = vrot.slane %v14260_v44, %v19015_v62  ;;  %v14324_v30 = vpack.c.bf16 %v6269_v14, %v6253_v58  ;;  %v6027_v39 = vadd.f32 %v13966_v59, %v5687_v36  ;;  %v6042_v15 = vadd.f32 %v13947_v11, %v5702_v41  ;;  %v19020_v62 = vld [vmem:[#allocation65_spill] sm:$0xff]  ;;  %v19022_v58 = vld [vmem:[#allocation304_spill] sm:$0xff] }
 0x3c9   : > { %19016 = vst [vmem:[#allocation143_spill] sm:$0xff] %v14315_v27  ;;  %v14322_v28 = vrot.slane %v14260_v44, %v19018_v24  ;;  %v5703_v31 = vadd.f32 %v4890_v26, %v19020_v62  ;;  %v19021_v61 = vsub.s32 3, %v18825_v56  ;;  %6533 = vmatmul.mubr.bf16.gmra.mxu0 %v14303_v5  ;;  %v6029_v9 = vadd.f32 %v13974_v54, %v5689_v2  ;;  %v5040_v24 = vpop.f32.mrf.mxu0  ;;  %v19023_v26 = vld [vmem:[#allocation66_spill] sm:$0xff] }
 0x3ca   : > { %19019 = vst [vmem:[#allocation385_spill] sm:$0xff] %v14324_v30  ;;  %v6044_v51 = vadd.f32 %v13956_v47, %v5704_v48  ;;  %v5705_v14 = vadd.f32 %v5003_v6, %v19022_v58  ;;  %6606 = vmatmul.mubr.bf16.gmra.mxu1 %v14303_v5  ;;  %6648 = vmatprep.mubr.bf16.mxu0 %v17850_v16  ;;  %v6282_v11 = vmax.f32 %v6026_v7, 0.0  ;;  %v6298_v36 = vmax.f32 %v6042_v15, 0.0  ;;  %v19024_v48 = vld [vmem:[#allocation67_spill] sm:$0xff]  ;;  %v19026_v7 = vld [vmem:[#allocation68_spill] sm:$0xff] }
 0x3cb   : > { %v14332_v37 = vrot.slane %v14260_v44, %v19021_v61  ;;  %v6043_v41 = vadd.f32 %v13966_v59, %v5703_v31  ;;  %v5466_v62 = vadd.f32 %v5040_v24, %v19023_v26  ;;  %v5153_v61 = vpop.f32.mrf.mxu1  ;;  %6721 = vmatprep.mubr.bf16.mxu1 %v17850_v16  ;;  %v6284_v57 = vmax.f32 %v6028_v33, 0.0  ;;  %v5042_v58 = vpop.f32.mrf.mxu0  ;;  %v19028_v26 = vld [vmem:[#allocation307_spill] sm:$0xff] }
 0x3cc   : > { %v6300_v2 = vmax.f32 %v6044_v51, 0.0  ;;  %v6045_v47 = vadd.f32 %v13974_v54, %v5705_v14  ;;  %v5468_v6 = vadd.f32 %v5153_v61, %v19024_v48  ;;  %v6283_v38 = vmax.f32 %v6027_v39, 0.0  ;;  %v19029_v51 = vld [vmem:[#allocation200_spill] sm:$0xff]  ;;  %v19031_v39 = vld [vmem:[#allocation69_spill] sm:$0xff]  ;;  %v19034_v48 = vld [vmem:[#allocation443_spill] sm:$0xff] }
 0x3cd   : > { %v14345_v5 = vpack.c.bf16 %v6298_v36, %v6282_v11  ;;  %v6299_v49 = vmax.f32 %v6043_v41, 0.0  ;;  %v5467_v15 = vadd.f32 %v5042_v58, %v19026_v7  ;;  %v5155_v44 = vpop.f32.mrf.mxu1  ;;  %v6285_v59 = vmax.f32 %v6029_v9, 0.0  ;;  %v5044_v33 = vpop.f32.mrf.mxu0  ;;  %v19033_v61 = vld [vmem:[#allocation201_spill] sm:$0xff]  ;;  %v19038_v7 = vld [vmem:[#allocation444_spill] sm:$0xff] }
 0x3ce   : > { %v14348_v31 = vpack.c.bf16 %v6300_v2, %v6284_v57  ;;  %v6301_v24 = vmax.f32 %v6045_v47, 0.0  ;;  %v5469_v56 = vadd.f32 %v5155_v44, %v19028_v26  ;;  %v14353_v54 = vadd.f32 %v19030_v4, %v19029_v51  ;;  %v19035_v2 = vld [vmem:[#allocation70_spill] sm:$0xff] }
 0x3cf   : > { %19025 = vst [vmem:[#allocation144_spill] sm:$0xff] %v14345_v5  ;;  %v5806_v14 = vadd.f32 %v14284_v23, %v5466_v62  ;;  %v5482_v11 = vadd.f32 %v5044_v33, %v19031_v39  ;;  %v5157_v36 = vpop.f32.mrf.mxu1  ;;  %v14357_v41 = vpack.c.bf16 %v6299_v49, %v6283_v38  ;;  %v14361_v9 = vadd.f32 %v19034_v48, %v19033_v61  ;;  %v5046_v47 = vpop.f32.mrf.mxu0  ;;  %v19037_v4 = vld [vmem:[#allocation202_spill] sm:$0xff]  ;;  %v19039_v49 = vld [vmem:[#allocation309_spill] sm:$0xff]  ;;  %v19041_v48 = vld [vmem:[#allocation72_spill] sm:$0xff] }
 0x3d0   : > { %19027 = vst [vmem:[#allocation386_spill] sm:$0xff] %v14348_v31  ;;  %v5808_v57 = vadd.f32 %v14313_v17, %v5468_v6  ;;  %v5484_v44 = vadd.f32 %v5157_v36, %v19035_v2  ;;  %v14365_v58 = vpack.c.bf16 %v6301_v24, %v6285_v59  ;;  %v14369_v26 = vadd.f32 %v19038_v7, %v19037_v4  ;;  %v19040_v36 = vld [vmem:[#allocation71_spill] sm:$0xff] }
 0x3d1   : > { %19032 = vst [vmem:[#allocation145_spill] sm:$0xff] %v14357_v41  ;;  %v5807_v62 = vadd.f32 %v14322_v28, %v5467_v15  ;;  %v5822_v38 = vadd.f32 %v14284_v23, %v5482_v11  ;;  %v5483_v33 = vadd.f32 %v5046_v47, %v19039_v49  ;;  %v5159_v51 = vpop.f32.mrf.mxu1  ;;  %6616 = vmatprep.subr.bf16.mxu0 %v14357_v41  ;;  %v5050_v24 = vpop.f32.mrf.mxu0  ;;  %v6062_v61 = vmax.f32 %v5806_v14, 0.0  ;;  %v19042_v7 = vld [vmem:[#allocation311_spill] sm:$0xff] }
 0x3d2   : > { %19036 = vst [vmem:[#allocation387_spill] sm:$0xff] %v14365_v58  ;;  %v5809_v6 = vadd.f32 %v14332_v37, %v5469_v56  ;;  %v5824_v39 = vadd.f32 %v14313_v17, %v5484_v44  ;;  %v5485_v59 = vadd.f32 %v5159_v51, %v19040_v36  ;;  %6689 = vmatprep.subr.bf16.mxu1 %v14365_v58  ;;  %v6064_v56 = vmax.f32 %v5808_v57, 0.0  ;;  %v19044_v36 = vld [vmem:[#allocation73_spill] sm:$0xff]  ;;  %v19046_v57 = vld [vmem:[#allocation312_spill] sm:$0xff]  ;;  %v19125_v41 = vld [vmem:[#allocation19_spill] sm:$0xff] }
 0x3d3   : > { %6617 = vmatpush1.bf16.msra.mxu0 %v14345_v5  ;;  %v6078_v15 = vmax.f32 %v5822_v38, 0.0  ;;  %v5823_v11 = vadd.f32 %v14322_v28, %v5483_v33  ;;  %v5498_v2 = vadd.f32 %v5050_v24, %v19041_v48  ;;  %v5163_v47 = vpop.f32.mrf.mxu1  ;;  %6690 = vmatpush1.bf16.msra.mxu1 %v14348_v31  ;;  %v5052_v51 = vpop.f32.mrf.mxu0  ;;  %v6063_v14 = vmax.f32 %v5807_v62, 0.0 }
 0x3d4   : > { %6618 = vmatprep.subr.bf16.mxu0 %v14315_v27  ;;  %v6080_v44 = vmax.f32 %v5824_v39, 0.0  ;;  %v5825_v4 = vadd.f32 %v14332_v37, %v5485_v59  ;;  %v5500_v49 = vadd.f32 %v5163_v47, %v19042_v7  ;;  %6691 = vmatprep.subr.bf16.mxu1 %v14324_v30  ;;  %v5499_v24 = vadd.f32 %v5052_v51, %v19044_v36  ;;  %v19047_v47 = vld [vmem:[#allocation313_spill] sm:$0xff]  ;;  %v19054_v36 = vld [vmem:[#allocation446_spill] sm:$0xff] }
 0x3d5   : > { %v14387_v38 = vpack.c.bf16 %v6078_v15, %v6062_v61  ;;  %v6079_v33 = vmax.f32 %v5823_v11, 0.0  ;;  %v5165_v48 = vpop.f32.mrf.mxu1  ;;  %v6065_v5 = vmax.f32 %v5809_v6, 0.0  ;;  %v5054_v58 = vpop.f32.mrf.mxu0  ;;  %v5838_v59 = vadd.f32 %v14284_v23, %v5498_v2  ;;  %v19049_v6 = vld [vmem:[#allocation203_spill] sm:$0xff]  ;;  %v19050_v15 = vld [vmem:[#allocation445_spill] sm:$0xff] }
 0x3d6   : > { %v14390_v31 = vpack.c.bf16 %v6080_v44, %v6064_v56  ;;  %v6081_v27 = vmax.f32 %v5825_v4, 0.0  ;;  %v5501_v39 = vadd.f32 %v5165_v48, %v19046_v57  ;;  %v5514_v7 = vadd.f32 %v5054_v58, %v19047_v47  ;;  %v19051_v44 = vld [vmem:[#allocation75_spill] sm:$0xff]  ;;  %v19053_v58 = vld [vmem:[#allocation204_spill] sm:$0xff]  ;;  %v19055_v57 = vld [vmem:[#allocation314_spill] sm:$0xff] }
 0x3d7   : > { %19043 = vst [vmem:[#allocation146_spill] sm:$0xff] %v14387_v38  ;;  %6619 = vmatpush1.bf16.msra.mxu0 %v14297_v20  ;;  %v5167_v62 = vpop.f32.mrf.mxu1  ;;  %6692 = vmatpush1.bf16.msra.mxu1 %v14305_v3  ;;  %v14398_v61 = vpack.c.bf16 %v6079_v33, %v6063_v14  ;;  %v14402_v11 = vadd.f32 %v19050_v15, %v19049_v6  ;;  %v5056_v2 = vpop.f32.mrf.mxu0  ;;  %v19056_v15 = vld [vmem:[#allocation205_spill] sm:$0xff] }
 0x3d8   : > { %19045 = vst [vmem:[#allocation388_spill] sm:$0xff] %v14390_v31  ;;  %6620 = vmatprep.subr.bf16.mxu0 %v14268_v43  ;;  %v5840_v56 = vadd.f32 %v14313_v17, %v5500_v49  ;;  %v5516_v4 = vadd.f32 %v5167_v62, %v19051_v44  ;;  %6693 = vmatprep.subr.bf16.mxu1 %v14276_v42  ;;  %v19057_v49 = vld [vmem:[#allocation243_spill] sm:$0xff] }
 0x3d9   : > { %19048 = vst [vmem:[#allocation147_spill] sm:$0xff] %v14398_v61  ;;  %v14407_v51 = vpack.c.bf16 %v6081_v27, %v6065_v5  ;;  %v14411_v48 = vadd.f32 %v19054_v36, %v19053_v58  ;;  %v5839_v14 = vadd.f32 %v14322_v28, %v5499_v24  ;;  %v5854_v33 = vadd.f32 %v14284_v23, %v5514_v7  ;;  %v5169_v6 = vpop.f32.mrf.mxu1  ;;  %v19058_v27 = vld [vmem:[#allocation76_spill] sm:$0xff]  ;;  %v5060_v42 = vpop.f32.mrf.mxu0  ;;  %v19059_v36 = vld [vmem:[#allocation77_spill] sm:$0xff] }
 0x3da   : > { %v5515_v47 = vadd.f32 %v5056_v2, %v19055_v57  ;;  %v14418_v43 = vadd.f32 %v19057_v49, %v19056_v15  ;;  %v5841_v62 = vadd.f32 %v14332_v37, %v5501_v39  ;;  %v5856_v5 = vadd.f32 %v14313_v17, %v5516_v4  ;;  %v19060_v49 = vld [vmem:[#allocation316_spill] sm:$0xff] }
 0x3db   : > { %19052 = vst [vmem:[#allocation389_spill] sm:$0xff] %v14407_v51  ;;  %v5517_v44 = vadd.f32 %v5169_v6, %v19058_v27  ;;  %6621 = vmatpush1.bf16.msra.mxu0 %v14246_v8  ;;  %v6094_v58 = vmax.f32 %v5838_v59, 0.0  ;;  %v6110_v24 = vmax.f32 %v5854_v33, 0.0  ;;  %v5530_v2 = vadd.f32 %v5060_v42, %v19059_v36  ;;  %v5173_v57 = vpop.f32.mrf.mxu1  ;;  %6694 = vmatpush1.bf16.msra.mxu1 %v14254_v35  ;;  %v5062_v27 = vpop.f32.mrf.mxu0  ;;  %v19062_v8 = vld [vmem:[#allocation78_spill] sm:$0xff]  ;;  %v19163_v51 = vld [vmem:[#allocation105_spill] sm:$0xff] }
 0x3dc   : > { %v5855_v7 = vadd.f32 %v14322_v28, %v5515_v47  ;;  %6622 = vmatprep.subr.bf16.mxu0 %v14218_v10  ;;  %v6096_v15 = vmax.f32 %v5840_v56, 0.0  ;;  %v6112_v39 = vmax.f32 %v5856_v5, 0.0  ;;  %v5532_v6 = vadd.f32 %v5173_v57, %v19060_v49  ;;  %6695 = vmatprep.subr.bf16.mxu1 %v14226_v0  ;;  %v19064_v56 = vld [vmem:[#allocation317_spill] sm:$0xff]  ;;  %v19065_v57 = vld [vmem:[#allocation318_spill] sm:$0xff] }
 0x3dd   : > { %v5857_v4 = vadd.f32 %v14332_v37, %v5517_v44  ;;  %v6095_v59 = vmax.f32 %v5839_v14, 0.0  ;;  %v14431_v33 = vpack.c.bf16 %v6110_v24, %v6094_v58  ;;  %v5531_v42 = vadd.f32 %v5062_v27, %v19062_v8  ;;  %v5175_v36 = vpop.f32.mrf.mxu1  ;;  %v5064_v20 = vpop.f32.mrf.mxu0  ;;  %v19068_v58 = vld [vmem:[#allocation5_spill] sm:$0xff]  ;;  %v19072_v27 = vld [vmem:[#allocation244_spill] sm:$0xff] }
 0x3de   : > { %v6111_v47 = vmax.f32 %v5855_v7, 0.0  ;;  %v6097_v3 = vmax.f32 %v5841_v62, 0.0  ;;  %v14434_v35 = vpack.c.bf16 %v6112_v39, %v6096_v15  ;;  %v5533_v5 = vadd.f32 %v5175_v36, %v19064_v56  ;;  %v19067_v62 = vld [vmem:[#allocation206_spill] sm:$0xff]  ;;  %v19069_v15 = vld [vmem:[#allocation80_spill] sm:$0xff]  ;;  %v19073_v56 = vld [vmem:[#allocation319_spill] sm:$0xff] }
 0x3df   : > { %19061 = vst [vmem:[#allocation148_spill] sm:$0xff] %v14431_v33  ;;  %v6113_v10 = vmax.f32 %v5857_v4, 0.0  ;;  %6623 = vmatpush1.bf16.msra.mxu0 %v14201_v18  ;;  %v5870_v44 = vadd.f32 %v14284_v23, %v5530_v2  ;;  %v5546_v49 = vadd.f32 %v5064_v20, %v19065_v57  ;;  %v5177_v14 = vpop.f32.mrf.mxu1  ;;  %6696 = vmatpush1.bf16.msra.mxu1 %v14209_v12  ;;  %v5066_v2 = vpop.f32.mrf.mxu0  ;;  %v19071_v20 = vld [vmem:[#allocation207_spill] sm:$0xff] }
 0x3e0   : > { %19063 = vst [vmem:[#allocation390_spill] sm:$0xff] %v14434_v35  ;;  %6624 = vmatprep.subr.bf16.mxu0 %v14173_v34  ;;  %v14442_v8 = vpack.c.bf16 %v6111_v47, %v6095_v59  ;;  %v14446_v24 = vadd.f32 %v19068_v58, %v19067_v62  ;;  %v5872_v7 = vadd.f32 %v14313_v17, %v5532_v6  ;;  %v19074_v58 = vld [vmem:[#allocation208_spill] sm:$0xff]  ;;  %v19075_v6 = vld [vmem:[#allocation6_spill] sm:$0xff] }
 0x3e1   : > { %v5548_v39 = vadd.f32 %v5177_v14, %v19069_v15  ;;  %6697 = vmatprep.subr.bf16.mxu1 %v14181_v50  ;;  %v14451_v4 = vpack.c.bf16 %v6113_v10, %v6097_v3  ;;  %v14455_v36 = vadd.f32 %v19072_v27, %v19071_v20  ;;  %v5871_v59 = vadd.f32 %v14322_v28, %v5531_v42  ;;  %v5179_v62 = vpop.f32.mrf.mxu1  ;;  %v19076_v3 = vld [vmem:[#allocation81_spill] sm:$0xff]  ;;  %v5070_v50 = vpop.f32.mrf.mxu0  ;;  %v19077_v27 = vld [vmem:[#allocation82_spill] sm:$0xff] }
 0x3e2   : > { %19066 = vst [vmem:[#allocation149_spill] sm:$0xff] %v14442_v8  ;;  %v5886_v47 = vadd.f32 %v14284_v23, %v5546_v49  ;;  %v5547_v57 = vadd.f32 %v5066_v2, %v19073_v56  ;;  %v14462_v34 = vadd.f32 %v19075_v6, %v19074_v58  ;;  %v5873_v14 = vadd.f32 %v14332_v37, %v5533_v5  ;;  %v19078_v6 = vld [vmem:[#allocation321_spill] sm:$0xff] }
 0x3e3   : > { %19070 = vst [vmem:[#allocation391_spill] sm:$0xff] %v14451_v4  ;;  %v5888_v10 = vadd.f32 %v14313_v17, %v5548_v39  ;;  %v5549_v15 = vadd.f32 %v5179_v62, %v19076_v3  ;;  %6625 = vmatpush1.bf16.msra.mxu0 %v14154_v55  ;;  %v6126_v20 = vmax.f32 %v5870_v44, 0.0  ;;  %v5562_v2 = vadd.f32 %v5070_v50, %v19077_v27  ;;  %v5183_v56 = vpop.f32.mrf.mxu1  ;;  %v5072_v3 = vpop.f32.mrf.mxu0  ;;  %v19080_v55 = vld [vmem:[#allocation83_spill] sm:$0xff] }
 0x3e4   : > { %v6142_v42 = vmax.f32 %v5886_v47, 0.0  ;;  %v5887_v49 = vadd.f32 %v14322_v28, %v5547_v57  ;;  %6698 = vmatpush1.bf16.msra.mxu1 %v14162_v25  ;;  %6626 = vmatprep.subr.bf16.mxu0 %v14121_v22  ;;  %v6128_v58 = vmax.f32 %v5872_v7, 0.0  ;;  %v5564_v62 = vadd.f32 %v5183_v56, %v19078_v6  ;;  %v19082_v7 = vld [vmem:[#allocation322_spill] sm:$0xff]  ;;  %v19083_v56 = vld [vmem:[#allocation84_spill] sm:$0xff] }
 0x3e5   : > { %v6144_v5 = vmax.f32 %v5888_v10, 0.0  ;;  %v5889_v39 = vadd.f32 %v14332_v37, %v5549_v15  ;;  %6699 = vmatprep.subr.bf16.mxu1 %v14130_v46  ;;  %v6127_v44 = vmax.f32 %v5871_v59, 0.0  ;;  %v5563_v50 = vadd.f32 %v5072_v3, %v19080_v55  ;;  %v5185_v27 = vpop.f32.mrf.mxu1  ;;  %v5074_v18 = vpop.f32.mrf.mxu0  ;;  %v19091_v3 = vld [vmem:[#allocation7_spill] sm:$0xff] }
 0x3e6   : > { %v14475_v47 = vpack.c.bf16 %v6142_v42, %v6126_v20  ;;  %v6143_v57 = vmax.f32 %v5887_v49, 0.0  ;;  %v6129_v12 = vmax.f32 %v5873_v14, 0.0  ;;  %v5565_v10 = vadd.f32 %v5185_v27, %v19082_v7  ;;  %v19085_v14 = vld [vmem:[#allocation209_spill] sm:$0xff] }
 0x3e7   : > { %v14478_v25 = vpack.c.bf16 %v6144_v5, %v6128_v58  ;;  %v6145_v22 = vmax.f32 %v5889_v39, 0.0  ;;  %6627 = vmatpush1.bf16.msra.mxu0 %v14110_v29  ;;  %v5902_v15 = vadd.f32 %v14284_v23, %v5562_v2  ;;  %v5578_v6 = vadd.f32 %v5074_v18, %v19083_v56  ;;  %v5187_v59 = vpop.f32.mrf.mxu1  ;;  %v19086_v20 = vld [vmem:[#allocation245_spill] sm:$0xff]  ;;  %v19088_v58 = vld [vmem:[#allocation323_spill] sm:$0xff]  ;;  %v5076_v2 = vpop.f32.mrf.mxu0  ;;  %v19090_v18 = vld [vmem:[#allocation210_spill] sm:$0xff] }
 0x3e8   : > { %19079 = vst [vmem:[#allocation150_spill] sm:$0xff] %v14475_v47  ;;  %6700 = vmatpush1.bf16.msra.mxu1 %v14113_v60  ;;  %6628 = vmatprep.subr.bf16.mxu0 %v14077_v45  ;;  %v14486_v55 = vpack.c.bf16 %v6143_v57, %v6127_v44  ;;  %v14490_v42 = vadd.f32 %v19086_v20, %v19085_v14  ;;  %v19093_v7 = vld [vmem:[#allocation85_spill] sm:$0xff]  ;;  %v19094_v20 = vld [vmem:[#allocation211_spill] sm:$0xff] }
 0x3e9   : > { %19081 = vst [vmem:[#allocation392_spill] sm:$0xff] %v14478_v25  ;;  %v5904_v49 = vadd.f32 %v14313_v17, %v5564_v62  ;;  %v5580_v5 = vadd.f32 %v5187_v59, %v19088_v58  ;;  %6701 = vmatprep.subr.bf16.mxu1 %v14086_v21  ;;  %v14495_v39 = vpack.c.bf16 %v6145_v22, %v6129_v12  ;;  %v5189_v14 = vpop.f32.mrf.mxu1  ;;  %v19095_v62 = vld [vmem:[#allocation248_spill] sm:$0xff]  ;;  %v5080_v21 = vpop.f32.mrf.mxu0 }
 0x3ea   : > { %19084 = vst [vmem:[#allocation151_spill] sm:$0xff] %v14486_v55  ;;  %19087 = vst [vmem:[#allocation393_spill] sm:$0xff] %v14490_v42  ;;  %v14499_v27 = vadd.f32 %v19091_v3, %v19090_v18  ;;  %v5903_v44 = vadd.f32 %v14322_v28, %v5563_v50  ;;  %v5918_v57 = vadd.f32 %v14284_v23, %v5578_v6  ;;  %v19097_v12 = vld [vmem:[#allocation324_spill] sm:$0xff]  ;;  %v6158_v18 = vmax.f32 %v5902_v15, 0.0  ;;  %v19098_v3 = vld [vmem:[#allocation86_spill] sm:$0xff] }
 0x3eb   : > { %19089 = vst [vmem:[#allocation152_spill] sm:$0xff] %v14495_v39  ;;  %v5579_v56 = vadd.f32 %v5076_v2, %v19093_v7  ;;  %v14506_v45 = vadd.f32 %v19095_v62, %v19094_v20  ;;  %v5905_v59 = vadd.f32 %v14332_v37, %v5565_v10  ;;  %v5920_v22 = vadd.f32 %v14313_v17, %v5580_v5  ;;  %v5193_v7 = vpop.f32.mrf.mxu1  ;;  %v19099_v62 = vld [vmem:[#allocation325_spill] sm:$0xff]  ;;  %v19185_v42 = vld [vmem:[#allocation31_spill] sm:$0xff] }
 0x3ec   : > { %19092 = vst [vmem:[#allocation394_spill] sm:$0xff] %v14499_v27  ;;  %v5581_v58 = vadd.f32 %v5189_v14, %v19097_v12  ;;  %6629 = vmatpush1.bf16.msra.mxu0 %v14066_v52  ;;  %v6174_v50 = vmax.f32 %v5918_v57, 0.0  ;;  %v5594_v2 = vadd.f32 %v5080_v21, %v19098_v3  ;;  %6702 = vmatpush1.bf16.msra.mxu1 %v14069_v1  ;;  %v6160_v20 = vmax.f32 %v5904_v49, 0.0  ;;  %v5082_v12 = vpop.f32.mrf.mxu0  ;;  %v19101_v52 = vld [vmem:[#allocation87_spill] sm:$0xff]  ;;  %v19103_v49 = vld [vmem:[#allocation326_spill] sm:$0xff] }
 0x3ed   : > { %19096 = vst [vmem:[#allocation153_spill] sm:$0xff] %v14506_v45  ;;  %v5919_v6 = vadd.f32 %v14322_v28, %v5579_v56  ;;  %6630 = vmatprep.subr.bf16.mxu0 %v14033_v53  ;;  %v6176_v10 = vmax.f32 %v5920_v22, 0.0  ;;  %v5596_v14 = vadd.f32 %v5193_v7, %v19099_v62  ;;  %6703 = vmatprep.subr.bf16.mxu1 %v14042_v13  ;;  %v6159_v15 = vmax.f32 %v5903_v44, 0.0  ;;  %v5195_v3 = vpop.f32.mrf.mxu1  ;;  %v19105_v7 = vld [vmem:[#allocation250_spill] sm:$0xff] }
 0x3ee   : > { %v5921_v5 = vadd.f32 %v14332_v37, %v5581_v58  ;;  %v14519_v57 = vpack.c.bf16 %v6174_v50, %v6158_v18  ;;  %v5595_v21 = vadd.f32 %v5082_v12, %v19101_v52  ;;  %v6161_v60 = vmax.f32 %v5905_v59, 0.0  ;;  %v5084_v29 = vpop.f32.mrf.mxu0  ;;  %v19104_v58 = vld [vmem:[#allocation212_spill] sm:$0xff]  ;;  %v19108_v59 = vld [vmem:[#allocation213_spill] sm:$0xff] }
 0x3ef   : > { %v6175_v56 = vmax.f32 %v5919_v6, 0.0  ;;  %v14522_v1 = vpack.c.bf16 %v6176_v10, %v6160_v20  ;;  %v5597_v22 = vadd.f32 %v5195_v3, %v19103_v49  ;;  %v14528_v62 = vadd.f32 %v19105_v7, %v19104_v58  ;;  %v5197_v50 = vpop.f32.mrf.mxu1  ;;  %v19109_v6 = vld [vmem:[#allocation14_spill] sm:$0xff] }
 0x3f0   : > { %19100 = vst [vmem:[#allocation395_spill] sm:$0xff] %v14519_v57  ;;  %v6177_v53 = vmax.f32 %v5921_v5, 0.0  ;;  %6631 = vmatpush1.bf16.msra.mxu0 %v14022_v32  ;;  %v5934_v44 = vadd.f32 %v14284_v23, %v5594_v2  ;;  %v5610_v18 = vadd.f32 %v5084_v29, %v13631_v19  ;;  %6704 = vmatpush1.bf16.msra.mxu1 %v14025_v63  ;;  %v19111_v5 = vld [vmem:[#allocation88_spill] sm:$0xff]  ;;  %v5086_v3 = vpop.f32.mrf.mxu0  ;;  %v19113_v58 = vld [vmem:[#allocation214_spill] sm:$0xff]  ;;  %v19114_v2 = vld [vmem:[#allocation255_spill] sm:$0xff] }
 0x3f1   : > { %19102 = vst [vmem:[#allocation154_spill] sm:$0xff] %v14522_v1  ;;  %19106 = vst [vmem:[#allocation396_spill] sm:$0xff] %v14528_v62  ;;  %v14533_v52 = vpack.c.bf16 %v6175_v56, %v6159_v15  ;;  %v14537_v20 = vadd.f32 %v19109_v6, %v19108_v59  ;;  %v5936_v10 = vadd.f32 %v14313_v17, %v5596_v14  ;;  %v19116_v15 = vld [vmem:[#allocation327_spill] sm:$0xff]  ;;  %v5199_v63 = vpop.f32.mrf.mxu1  ;;  %v19117_v59 = vld [vmem:[#allocation89_spill] sm:$0xff] }
 0x3f2   : > { %v5612_v12 = vadd.f32 %v5197_v50, %v19111_v5  ;;  %v14541_v49 = vpack.c.bf16 %v6177_v53, %v6161_v60  ;;  %v14545_v7 = vadd.f32 %v19114_v2, %v19113_v58  ;;  %v5935_v19 = vadd.f32 %v14322_v28, %v5595_v21  ;;  %v5090_v53 = vpop.f32.mrf.mxu0  ;;  %v19118_v5 = vld [vmem:[#allocation329_spill] sm:$0xff] }
 0x3f3   : > { %19107 = vst [vmem:[#allocation155_spill] sm:$0xff] %v14533_v52  ;;  %19110 = vst [vmem:[#allocation397_spill] sm:$0xff] %v14537_v20  ;;  %v5950_v29 = vadd.f32 %v14284_v23, %v5610_v18  ;;  %v5611_v56 = vadd.f32 %v5086_v3, %v19116_v15  ;;  %6649 = vmatmul.mubr.bf16.vlgmr.msra.gmra.mxu0 %v14160_v40  ;;  %v5937_v14 = vadd.f32 %v14332_v37, %v5597_v22  ;;  %v5203_v58 = vpop.f32.mrf.mxu1  ;;  %v19119_v15 = vld [vmem:[#allocation90_spill] sm:$0xff]  ;;  %v19147_v20 = vld [vmem:[#allocation265_spill] sm:$0xff] }
 0x3f4   : > { %19112 = vst [vmem:[#allocation156_spill] sm:$0xff] %v14541_v49  ;;  %19115 = vst [vmem:[#allocation398_spill] sm:$0xff] %v14545_v7  ;;  %v5952_v50 = vadd.f32 %v14313_v17, %v5612_v12  ;;  %v5613_v60 = vadd.f32 %v5199_v63, %v19117_v59  ;;  %6722 = vmatmul.mubr.bf16.vlgmr.msra.gmra.mxu1 %v14160_v40  ;;  %6658 = vmatprep.mubr.bf16.mxu0 %v17850_v16  ;;  %v6190_v6 = vmax.f32 %v5934_v44, 0.0  ;;  %v5092_v59 = vpop.f32.mrf.mxu0  ;;  %v19121_v44 = vld [vmem:[#allocation330_spill] sm:$0xff] }
 0x3f5   : > { %v6206_v21 = vmax.f32 %v5950_v29, 0.0  ;;  %v5951_v18 = vadd.f32 %v14322_v28, %v5611_v56  ;;  %v5626_v3 = vadd.f32 %v5090_v53, %v19118_v5  ;;  %6731 = vmatprep.mubr.bf16.mxu1 %v17850_v16  ;;  %v6192_v2 = vmax.f32 %v5936_v10, 0.0  ;;  %v5205_v46 = vpop.f32.mrf.mxu1  ;;  %v19123_v5 = vld [vmem:[#allocation91_spill] sm:$0xff] }
 0x3f6   : > { %v6208_v22 = vmax.f32 %v5952_v50, 0.0  ;;  %v5953_v12 = vadd.f32 %v14332_v37, %v5613_v60  ;;  %v5628_v63 = vadd.f32 %v5203_v58, %v19119_v15  ;;  %v6191_v32 = vmax.f32 %v5935_v19, 0.0  ;;  %v5094_v10 = vpop.f32.mrf.mxu0  ;;  %v19124_v50 = vld [vmem:[#allocation215_spill] sm:$0xff]  ;;  %v19129_v15 = vld [vmem:[#allocation216_spill] sm:$0xff] }
 0x3f7   : > { %v14561_v40 = vpack.c.bf16 %v6206_v21, %v6190_v6  ;;  %v6207_v13 = vmax.f32 %v5951_v18, 0.0  ;;  %v5627_v29 = vadd.f32 %v5092_v59, %v19121_v44  ;;  %v6193_v56 = vmax.f32 %v5937_v14, 0.0  ;;  %v19127_v19 = vld [vmem:[#allocation331_spill] sm:$0xff]  ;;  %v5207_v21 = vpop.f32.mrf.mxu1  ;;  %v19130_v59 = vld [vmem:[#allocation260_spill] sm:$0xff] }
 0x3f8   : > { %v14564_v0 = vpack.c.bf16 %v6208_v22, %v6192_v2  ;;  %v6209_v53 = vmax.f32 %v5953_v12, 0.0  ;;  %v5629_v30 = vadd.f32 %v5205_v46, %v19123_v5  ;;  %v14569_v60 = vadd.f32 %v19125_v41, %v19124_v50  ;;  %v19132_v22 = vld [vmem:[#allocation93_spill] sm:$0xff]  ;;  %v5096_v12 = vpop.f32.mrf.mxu0  ;;  %v19135_v5 = vld [vmem:[#allocation24_spill] sm:$0xff] }
 0x3f9   : > { %19120 = vst [vmem:[#allocation157_spill] sm:$0xff] %v14561_v40  ;;  %v5966_v58 = vadd.f32 %v14284_v23, %v5626_v3  ;;  %v5642_v6 = vadd.f32 %v5094_v10, %v19127_v19  ;;  %v14573_v18 = vpack.c.bf16 %v6207_v13, %v6191_v32  ;;  %v14577_v14 = vadd.f32 %v19130_v59, %v19129_v15  ;;  %v19134_v41 = vld [vmem:[#allocation217_spill] sm:$0xff]  ;;  %v19137_v13 = vld [vmem:[#allocation94_spill] sm:$0xff]  ;;  %v5209_v19 = vpop.f32.mrf.mxu1  ;;  %v19139_v59 = vld [vmem:[#allocation95_spill] sm:$0xff] }
 0x3fa   : > { %19122 = vst [vmem:[#allocation399_spill] sm:$0xff] %v14564_v0  ;;  %19126 = vst [vmem:[#allocation158_spill] sm:$0xff] %v14569_v60  ;;  %v5968_v2 = vadd.f32 %v14313_v17, %v5628_v63  ;;  %v5644_v46 = vadd.f32 %v5207_v21, %v19132_v22  ;;  %v14581_v44 = vpack.c.bf16 %v6209_v53, %v6193_v56  ;;  %v19138_v15 = vld [vmem:[#allocation134_spill] sm:$0xff]  ;;  %v5100_v53 = vpop.f32.mrf.mxu0 }
 0x3fb   : > { %19128 = vst [vmem:[#allocation400_spill] sm:$0xff] %v14573_v18  ;;  %19131 = vst [vmem:[#allocation159_spill] sm:$0xff] %v14577_v14  ;;  %v14585_v50 = vadd.f32 %v19135_v5, %v19134_v41  ;;  %v5967_v3 = vadd.f32 %v14322_v28, %v5627_v29  ;;  %v5982_v32 = vadd.f32 %v14284_v23, %v5642_v6  ;;  %6659 = vmatmul.mubr.bf16.gmra.mxu0 %v19138_v15  ;;  %v19140_v41 = vld [vmem:[#allocation335_spill] sm:$0xff]  ;;  %v5213_v5 = vpop.f32.mrf.mxu1 }
 0x3fc   : > { %19133 = vst [vmem:[#allocation401_spill] sm:$0xff] %v14581_v44  ;;  %v5643_v10 = vadd.f32 %v5096_v12, %v19137_v13  ;;  %v5969_v63 = vadd.f32 %v14332_v37, %v5629_v30  ;;  %v5984_v21 = vadd.f32 %v14313_v17, %v5644_v46  ;;  %v5645_v56 = vadd.f32 %v5209_v19, %v19139_v59  ;;  %v5102_v59 = vpop.f32.mrf.mxu0 }
 0x3fd   : > { %19136 = vst [vmem:[#allocation160_spill] sm:$0xff] %v14585_v50  ;;  %6732 = vmatmul.mubr.bf16.gmra.mxu1 %v19138_v15  ;;  %6668 = vmatprep.mubr.bf16.mxu0 %v17850_v16  ;;  %v6222_v22 = vmax.f32 %v5966_v58, 0.0  ;;  %v6238_v29 = vmax.f32 %v5982_v32, 0.0  ;;  %v5658_v12 = vadd.f32 %v5100_v53, %v19140_v41  ;;  %v6224_v13 = vmax.f32 %v5968_v2, 0.0  ;;  %v19141_v50 = vld [vmem:[#allocation97_spill] sm:$0xff]  ;;  %v19143_v58 = vld [vmem:[#allocation98_spill] sm:$0xff]  ;;  %v5215_v60 = vpop.f32.mrf.mxu1 }
 0x3fe   : > { %v5983_v6 = vadd.f32 %v14322_v28, %v5643_v10  ;;  %6741 = vmatprep.mubr.bf16.mxu1 %v17850_v16  ;;  %v6240_v30 = vmax.f32 %v5984_v21, 0.0  ;;  %v5985_v46 = vadd.f32 %v14332_v37, %v5645_v56  ;;  %v5660_v19 = vadd.f32 %v5213_v5, %v19141_v50  ;;  %v19145_v41 = vld [vmem:[#allocation99_spill] sm:$0xff]  ;;  %v5104_v2 = vpop.f32.mrf.mxu0  ;;  %v19146_v21 = vld [vmem:[#allocation218_spill] sm:$0xff] }
 0x3ff   : > { %v6223_v14 = vmax.f32 %v5967_v3, 0.0  ;;  %v14601_v15 = vpack.c.bf16 %v6238_v29, %v6222_v22  ;;  %v5659_v32 = vadd.f32 %v5102_v59, %v19143_v58  ;;  %v6225_v10 = vmax.f32 %v5969_v63, 0.0  ;;  %v19149_v3 = vld [vmem:[#allocation340_spill] sm:$0xff]  ;;  %v5217_v29 = vpop.f32.mrf.mxu1  ;;  %v19151_v5 = vld [vmem:[#allocation219_spill] sm:$0xff]  ;;  %v19152_v59 = vld [vmem:[#allocation29_spill] sm:$0xff] }
 0x400   : > { %v6239_v31 = vmax.f32 %v5983_v6, 0.0  ;;  %v14604_v38 = vpack.c.bf16 %v6240_v30, %v6224_v13  ;;  %v6241_v53 = vmax.f32 %v5985_v46, 0.0  ;;  %v5661_v7 = vadd.f32 %v5215_v60, %v19145_v41  ;;  %v19154_v30 = vld [vmem:[#allocation101_spill] sm:$0xff]  ;;  %v5106_v46 = vpop.f32.mrf.mxu0  ;;  %v19156_v41 = vld [vmem:[#allocation102_spill] sm:$0xff] }
 0x401   : > { %19142 = vst [vmem:[#allocation402_spill] sm:$0xff] %v14601_v15  ;;  %v14609_v56 = vadd.f32 %v19147_v20, %v19146_v21  ;;  %v5998_v50 = vadd.f32 %v14284_v23, %v5658_v12  ;;  %v5674_v22 = vadd.f32 %v5104_v2, %v19149_v3  ;;  %v14617_v63 = vadd.f32 %v19152_v59, %v19151_v5  ;;  %v5219_v21 = vpop.f32.mrf.mxu1  ;;  %v19159_v3 = vld [vmem:[#allocation139_spill] sm:$0xff]  ;;  %v19160_v5 = vld [vmem:[#allocation138_spill] sm:$0xff] }
 0x402   : > { %19144 = vst [vmem:[#allocation161_spill] sm:$0xff] %v14604_v38  ;;  %v14613_v6 = vpack.c.bf16 %v6239_v31, %v6223_v14  ;;  %v6000_v13 = vadd.f32 %v14313_v17, %v5660_v19  ;;  %v5676_v60 = vadd.f32 %v5217_v29, %v19154_v30  ;;  %v14621_v58 = vpack.c.bf16 %v6241_v53, %v6225_v10  ;;  %v19157_v31 = vld [vmem:[#allocation289_spill] sm:$0xff]  ;;  %v19161_v10 = vld [vmem:[#allocation103_spill] sm:$0xff]  ;;  %v5110_v59 = vpop.f32.mrf.mxu0 }
 0x403   : > { %19148 = vst [vmem:[#allocation403_spill] sm:$0xff] %v14609_v56  ;;  %19153 = vst [vmem:[#allocation404_spill] sm:$0xff] %v14617_v63  ;;  %v5999_v20 = vadd.f32 %v14322_v28, %v5659_v32  ;;  %v6014_v12 = vadd.f32 %v14284_v23, %v5674_v22  ;;  %v5675_v2 = vadd.f32 %v5106_v46, %v19156_v41  ;;  %v19158_v14 = vsub.s32 4, %v19157_v31  ;;  %v19162_v46 = vld [vmem:[#allocation344_spill] sm:$0xff] }
 0x404   : > { %19150 = vst [vmem:[#allocation162_spill] sm:$0xff] %v14613_v6  ;;  %19155 = vst [vmem:[#allocation163_spill] sm:$0xff] %v14621_v58  ;;  %6669 = vmatmul.mubr.bf16.gmra.mxu0 %v19160_v5  ;;  %v6001_v19 = vadd.f32 %v14332_v37, %v5661_v7  ;;  %v6016_v29 = vadd.f32 %v14313_v17, %v5676_v60  ;;  %v5677_v53 = vadd.f32 %v5219_v21, %v19161_v10  ;;  %v5112_v10 = vpop.f32.mrf.mxu0 }
 0x405   : > { %v14629_v56 = vrot.slane %v19159_v3, %v19158_v14  ;;  %6742 = vmatmul.mubr.bf16.gmra.mxu1 %v19160_v5  ;;  %6678 = vmatprep.mubr.bf16.mxu0 %v17850_v16  ;;  %v6254_v32 = vmax.f32 %v5998_v50, 0.0  ;;  %v6270_v22 = vmax.f32 %v6014_v12, 0.0  ;;  %v6015_v30 = vadd.f32 %v14322_v28, %v5675_v2  ;;  %v5223_v14 = vpop.f32.mrf.mxu1  ;;  %v19165_v50 = vld [vmem:[#allocation106_spill] sm:$0xff] }
 0x406   : > { %v5690_v41 = vadd.f32 %v5110_v59, %v19162_v46  ;;  %6751 = vmatprep.mubr.bf16.mxu1 %v17850_v16  ;;  %v6256_v63 = vmax.f32 %v6000_v13, 0.0  ;;  %v6272_v7 = vmax.f32 %v6016_v29, 0.0  ;;  %v6017_v60 = vadd.f32 %v14332_v37, %v5677_v53  ;;  %v19167_v46 = vld [vmem:[#allocation107_spill] sm:$0xff]  ;;  %v5114_v13 = vpop.f32.mrf.mxu0  ;;  %v19168_v53 = vld [vmem:[#allocation349_spill] sm:$0xff] }
 0x407   : > { %v5692_v21 = vadd.f32 %v5223_v14, %v19163_v51  ;;  %v6255_v62 = vmax.f32 %v5999_v20, 0.0  ;;  %v14642_v5 = vpack.c.bf16 %v6270_v22, %v6254_v32  ;;  %v6271_v61 = vmax.f32 %v6015_v30, 0.0  ;;  %v5225_v35 = vpop.f32.mrf.mxu1 }
 0x408   : > { %v5691_v12 = vadd.f32 %v5112_v10, %v19165_v50  ;;  %v6257_v2 = vmax.f32 %v6001_v19, 0.0  ;;  %v14645_v45 = vpack.c.bf16 %v6272_v7, %v6256_v63  ;;  %v6273_v59 = vmax.f32 %v6017_v60, 0.0  ;;  %v19171_v63 = vld [vmem:[#allocation109_spill] sm:$0xff]  ;;  %v5116_v14 = vpop.f32.mrf.mxu0  ;;  %v19174_v50 = vld [vmem:[#allocation110_spill] sm:$0xff] }
 0x409   : > { %19164 = vst [vmem:[#allocation405_spill] sm:$0xff] %v14642_v5  ;;  %v5693_v33 = vadd.f32 %v5225_v35, %v19167_v46  ;;  %v6030_v29 = vadd.f32 %v14284_v23, %v5690_v41  ;;  %v5706_v27 = vadd.f32 %v5114_v13, %v19168_v53  ;;  %v5227_v51 = vpop.f32.mrf.mxu1  ;;  %v19169_v20 = vsub.s32 6, %v19157_v31  ;;  %v19176_v13 = vld [vmem:[#allocation142_spill] sm:$0xff] }
 0x40a   : > { %19166 = vst [vmem:[#allocation164_spill] sm:$0xff] %v14645_v45  ;;  %v14655_v22 = vpack.c.bf16 %v6271_v61, %v6255_v62  ;;  %v6032_v19 = vadd.f32 %v14313_v17, %v5692_v21  ;;  %v5708_v30 = vadd.f32 %v5227_v51, %v19171_v63  ;;  %v19172_v35 = vsub.s32 5, %v19157_v31 }
 0x40b   : > { %v14653_v32 = vrot.slane %v19159_v3, %v19169_v20  ;;  %v14664_v41 = vpack.c.bf16 %v6273_v59, %v6257_v2  ;;  %v6031_v60 = vadd.f32 %v14322_v28, %v5691_v12  ;;  %v6046_v10 = vadd.f32 %v14284_v23, %v5706_v27  ;;  %v5229_v61 = vpop.f32.mrf.mxu1  ;;  %v19177_v2 = vld [vmem:[#allocation111_spill] sm:$0xff]  ;;  %v5266_v20 = vpop.f32.mrf.mxu0  ;;  %v19178_v12 = vld [vmem:[#allocation113_spill] sm:$0xff] }
 0x40c   : > { %19170 = vst [vmem:[#allocation406_spill] sm:$0xff] %v14655_v22  ;;  %v14662_v7 = vrot.slane %v19159_v3, %v19172_v35  ;;  %v5707_v46 = vadd.f32 %v5116_v14, %v19174_v50  ;;  %v19175_v62 = vsub.s32 7, %v19157_v31  ;;  %6679 = vmatmul.mubr.bf16.gmra.mxu0 %v19176_v13  ;;  %v6033_v53 = vadd.f32 %v14332_v37, %v5693_v33 }
 0x40d   : > { %19173 = vst [vmem:[#allocation165_spill] sm:$0xff] %v14664_v41  ;;  %v6048_v51 = vadd.f32 %v14313_v17, %v5708_v30  ;;  %v5709_v59 = vadd.f32 %v5229_v61, %v19177_v2  ;;  %6752 = vmatmul.mubr.bf16.gmra.mxu1 %v19176_v13  ;;  %6794 = vmatprep.mubr.bf16.mxu0 %v17850_v16  ;;  %v6286_v23 = vmax.f32 %v6030_v29, 0.0  ;;  %v6302_v27 = vmax.f32 %v6046_v10, 0.0  ;;  %v5379_v63 = vpop.f32.mrf.mxu1  ;;  %v19179_v30 = vld [vmem:[#allocation117_spill] sm:$0xff]  ;;  %v5268_v50 = vpop.f32.mrf.mxu0  ;;  %v19181_v29 = vld [vmem:[#allocation118_spill] sm:$0xff] }
 0x40e   : > { %v14672_v21 = vrot.slane %v19159_v3, %v19175_v62  ;;  %v6047_v31 = vadd.f32 %v14322_v28, %v5707_v46  ;;  %v5470_v3 = vadd.f32 %v5266_v20, %v19178_v12  ;;  %6867 = vmatprep.mubr.bf16.mxu1 %v17850_v16  ;;  %v6288_v14 = vmax.f32 %v6032_v19, 0.0  ;;  %v19183_v12 = vld [vmem:[#allocation119_spill] sm:$0xff] }
 0x40f   : > { %v6304_v33 = vmax.f32 %v6048_v51, 0.0  ;;  %v6049_v17 = vadd.f32 %v14332_v37, %v5709_v59  ;;  %v5472_v35 = vadd.f32 %v5379_v63, %v19179_v30  ;;  %v6287_v61 = vmax.f32 %v6031_v60, 0.0  ;;  %v5381_v2 = vpop.f32.mrf.mxu1  ;;  %v5270_v19 = vpop.f32.mrf.mxu0  ;;  %v19184_v51 = vld [vmem:[#allocation220_spill] sm:$0xff]  ;;  %v19186_v60 = vld [vmem:[#allocation121_spill] sm:$0xff] }
 0x410   : > { %v14685_v62 = vpack.c.bf16 %v6302_v27, %v6286_v23  ;;  %v6303_v13 = vmax.f32 %v6047_v31, 0.0  ;;  %v5471_v10 = vadd.f32 %v5268_v50, %v19181_v29  ;;  %v6289_v28 = vmax.f32 %v6033_v53, 0.0  ;;  %v19187_v63 = vld [vmem:[#allocation221_spill] sm:$0xff]  ;;  %v19188_v30 = vld [vmem:[#allocation272_spill] sm:$0xff] }
 0x411   : > { %v14688_v46 = vpack.c.bf16 %v6304_v33, %v6288_v14  ;;  %v6305_v20 = vmax.f32 %v6049_v17, 0.0  ;;  %v5473_v16 = vadd.f32 %v5381_v2, %v19183_v12  ;;  %v14693_v37 = vadd.f32 %v19185_v42, %v19184_v51  ;;  %v5383_v27 = vpop.f32.mrf.mxu1  ;;  %v19189_v33 = vld [vmem:[#allocation122_spill] sm:$0xff]  ;;  %v5272_v50 = vpop.f32.mrf.mxu0  ;;  %v19192_v2 = vld [vmem:[#allocation36_spill] sm:$0xff] }
 0x412   : > { %19180 = vst [vmem:[#allocation407_spill] sm:$0xff] %v14685_v62  ;;  %v5810_v59 = vadd.f32 %v14629_v56, %v5470_v3  ;;  %v5486_v23 = vadd.f32 %v5270_v19, %v19186_v60  ;;  %v14697_v31 = vpack.c.bf16 %v6303_v13, %v6287_v61  ;;  %v14701_v53 = vadd.f32 %v19188_v30, %v19187_v63  ;;  %v19191_v42 = vld [vmem:[#allocation222_spill] sm:$0xff]  ;;  %v19193_v13 = vld [vmem:[#allocation364_spill] sm:$0xff]  ;;  %v19195_v30 = vld [vmem:[#allocation367_spill] sm:$0xff] }
 0x413   : > { %19182 = vst [vmem:[#allocation166_spill] sm:$0xff] %v14688_v46  ;;  %v5812_v14 = vadd.f32 %v14653_v32, %v5472_v35  ;;  %v5488_v17 = vadd.f32 %v5383_v27, %v19189_v33  ;;  %v14705_v29 = vpack.c.bf16 %v6305_v20, %v6289_v28  ;;  %v14709_v12 = vadd.f32 %v19192_v2, %v19191_v42  ;;  %v5385_v51 = vpop.f32.mrf.mxu1  ;;  %v19194_v27 = vld [vmem:[#allocation366_spill] sm:$0xff]  ;;  %v5276_v20 = vpop.f32.mrf.mxu0 }
 0x414   : > { %v5811_v3 = vadd.f32 %v14662_v7, %v5471_v10  ;;  %v5826_v61 = vadd.f32 %v14629_v56, %v5486_v23  ;;  %v5487_v19 = vadd.f32 %v5272_v50, %v19193_v13  ;;  %6762 = vmatprep.subr.bf16.mxu0 %v14697_v31  ;;  %v5813_v35 = vadd.f32 %v14672_v21, %v5473_v16  ;;  %v19196_v2 = vld [vmem:[#allocation126_spill] sm:$0xff] }
 0x415   : > { %19190 = vst [vmem:[#allocation408_spill] sm:$0xff] %v14705_v29  ;;  %v5828_v60 = vadd.f32 %v14653_v32, %v5488_v17  ;;  %v5489_v28 = vadd.f32 %v5385_v51, %v19194_v27  ;;  %6835 = vmatprep.subr.bf16.mxu1 %v14705_v29  ;;  %6763 = vmatpush1.bf16.msra.mxu0 %v14685_v62  ;;  %v6066_v63 = vmax.f32 %v5810_v59, 0.0  ;;  %v5389_v50 = vpop.f32.mrf.mxu1  ;;  %v6068_v16 = vmax.f32 %v5812_v14, 0.0  ;;  %v5278_v51 = vpop.f32.mrf.mxu0  ;;  %v19197_v27 = vld [vmem:[#allocation128_spill] sm:$0xff]  ;;  %v19198_v14 = vld [vmem:[#allocation129_spill] sm:$0xff] }
 0x416   : > { %v6082_v10 = vmax.f32 %v5826_v61, 0.0  ;;  %v5827_v23 = vadd.f32 %v14662_v7, %v5487_v19  ;;  %v5502_v33 = vadd.f32 %v5276_v20, %v19195_v30  ;;  %6836 = vmatpush1.bf16.msra.mxu1 %v14688_v46  ;;  %6764 = vmatprep.subr.bf16.mxu0 %v14655_v22  ;;  %v5504_v13 = vadd.f32 %v5389_v50, %v19196_v2  ;;  %v19199_v50 = vld [vmem:[#allocation371_spill] sm:$0xff] }
 0x417   : > { %v6084_v17 = vmax.f32 %v5828_v60, 0.0  ;;  %v5829_v42 = vadd.f32 %v14672_v21, %v5489_v28  ;;  %6837 = vmatprep.subr.bf16.mxu1 %v14664_v41  ;;  %v6067_v59 = vmax.f32 %v5811_v3, 0.0  ;;  %v5503_v20 = vadd.f32 %v5278_v51, %v19197_v27  ;;  %v5391_v30 = vpop.f32.mrf.mxu1  ;;  %v5280_v29 = vpop.f32.mrf.mxu0  ;;  %v19204_v27 = vld [vmem:[#allocation279_spill] sm:$0xff] }
 0x418   : > { %v14727_v61 = vpack.c.bf16 %v6082_v10, %v6066_v63  ;;  %v6083_v19 = vmax.f32 %v5827_v23, 0.0  ;;  %v6069_v62 = vmax.f32 %v5813_v35, 0.0  ;;  %v5505_v60 = vadd.f32 %v5391_v30, %v19198_v14  ;;  %v19200_v35 = vld [vmem:[#allocation223_spill] sm:$0xff]  ;;  %v19201_v10 = vld [vmem:[#allocation277_spill] sm:$0xff]  ;;  %v19205_v14 = vld [vmem:[#allocation132_spill] sm:$0xff] }
 0x419   : > { %v14730_v46 = vpack.c.bf16 %v6084_v17, %v6068_v16  ;;  %v6085_v22 = vmax.f32 %v5829_v42, 0.0  ;;  %6765 = vmatpush1.bf16.msra.mxu0 %v14642_v5  ;;  %v5842_v28 = vadd.f32 %v14629_v56, %v5502_v33  ;;  %v5518_v2 = vadd.f32 %v5280_v29, %v19199_v50  ;;  %v5393_v3 = vpop.f32.mrf.mxu1  ;;  %v19202_v17 = vld [vmem:[#allocation131_spill] sm:$0xff]  ;;  %v5282_v33 = vpop.f32.mrf.mxu0  ;;  %v19203_v29 = vld [vmem:[#allocation224_spill] sm:$0xff] }
 0x41a   : > { %6838 = vmatpush1.bf16.msra.mxu1 %v14645_v45  ;;  %6766 = vmatprep.subr.bf16.mxu0 %v14613_v6  ;;  %v14738_v63 = vpack.c.bf16 %v6083_v19, %v6067_v59  ;;  %v14742_v23 = vadd.f32 %v19201_v10, %v19200_v35  ;;  %v5844_v16 = vadd.f32 %v14653_v32, %v5504_v13  ;;  %v19206_v10 = vld [vmem:[#allocation225_spill] sm:$0xff]  ;;  %v19207_v13 = vld [vmem:[#allocation43_spill] sm:$0xff] }
 0x41b   : > { %v5520_v42 = vadd.f32 %v5393_v3, %v19202_v17  ;;  %6839 = vmatprep.subr.bf16.mxu1 %v14621_v58  ;;  %v14747_v51 = vpack.c.bf16 %v6085_v22, %v6069_v62  ;;  %v14751_v30 = vadd.f32 %v19204_v27, %v19203_v29  ;;  %v5843_v59 = vadd.f32 %v14662_v7, %v5503_v20  ;;  %v5395_v35 = vpop.f32.mrf.mxu1  ;;  %v19208_v62 = vld [vmem:[#allocation133_spill] sm:$0xff]  ;;  %v5286_v58 = vpop.f32.mrf.mxu0  ;;  %v19209_v27 = vld [vmem:[#allocation135_spill] sm:$0xff] }
 0x41c   : > { %v5858_v19 = vadd.f32 %v14629_v56, %v5518_v2  ;;  %v5519_v50 = vadd.f32 %v5282_v33, %v19205_v14  ;;  %v14758_v6 = vadd.f32 %v19207_v13, %v19206_v10  ;;  %v5845_v3 = vadd.f32 %v14672_v21, %v5505_v60  ;;  %v19210_v13 = vld [vmem:[#allocation136_spill] sm:$0xff] }
 0x41d   : > { %v5860_v22 = vadd.f32 %v14653_v32, %v5520_v42  ;;  %v5521_v17 = vadd.f32 %v5395_v35, %v19208_v62  ;;  %6767 = vmatpush1.bf16.msra.mxu0 %v14601_v15  ;;  %v6098_v29 = vmax.f32 %v5842_v28, 0.0  ;;  %v5534_v33 = vadd.f32 %v5286_v58, %v19209_v27  ;;  %v5399_v14 = vpop.f32.mrf.mxu1  ;;  %v5288_v62 = vpop.f32.mrf.mxu0  ;;  %v19211_v15 = vld [vmem:[#allocation137_spill] sm:$0xff] }
 0x41e   : > { %v6114_v20 = vmax.f32 %v5858_v19, 0.0  ;;  %v5859_v2 = vadd.f32 %v14662_v7, %v5519_v50  ;;  %6840 = vmatpush1.bf16.msra.mxu1 %v14604_v38  ;;  %6768 = vmatprep.subr.bf16.mxu0 %v14573_v18  ;;  %v6100_v10 = vmax.f32 %v5844_v16, 0.0  ;;  %v5536_v35 = vadd.f32 %v5399_v14, %v19210_v13  ;;  %v19212_v16 = vld [vmem:[#allocation381_spill] sm:$0xff]  ;;  %v19213_v14 = vld [vmem:[#allocation382_spill] sm:$0xff] }
 0x41f   : > { %v6116_v60 = vmax.f32 %v5860_v22, 0.0  ;;  %v5861_v42 = vadd.f32 %v14672_v21, %v5521_v17  ;;  %6841 = vmatprep.subr.bf16.mxu1 %v14581_v44  ;;  %v6099_v28 = vmax.f32 %v5843_v59, 0.0  ;;  %v5535_v58 = vadd.f32 %v5288_v62, %v19211_v15  ;;  %v5401_v27 = vpop.f32.mrf.mxu1  ;;  %v5290_v5 = vpop.f32.mrf.mxu0  ;;  %v19251_v44 = vld [vmem:[#allocation305_spill] sm:$0xff] }
 0x420   : > { %v14771_v19 = vpack.c.bf16 %v6114_v20, %v6098_v29  ;;  %v6115_v50 = vmax.f32 %v5859_v2, 0.0  ;;  %v6101_v45 = vmax.f32 %v5845_v3, 0.0  ;;  %v5537_v22 = vadd.f32 %v5401_v27, %v19212_v16  ;;  %v19214_v3 = vld [vmem:[#allocation226_spill] sm:$0xff]  ;;  %v19215_v29 = vld [vmem:[#allocation284_spill] sm:$0xff] }
 0x421   : > { %v14774_v38 = vpack.c.bf16 %v6116_v60, %v6100_v10  ;;  %v6117_v18 = vmax.f32 %v5861_v42, 0.0  ;;  %6769 = vmatpush1.bf16.msra.mxu0 %v14561_v40  ;;  %v5874_v17 = vadd.f32 %v14629_v56, %v5534_v33  ;;  %v5550_v13 = vadd.f32 %v5290_v5, %v19213_v14  ;;  %v5403_v59 = vpop.f32.mrf.mxu1  ;;  %v5292_v33 = vpop.f32.mrf.mxu0  ;;  %v19216_v5 = vld [vmem:[#allocation227_spill] sm:$0xff]  ;;  %v19217_v42 = vld [vmem:[#allocation48_spill] sm:$0xff] }
 0x422   : > { %6842 = vmatpush1.bf16.msra.mxu1 %v14564_v0  ;;  %6770 = vmatprep.subr.bf16.mxu0 %v14533_v52  ;;  %v14782_v15 = vpack.c.bf16 %v6115_v50, %v6099_v28  ;;  %v14786_v20 = vadd.f32 %v19215_v29, %v19214_v3  ;;  %v5876_v2 = vadd.f32 %v14653_v32, %v5536_v35  ;;  %v19218_v14 = vld [vmem:[#allocation228_spill] sm:$0xff]  ;;  %v19219_v35 = vld [vmem:[#allocation50_spill] sm:$0xff] }
 0x423   : > { %v5552_v10 = vadd.f32 %v5403_v59, %v14353_v54  ;;  %6843 = vmatprep.subr.bf16.mxu1 %v14541_v49  ;;  %v14791_v60 = vpack.c.bf16 %v6117_v18, %v6101_v45  ;;  %v14795_v62 = vadd.f32 %v19217_v42, %v19216_v5  ;;  %v5875_v28 = vadd.f32 %v14662_v7, %v5535_v58  ;;  %v5405_v16 = vpop.f32.mrf.mxu1  ;;  %v5296_v59 = vpop.f32.mrf.mxu0 }
 0x424   : > { %v5890_v50 = vadd.f32 %v14629_v56, %v5550_v13  ;;  %v5551_v27 = vadd.f32 %v5292_v33, %v14361_v9  ;;  %v14802_v3 = vadd.f32 %v19219_v35, %v19218_v14  ;;  %v5877_v54 = vadd.f32 %v14672_v21, %v5537_v22 }
 0x425   : > { %v5892_v45 = vadd.f32 %v14653_v32, %v5552_v10  ;;  %v5553_v18 = vadd.f32 %v5405_v16, %v14369_v26  ;;  %6771 = vmatpush1.bf16.msra.mxu0 %v14519_v57  ;;  %v6130_v29 = vmax.f32 %v5874_v17, 0.0  ;;  %v5566_v9 = vadd.f32 %v5296_v59, %v14402_v11  ;;  %v5409_v33 = vpop.f32.mrf.mxu1  ;;  %v5298_v42 = vpop.f32.mrf.mxu0 }
 0x426   : > { %v6146_v58 = vmax.f32 %v5890_v50, 0.0  ;;  %v5891_v13 = vadd.f32 %v14662_v7, %v5551_v27  ;;  %6844 = vmatpush1.bf16.msra.mxu1 %v14522_v1  ;;  %6772 = vmatprep.subr.bf16.mxu0 %v14486_v55  ;;  %v6132_v5 = vmax.f32 %v5876_v2, 0.0  ;;  %v5568_v26 = vadd.f32 %v5409_v33, %v14411_v48 }
 0x427   : > { %v6148_v22 = vmax.f32 %v5892_v45, 0.0  ;;  %v5893_v10 = vadd.f32 %v14672_v21, %v5553_v18  ;;  %6845 = vmatprep.subr.bf16.mxu1 %v14495_v39  ;;  %v6131_v17 = vmax.f32 %v5875_v28, 0.0  ;;  %v5567_v11 = vadd.f32 %v5298_v42, %v14418_v43  ;;  %v5411_v16 = vpop.f32.mrf.mxu1  ;;  %v5300_v45 = vpop.f32.mrf.mxu0 }
 0x428   : > { %v14815_v50 = vpack.c.bf16 %v6146_v58, %v6130_v29  ;;  %v6147_v27 = vmax.f32 %v5891_v13, 0.0  ;;  %v6133_v14 = vmax.f32 %v5877_v54, 0.0  ;;  %v5569_v2 = vadd.f32 %v5411_v16, %v14446_v24  ;;  %v19220_v54 = vld [vmem:[#allocation229_spill] sm:$0xff] }
 0x429   : > { %v14818_v35 = vpack.c.bf16 %v6148_v22, %v6132_v5  ;;  %v6149_v59 = vmax.f32 %v5893_v10, 0.0  ;;  %6773 = vmatpush1.bf16.msra.mxu0 %v14475_v47  ;;  %v5906_v48 = vadd.f32 %v14629_v56, %v5566_v9  ;;  %v5582_v18 = vadd.f32 %v5300_v45, %v14455_v36  ;;  %v5413_v28 = vpop.f32.mrf.mxu1  ;;  %v19221_v29 = vld [vmem:[#allocation53_spill] sm:$0xff]  ;;  %v5302_v9 = vpop.f32.mrf.mxu0  ;;  %v19222_v36 = vld [vmem:[#allocation230_spill] sm:$0xff]  ;;  %v19225_v45 = vld [vmem:[#allocation231_spill] sm:$0xff] }
 0x42a   : > { %6846 = vmatpush1.bf16.msra.mxu1 %v14478_v25  ;;  %6774 = vmatprep.subr.bf16.mxu0 %v14442_v8  ;;  %v14826_v43 = vpack.c.bf16 %v6147_v27, %v6131_v17  ;;  %v14830_v58 = vadd.f32 %v19221_v29, %v19220_v54  ;;  %v5908_v24 = vadd.f32 %v14653_v32, %v5568_v26  ;;  %v19223_v5 = vld [vmem:[#allocation294_spill] sm:$0xff]  ;;  %v19224_v17 = vld [vmem:[#allocation393_spill] sm:$0xff]  ;;  %v19232_v25 = vld [vmem:[#allocation396_spill] sm:$0xff] }
 0x42b   : > { %v5584_v13 = vadd.f32 %v5413_v28, %v14462_v34  ;;  %6847 = vmatprep.subr.bf16.mxu1 %v14451_v4  ;;  %v14835_v33 = vpack.c.bf16 %v6149_v59, %v6133_v14  ;;  %v14839_v22 = vadd.f32 %v19223_v5, %v19222_v36  ;;  %v5907_v10 = vadd.f32 %v14662_v7, %v5567_v11  ;;  %v5415_v16 = vpop.f32.mrf.mxu1  ;;  %v19226_v26 = vld [vmem:[#allocation58_spill] sm:$0xff]  ;;  %v5306_v29 = vpop.f32.mrf.mxu0  ;;  %v19228_v36 = vld [vmem:[#allocation148_spill] sm:$0xff]  ;;  %v19229_v4 = vld [vmem:[#allocation153_spill] sm:$0xff] }
 0x42c   : > { %v5922_v42 = vadd.f32 %v14629_v56, %v5582_v18  ;;  %v5583_v27 = vadd.f32 %v5302_v9, %v19224_v17  ;;  %v14846_v54 = vadd.f32 %v19226_v26, %v19225_v45  ;;  %v5909_v34 = vadd.f32 %v14672_v21, %v5569_v2  ;;  %v19227_v59 = vld [vmem:[#allocation394_spill] sm:$0xff]  ;;  %v19231_v45 = vld [vmem:[#allocation147_spill] sm:$0xff]  ;;  %v19234_v47 = vld [vmem:[#allocation397_spill] sm:$0xff] }
 0x42d   : > { %v5924_v14 = vadd.f32 %v14653_v32, %v5584_v13  ;;  %v5585_v28 = vadd.f32 %v5415_v16, %v19227_v59  ;;  %6775 = vmatpush1.bf16.msra.mxu0 %v19228_v36  ;;  %v6162_v5 = vmax.f32 %v5906_v48, 0.0  ;;  %v5598_v9 = vadd.f32 %v5306_v29, %v19229_v4  ;;  %v5419_v17 = vpop.f32.mrf.mxu1  ;;  %v19230_v8 = vld [vmem:[#allocation390_spill] sm:$0xff]  ;;  %v19233_v59 = vld [vmem:[#allocation389_spill] sm:$0xff]  ;;  %v5308_v36 = vpop.f32.mrf.mxu0 }
 0x42e   : > { %v6178_v11 = vmax.f32 %v5922_v42, 0.0  ;;  %v5923_v18 = vadd.f32 %v14662_v7, %v5583_v27  ;;  %6848 = vmatpush1.bf16.msra.mxu1 %v19230_v8  ;;  %6776 = vmatprep.subr.bf16.mxu0 %v19231_v45  ;;  %v6164_v26 = vmax.f32 %v5908_v24, 0.0  ;;  %v5600_v16 = vadd.f32 %v5419_v17, %v19232_v25  ;;  %v19235_v24 = vld [vmem:[#allocation398_spill] sm:$0xff]  ;;  %v19237_v25 = vld [vmem:[#allocation232_spill] sm:$0xff] }
 0x42f   : > { %v6180_v2 = vmax.f32 %v5924_v14, 0.0  ;;  %v5925_v13 = vadd.f32 %v14672_v21, %v5585_v28  ;;  %6849 = vmatprep.subr.bf16.mxu1 %v19233_v59  ;;  %v6163_v48 = vmax.f32 %v5907_v10, 0.0  ;;  %v5599_v4 = vadd.f32 %v5308_v36, %v19234_v47  ;;  %v5421_v29 = vpop.f32.mrf.mxu1  ;;  %v5310_v55 = vpop.f32.mrf.mxu0  ;;  %v19236_v28 = vld [vmem:[#allocation146_spill] sm:$0xff]  ;;  %v19240_v47 = vld [vmem:[#allocation388_spill] sm:$0xff]  ;;  %v19241_v36 = vld [vmem:[#allocation233_spill] sm:$0xff] }
 0x430   : > { %v14859_v42 = vpack.c.bf16 %v6178_v11, %v6162_v5  ;;  %v6179_v27 = vmax.f32 %v5923_v18, 0.0  ;;  %v6165_v39 = vmax.f32 %v5909_v34, 0.0  ;;  %v5601_v14 = vadd.f32 %v5421_v29, %v19235_v24  ;;  %v19238_v17 = vld [vmem:[#allocation298_spill] sm:$0xff]  ;;  %v19243_v29 = vld [vmem:[#allocation159_spill] sm:$0xff] }
 0x431   : > { %v14862_v8 = vpack.c.bf16 %v6180_v2, %v6164_v26  ;;  %v6181_v45 = vmax.f32 %v5925_v13, 0.0  ;;  %6777 = vmatpush1.bf16.msra.mxu0 %v19236_v28  ;;  %v14868_v59 = vadd.f32 %v19238_v17, %v19237_v25  ;;  %v5938_v10 = vadd.f32 %v14629_v56, %v5598_v9  ;;  %v19239_v5 = vld [vmem:[#allocation158_spill] sm:$0xff]  ;;  %v5423_v18 = vpop.f32.mrf.mxu1  ;;  %v19242_v26 = vld [vmem:[#allocation300_spill] sm:$0xff]  ;;  %v5312_v28 = vpop.f32.mrf.mxu0 }
 0x432   : > { %v5614_v11 = vadd.f32 %v5310_v55, %v19239_v5  ;;  %6850 = vmatpush1.bf16.msra.mxu1 %v19240_v47  ;;  %v14873_v34 = vpack.c.bf16 %v6179_v27, %v6163_v48  ;;  %v14877_v2 = vadd.f32 %v19242_v26, %v19241_v36  ;;  %v5940_v13 = vadd.f32 %v14653_v32, %v5600_v16  ;;  %v19244_v17 = vld [vmem:[#allocation234_spill] sm:$0xff]  ;;  %v19245_v9 = vld [vmem:[#allocation64_spill] sm:$0xff]  ;;  %v14893_v16 = vld [vmem:[%s17625_s3] sm:$0xff]  }
 0x433   : > { %v5616_v24 = vadd.f32 %v5423_v18, %v19243_v29  ;;  %v14881_v25 = vpack.c.bf16 %v6181_v45, %v6165_v39  ;;  %v14885_v1 = vadd.f32 %v19245_v9, %v19244_v17  ;;  %v5939_v55 = vadd.f32 %v14662_v7, %v5599_v4  ;;  %v19246_v27 = vld [vmem:[#allocation160_spill] sm:$0xff]  ;;  %v5425_v47 = vpop.f32.mrf.mxu1  ;;  %v19247_v18 = vld [vmem:[#allocation403_spill] sm:$0xff]  ;;  %v5316_v26 = vpop.f32.mrf.mxu0 }
 0x434   : > { %v5954_v48 = vadd.f32 %v14629_v56, %v5614_v11  ;;  %v5615_v5 = vadd.f32 %v5312_v28, %v19246_v27  ;;  %6795 = vmatmul.mubr.bf16.vlgmr.msra.gmra.mxu0 %v14893_v16  ;;  %v5941_v39 = vadd.f32 %v14672_v21, %v5601_v14  ;;  %v5617_v36 = vadd.f32 %v5425_v47, %v19247_v18  ;;  %v19249_v17 = vld [vmem:[#allocation404_spill] sm:$0xff] }
 0x435   : > { %v5956_v45 = vadd.f32 %v14653_v32, %v5616_v24  ;;  %6868 = vmatmul.mubr.bf16.vlgmr.msra.gmra.mxu1 %v14893_v16  ;;  %v19248_v4 = vmov 0   ;;  %v6194_v28 = vmax.f32 %v5938_v10, 0.0  ;;  %v5630_v9 = vadd.f32 %v5316_v26, %v19249_v17  ;;  %v5429_v27 = vpop.f32.mrf.mxu1  ;;  %v5318_v18 = vpop.f32.mrf.mxu0 }
 0x436   : > { %6804 = vmatprep.mubr.bf16.mxu0 %v19248_v4  ;;  %v6210_v11 = vmax.f32 %v5954_v48, 0.0  ;;  %v5955_v29 = vadd.f32 %v14662_v7, %v5615_v5  ;;  %6877 = vmatprep.mubr.bf16.mxu1 %v19248_v4  ;;  %v6196_v57 = vmax.f32 %v5940_v13, 0.0  ;;  %v5957_v24 = vadd.f32 %v14672_v21, %v5617_v36 }
 0x437   : > { %v6212_v14 = vmax.f32 %v5956_v45, 0.0  ;;  %v5632_v47 = vadd.f32 %v5429_v27, %v14693_v37  ;;  %v6195_v49 = vmax.f32 %v5939_v55, 0.0  ;;  %v5631_v10 = vadd.f32 %v5318_v18, %v14701_v53  ;;  %v5431_v48 = vpop.f32.mrf.mxu1  ;;  %v5320_v13 = vpop.f32.mrf.mxu0  ;;  %v19250_v45 = vld [vmem:[#allocation235_spill] sm:$0xff]  ;;  %v19252_v53 = vld [vmem:[#allocation236_spill] sm:$0xff] }
 0x438   : > { %v14906_v52 = vpack.c.bf16 %v6210_v11, %v6194_v28  ;;  %v6211_v0 = vmax.f32 %v5955_v29, 0.0  ;;  %v6197_v5 = vmax.f32 %v5941_v39, 0.0  ;;  %v6213_v26 = vmax.f32 %v5957_v24, 0.0  ;;  %v19253_v29 = vld [vmem:[#allocation306_spill] sm:$0xff]  ;;  %v19255_v24 = vld [vmem:[#allocation308_spill] sm:$0xff] }
 0x439   : > { %v14909_v40 = vpack.c.bf16 %v6212_v14, %v6196_v57  ;;  %v5633_v17 = vadd.f32 %v5431_v48, %v14709_v12  ;;  %v14914_v36 = vadd.f32 %v19251_v44, %v19250_v45  ;;  %v5970_v37 = vadd.f32 %v14629_v56, %v5630_v9  ;;  %v5433_v28 = vpop.f32.mrf.mxu1  ;;  %v5322_v27 = vpop.f32.mrf.mxu0  ;;  %v19254_v44 = vld [vmem:[#allocation237_spill] sm:$0xff] }
 0x43a   : > { %v5646_v55 = vadd.f32 %v5320_v13, %v14742_v23  ;;  %v14918_v11 = vpack.c.bf16 %v6211_v0, %v6195_v49  ;;  %v14922_v39 = vadd.f32 %v19253_v29, %v19252_v53  ;;  %v5972_v57 = vadd.f32 %v14653_v32, %v5632_v47  ;;  %v14938_v47 = vld [vmem:[%s17625_s3 + $0x8] sm:$0xff]  }
 0x43b   : > { %v5648_v12 = vadd.f32 %v5433_v28, %v14751_v30  ;;  %v14926_v14 = vpack.c.bf16 %v6213_v26, %v6197_v5  ;;  %v14930_v18 = vadd.f32 %v19255_v24, %v19254_v44  ;;  %v5971_v23 = vadd.f32 %v14662_v7, %v5631_v10  ;;  %v5435_v9 = vpop.f32.mrf.mxu1  ;;  %v5326_v26 = vpop.f32.mrf.mxu0 }
 0x43c   : > { %v5986_v0 = vadd.f32 %v14629_v56, %v5646_v55  ;;  %v5647_v49 = vadd.f32 %v5322_v27, %v14758_v6  ;;  %6805 = vmatmul.mubr.bf16.gmra.mxu0 %v14938_v47  ;;  %v5973_v30 = vadd.f32 %v14672_v21, %v5633_v17  ;;  %v5649_v5 = vadd.f32 %v5435_v9, %v14786_v20 }
 0x43d   : > { %v5988_v48 = vadd.f32 %v14653_v32, %v5648_v12  ;;  %6878 = vmatmul.mubr.bf16.gmra.mxu1 %v14938_v47  ;;  %6814 = vmatprep.mubr.bf16.mxu0 %v19248_v4  ;;  %v6226_v6 = vmax.f32 %v5970_v37, 0.0  ;;  %v5662_v45 = vadd.f32 %v5326_v26, %v14795_v62  ;;  %v5439_v55 = vpop.f32.mrf.mxu1  ;;  %v6228_v28 = vmax.f32 %v5972_v57, 0.0  ;;  %v5328_v29 = vpop.f32.mrf.mxu0  ;;  %v19257_v26 = vld [vmem:[#allocation310_spill] sm:$0xff] }
 0x43e   : > { %v6242_v10 = vmax.f32 %v5986_v0, 0.0  ;;  %v5987_v13 = vadd.f32 %v14662_v7, %v5647_v49  ;;  %6887 = vmatprep.mubr.bf16.mxu1 %v19248_v4  ;;  %v5989_v53 = vadd.f32 %v14672_v21, %v5649_v5  ;;  %v5664_v20 = vadd.f32 %v5439_v55, %v14802_v3 }
 0x43f   : > { %v6244_v17 = vmax.f32 %v5988_v48, 0.0  ;;  %v6227_v12 = vmax.f32 %v5971_v23, 0.0  ;;  %v5663_v37 = vadd.f32 %v5328_v29, %v14830_v58  ;;  %v5441_v24 = vpop.f32.mrf.mxu1  ;;  %v6229_v0 = vmax.f32 %v5973_v30, 0.0  ;;  %v5330_v57 = vpop.f32.mrf.mxu0  ;;  %v19256_v48 = vld [vmem:[#allocation238_spill] sm:$0xff]  ;;  %v19261_v29 = vld [vmem:[#allocation315_spill] sm:$0xff] }
 0x440   : > { %v14951_v27 = vpack.c.bf16 %v6242_v10, %v6226_v6  ;;  %v6243_v44 = vmax.f32 %v5987_v13, 0.0  ;;  %v6245_v62 = vmax.f32 %v5989_v53, 0.0  ;;  %v5665_v9 = vadd.f32 %v5441_v24, %v14839_v22  ;;  %v19258_v13 = vld [vmem:[#allocation239_spill] sm:$0xff]  ;;  %v19259_v58 = vld [vmem:[#allocation74_spill] sm:$0xff]  ;;  %v19260_v53 = vld [vmem:[#allocation240_spill] sm:$0xff] }
 0x441   : > { %v14954_v49 = vpack.c.bf16 %v6244_v17, %v6228_v28  ;;  %v3749_v5 = vadd.f32 %v19257_v26, %v19256_v48  ;;  %v6002_v3 = vadd.f32 %v14629_v56, %v5662_v45  ;;  %v5678_v23 = vadd.f32 %v5330_v57, %v14846_v54  ;;  %v5443_v6 = vpop.f32.mrf.mxu1  ;;  %v5332_v17 = vpop.f32.mrf.mxu0  ;;  %v14977_v57 = vld [vmem:[%s17625_s3 + $0x10] sm:$0xff]  }
 0x442   : > { %v14961_v10 = vpack.c.bf16 %v6243_v44, %v6227_v12  ;;  %v3638_v55 = vadd.f32 %v19259_v58, %v19258_v13  ;;  %v6004_v30 = vadd.f32 %v14653_v32, %v5664_v20  ;;  %v5680_v28 = vadd.f32 %v5443_v6, %v14868_v59 }
 0x443   : > { %v14967_v22 = vpack.c.bf16 %v6245_v62, %v6229_v0  ;;  %v3751_v24 = vadd.f32 %v19261_v29, %v19260_v53  ;;  %v6003_v45 = vadd.f32 %v14662_v7, %v5663_v37  ;;  %v6018_v54 = vadd.f32 %v14629_v56, %v5678_v23  ;;  %v5445_v44 = vpop.f32.mrf.mxu1  ;;  %v5336_v62 = vpop.f32.mrf.mxu0 }
 0x444   : > { %v5679_v12 = vadd.f32 %v5332_v17, %v14877_v2  ;;  %6815 = vmatmul.mubr.bf16.gmra.mxu0 %v14977_v57  ;;  %v6005_v59 = vadd.f32 %v14672_v21, %v5665_v9  ;;  %v6020_v20 = vadd.f32 %v14653_v32, %v5680_v28  ;;  %v5681_v0 = vadd.f32 %v5445_v44, %v14885_v1 }
 0x445   : > { %6888 = vmatmul.mubr.bf16.gmra.mxu1 %v14977_v57  ;;  %6824 = vmatprep.mubr.bf16.mxu0 %v19248_v4  ;;  %v6258_v2 = vmax.f32 %v6002_v3, 0.0  ;;  %v6274_v37 = vmax.f32 %v6018_v54, 0.0  ;;  %v5694_v26 = vadd.f32 %v5336_v62, %v14914_v36  ;;  %v5449_v23 = vpop.f32.mrf.mxu1  ;;  %v6260_v6 = vmax.f32 %v6004_v30, 0.0  ;;  %v5338_v58 = vpop.f32.mrf.mxu0  ;;  %v19262_v30 = vld [vmem:[#allocation241_spill] sm:$0xff] }
 0x446   : > { %v6019_v48 = vadd.f32 %v14662_v7, %v5679_v12  ;;  %6897 = vmatprep.mubr.bf16.mxu1 %v19248_v4  ;;  %v6276_v9 = vmax.f32 %v6020_v20, 0.0  ;;  %v6021_v13 = vadd.f32 %v14672_v21, %v5681_v0  ;;  %v5696_v1 = vadd.f32 %v5449_v23, %v14922_v39  ;;  %v19263_v20 = vld [vmem:[#allocation79_spill] sm:$0xff] }
 0x447   : > { %v6259_v28 = vmax.f32 %v6003_v45, 0.0  ;;  %v14990_v17 = vpack.c.bf16 %v6274_v37, %v6258_v2  ;;  %v5695_v3 = vadd.f32 %v5338_v58, %v14930_v18  ;;  %v5451_v29 = vpop.f32.mrf.mxu1  ;;  %v6261_v54 = vmax.f32 %v6005_v59, 0.0  ;;  %v5340_v62 = vpop.f32.mrf.mxu0  ;;  %v19264_v2 = vld [vmem:[#allocation242_spill] sm:$0xff]  ;;  %v19265_v37 = vld [vmem:[#allocation320_spill] sm:$0xff] }
 0x448   : > { %v6275_v53 = vmax.f32 %v6019_v48, 0.0  ;;  %v14993_v12 = vpack.c.bf16 %v6276_v9, %v6260_v6  ;;  %v6277_v36 = vmax.f32 %v6021_v13, 0.0  ;;  %v5697_v44 = vadd.f32 %v5451_v29, %v3749_v5 }
 0x449   : > { %v3640_v41 = vadd.f32 %v19263_v20, %v19262_v30  ;;  %v6034_v0 = vadd.f32 %v14629_v56, %v5694_v26  ;;  %v5710_v39 = vadd.f32 %v5340_v62, %v3638_v55  ;;  %v5453_v23 = vpop.f32.mrf.mxu1  ;;  %v3753_v48 = vadd.f32 %v19265_v37, %v19264_v2  ;;  %v5342_v6 = vpop.f32.mrf.mxu0  ;;  %v15010_v55 = vld [vmem:[%s17625_s3 + $0x18] sm:$0xff]   ;;  %v19269_v2 = vld [vmem:[#allocation358_spill] sm:$0xff]  ;;  %v19270_v37 = vld [vmem:[#allocation115_spill] sm:$0xff] }
 0x44a   : > { %v14998_v45 = vpack.c.bf16 %v6275_v53, %v6259_v28  ;;  %v6036_v18 = vadd.f32 %v14653_v32, %v5696_v1  ;;  %v5712_v59 = vadd.f32 %v5453_v23, %v3751_v24  ;;  %v15003_v9 = vpack.c.bf16 %v6277_v36, %v6261_v54  ;;  %v19268_v23 = vld [vmem:[#allocation116_spill] sm:$0xff] }
 0x44b   : > { %v6035_v5 = vadd.f32 %v14662_v7, %v5695_v3  ;;  %v6050_v13 = vadd.f32 %v14629_v56, %v5710_v39  ;;  %v5711_v58 = vadd.f32 %v5342_v6, %v3640_v41  ;;  %v5455_v29 = vpop.f32.mrf.mxu1  ;;  %v6037_v26 = vadd.f32 %v14672_v21, %v5697_v44  ;;  %v19272_v6 = vld [vmem:[#allocation114_spill] sm:$0xff] }
 0x44c   : > { %6825 = vmatmul.mubr.bf16.gmra.mxu0 %v15010_v55  ;;  %v6052_v24 = vadd.f32 %v14653_v32, %v5712_v59  ;;  %v5713_v1 = vadd.f32 %v5455_v29, %v3753_v48  ;;  %v6290_v28 = vmax.f32 %v6034_v0, 0.0  ;;  %v6292_v53 = vmax.f32 %v6036_v18, 0.0  ;;  %v19271_v18 = vld [vmem:[#allocation357_spill] sm:$0xff] }
 0x44d   : > { %6898 = vmatmul.mubr.bf16.gmra.mxu1 %v15010_v55  ;;  %6940 = vmatprep.mubr.bf16.mxu0 %v19248_v4  ;;  %v6306_v56 = vmax.f32 %v6050_v13, 0.0  ;;  %v6051_v41 = vadd.f32 %v14662_v7, %v5711_v58  ;;  %v6291_v36 = vmax.f32 %v6035_v5, 0.0  ;;  %v6293_v32 = vmax.f32 %v6037_v26, 0.0  ;;  %v19266_v7 = vld [vmem:[#allocation359_spill] sm:$0xff]  ;;  %v19273_v5 = vld [vmem:[#allocation356_spill] sm:$0xff]  ;;  %v19276_v26 = vld [vmem:[#allocation353_spill] sm:$0xff] }
 0x44e   : > { %7013 = vmatprep.mubr.bf16.mxu1 %v19248_v4  ;;  %v6308_v3 = vmax.f32 %v6052_v24, 0.0  ;;  %v6053_v54 = vadd.f32 %v14672_v21, %v5713_v1  ;;  %v19267_v21 = vld [vmem:[#allocation360_spill] sm:$0xff]  ;;  %v19275_v58 = vld [vmem:[#allocation355_spill] sm:$0xff] }
 0x44f   : > { %v15020_v62 = vpack.c.bf16 %v6306_v56, %v6290_v28  ;;  %v6307_v44 = vmax.f32 %v6051_v41, 0.0  ;;  %v19277_v24 = vld [vmem:[#allocation112_spill] sm:$0xff]  ;;  %v19278_v1 = vld [vmem:[#allocation351_spill] sm:$0xff] }
 0x450   : > { %v15022_v30 = vpack.c.bf16 %v6308_v3, %v6292_v53  ;;  %v6309_v20 = vmax.f32 %v6053_v54, 0.0  ;;  %v19279_v56 = vld [vmem:[#allocation352_spill] sm:$0xff]  ;;  %v19281_v3 = vld [vmem:[#allocation350_spill] sm:$0xff] }
 0x451   : > { %v15024_v39 = vpack.c.bf16 %v6307_v44, %v6291_v36  ;;  %v19280_v53 = vld [vmem:[#allocation108_spill] sm:$0xff] }
 0x452   : > { %v15026_v0 = vpack.c.bf16 %v6309_v20, %v6293_v32  ;;  %v19283_v36 = vld [vmem:[#allocation348_spill] sm:$0xff]  ;;  %v19285_v20 = vld [vmem:[#allocation345_spill] sm:$0xff] }
 0x453   : > { %6908 = vmatprep.subr.bf16.mxu0 %v15024_v39  ;;  %v19284_v32 = vld [vmem:[#allocation104_spill] sm:$0xff] }
 0x454   : > { %6981 = vmatprep.subr.bf16.mxu1 %v15026_v0  ;;  %6909 = vmatpush1.bf16.msra.mxu0 %v15020_v62 }
 0x455   : > { %6982 = vmatpush1.bf16.msra.mxu1 %v15022_v30  ;;  %6910 = vmatprep.subr.bf16.mxu0 %v14998_v45 }
 0x456   : > { %6983 = vmatprep.subr.bf16.mxu1 %v15003_v9 }
 0x458   : > { %6911 = vmatpush1.bf16.msra.mxu0 %v14990_v17 }
 0x459   : > { %6984 = vmatpush1.bf16.msra.mxu1 %v14993_v12  ;;  %6912 = vmatprep.subr.bf16.mxu0 %v14961_v10 }
 0x45a   : > { %6985 = vmatprep.subr.bf16.mxu1 %v14967_v22 }
 0x45c   : > { %6913 = vmatpush1.bf16.msra.mxu0 %v14951_v27 }
 0x45d   : > { %6986 = vmatpush1.bf16.msra.mxu1 %v14954_v49  ;;  %6914 = vmatprep.subr.bf16.mxu0 %v14918_v11 }
 0x45e   : > { %6987 = vmatprep.subr.bf16.mxu1 %v14926_v14 }
 0x460   : > { %6915 = vmatpush1.bf16.msra.mxu0 %v14906_v52 }
 0x461   : > { %6988 = vmatpush1.bf16.msra.mxu1 %v14909_v40  ;;  %6916 = vmatprep.subr.bf16.mxu0 %v14873_v34 }
 0x462   : > { %6989 = vmatprep.subr.bf16.mxu1 %v14881_v25 }
 0x464   : > { %6917 = vmatpush1.bf16.msra.mxu0 %v14859_v42 }
 0x465   : > { %6990 = vmatpush1.bf16.msra.mxu1 %v14862_v8  ;;  %6918 = vmatprep.subr.bf16.mxu0 %v14826_v43 }
 0x466   : > { %6991 = vmatprep.subr.bf16.mxu1 %v14835_v33 }
 0x468   : > { %6919 = vmatpush1.bf16.msra.mxu0 %v14815_v50 }
 0x469   : > { %6992 = vmatpush1.bf16.msra.mxu1 %v14818_v35  ;;  %6920 = vmatprep.subr.bf16.mxu0 %v14782_v15 }
 0x46a   : > { %6993 = vmatprep.subr.bf16.mxu1 %v14791_v60 }
 0x46c   : > { %6921 = vmatpush1.bf16.msra.mxu0 %v14771_v19 }
 0x46d   : > { %6994 = vmatpush1.bf16.msra.mxu1 %v14774_v38  ;;  %6922 = vmatprep.subr.bf16.mxu0 %v14738_v63 }
 0x46e   : > { %6995 = vmatprep.subr.bf16.mxu1 %v14747_v51 }
 0x470   : > { %6923 = vmatpush1.bf16.msra.mxu0 %v14727_v61 }
 0x471   : > { %6996 = vmatpush1.bf16.msra.mxu1 %v14730_v46  ;;  %7087 = vmatprep.subr.bf16.mxu0 %v19266_v7  ;;  %v15067_v48 = vpop.f32.mrf.mxu0  ;;  %v19286_v7 = vld [vmem:[#allocation342_spill] sm:$0xff] }
 0x472   : > { %7160 = vmatprep.subr.bf16.mxu1 %v19267_v21  ;;  %v15071_v59 = vpop.f32.mrf.mxu1 }
 0x473   : > { %6941 = vmatmul.mubr.bf16.vlgmr.msra.gmra.mxu0 %v14893_v16  ;;  %v15077_v13 = vpop.f32.mrf.mxu0 }
 0x474   : > { %7014 = vmatmul.mubr.bf16.vlgmr.msra.gmra.mxu1 %v14893_v16  ;;  %7088 = vmatpush1.bf16.msra.mxu0 %v19268_v23  ;;  %v19274_v16 = vld [vmem:[#allocation354_spill] sm:$0xff]  ;;  %v15080_v29 = vpop.f32.mrf.mxu1  ;;  %v19287_v23 = vld [vmem:[#allocation343_spill] sm:$0xff] }
 0x475   : > { %7161 = vmatpush1.bf16.msra.mxu1 %v19269_v2  ;;  %7089 = vmatprep.subr.bf16.mxu0 %v19270_v37  ;;  %v15087_v28 = vpop.f32.mrf.mxu0  ;;  %v19289_v37 = vld [vmem:[#allocation100_spill] sm:$0xff] }
 0x476   : > { %7162 = vmatprep.subr.bf16.mxu1 %v19271_v18  ;;  %6950 = vmatprep.mubr.bf16.mxu0 %v19248_v4  ;;  %v15091_v41 = vpop.f32.mrf.mxu1  ;;  %v19290_v18 = vld [vmem:[#allocation341_spill] sm:$0xff] }
 0x477   : > { %7023 = vmatprep.mubr.bf16.mxu1 %v19248_v4  ;;  %v15097_v54 = vpop.f32.mrf.mxu0 }
 0x478   : > { %7090 = vmatpush1.bf16.msra.mxu0 %v19272_v6  ;;  %v15100_v44 = vpop.f32.mrf.mxu1 }
 0x479   : > { %7163 = vmatpush1.bf16.msra.mxu1 %v19273_v5  ;;  %7091 = vmatprep.subr.bf16.mxu0 %v19274_v16  ;;  %v15107_v21 = vpop.f32.mrf.mxu0  ;;  %v19292_v5 = vld [vmem:[#allocation339_spill] sm:$0xff] }
 0x47a   : > { %7164 = vmatprep.subr.bf16.mxu1 %v19275_v58  ;;  %v15111_v2 = vpop.f32.mrf.mxu1  ;;  %v19294_v58 = vld [vmem:[#allocation96_spill] sm:$0xff] }
 0x47b   : > { %6951 = vmatmul.mubr.bf16.gmra.mxu0 %v14938_v47  ;;  %19288 = vst [vmem:[#allocation167_spill] sm:$0xff] %v15111_v2  ;;  %v15117_v6 = vpop.f32.mrf.mxu0  ;;  %v19377_v2 = vld [vmem:[#allocation149_spill] sm:$0xff] }
 0x47c   : > { %7024 = vmatmul.mubr.bf16.gmra.mxu1 %v14938_v47  ;;  %7092 = vmatpush1.bf16.msra.mxu0 %v19276_v26  ;;  %v19282_v47 = vld [vmem:[#allocation347_spill] sm:$0xff]  ;;  %v15120_v16 = vpop.f32.mrf.mxu1  ;;  %v19295_v26 = vld [vmem:[#allocation336_spill] sm:$0xff] }
 0x47d   : > { %7165 = vmatpush1.bf16.msra.mxu1 %v19277_v24  ;;  %7093 = vmatprep.subr.bf16.mxu0 %v19278_v1  ;;  %19293 = vst [vmem:[#allocation409_spill] sm:$0xff] %v15120_v16  ;;  %v19296_v24 = vld [vmem:[#allocation333_spill] sm:$0xff]  ;;  %v15127_v1 = vpop.f32.mrf.mxu0  ;;  %v19376_v16 = vld [vmem:[#allocation392_spill] sm:$0xff] }
 0x47e   : > { %7166 = vmatprep.subr.bf16.mxu1 %v19279_v56  ;;  %6960 = vmatprep.mubr.bf16.mxu0 %v19248_v4  ;;  %19297 = vst [vmem:[#allocation168_spill] sm:$0xff] %v15127_v1  ;;  %v19298_v56 = vld [vmem:[#allocation334_spill] sm:$0xff]  ;;  %v19371_v1 = vld [vmem:[#allocation151_spill] sm:$0xff] }
 0x47f   : > { %7033 = vmatprep.mubr.bf16.mxu1 %v19248_v4 }
 0x480   : > { %7094 = vmatpush1.bf16.msra.mxu0 %v19280_v53  ;;  %v15131_v53 = vpop.f32.mrf.mxu1 }
 0x481   : > { %7167 = vmatpush1.bf16.msra.mxu1 %v19281_v3  ;;  %7095 = vmatprep.subr.bf16.mxu0 %v19282_v47  ;;  %19299 = vst [vmem:[#allocation410_spill] sm:$0xff] %v15131_v53  ;;  %v19300_v3 = vld [vmem:[#allocation92_spill] sm:$0xff]  ;;  %v19367_v53 = vld [vmem:[#allocation155_spill] sm:$0xff] }
 0x482   : > { %7168 = vmatprep.subr.bf16.mxu1 %v19283_v36  ;;  %v19301_v47 = vld [vmem:[#allocation332_spill] sm:$0xff]  ;;  %v19302_v36 = vld [vmem:[#allocation145_spill] sm:$0xff] }
 0x483   : > { %6961 = vmatmul.mubr.bf16.gmra.mxu0 %v14977_v57 }
 0x484   : > { %7034 = vmatmul.mubr.bf16.gmra.mxu1 %v14977_v57  ;;  %7096 = vmatpush1.bf16.msra.mxu0 %v19284_v32  ;;  %v19291_v57 = vld [vmem:[#allocation338_spill] sm:$0xff]  ;;  %v15142_v32 = vpop.f32.mrf.mxu0 }
 0x485   : > { %7169 = vmatpush1.bf16.msra.mxu1 %v19285_v20  ;;  %7097 = vmatprep.subr.bf16.mxu0 %v19286_v7  ;;  %19303 = vst [vmem:[#allocation169_spill] sm:$0xff] %v15142_v32  ;;  %v19304_v20 = vld [vmem:[#allocation387_spill] sm:$0xff]  ;;  %v15145_v7 = vpop.f32.mrf.mxu1  ;;  %v19370_v32 = vld [vmem:[#allocation154_spill] sm:$0xff] }
 0x486   : > { %7170 = vmatprep.subr.bf16.mxu1 %v19287_v23  ;;  %6970 = vmatprep.mubr.bf16.mxu0 %v19248_v4  ;;  %19305 = vst [vmem:[#allocation411_spill] sm:$0xff] %v15145_v7  ;;  %v19306_v23 = vld [vmem:[#allocation144_spill] sm:$0xff]  ;;  %v19366_v7 = vld [vmem:[#allocation399_spill] sm:$0xff] }
 0x487   : > { %7043 = vmatprep.mubr.bf16.mxu1 %v19248_v4 }
 0x488   : > { %7098 = vmatpush1.bf16.msra.mxu0 %v19289_v37  ;;  %v19307_v37 = vld [vmem:[#allocation386_spill] sm:$0xff] }
 0x489   : > { %7171 = vmatpush1.bf16.msra.mxu1 %v19290_v18  ;;  %7099 = vmatprep.subr.bf16.mxu0 %v19291_v57  ;;  %v19308_v18 = vld [vmem:[#allocation143_spill] sm:$0xff]  ;;  %v15152_v57 = vpop.f32.mrf.mxu0 }
 0x48a   : > { %7172 = vmatprep.subr.bf16.mxu1 %v19292_v5  ;;  %19309 = vst [vmem:[#allocation170_spill] sm:$0xff] %v15152_v57  ;;  %v19310_v5 = vld [vmem:[#allocation385_spill] sm:$0xff]  ;;  %v19363_v57 = vld [vmem:[#allocation400_spill] sm:$0xff] }
 0x48b   : > { %6971 = vmatmul.mubr.bf16.gmra.mxu0 %v15010_v55 }
 0x48c   : > { %7044 = vmatmul.mubr.bf16.gmra.mxu1 %v15010_v55  ;;  %7100 = vmatpush1.bf16.msra.mxu0 %v19294_v58  ;;  %v15137_v55 = vld [vmem:[%s17625_s3 + $0x20] sm:$0xff]   ;;  %v15156_v58 = vpop.f32.mrf.mxu1 }
 0x48d   : > { %7173 = vmatpush1.bf16.msra.mxu1 %v19295_v26  ;;  %7101 = vmatprep.subr.bf16.mxu0 %v19296_v24  ;;  %19311 = vst [vmem:[#allocation412_spill] sm:$0xff] %v15156_v58  ;;  %v15162_v26 = vld [vmem:[%s17625_s3 + $0x28] sm:$0xff]   ;;  %v19312_v24 = vld [vmem:[#allocation383_spill] sm:$0xff]  ;;  %v19332_v58 = vld [vmem:[#allocation369_spill] sm:$0xff] }
 0x48e   : > { %7174 = vmatprep.subr.bf16.mxu1 %v19298_v56  ;;  %7119 = vmatprep.mubr.bf16.mxu0 %v19248_v4  ;;  %v19313_v56 = vld [vmem:[#allocation384_spill] sm:$0xff] }
 0x48f   : > { %7192 = vmatprep.mubr.bf16.mxu1 %v19248_v4 }
 0x490   : > { %7102 = vmatpush1.bf16.msra.mxu0 %v19300_v3  ;;  %v19314_v3 = vld [vmem:[#allocation140_spill] sm:$0xff] }
 0x491   : > { %7175 = vmatpush1.bf16.msra.mxu1 %v19301_v47  ;;  %7233 = vmatprep.subr.bf16.mxu0 %v19302_v36  ;;  %v15167_v47 = vpop.f32.mrf.mxu0  ;;  %v19316_v36 = vld [vmem:[#allocation141_spill] sm:$0xff] }
 0x492   : > { %7306 = vmatprep.subr.bf16.mxu1 %v19304_v20  ;;  %19315 = vst [vmem:[#allocation171_spill] sm:$0xff] %v15167_v47  ;;  %v15170_v20 = vpop.f32.mrf.mxu1  ;;  %v19344_v47 = vld [vmem:[#allocation362_spill] sm:$0xff] }
 0x493   : > { %7120 = vmatmul.mubr.bf16.vlgmr.msra.gmra.mxu0 %v15137_v55  ;;  %19317 = vst [vmem:[#allocation413_spill] sm:$0xff] %v15170_v20  ;;  %v19331_v20 = vld [vmem:[#allocation372_spill] sm:$0xff] }
 0x494   : > { %7193 = vmatmul.mubr.bf16.vlgmr.msra.gmra.mxu1 %v15137_v55  ;;  %7234 = vmatpush1.bf16.msra.mxu0 %v19306_v23  ;;  %v19318_v23 = vld [vmem:[#allocation379_spill] sm:$0xff] }
 0x495   : > { %7307 = vmatpush1.bf16.msra.mxu1 %v19307_v37  ;;  %7235 = vmatprep.subr.bf16.mxu0 %v19308_v18  ;;  %v19319_v37 = vld [vmem:[#allocation380_spill] sm:$0xff]  ;;  %v19320_v18 = vld [vmem:[#allocation377_spill] sm:$0xff] }
 0x496   : > { %7308 = vmatprep.subr.bf16.mxu1 %v19310_v5  ;;  %7129 = vmatprep.mubr.bf16.mxu0 %v19248_v4  ;;  %v15177_v5 = vpop.f32.mrf.mxu0 }
 0x497   : > { %7202 = vmatprep.mubr.bf16.mxu1 %v19248_v4  ;;  %19321 = vst [vmem:[#allocation172_spill] sm:$0xff] %v15177_v5 }
 0x498   : > { %7236 = vmatpush1.bf16.msra.mxu0 %v19312_v24  ;;  %v19322_v24 = vld [vmem:[#allocation378_spill] sm:$0xff] }
 0x499   : > { %7309 = vmatpush1.bf16.msra.mxu1 %v19313_v56  ;;  %7237 = vmatprep.subr.bf16.mxu0 %v19314_v3  ;;  %v15181_v56 = vpop.f32.mrf.mxu1  ;;  %v15187_v3 = vld [vmem:[%s17625_s3 + $0x30] sm:$0xff]  }
 0x49a   : > { %7310 = vmatprep.subr.bf16.mxu1 %v19316_v36  ;;  %19323 = vst [vmem:[#allocation414_spill] sm:$0xff] %v15181_v56  ;;  %v19324_v36 = vld [vmem:[#allocation375_spill] sm:$0xff]  ;;  %v19330_v56 = vld [vmem:[#allocation130_spill] sm:$0xff] }
 0x49b   : > { %7130 = vmatmul.mubr.bf16.gmra.mxu0 %v15162_v26  ;;  %v15195_v5 = vpop.f32.mrf.mxu1 }
 0x49c   : > { %7203 = vmatmul.mubr.bf16.gmra.mxu1 %v15162_v26  ;;  %7238 = vmatpush1.bf16.msra.mxu0 %v19318_v23  ;;  %v19325_v23 = vld [vmem:[#allocation376_spill] sm:$0xff]  ;;  %19329 = vst [vmem:[#allocation415_spill] sm:$0xff] %v15195_v5 }
 0x49d   : > { %7311 = vmatpush1.bf16.msra.mxu1 %v19319_v37  ;;  %7239 = vmatprep.subr.bf16.mxu0 %v19320_v18  ;;  %v19326_v37 = vld [vmem:[#allocation373_spill] sm:$0xff]  ;;  %v15192_v18 = vpop.f32.mrf.mxu0 }
 0x49e   : > { %7312 = vmatprep.subr.bf16.mxu1 %v19322_v24  ;;  %7139 = vmatprep.mubr.bf16.mxu0 %v19248_v4  ;;  %19327 = vst [vmem:[#allocation173_spill] sm:$0xff] %v15192_v18  ;;  %v19328_v24 = vld [vmem:[#allocation374_spill] sm:$0xff]  ;;  %v19343_v18 = vld [vmem:[#allocation365_spill] sm:$0xff] }
 0x49f   : > { %7212 = vmatprep.mubr.bf16.mxu1 %v19248_v4 }
 0x4a0   : > { %7240 = vmatpush1.bf16.msra.mxu0 %v19324_v36  ;;  %v15202_v36 = vpop.f32.mrf.mxu0 }
 0x4a1   : > { %7313 = vmatpush1.bf16.msra.mxu1 %v19325_v23  ;;  %7241 = vmatprep.subr.bf16.mxu0 %v19326_v37  ;;  %19333 = vst [vmem:[#allocation246_spill] sm:$0xff] %v15202_v36  ;;  %v19334_v23 = vld [vmem:[#allocation370_spill] sm:$0xff]  ;;  %v15206_v37 = vpop.f32.mrf.mxu1 }
 0x4a2   : > { %7314 = vmatprep.subr.bf16.mxu1 %v19328_v24  ;;  %19335 = vst [vmem:[#allocation174_spill] sm:$0xff] %v15206_v37  ;;  %v15212_v24 = vld [vmem:[%s17625_s3 + $0x38] sm:$0xff]   ;;  %v15217_v36 = vpop.f32.mrf.mxu0  ;;  %v19342_v37 = vld [vmem:[#allocation123_spill] sm:$0xff] }
 0x4a3   : > { %7140 = vmatmul.mubr.bf16.gmra.mxu0 %v15187_v3  ;;  %19339 = vst [vmem:[#allocation416_spill] sm:$0xff] %v15217_v36  ;;  %v15220_v5 = vpop.f32.mrf.mxu1  ;;  %v19362_v36 = vld [vmem:[#allocation161_spill] sm:$0xff] }
 0x4a4   : > { %7213 = vmatmul.mubr.bf16.gmra.mxu1 %v15187_v3  ;;  %7242 = vmatpush1.bf16.msra.mxu0 %v19330_v56  ;;  %v19336_v56 = vld [vmem:[#allocation368_spill] sm:$0xff]  ;;  %19341 = vst [vmem:[#allocation8_spill] sm:$0xff] %v15220_v5 }
 0x4a5   : > { %7315 = vmatpush1.bf16.msra.mxu1 %v19331_v20  ;;  %7243 = vmatprep.subr.bf16.mxu0 %v19332_v58  ;;  %v19337_v20 = vld [vmem:[#allocation127_spill] sm:$0xff]  ;;  %v19338_v58 = vld [vmem:[#allocation124_spill] sm:$0xff] }
 0x4a6   : > { %7316 = vmatprep.subr.bf16.mxu1 %v19334_v23  ;;  %7149 = vmatprep.mubr.bf16.mxu0 %v19248_v4  ;;  %v19340_v23 = vld [vmem:[#allocation125_spill] sm:$0xff]  ;;  %v19349_v5 = vld [vmem:[#allocation120_spill] sm:$0xff] }
 0x4a7   : > { %7222 = vmatprep.mubr.bf16.mxu1 %v19248_v4 }
 0x4a8   : > { %7244 = vmatpush1.bf16.msra.mxu0 %v19336_v56  ;;  %v15227_v56 = vpop.f32.mrf.mxu0 }
 0x4a9   : > { %7317 = vmatpush1.bf16.msra.mxu1 %v19337_v20  ;;  %7245 = vmatprep.subr.bf16.mxu0 %v19338_v58  ;;  %19345 = vst [vmem:[#allocation175_spill] sm:$0xff] %v15227_v56  ;;  %v19346_v20 = vld [vmem:[#allocation363_spill] sm:$0xff]  ;;  %v15231_v58 = vpop.f32.mrf.mxu1  ;;  %v19355_v56 = vld [vmem:[#allocation406_spill] sm:$0xff] }
 0x4aa   : > { %7318 = vmatprep.subr.bf16.mxu1 %v19340_v23  ;;  %19347 = vst [vmem:[#allocation417_spill] sm:$0xff] %v15231_v58  ;;  %v19348_v23 = vld [vmem:[#allocation361_spill] sm:$0xff]  ;;  %v19354_v58 = vld [vmem:[#allocation166_spill] sm:$0xff] }
 0x4ab   : > { %7150 = vmatmul.mubr.bf16.gmra.mxu0 %v15212_v24 }
 0x4ac   : > { %7223 = vmatmul.mubr.bf16.gmra.mxu1 %v15212_v24  ;;  %7246 = vmatpush1.bf16.msra.mxu0 %v19342_v37  ;;  %v15237_v37 = vpop.f32.mrf.mxu0 }
 0x4ad   : > { %7319 = vmatpush1.bf16.msra.mxu1 %v19343_v18  ;;  %7247 = vmatprep.subr.bf16.mxu0 %v19344_v47  ;;  %19350 = vst [vmem:[#allocation247_spill] sm:$0xff] %v15237_v37  ;;  %v19351_v18 = vld [vmem:[#allocation408_spill] sm:$0xff]  ;;  %v15240_v47 = vpop.f32.mrf.mxu1  ;;  %v19359_v37 = vld [vmem:[#allocation162_spill] sm:$0xff] }
 0x4ae   : > { %7320 = vmatprep.subr.bf16.mxu1 %v19346_v20  ;;  %7265 = vmatprep.mubr.bf16.mxu0 %v19248_v4  ;;  %19352 = vst [vmem:[#allocation328_spill] sm:$0xff] %v15240_v47  ;;  %v19353_v20 = vld [vmem:[#allocation407_spill] sm:$0xff]  ;;  %v19358_v47 = vld [vmem:[#allocation164_spill] sm:$0xff] }
 0x4af   : > { %7338 = vmatprep.mubr.bf16.mxu1 %v19248_v4 }
 0x4b0   : > { %7248 = vmatpush1.bf16.msra.mxu0 %v19348_v23 }
 0x4b1   : > { %7321 = vmatpush1.bf16.msra.mxu1 %v19349_v5  ;;  %7379 = vmatprep.subr.bf16.mxu0 %v14697_v31  ;;  %v19356_v5 = vld [vmem:[#allocation165_spill] sm:$0xff] }
 0x4b2   : > { %7452 = vmatprep.subr.bf16.mxu1 %v19351_v18  ;;  %v19357_v18 = vld [vmem:[#allocation405_spill] sm:$0xff] }
 0x4b3   : > { %7266 = vmatmul.mubr.bf16.vlgmr.msra.gmra.mxu0 %v15137_v55  ;;  %v15247_v23 = vpop.f32.mrf.mxu0 }
 0x4b4   : > { %7339 = vmatmul.mubr.bf16.vlgmr.msra.gmra.mxu1 %v15137_v55  ;;  %7380 = vmatpush1.bf16.msra.mxu0 %v19353_v20  ;;  %v15251_v31 = vpop.f32.mrf.mxu1 }
 0x4b5   : > { %7453 = vmatpush1.bf16.msra.mxu1 %v19354_v58  ;;  %7381 = vmatprep.subr.bf16.mxu0 %v19355_v56  ;;  %v15257_v20 = vpop.f32.mrf.mxu0  ;;  %v19360_v58 = vld [vmem:[#allocation163_spill] sm:$0xff] }
 0x4b6   : > { %7454 = vmatprep.subr.bf16.mxu1 %v19356_v5  ;;  %7275 = vmatprep.mubr.bf16.mxu0 %v19248_v4  ;;  %v15260_v56 = vpop.f32.mrf.mxu1  ;;  %v19361_v5 = vld [vmem:[#allocation402_spill] sm:$0xff] }
 0x4b7   : > { %7348 = vmatprep.mubr.bf16.mxu1 %v19248_v4 }
 0x4b8   : > { %7382 = vmatpush1.bf16.msra.mxu0 %v19357_v18  ;;  %v15267_v18 = vpop.f32.mrf.mxu0 }
 0x4b9   : > { %7455 = vmatpush1.bf16.msra.mxu1 %v19358_v47  ;;  %7383 = vmatprep.subr.bf16.mxu0 %v19359_v37  ;;  %v19364_v47 = vld [vmem:[#allocation401_spill] sm:$0xff]  ;;  %v15271_v37 = vpop.f32.mrf.mxu1 }
 0x4ba   : > { %7456 = vmatprep.subr.bf16.mxu1 %v19360_v58  ;;  %v19365_v58 = vld [vmem:[#allocation157_spill] sm:$0xff] }
 0x4bb   : > { %7276 = vmatmul.mubr.bf16.gmra.mxu0 %v15162_v26 }
 0x4bc   : > { %7349 = vmatmul.mubr.bf16.gmra.mxu1 %v15162_v26  ;;  %7384 = vmatpush1.bf16.msra.mxu0 %v19361_v5  ;;  %v15277_v5 = vpop.f32.mrf.mxu0 }
 0x4bd   : > { %7457 = vmatpush1.bf16.msra.mxu1 %v19362_v36  ;;  %7385 = vmatprep.subr.bf16.mxu0 %v19363_v57  ;;  %v19368_v36 = vld [vmem:[#allocation156_spill] sm:$0xff]  ;;  %v15280_v57 = vpop.f32.mrf.mxu1 }
 0x4be   : > { %7458 = vmatprep.subr.bf16.mxu1 %v19364_v47  ;;  %7285 = vmatprep.mubr.bf16.mxu0 %v19248_v4  ;;  %v19369_v47 = vld [vmem:[#allocation395_spill] sm:$0xff] }
 0x4bf   : > { %7358 = vmatprep.mubr.bf16.mxu1 %v19248_v4 }
 0x4c0   : > { %7386 = vmatpush1.bf16.msra.mxu0 %v19365_v58  ;;  %v15287_v58 = vpop.f32.mrf.mxu0 }
 0x4c1   : > { %7459 = vmatpush1.bf16.msra.mxu1 %v19366_v7  ;;  %7387 = vmatprep.subr.bf16.mxu0 %v19367_v53  ;;  %19372 = vst [vmem:[#allocation9_spill] sm:$0xff] %v15287_v58  ;;  %v19373_v7 = vld [vmem:[#allocation152_spill] sm:$0xff]  ;;  %v15291_v53 = vpop.f32.mrf.mxu1  ;;  %v19382_v58 = vld [vmem:[#allocation147_spill] sm:$0xff] }
 0x4c2   : > { %7460 = vmatprep.subr.bf16.mxu1 %v19368_v36  ;;  %19374 = vst [vmem:[#allocation10_spill] sm:$0xff] %v15291_v53  ;;  %v19375_v36 = vld [vmem:[#allocation150_spill] sm:$0xff] }
 0x4c3   : > { %7286 = vmatmul.mubr.bf16.gmra.mxu0 %v15187_v3  ;;  %v19381_v53 = vld [vmem:[#allocation390_spill] sm:$0xff] }
 0x4c4   : > { %7359 = vmatmul.mubr.bf16.gmra.mxu1 %v15187_v3  ;;  %7388 = vmatpush1.bf16.msra.mxu0 %v19369_v47  ;;  %v15297_v47 = vpop.f32.mrf.mxu0 }
 0x4c5   : > { %7461 = vmatpush1.bf16.msra.mxu1 %v19370_v32  ;;  %7389 = vmatprep.subr.bf16.mxu0 %v19371_v1  ;;  %v19378_v32 = vld [vmem:[#allocation391_spill] sm:$0xff]  ;;  %v15300_v1 = vpop.f32.mrf.mxu1 }
 0x4c6   : > { %7462 = vmatprep.subr.bf16.mxu1 %v19373_v7  ;;  %7295 = vmatprep.mubr.bf16.mxu0 %v19248_v4  ;;  %19379 = vst [vmem:[#allocation249_spill] sm:$0xff] %v15300_v1  ;;  %v19380_v7 = vld [vmem:[#allocation148_spill] sm:$0xff] }
 0x4c7   : > { %7368 = vmatprep.mubr.bf16.mxu1 %v19248_v4  ;;  %v19387_v1 = vld [vmem:[#allocation388_spill] sm:$0xff] }
 0x4c8   : > { %7390 = vmatpush1.bf16.msra.mxu0 %v19375_v36  ;;  %v15307_v36 = vpop.f32.mrf.mxu0 }
 0x4c9   : > { %7463 = vmatpush1.bf16.msra.mxu1 %v19376_v16  ;;  %7391 = vmatprep.subr.bf16.mxu0 %v19377_v2  ;;  %19383 = vst [vmem:[#allocation11_spill] sm:$0xff] %v15307_v36  ;;  %v19384_v16 = vld [vmem:[#allocation389_spill] sm:$0xff]  ;;  %v15311_v2 = vpop.f32.mrf.mxu1 }
 0x4ca   : > { %7464 = vmatprep.subr.bf16.mxu1 %v19378_v32  ;;  %19385 = vst [vmem:[#allocation176_spill] sm:$0xff] %v15311_v2  ;;  %v19386_v32 = vld [vmem:[#allocation146_spill] sm:$0xff] }
 0x4cb   : > { %7296 = vmatmul.mubr.bf16.gmra.mxu0 %v15212_v24 }
 0x4cc   : > { %7369 = vmatmul.mubr.bf16.gmra.mxu1 %v15212_v24  ;;  %7392 = vmatpush1.bf16.msra.mxu0 %v19380_v7  ;;  %v15317_v7 = vpop.f32.mrf.mxu0 }
 0x4cd   : > { %7465 = vmatpush1.bf16.msra.mxu1 %v19381_v53  ;;  %7393 = vmatprep.subr.bf16.mxu0 %v19382_v58  ;;  %19388 = vst [vmem:[#allocation418_spill] sm:$0xff] %v15317_v7  ;;  %v15320_v58 = vpop.f32.mrf.mxu1 }
 0x4ce   : > { %7466 = vmatprep.subr.bf16.mxu1 %v19384_v16  ;;  %7411 = vmatprep.mubr.bf16.mxu0 %v19248_v4  ;;  %19389 = vst [vmem:[#allocation12_spill] sm:$0xff] %v15320_v58  ;;  %v15327_v53 = vpop.f32.mrf.mxu0 }
 0x4cf   : > { %7484 = vmatprep.mubr.bf16.mxu1 %v19248_v4  ;;  %19390 = vst [vmem:[#allocation177_spill] sm:$0xff] %v15327_v53 }
 0x4d0   : > { %7394 = vmatpush1.bf16.msra.mxu0 %v19386_v32 }
 0x4d1   : > { %7467 = vmatpush1.bf16.msra.mxu1 %v19387_v1  ;;  %7525 = vmatprep.subr.bf16.mxu0 %v15024_v39  ;;  %v15331_v39 = vpop.f32.mrf.mxu1 }
 0x4d2   : > { %7598 = vmatprep.subr.bf16.mxu1 %v15026_v0  ;;  %19391 = vst [vmem:[#allocation419_spill] sm:$0xff] %v15331_v39 }
 0x4d3   : > { %7412 = vmatmul.mubr.bf16.vlgmr.msra.gmra.mxu0 %v15137_v55 }
 0x4d4   : > { %7485 = vmatmul.mubr.bf16.vlgmr.msra.gmra.mxu1 %v15137_v55  ;;  %7526 = vmatpush1.bf16.msra.mxu0 %v15020_v62  ;;  %v15337_v62 = vpop.f32.mrf.mxu0 }
 0x4d5   : > { %7599 = vmatpush1.bf16.msra.mxu1 %v15022_v30  ;;  %7527 = vmatprep.subr.bf16.mxu0 %v14998_v45  ;;  %19392 = vst [vmem:[#allocation251_spill] sm:$0xff] %v15337_v62  ;;  %v15340_v45 = vpop.f32.mrf.mxu1 }
 0x4d6   : > { %7600 = vmatprep.subr.bf16.mxu1 %v15003_v9  ;;  %7421 = vmatprep.mubr.bf16.mxu0 %v19248_v4  ;;  %19393 = vst [vmem:[#allocation178_spill] sm:$0xff] %v15340_v45 }
 0x4d7   : > { %7494 = vmatprep.mubr.bf16.mxu1 %v19248_v4 }
 0x4d8   : > { %7528 = vmatpush1.bf16.msra.mxu0 %v14990_v17  ;;  %v15347_v17 = vpop.f32.mrf.mxu0 }
 0x4d9   : > { %7601 = vmatpush1.bf16.msra.mxu1 %v14993_v12  ;;  %7529 = vmatprep.subr.bf16.mxu0 %v14961_v10  ;;  %19394 = vst [vmem:[#allocation420_spill] sm:$0xff] %v15347_v17  ;;  %v15351_v10 = vpop.f32.mrf.mxu1 }
 0x4da   : > { %7602 = vmatprep.subr.bf16.mxu1 %v14967_v22  ;;  %19395 = vst [vmem:[#allocation13_spill] sm:$0xff] %v15351_v10 }
 0x4db   : > { %7422 = vmatmul.mubr.bf16.gmra.mxu0 %v15162_v26 }
 0x4dc   : > { %7495 = vmatmul.mubr.bf16.gmra.mxu1 %v15162_v26  ;;  %7530 = vmatpush1.bf16.msra.mxu0 %v14951_v27  ;;  %v15357_v27 = vpop.f32.mrf.mxu0 }
 0x4dd   : > { %7603 = vmatpush1.bf16.msra.mxu1 %v14954_v49  ;;  %7531 = vmatprep.subr.bf16.mxu0 %v14918_v11  ;;  %19396 = vst [vmem:[#allocation252_spill] sm:$0xff] %v15357_v27  ;;  %v15360_v11 = vpop.f32.mrf.mxu1 }
 0x4de   : > { %7604 = vmatprep.subr.bf16.mxu1 %v14926_v14  ;;  %7431 = vmatprep.mubr.bf16.mxu0 %v19248_v4  ;;  %19397 = vst [vmem:[#allocation337_spill] sm:$0xff] %v15360_v11 }
 0x4df   : > { %7504 = vmatprep.mubr.bf16.mxu1 %v19248_v4 }
 0x4e0   : > { %7532 = vmatpush1.bf16.msra.mxu0 %v14906_v52  ;;  %v15367_v52 = vpop.f32.mrf.mxu0 }
 0x4e1   : > { %7605 = vmatpush1.bf16.msra.mxu1 %v14909_v40  ;;  %7533 = vmatprep.subr.bf16.mxu0 %v14873_v34  ;;  %19398 = vst [vmem:[#allocation253_spill] sm:$0xff] %v15367_v52  ;;  %v15371_v40 = vpop.f32.mrf.mxu1 }
 0x4e2   : > { %7606 = vmatprep.subr.bf16.mxu1 %v14881_v25  ;;  %19399 = vst [vmem:[#allocation15_spill] sm:$0xff] %v15371_v40 }
 0x4e3   : > { %7432 = vmatmul.mubr.bf16.gmra.mxu0 %v15187_v3 }
 0x4e4   : > { %7505 = vmatmul.mubr.bf16.gmra.mxu1 %v15187_v3  ;;  %7534 = vmatpush1.bf16.msra.mxu0 %v14859_v42  ;;  %v15377_v42 = vpop.f32.mrf.mxu0 }
 0x4e5   : > { %7607 = vmatpush1.bf16.msra.mxu1 %v14862_v8  ;;  %7535 = vmatprep.subr.bf16.mxu0 %v14826_v43  ;;  %19400 = vst [vmem:[#allocation254_spill] sm:$0xff] %v15377_v42  ;;  %v15380_v8 = vpop.f32.mrf.mxu1 }
 0x4e6   : > { %7608 = vmatprep.subr.bf16.mxu1 %v14835_v33  ;;  %7441 = vmatprep.mubr.bf16.mxu0 %v19248_v4  ;;  %19401 = vst [vmem:[#allocation16_spill] sm:$0xff] %v15380_v8 }
 0x4e7   : > { %7514 = vmatprep.mubr.bf16.mxu1 %v19248_v4 }
 0x4e8   : > { %7536 = vmatpush1.bf16.msra.mxu0 %v14815_v50  ;;  %v15387_v50 = vpop.f32.mrf.mxu0 }
 0x4e9   : > { %7609 = vmatpush1.bf16.msra.mxu1 %v14818_v35  ;;  %7537 = vmatprep.subr.bf16.mxu0 %v14782_v15  ;;  %19402 = vst [vmem:[#allocation17_spill] sm:$0xff] %v15387_v50  ;;  %v15391_v15 = vpop.f32.mrf.mxu1 }
 0x4ea   : > { %7610 = vmatprep.subr.bf16.mxu1 %v14791_v60  ;;  %19403 = vst [vmem:[#allocation179_spill] sm:$0xff] %v15391_v15  ;;  %v15396_v60 = vpop.f32.mrf.mxu0 }
 0x4eb   : > { %7442 = vmatmul.mubr.bf16.gmra.mxu0 %v15212_v24  ;;  %19404 = vst [vmem:[#allocation421_spill] sm:$0xff] %v15396_v60 }
 0x4ec   : > { %7515 = vmatmul.mubr.bf16.gmra.mxu1 %v15212_v24  ;;  %7538 = vmatpush1.bf16.msra.mxu0 %v14771_v19  ;;  %v15398_v19 = vpop.f32.mrf.mxu1 }
 0x4ed   : > { %7611 = vmatpush1.bf16.msra.mxu1 %v14774_v38  ;;  %7539 = vmatprep.subr.bf16.mxu0 %v14738_v63  ;;  %19405 = vst [vmem:[#allocation256_spill] sm:$0xff] %v15398_v19 }
 0x4ee   : > { %7612 = vmatprep.subr.bf16.mxu1 %v14747_v51  ;;  %7557 = vmatprep.mubr.bf16.mxu0 %v19248_v4 }
 0x4ef   : > { %7630 = vmatprep.mubr.bf16.mxu1 %v19248_v4 }
 0x4f0   : > { %7540 = vmatpush1.bf16.msra.mxu0 %v14727_v61 }
 0x4f1   : > { %7613 = vmatpush1.bf16.msra.mxu1 %v14730_v46 }
 0x4f3   : > { %7558 = vmatmul.mubr.bf16.vlgmr.msra.gmra.mxu0 %v15137_v55 }
 0x4f4   : > { %7631 = vmatmul.mubr.bf16.vlgmr.msra.gmra.mxu1 %v15137_v55  ;;  %7567 = vmatprep.mubr.bf16.mxu0 %v19248_v4  ;;  %v15404_v38 = vpop.f32.mrf.mxu0 }
 0x4f5   : > { %7640 = vmatprep.mubr.bf16.mxu1 %v19248_v4  ;;  %v15406_v63 = vpop.f32.mrf.mxu1 }
 0x4f6   : > { %v15408_v51 = vpop.f32.mrf.mxu0 }
 0x4f7   : > { %v15410_v61 = vpop.f32.mrf.mxu1 }
 0x4f8   : > { %v15416_v46 = vpop.f32.mrf.mxu0 }
 0x4f9   : > { %v15418_v35 = vpop.f32.mrf.mxu1 }
 0x4fa   : > { %v15420_v43 = vpop.f32.mrf.mxu0 }
 0x4fb   : > { %7568 = vmatmul.mubr.bf16.gmra.mxu0 %v15162_v26  ;;  %v15422_v33 = vpop.f32.mrf.mxu1 }
 0x4fc   : > { %7641 = vmatmul.mubr.bf16.gmra.mxu1 %v15162_v26  ;;  %7577 = vmatprep.mubr.bf16.mxu0 %v19248_v4  ;;  %v15428_v34 = vpop.f32.mrf.mxu0 }
 0x4fd   : > { %7650 = vmatprep.mubr.bf16.mxu1 %v19248_v4  ;;  %v15430_v25 = vpop.f32.mrf.mxu1 }
 0x4fe   : > { %v15432_v14 = vpop.f32.mrf.mxu0 }
 0x4ff   : > { %v15434_v49 = vpop.f32.mrf.mxu1 }
 0x500   : > { %v15438_v22 = vpop.f32.mrf.mxu0 }
 0x501   : > { %19406 = vst [vmem:[#allocation18_spill] sm:$0xff] %v15438_v22  ;;  %v15440_v12 = vpop.f32.mrf.mxu1 }
 0x502   : > { %19407 = vst [vmem:[#allocation257_spill] sm:$0xff] %v15440_v12  ;;  %v15442_v9 = vpop.f32.mrf.mxu0 }
 0x503   : > { %7578 = vmatmul.mubr.bf16.gmra.mxu0 %v15187_v3  ;;  %19408 = vst [vmem:[#allocation346_spill] sm:$0xff] %v15442_v9  ;;  %v15444_v30 = vpop.f32.mrf.mxu1 }
 0x504   : > { %7651 = vmatmul.mubr.bf16.gmra.mxu1 %v15187_v3  ;;  %7587 = vmatprep.mubr.bf16.mxu0 %v19248_v4  ;;  %19409 = vst [vmem:[#allocation258_spill] sm:$0xff] %v15444_v30 }
 0x505   : > { %7660 = vmatprep.mubr.bf16.mxu1 %v19248_v4  ;;  %v15446_v4 = vpop.f32.mrf.mxu0  ;;  %v15448_v0 = vpop.f32.mrf.mxu1 }
 0x506   : > { %19410 = vst [vmem:[#allocation20_spill] sm:$0xff] %v15446_v4  ;;  %19411 = vst [vmem:[#allocation259_spill] sm:$0xff] %v15448_v0 }
 0x507   : > { %v15450_v55 = vpop.f32.mrf.mxu0  ;;  %v15452_v26 = vpop.f32.mrf.mxu1 }
 0x508   : > { %19412 = vst [vmem:[#allocation21_spill] sm:$0xff] %v15450_v55  ;;  %19413 = vst [vmem:[#allocation22_spill] sm:$0xff] %v15452_v26 }
 0x509   : > { %v15454_v3 = vpop.f32.mrf.mxu0  ;;  %v15456_v1 = vpop.f32.mrf.mxu1 }
 0x50a   : > { %19414 = vst [vmem:[#allocation62_spill] sm:$0xff] %v15454_v3  ;;  %19415 = vst [vmem:[#allocation261_spill] sm:$0xff] %v15456_v1 }
 0x50b   : > { %7588 = vmatmul.mubr.bf16.gmra.mxu0 %v15212_v24  ;;  %v15460_v16 = vpop.f32.mrf.mxu1 }
 0x50c   : > { %7661 = vmatmul.mubr.bf16.gmra.mxu1 %v15212_v24  ;;  %v15458_v24 = vpop.f32.mrf.mxu0  ;;  %19417 = vst [vmem:[#allocation262_spill] sm:$0xff] %v15460_v16 }
 0x50d   : > { %19416 = vst [vmem:[#allocation23_spill] sm:$0xff] %v15458_v24  ;;  %v15464_v19 = vpop.f32.mrf.mxu1 }
 0x50e   : > { %v15462_v32 = vpop.f32.mrf.mxu0  ;;  %19419 = vst [vmem:[#allocation25_spill] sm:$0xff] %v15464_v19 }
 0x50f   : > { %19418 = vst [vmem:[#allocation263_spill] sm:$0xff] %v15462_v32  ;;  %v15468_v60 = vpop.f32.mrf.mxu1 }
 0x510   : > { %v15466_v15 = vpop.f32.mrf.mxu0  ;;  %19421 = vst [vmem:[#allocation26_spill] sm:$0xff] %v15468_v60 }
 0x511   : > { %19420 = vst [vmem:[#allocation264_spill] sm:$0xff] %v15466_v15  ;;  %v15472_v8 = vpop.f32.mrf.mxu1 }
 0x512   : > { %v15470_v50 = vpop.f32.mrf.mxu0  ;;  %19423 = vst [vmem:[#allocation422_spill] sm:$0xff] %v15472_v8 }
 0x513   : > { %19422 = vst [vmem:[#allocation180_spill] sm:$0xff] %v15470_v50  ;;  %v15476_v42 = vpop.f32.mrf.mxu1 }
 0x514   : > { %v15474_v40 = vpop.f32.mrf.mxu0  ;;  %19425 = vst [vmem:[#allocation181_spill] sm:$0xff] %v15476_v42 }
 0x515   : > { %19424 = vst [vmem:[#allocation27_spill] sm:$0xff] %v15474_v40 }
 0x533   : > { %v15478_v52 = vpop.f32.mrf.mxu0 }
 0x534   : > { %v15480_v24 = vpop.f32.mrf.mxu1 }
 0x535   : > { %v15482_v16 = vpop.f32.mrf.mxu0 }
 0x536   : > { %v15484_v32 = vpop.f32.mrf.mxu1 }
 0x537   : > { %v15486_v19 = vpop.f32.mrf.mxu0 }
 0x538   : > { %v15488_v15 = vpop.f32.mrf.mxu1 }
 0x539   : > { %v15490_v60 = vpop.f32.mrf.mxu0 }
 0x53a   : > { %v15492_v50 = vpop.f32.mrf.mxu1 }
 0x53b   : > { %v15494_v8 = vpop.f32.mrf.mxu0 }
 0x53c   : > { %v15496_v40 = vpop.f32.mrf.mxu1 }
 0x53d   : > { %19426 = vst [vmem:[#allocation423_spill] sm:$0xff] %v15496_v40  ;;  %v15498_v42 = vpop.f32.mrf.mxu0 }
 0x53e   : > { %v15500_v1 = vpop.f32.mrf.mxu1 }
 0x53f   : > { %19427 = vst [vmem:[#allocation266_spill] sm:$0xff] %v15500_v1  ;;  %v15502_v3 = vpop.f32.mrf.mxu0 }
 0x540   : > { %19428 = vst [vmem:[#allocation182_spill] sm:$0xff] %v15502_v3  ;;  %v15504_v11 = vpop.f32.mrf.mxu1 }
 0x541   : > { %19429 = vst [vmem:[#allocation424_spill] sm:$0xff] %v15504_v11  ;;  %v15506_v10 = vpop.f32.mrf.mxu0 }
 0x542   : > { %19430 = vst [vmem:[#allocation28_spill] sm:$0xff] %v15506_v10  ;;  %v15508_v27 = vpop.f32.mrf.mxu1 }
 0x543   : > { %19431 = vst [vmem:[#allocation267_spill] sm:$0xff] %v15508_v27  ;;  %v15510_v17 = vpop.f32.mrf.mxu0 }
 0x544   : > { %19432 = vst [vmem:[#allocation268_spill] sm:$0xff] %v15510_v17  ;;  %v15512_v26 = vpop.f32.mrf.mxu1 }
 0x545   : > { %19433 = vst [vmem:[#allocation30_spill] sm:$0xff] %v15512_v26  ;;  %v15514_v0 = vpop.f32.mrf.mxu0 }
 0x546   : > { %19434 = vst [vmem:[#allocation269_spill] sm:$0xff] %v15514_v0  ;;  %v15516_v55 = vpop.f32.mrf.mxu1 }
 0x547   : > { %19435 = vst [vmem:[#allocation270_spill] sm:$0xff] %v15516_v55  ;;  %v15518_v4 = vpop.f32.mrf.mxu0 }
 0x548   : > { %19436 = vst [vmem:[#allocation32_spill] sm:$0xff] %v15518_v4  ;;  %v15520_v45 = vpop.f32.mrf.mxu1 }
 0x549   : > { %19437 = vst [vmem:[#allocation183_spill] sm:$0xff] %v15520_v45  ;;  %v15522_v39 = vpop.f32.mrf.mxu0 }
 0x54a   : > { %19438 = vst [vmem:[#allocation425_spill] sm:$0xff] %v15522_v39  ;;  %v15524_v62 = vpop.f32.mrf.mxu1 }
 0x54b   : > { %19439 = vst [vmem:[#allocation271_spill] sm:$0xff] %v15524_v62  ;;  %v15526_v53 = vpop.f32.mrf.mxu0 }
 0x54c   : > { %19440 = vst [vmem:[#allocation184_spill] sm:$0xff] %v15526_v53  ;;  %v15528_v11 = vpop.f32.mrf.mxu1 }
 0x54d   : > { %19441 = vst [vmem:[#allocation426_spill] sm:$0xff] %v15528_v11  ;;  %v15530_v27 = vpop.f32.mrf.mxu0 }
 0x54e   : > { %19442 = vst [vmem:[#allocation33_spill] sm:$0xff] %v15530_v27  ;;  %v15532_v17 = vpop.f32.mrf.mxu1 }
 0x54f   : > { %19443 = vst [vmem:[#allocation185_spill] sm:$0xff] %v15532_v17  ;;  %v15534_v26 = vpop.f32.mrf.mxu0 }
 0x550   : > { %19444 = vst [vmem:[#allocation427_spill] sm:$0xff] %v15534_v26  ;;  %v15536_v0 = vpop.f32.mrf.mxu1 }
 0x551   : > { %19445 = vst [vmem:[#allocation34_spill] sm:$0xff] %v15536_v0  ;;  %v15538_v55 = vpop.f32.mrf.mxu0 }
 0x552   : > { %19446 = vst [vmem:[#allocation273_spill] sm:$0xff] %v15538_v55  ;;  %v15540_v4 = vpop.f32.mrf.mxu1 }
 0x553   : > { %19447 = vst [vmem:[#allocation35_spill] sm:$0xff] %v15540_v4  ;;  %v7121_v45 = vpop.f32.mrf.mxu0 }
 0x554   : > { %v15543_v39 = vmax.f32 %v15067_v48, %v7121_v45  ;;  %v7194_v62 = vpop.f32.mrf.mxu1 }
 0x555   : > { %v15546_v53 = vmax.f32 %v15071_v59, %v7194_v62  ;;  %v7123_v11 = vpop.f32.mrf.mxu0 }
 0x556   : > { %19448 = vst [vmem:[#allocation274_spill] sm:$0xff] %v15543_v39  ;;  %v7196_v27 = vpop.f32.mrf.mxu1  ;;  %7799 = vrot.lane.b32.xlu0 %v15543_v39, %s10074_s19  ;;  %v15555_v4 = vmax.f32 %v15077_v13, %v7123_v11 }
 0x557   : > { %19449 = vst [vmem:[#allocation275_spill] sm:$0xff] %v15546_v53  ;;  %7831 = vrot.lane.b32.xlu1 %v15546_v53, %s10074_s19  ;;  %v15552_v0 = vpop.f32.mrf.mxu0  ;;  %v15560_v45 = vmax.f32 %v15080_v29, %v7196_v27 }
 0x558   : > { %19450 = vst [vmem:[#allocation37_spill] sm:$0xff] %v15555_v4  ;;  %v15557_v48 = vpop.f32.mrf.mxu1 }
 0x559   : > { %19451 = vst [vmem:[#allocation186_spill] sm:$0xff] %v15560_v45  ;;  %v15562_v59 = vpop.f32.mrf.mxu0 }
 0x55a   : > { %v15564_v62 = vpop.f32.mrf.mxu1  ;;  %7815 = vrot.lane.b32.xlu0 %v15555_v4, %s10074_s19 }
 0x55b   : > { %7847 = vrot.lane.b32.xlu1 %v15560_v45, %s10074_s19  ;;  %v15570_v55 = vpop.f32.mrf.mxu0 }
 0x55c   : > { %v15572_v26 = vpop.f32.mrf.mxu1 }
 0x55d   : > { %v15574_v13 = vpop.f32.mrf.mxu0 }
 0x55e   : > { %v15576_v11 = vpop.f32.mrf.mxu1 }
 0x55f   : > { %v15578_v29 = vpop.f32.mrf.mxu0 }
 0x560   : > { %19452 = vst [vmem:[#allocation428_spill] sm:$0xff] %v15578_v29  ;;  %v15580_v27 = vpop.f32.mrf.mxu1 }
 0x561   : > { %19453 = vst [vmem:[#allocation276_spill] sm:$0xff] %v15580_v27  ;;  %v15582_v17 = vpop.f32.mrf.mxu0 }
 0x562   : > { %19454 = vst [vmem:[#allocation187_spill] sm:$0xff] %v15582_v17  ;;  %v15584_v10 = vpop.f32.mrf.mxu1 }
 0x563   : > { %19455 = vst [vmem:[#allocation429_spill] sm:$0xff] %v15584_v10  ;;  %v15586_v3 = vpop.f32.mrf.mxu0 }
 0x564   : > { %19456 = vst [vmem:[#allocation38_spill] sm:$0xff] %v15586_v3  ;;  %v15588_v30 = vpop.f32.mrf.mxu1 }
 0x565   : > { %19457 = vst [vmem:[#allocation188_spill] sm:$0xff] %v15588_v30  ;;  %v15590_v12 = vpop.f32.mrf.mxu0 }
 0x566   : > { %19458 = vst [vmem:[#allocation430_spill] sm:$0xff] %v15590_v12  ;;  %v15592_v9 = vpop.f32.mrf.mxu1 }
 0x567   : > { %19459 = vst [vmem:[#allocation39_spill] sm:$0xff] %v15592_v9  ;;  %v15594_v22 = vpop.f32.mrf.mxu0 }
 0x568   : > { %19460 = vst [vmem:[#allocation278_spill] sm:$0xff] %v15594_v22  ;;  %v15596_v58 = vpop.f32.mrf.mxu1 }
 0x569   : > { %19461 = vst [vmem:[#allocation40_spill] sm:$0xff] %v15596_v58  ;;  %v15598_v45 = vpop.f32.mrf.mxu0 }
 0x56a   : > { %19462 = vst [vmem:[#allocation41_spill] sm:$0xff] %v15598_v45  ;;  %v15600_v53 = vpop.f32.mrf.mxu1 }
 0x56b   : > { %19463 = vst [vmem:[#allocation280_spill] sm:$0xff] %v15600_v53  ;;  %v15602_v2 = vpop.f32.mrf.mxu0 }
 0x56c   : > { %19464 = vst [vmem:[#allocation42_spill] sm:$0xff] %v15602_v2  ;;  %v15604_v7 = vpop.f32.mrf.mxu1 }
 0x56d   : > { %19465 = vst [vmem:[#allocation189_spill] sm:$0xff] %v15604_v7  ;;  %v15606_v36 = vpop.f32.mrf.mxu0 }
 0x56e   : > { %19466 = vst [vmem:[#allocation431_spill] sm:$0xff] %v15606_v36  ;;  %v15608_v3 = vpop.f32.mrf.mxu1 }
 0x56f   : > { %19467 = vst [vmem:[#allocation281_spill] sm:$0xff] %v15608_v3  ;;  %v15610_v30 = vpop.f32.mrf.mxu0 }
 0x570   : > { %19468 = vst [vmem:[#allocation190_spill] sm:$0xff] %v15610_v30  ;;  %v15612_v12 = vpop.f32.mrf.mxu1 }
 0x571   : > { %19469 = vst [vmem:[#allocation432_spill] sm:$0xff] %v15612_v12  ;;  %v15614_v9 = vpop.f32.mrf.mxu0 }
 0x572   : > { %19470 = vst [vmem:[#allocation282_spill] sm:$0xff] %v15614_v9  ;;  %v15616_v22 = vpop.f32.mrf.mxu1 }
 0x573   : > { %19471 = vst [vmem:[#allocation191_spill] sm:$0xff] %v15616_v22  ;;  %v7267_v58 = vpop.f32.mrf.mxu0 }
 0x574   : > { %v15619_v45 = vmax.f32 %v15247_v23, %v7267_v58  ;;  %v7340_v53 = vpop.f32.mrf.mxu1 }
 0x575   : > { %v7269_v2 = vpop.f32.mrf.mxu0  ;;  %v15629_v12 = vmax.f32 %v15251_v31, %v7340_v53 }
 0x576   : > { %19472 = vst [vmem:[#allocation433_spill] sm:$0xff] %v15619_v45  ;;  %v15622_v7 = vmax.f32 %v15257_v20, %v7269_v2  ;;  %v7342_v36 = vpop.f32.mrf.mxu1  ;;  %7863 = vrot.lane.b32.xlu0 %v15619_v45, %s10074_s19 }
 0x577   : > { %v15626_v30 = vpop.f32.mrf.mxu0  ;;  %19474 = vst [vmem:[#allocation283_spill] sm:$0xff] %v15629_v12  ;;  %v15638_v58 = vmax.f32 %v15260_v56, %v7342_v36 }
 0x578   : > { %19473 = vst [vmem:[#allocation44_spill] sm:$0xff] %v15622_v7  ;;  %v15631_v9 = vpop.f32.mrf.mxu1  ;;  %7879 = vrot.lane.b32.xlu1 %v15622_v7, %s10074_s19 }
 0x579   : > { %v15635_v23 = vpop.f32.mrf.mxu0  ;;  %19475 = vst [vmem:[#allocation45_spill] sm:$0xff] %v15638_v58 }
 0x57a   : > { %v15640_v20 = vpop.f32.mrf.mxu1  ;;  %7895 = vrot.lane.b32.xlu0 %v15629_v12, %s10074_s19 }
 0x57b   : > { %v15644_v2 = vpop.f32.mrf.mxu0 }
 0x57c   : > { %v15646_v22 = vpop.f32.mrf.mxu1  ;;  %7911 = vrot.lane.b32.xlu1 %v15638_v58, %s10074_s19 }
 0x57d   : > { %v15650_v31 = vpop.f32.mrf.mxu0 }
 0x57e   : > { %v15652_v53 = vpop.f32.mrf.mxu1 }
 0x57f   : > { %v15654_v3 = vpop.f32.mrf.mxu0 }
 0x580   : > { %19476 = vst [vmem:[#allocation46_spill] sm:$0xff] %v15654_v3  ;;  %v15656_v56 = vpop.f32.mrf.mxu1 }
 0x581   : > { %19477 = vst [vmem:[#allocation285_spill] sm:$0xff] %v15656_v56  ;;  %v15658_v36 = vpop.f32.mrf.mxu0 }
 0x582   : > { %19478 = vst [vmem:[#allocation192_spill] sm:$0xff] %v15658_v36  ;;  %v15660_v7 = vpop.f32.mrf.mxu1 }
 0x583   : > { %19479 = vst [vmem:[#allocation434_spill] sm:$0xff] %v15660_v7  ;;  %v15662_v12 = vpop.f32.mrf.mxu0 }
 0x584   : > { %19480 = vst [vmem:[#allocation47_spill] sm:$0xff] %v15662_v12  ;;  %v15664_v45 = vpop.f32.mrf.mxu1 }
 0x585   : > { %19481 = vst [vmem:[#allocation193_spill] sm:$0xff] %v15664_v45  ;;  %v15666_v4 = vpop.f32.mrf.mxu0 }
 0x586   : > { %19482 = vst [vmem:[#allocation435_spill] sm:$0xff] %v15666_v4  ;;  %v15668_v39 = vpop.f32.mrf.mxu1 }
 0x587   : > { %19483 = vst [vmem:[#allocation286_spill] sm:$0xff] %v15668_v39  ;;  %v15670_v58 = vpop.f32.mrf.mxu0 }
 0x588   : > { %19484 = vst [vmem:[#allocation194_spill] sm:$0xff] %v15670_v58  ;;  %v15672_v10 = vpop.f32.mrf.mxu1 }
 0x589   : > { %19485 = vst [vmem:[#allocation436_spill] sm:$0xff] %v15672_v10  ;;  %v15674_v27 = vpop.f32.mrf.mxu0 }
 0x58a   : > { %19486 = vst [vmem:[#allocation287_spill] sm:$0xff] %v15674_v27  ;;  %v15676_v3 = vpop.f32.mrf.mxu1 }
 0x58b   : > { %19487 = vst [vmem:[#allocation49_spill] sm:$0xff] %v15676_v3  ;;  %v15678_v56 = vpop.f32.mrf.mxu0 }
 0x58c   : > { %19488 = vst [vmem:[#allocation288_spill] sm:$0xff] %v15678_v56  ;;  %v15680_v36 = vpop.f32.mrf.mxu1 }
 0x58d   : > { %19489 = vst [vmem:[#allocation51_spill] sm:$0xff] %v15680_v36  ;;  %v15682_v7 = vpop.f32.mrf.mxu0 }
 0x58e   : > { %19490 = vst [vmem:[#allocation290_spill] sm:$0xff] %v15682_v7  ;;  %v15684_v12 = vpop.f32.mrf.mxu1 }
 0x58f   : > { %19491 = vst [vmem:[#allocation52_spill] sm:$0xff] %v15684_v12  ;;  %v15686_v45 = vpop.f32.mrf.mxu0 }
 0x590   : > { %19492 = vst [vmem:[#allocation195_spill] sm:$0xff] %v15686_v45  ;;  %v15688_v4 = vpop.f32.mrf.mxu1 }
 0x591   : > { %19493 = vst [vmem:[#allocation437_spill] sm:$0xff] %v15688_v4  ;;  %v15690_v39 = vpop.f32.mrf.mxu0 }
 0x592   : > { %19494 = vst [vmem:[#allocation291_spill] sm:$0xff] %v15690_v39  ;;  %v15692_v58 = vpop.f32.mrf.mxu1 }
 0x593   : > { %19495 = vst [vmem:[#allocation196_spill] sm:$0xff] %v15692_v58  ;;  %v7413_v10 = vpop.f32.mrf.mxu0 }
 0x594   : > { %v15695_v27 = vmax.f32 %v15404_v38, %v7413_v10  ;;  %v7486_v3 = vpop.f32.mrf.mxu1 }
 0x595   : > { %v7415_v56 = vpop.f32.mrf.mxu0  ;;  %v15703_v4 = vmax.f32 %v15406_v63, %v7486_v3 }
 0x596   : > { %19496 = vst [vmem:[#allocation438_spill] sm:$0xff] %v15695_v27  ;;  %v15698_v36 = vmax.f32 %v15408_v51, %v7415_v56  ;;  %v7488_v7 = vpop.f32.mrf.mxu1  ;;  %7927 = vrot.lane.b32.xlu0 %v15695_v27, %s10074_s19 }
 0x597   : > { %v7417_v45 = vpop.f32.mrf.mxu0  ;;  %19498 = vst [vmem:[#allocation197_spill] sm:$0xff] %v15703_v4  ;;  %v15710_v38 = vmax.f32 %v15410_v61, %v7488_v7 }
 0x598   : > { %19497 = vst [vmem:[#allocation292_spill] sm:$0xff] %v15698_v36  ;;  %v15705_v39 = vpop.f32.mrf.mxu1  ;;  %7943 = vrot.lane.b32.xlu1 %v15698_v36, %s10074_s19 }
 0x599   : > { %v7419_v10 = vpop.f32.mrf.mxu0  ;;  %19499 = vst [vmem:[#allocation439_spill] sm:$0xff] %v15710_v38 }
 0x59a   : > { %v7492_v58 = vpop.f32.mrf.mxu1  ;;  %7959 = vrot.lane.b32.xlu0 %v15703_v4, %s10074_s19 }
 0x59b   : > { %v15714_v51 = vpop.f32.mrf.mxu0 }
 0x59c   : > { %v15716_v56 = vpop.f32.mrf.mxu1  ;;  %7975 = vrot.lane.b32.xlu1 %v15710_v38, %s10074_s19 }
 0x59d   : > { %v15720_v63 = vpop.f32.mrf.mxu0 }
 0x59e   : > { %v15722_v3 = vpop.f32.mrf.mxu1 }
 0x59f   : > { %v15724_v12 = vpop.f32.mrf.mxu0 }
 0x5a0   : > { %19500 = vst [vmem:[#allocation54_spill] sm:$0xff] %v15724_v12  ;;  %v15726_v36 = vpop.f32.mrf.mxu1 }
 0x5a1   : > { %19501 = vst [vmem:[#allocation293_spill] sm:$0xff] %v15726_v36  ;;  %v15728_v7 = vpop.f32.mrf.mxu0 }
 0x5a2   : > { %19502 = vst [vmem:[#allocation55_spill] sm:$0xff] %v15728_v7  ;;  %v15730_v61 = vpop.f32.mrf.mxu1 }
 0x5a3   : > { %19503 = vst [vmem:[#allocation56_spill] sm:$0xff] %v15730_v61  ;;  %v15732_v4 = vpop.f32.mrf.mxu0 }
 0x5a4   : > { %19504 = vst [vmem:[#allocation295_spill] sm:$0xff] %v15732_v4  ;;  %v15734_v27 = vpop.f32.mrf.mxu1 }
 0x5a5   : > { %19505 = vst [vmem:[#allocation57_spill] sm:$0xff] %v15734_v27  ;;  %v15736_v17 = vpop.f32.mrf.mxu0 }
 0x5a6   : > { %19506 = vst [vmem:[#allocation198_spill] sm:$0xff] %v15736_v17  ;;  %v15738_v29 = vpop.f32.mrf.mxu1 }
 0x5a7   : > { %19507 = vst [vmem:[#allocation440_spill] sm:$0xff] %v15738_v29  ;;  %v15740_v38 = vpop.f32.mrf.mxu0 }
 0x5a8   : > { %19508 = vst [vmem:[#allocation296_spill] sm:$0xff] %v15740_v38  ;;  %v15742_v1 = vpop.f32.mrf.mxu1 }
 0x5a9   : > { %19509 = vst [vmem:[#allocation199_spill] sm:$0xff] %v15742_v1  ;;  %v15744_v40 = vpop.f32.mrf.mxu0 }
 0x5aa   : > { %19510 = vst [vmem:[#allocation441_spill] sm:$0xff] %v15744_v40  ;;  %v15746_v12 = vpop.f32.mrf.mxu1 }
 0x5ab   : > { %19511 = vst [vmem:[#allocation297_spill] sm:$0xff] %v15746_v12  ;;  %v15748_v36 = vpop.f32.mrf.mxu0 }
 0x5ac   : > { %19512 = vst [vmem:[#allocation59_spill] sm:$0xff] %v15748_v36  ;;  %v15750_v7 = vpop.f32.mrf.mxu1 }
 0x5ad   : > { %19513 = vst [vmem:[#allocation60_spill] sm:$0xff] %v15750_v7  ;;  %v15752_v61 = vpop.f32.mrf.mxu0 }
 0x5ae   : > { %v15754_v4 = vpop.f32.mrf.mxu1 }
 0x5af   : > { %19514 = vst [vmem:[#allocation299_spill] sm:$0xff] %v15754_v4  ;;  %v15756_v27 = vpop.f32.mrf.mxu0 }
 0x5b0   : > { %19515 = vst [vmem:[#allocation61_spill] sm:$0xff] %v15756_v27  ;;  %v15758_v17 = vpop.f32.mrf.mxu1 }
 0x5b1   : > { %19516 = vst [vmem:[#allocation301_spill] sm:$0xff] %v15758_v17  ;;  %v15760_v29 = vpop.f32.mrf.mxu0 }
 0x5b2   : > { %19517 = vst [vmem:[#allocation63_spill] sm:$0xff] %v15760_v29  ;;  %v15762_v38 = vpop.f32.mrf.mxu1  ;;  %v19550_v29 = vld [vmem:[#allocation176_spill] sm:$0xff] }
 0x5b3   : > { %19518 = vst [vmem:[#allocation302_spill] sm:$0xff] %v15762_v38  ;;  %v7559_v1 = vpop.f32.mrf.mxu0 }
 0x5b4   : > { %v15765_v40 = vmax.f32 %v15478_v52, %v7559_v1  ;;  %v7632_v12 = vpop.f32.mrf.mxu1  ;;  %v15784_v52 = vmax.f32 %v15087_v28, %v15552_v0  ;;  %v15802_v28 = vmax.f32 %v15100_v44, %v15564_v62  ;;  %v15820_v44 = vmax.f32 %v15271_v37, %v15631_v9 }
 0x5b5   : > { %v7561_v36 = vpop.f32.mrf.mxu0  ;;  %v15773_v27 = vmax.f32 %v15480_v24, %v7632_v12  ;;  %v15790_v12 = vmax.f32 %v15097_v54, %v15562_v59  ;;  %v15808_v54 = vmax.f32 %v15267_v18, %v15626_v30  ;;  %v15826_v18 = vmax.f32 %v15280_v57, %v15640_v20 }
 0x5b6   : > { %v15768_v7 = vmax.f32 %v15482_v16, %v7561_v36  ;;  %7991 = vrot.lane.b32.xlu0 %v15765_v40, %s10074_s19  ;;  %v7634_v4 = vpop.f32.mrf.mxu1  ;;  %v15836_v30 = vmax.f32 %v15420_v43, %v7419_v10  ;;  %v15842_v57 = vmax.f32 %v15418_v35, %v15705_v39  ;;  %v19522_v16 = vld [vmem:[#allocation10_spill] sm:$0xff]  ;;  %v15933_v62 = vmax.f32 %v15430_v25, %v15716_v56  ;;  %v19530_v36 = vld [vmem:[#allocation168_spill] sm:$0xff] }
 0x5b7   : > { %v15778_v38 = vmax.f32 %v15484_v32, %v7634_v4  ;;  %v15796_v4 = vmax.f32 %v15091_v41, %v15557_v48  ;;  %v15814_v41 = vmax.f32 %v15277_v5, %v15635_v23  ;;  %v15831_v5 = vmax.f32 %v15416_v46, %v7417_v45  ;;  %v7563_v37 = vpop.f32.mrf.mxu0  ;;  %v19523_v48 = vld [vmem:[#allocation249_spill] sm:$0xff] }
 0x5b8   : > { %8007 = vrot.lane.b32.xlu1 %v15768_v7, %s10074_s19  ;;  %v15847_v46 = vmax.f32 %v15422_v33, %v7492_v58  ;;  %v7636_v9 = vpop.f32.mrf.mxu1  ;;  %v15852_v0 = vmax.f32 %v15486_v19, %v7563_v37  ;;  %v15909_v32 = vmax.f32 %v19522_v16, %v15646_v22  ;;  %v15915_v45 = vmax.f32 %v19523_v48, %v15652_v53  ;;  %v19524_v58 = vld [vmem:[#allocation423_spill] sm:$0xff] }
 0x5b9   : > { %v7565_v43 = vpop.f32.mrf.mxu0  ;;  %v15862_v33 = vmax.f32 %v15488_v15, %v7636_v9  ;;  %v15879_v15 = vmax.f32 %v15117_v6, %v15574_v13  ;;  %v19521_v6 = vld [vmem:[#allocation9_spill] sm:$0xff]  ;;  %v15927_v22 = vmax.f32 %v15432_v14, %v15720_v63  ;;  %v19532_v63 = vld [vmem:[#allocation187_spill] sm:$0xff]  ;;  %v19535_v9 = vld [vmem:[#allocation276_spill] sm:$0xff] }
 0x5ba   : > { %8023 = vrot.lane.b32.xlu0 %v15773_v27, %s10074_s19  ;;  %v15857_v39 = vmax.f32 %v15490_v60, %v7565_v43  ;;  %v7638_v35 = vpop.f32.mrf.mxu1  ;;  %v15873_v60 = vmax.f32 %v15107_v21, %v15570_v55  ;;  %v19520_v21 = vld [vmem:[#allocation409_spill] sm:$0xff]  ;;  %v15897_v24 = vmax.f32 %v19521_v6, %v15644_v2  ;;  %v19536_v43 = vld [vmem:[#allocation410_spill] sm:$0xff]  ;;  %v19539_v16 = vld [vmem:[#allocation411_spill] sm:$0xff] }
 0x5bb   : > { %v15867_v1 = vmax.f32 %v15492_v50, %v7638_v35  ;;  %v19519_v50 = vld [vmem:[#allocation167_spill] sm:$0xff]  ;;  %v15891_v55 = vmax.f32 %v19520_v21, %v15576_v11  ;;  %v7569_v59 = vpop.f32.mrf.mxu0  ;;  %v15983_v35 = vmax.f32 %v19536_v43, %v19535_v9  ;;  %v19538_v6 = vld [vmem:[#allocation429_spill] sm:$0xff]  ;;  %v9851_v9 = vld [vmem:[%s17626_s4 + $0x408] sm:$0xff] }
 0x5bc   : > { %8039 = vrot.lane.b32.xlu1 %v15778_v38, %s10074_s19  ;;  %v15885_v19 = vmax.f32 %v19519_v50, %v15572_v26  ;;  %v15903_v26 = vmax.f32 %v15297_v47, %v15650_v31  ;;  %v15921_v47 = vmax.f32 %v15428_v34, %v15714_v51  ;;  %v15939_v34 = vmax.f32 %v15434_v49, %v15722_v3  ;;  %v7642_v14 = vpop.f32.mrf.mxu1  ;;  %v19527_v31 = vld [vmem:[#allocation266_spill] sm:$0xff]  ;;  %v19533_v3 = vld [vmem:[#allocation169_spill] sm:$0xff]  ;;  %v19546_v43 = vld [vmem:[#allocation192_spill] sm:$0xff] }
 0x5bd   : > { %v7571_v13 = vpop.f32.mrf.mxu0  ;;  %v15944_v11 = vmax.f32 %v15494_v8, %v7569_v59  ;;  %v15956_v20 = vmax.f32 %v19524_v58, %v7642_v14  ;;  %v19526_v8 = vlaneseq  ;;  %v15977_v37 = vmax.f32 %v19533_v3, %v19532_v63  ;;  %19537 = vst [vmem:[#allocation67_spill] sm:$0xff] %v15983_v35  ;;  %v19541_v14 = vld [vmem:[#allocation274_spill] sm:$0xff]  ;;  %v9850_v3 = vld [vmem:[%s17626_s4 + $0x400] sm:$0xff] }
 0x5be   : > { %7801 = vrot.lane.b32.xlu0 %v15784_v52, %s10074_s19  ;;  %v15949_v25 = vmax.f32 %v15498_v42, %v7571_v13  ;;  %v7644_v23 = vpop.f32.mrf.mxu1  ;;  %v19529_v42 = vld [vmem:[#allocation428_spill] sm:$0xff]  ;;  %v15994_v48 = vmax.f32 %v19539_v16, %v19538_v6  ;;  %v8315_v63 = vld [vmem:[%s17626_s4 + $0x8] sm:$0xff] }
 0x5bf   : > { %19525 = vst [vmem:[#allocation303_spill] sm:$0xff] %v15956_v20  ;;  %v15961_v2 = vand.u32 127, %v19526_v8  ;;  %v15964_v53 = vmax.f32 %v19527_v31, %v7644_v23  ;;  %v15970_v10 = vmax.f32 %v19530_v36, %v19529_v42  ;;  %19534 = vst [vmem:[#allocation66_spill] sm:$0xff] %v15977_v37  ;;  %v19542_v23 = vld [vmem:[#allocation37_spill] sm:$0xff]  ;;  %v19543_v31 = vld [vmem:[#allocation46_spill] sm:$0xff] }
 0x5c0   : > { %7817 = vrot.lane.b32.xlu1 %v15790_v12, %s10074_s19  ;;  %19540 = vst [vmem:[#allocation68_spill] sm:$0xff] %v15994_v48  ;;  %v19544_v42 = vld [vmem:[#allocation11_spill] sm:$0xff] }
 0x5c1   : > { %19528 = vst [vmem:[#allocation65_spill] sm:$0xff] %v15964_v53  ;;  %19531 = vst [vmem:[#allocation304_spill] sm:$0xff] %v15970_v10  ;;  %vm8057_vm2 = vcmp.lt.s32.totalorder %v15961_v2, 127  ;;  %v16002_v36 = vmax.f32 %v19544_v42, %v19543_v31  ;;  %v19549_v42 = vld [vmem:[#allocation285_spill] sm:$0xff]  ;;  %vm9104_vm3 = vcmp.eq.s32.totalorder %v15961_v2, 1  ;;  %vm9103_vm4 = vcmp.eq.s32.totalorder %v15961_v2, 0 }
 0x5c2   : > { %7833 = vrot.lane.b32.xlu0 %v15796_v4, %s10074_s19  ;;  %v16030_v17 = vmax.f32 %v19550_v29, %v19549_v42  ;;  %v8317_v29 = vld [vmem:[%s17626_s4 + $0x18] sm:$0xff] }
 0x5c3   : > { %19545 = vst [vmem:[#allocation307_spill] sm:$0xff] %v16002_v36 }
 0x5c4   : > { %7849 = vrot.lane.b32.xlu1 %v15802_v28, %s10074_s19  ;;  %19551 = vst [vmem:[#allocation442_spill] sm:$0xff] %v16030_v17 }
 0x5c6   : > { %7865 = vrot.lane.b32.xlu0 %v15808_v54, %s10074_s19 }
 0x5c8   : > { %7881 = vrot.lane.b32.xlu1 %v15814_v41, %s10074_s19  ;;  %v15953_v49 = vpop.permute.xlu0 %7799 }
 0x5c9   : > { %v7832_v51 = vpop.permute.xlu1 %7831 }
 0x5ca   : > { %7897 = vrot.lane.b32.xlu0 %v15820_v44, %s10074_s19 }
 0x5cc   : > { %7913 = vrot.lane.b32.xlu1 %v15826_v18, %s10074_s19  ;;  %v7816_v56 = vpop.permute.xlu0 %7815 }
 0x5cd   : > { %v8162_v50 = vsel %vm8057_vm2, %v7816_v56, %v7832_v51  ;;  %v8170_v21 = vsel %vm8057_vm2, %v15953_v49, %v7816_v56  ;;  %v7848_v59 = vpop.permute.xlu1 %7847  ;;  %v8314_v56 = vld [vmem:[%s17626_s4] sm:$0xff] }
 0x5ce   : > { %7929 = vrot.lane.b32.xlu0 %v15831_v5, %s10074_s19  ;;  %v8186_v13 = vmax.f32 %v19541_v14, %v8170_v21  ;;  %v8187_v58 = vmax.f32 %v19542_v23, %v8162_v50  ;;  %v19547_v50 = vld [vmem:[#allocation418_spill] sm:$0xff]  ;;  %v8154_v6 = vsel %vm8057_vm2, %v7832_v51, %v7848_v59 }
 0x5cf   : > { %v16020_v21 = vmax.f32 %v19547_v50, %v19546_v43  ;;  %v19552_v43 = vld [vmem:[#allocation275_spill] sm:$0xff]  ;;  %v19553_v50 = vld [vmem:[#allocation186_spill] sm:$0xff] }
 0x5d0   : > { %7945 = vrot.lane.b32.xlu1 %v15836_v30, %s10074_s19  ;;  %v8442_v14 = vmul.f32 %v8314_v56, %v8186_v13  ;;  %v8443_v23 = vmul.f32 %v8315_v63, %v8187_v58  ;;  %v8188_v51 = vmax.f32 %v19552_v43, %v8154_v6  ;;  %v8316_v56 = vld [vmem:[%s17626_s4 + $0x10] sm:$0xff]  ;;  %v9853_v63 = vld [vmem:[%s17626_s4 + $0x418] sm:$0xff]  ;;  %v19558_v6 = vld [vmem:[#allocation18_spill] sm:$0xff] }
 0x5d1   : > { %19548 = vst [vmem:[#allocation200_spill] sm:$0xff] %v16020_v21 }
 0x5d2   : > { %7961 = vrot.lane.b32.xlu0 %v15842_v57, %s10074_s19 }
 0x5d4   : > { %7977 = vrot.lane.b32.xlu1 %v15847_v46, %s10074_s19 }
 0x5d6   : > { %7993 = vrot.lane.b32.xlu0 %v15852_v0, %s10074_s19 }
 0x5d8   : > { %8009 = vrot.lane.b32.xlu1 %v15857_v39, %s10074_s19 }
 0x5da   : > { %8025 = vrot.lane.b32.xlu0 %v15862_v33, %s10074_s19 }
 0x5dc   : > { %8041 = vrot.lane.b32.xlu1 %v15867_v1, %s10074_s19 }
 0x5de   : > { %7803 = vrot.lane.b32.xlu0 %v15873_v60, %s10074_s19 }
 0x5e0   : > { %7819 = vrot.lane.b32.xlu1 %v15879_v15, %s10074_s19 }
 0x5e2   : > { %7835 = vrot.lane.b32.xlu0 %v15885_v19, %s10074_s19 }
 0x5e4   : > { %7851 = vrot.lane.b32.xlu1 %v15891_v55, %s10074_s19 }
 0x5e6   : > { %7867 = vrot.lane.b32.xlu0 %v15897_v24, %s10074_s19 }
 0x5e8   : > { %7883 = vrot.lane.b32.xlu1 %v15903_v26, %s10074_s19  ;;  %v7864_v8 = vpop.permute.xlu0 %7863 }
 0x5e9   : > { %v8146_v16 = vsel %vm8057_vm2, %v7848_v59, %v7864_v8  ;;  %v19554_v59 = vld [vmem:[#allocation434_spill] sm:$0xff] }
 0x5ea   : > { %7899 = vrot.lane.b32.xlu0 %v15909_v32, %s10074_s19  ;;  %v7880_v31 = vpop.permute.xlu1 %7879 }
 0x5ec   : > { %7915 = vrot.lane.b32.xlu1 %v15915_v45, %s10074_s19 }
 0x5ee   : > { %7931 = vrot.lane.b32.xlu0 %v15921_v47, %s10074_s19 }
 0x5f0   : > { %7947 = vrot.lane.b32.xlu1 %v15927_v22, %s10074_s19 }
 0x5f2   : > { %7963 = vrot.lane.b32.xlu0 %v15933_v62, %s10074_s19 }
 0x5f4   : > { %7979 = vrot.lane.b32.xlu1 %v15939_v34, %s10074_s19 }
 0x5f6   : > { %7995 = vrot.lane.b32.xlu0 %v15944_v11, %s10074_s19 }
 0x5f8   : > { %8011 = vrot.lane.b32.xlu1 %v15949_v25, %s10074_s19 }
 0x5fa   : > { %8027 = vrot.lane.b32.xlu0 %v15956_v20, %s10074_s19  ;;  %v8318_v20 = vld [vmem:[%s17626_s4 + $0x20] sm:$0xff] }
 0x5fc   : > { %8043 = vrot.lane.b32.xlu1 %v15964_v53, %s10074_s19 }
 0x5fe   : > { %7805 = vrot.lane.b32.xlu0 %v15970_v10, %s10074_s19  ;;  %v19555_v10 = vld [vmem:[#allocation12_spill] sm:$0xff] }
 0x5ff   : > { %v16038_v53 = vmax.f32 %v19555_v10, %v19554_v59  ;;  %v8570_v10 = vadd.f32 %v8443_v23, %v8442_v14 }
 0x600   : > { %7821 = vrot.lane.b32.xlu1 %v15977_v37, %s10074_s19  ;;  %v8189_v37 = vmax.f32 %v19553_v50, %v8146_v16  ;;  %v19560_v50 = vld [vmem:[#allocation433_spill] sm:$0xff] }
 0x601   : > { %19556 = vst [vmem:[#allocation69_spill] sm:$0xff] %v16038_v53 }
 0x602   : > { %7837 = vrot.lane.b32.xlu0 %v15983_v35, %s10074_s19  ;;  %v8838_v35 = vmul.f32 %v9851_v9, %v8187_v58  ;;  %v9852_v58 = vld [vmem:[%s17626_s4 + $0x410] sm:$0xff]  ;;  %v19557_v9 = vld [vmem:[#allocation54_spill] sm:$0xff]  ;;  %v8445_v43 = vmul.f32 %v8317_v29, %v8189_v37  ;;  %v9854_v29 = vld [vmem:[%s17626_s4 + $0x420] sm:$0xff] }
 0x603   : > { %v16058_v16 = vmax.f32 %v19558_v6, %v19557_v9  ;;  %v8839_v23 = vmul.f32 %v9852_v58, %v8188_v51 }
 0x604   : > { %7853 = vrot.lane.b32.xlu1 %v15994_v48, %s10074_s19  ;;  %v8837_v48 = vmul.f32 %v9850_v3, %v8186_v13  ;;  %v8138_v13 = vsel %vm8057_vm2, %v7864_v8, %v7880_v31  ;;  %v7896_v3 = vpop.permute.xlu0 %7895  ;;  %v8444_v8 = vmul.f32 %v8316_v56, %v8188_v51  ;;  %v19564_v51 = vld [vmem:[#allocation257_spill] sm:$0xff] }
 0x605   : > { %19559 = vst [vmem:[#allocation201_spill] sm:$0xff] %v16058_v16  ;;  %v8190_v59 = vmax.f32 %v19560_v50, %v8138_v13  ;;  %v19567_v50 = vld [vmem:[#allocation56_spill] sm:$0xff] }
 0x606   : > { %7869 = vrot.lane.b32.xlu0 %v16002_v36, %s10074_s19  ;;  %v8965_v42 = vadd.f32 %v8838_v35, %v8837_v48  ;;  %v8840_v36 = vmul.f32 %v9853_v63, %v8189_v37  ;;  %v8130_v35 = vsel %vm8057_vm2, %v7880_v31, %v7896_v3  ;;  %v7573_v48 = vpop.f32.mrf.mxu0  ;;  %v8571_v56 = vadd.f32 %v8570_v10, %v8444_v8  ;;  %v19566_v63 = vld [vmem:[#allocation44_spill] sm:$0xff]  ;;  %v19568_v10 = vld [vmem:[#allocation258_spill] sm:$0xff] }
 0x607   : > { %v8446_v31 = vmul.f32 %v8318_v20, %v8190_v59  ;;  %v8191_v9 = vmax.f32 %v19566_v63, %v8130_v35  ;;  %v16086_v8 = vmax.f32 %v19568_v10, %v19567_v50  ;;  %v7646_v20 = vpop.f32.mrf.mxu1  ;;  %v19570_v35 = vld [vmem:[#allocation182_spill] sm:$0xff]  ;;  %v19573_v63 = vld [vmem:[#allocation28_spill] sm:$0xff] }
 0x608   : > { %7885 = vrot.lane.b32.xlu1 %v16020_v21, %s10074_s19  ;;  %v19562_v21 = vld [vmem:[#allocation346_spill] sm:$0xff]  ;;  %v8966_v13 = vadd.f32 %v8965_v42, %v8839_v23  ;;  %v8572_v58 = vadd.f32 %v8571_v56, %v8445_v43  ;;  %v7928_v6 = vpop.permute.xlu0 %7927  ;;  %v7575_v43 = vpop.f32.mrf.mxu0  ;;  %v16099_v56 = vmax.f32 %v19570_v35, %v7573_v48  ;;  %v8320_v48 = vld [vmem:[%s17626_s4 + $0x30] sm:$0xff] }
 0x609   : > { %19569 = vst [vmem:[#allocation70_spill] sm:$0xff] %v16086_v8  ;;  %v9855_v23 = vld [vmem:[%s17626_s4 + $0x428] sm:$0xff]  ;;  %v16107_v50 = vmax.f32 %v19573_v63, %v7575_v43 }
 0x60a   : > { %7901 = vrot.lane.b32.xlu0 %v16030_v17, %s10074_s19  ;;  %v19561_v17 = vld [vmem:[#allocation55_spill] sm:$0xff]  ;;  %19571 = vst [vmem:[#allocation202_spill] sm:$0xff] %v16099_v56 }
 0x60b   : > { %v16065_v14 = vmax.f32 %v19562_v21, %v19561_v17  ;;  %v7912_v17 = vpop.permute.xlu1 %7911  ;;  %v19563_v21 = vld [vmem:[#allocation293_spill] sm:$0xff]  ;;  %19574 = vst [vmem:[#allocation444_spill] sm:$0xff] %v16107_v50 }
 0x60c   : > { %7917 = vrot.lane.b32.xlu1 %v16038_v53, %s10074_s19  ;;  %v16079_v37 = vmax.f32 %v19564_v51, %v19563_v21  ;;  %v8841_v53 = vmul.f32 %v9854_v29, %v8190_v59  ;;  %v8319_v21 = vld [vmem:[%s17626_s4 + $0x28] sm:$0xff]  ;;  %v8122_v42 = vsel %vm8057_vm2, %v7896_v3, %v7912_v17  ;;  %v8573_v59 = vadd.f32 %v8572_v58, %v8446_v31  ;;  %v19572_v29 = vld [vmem:[#allocation283_spill] sm:$0xff]  ;;  %v19575_v31 = vld [vmem:[#allocation45_spill] sm:$0xff] }
 0x60d   : > { %v8447_v3 = vmul.f32 %v8319_v21, %v8191_v9  ;;  %v8192_v51 = vmax.f32 %v19572_v29, %v8122_v42  ;;  %v9856_v58 = vld [vmem:[%s17626_s4 + $0x430] sm:$0xff]  ;;  %v19576_v42 = vld [vmem:[#allocation424_spill] sm:$0xff] }
 0x60e   : > { %7933 = vrot.lane.b32.xlu0 %v16058_v16, %s10074_s19  ;;  %19565 = vst [vmem:[#allocation443_spill] sm:$0xff] %v16079_v37  ;;  %v8967_v16 = vadd.f32 %v8966_v13, %v8840_v36  ;;  %v8114_v36 = vsel %vm8057_vm2, %v7912_v17, %v7928_v6  ;;  %v7648_v17 = vpop.f32.mrf.mxu1  ;;  %v16119_v35 = vmax.f32 %v19576_v42, %v7646_v20  ;;  %v19578_v29 = vld [vmem:[#allocation267_spill] sm:$0xff] }
 0x60f   : > { %v7944_v13 = vpop.permute.xlu1 %7943  ;;  %v8193_v21 = vmax.f32 %v19575_v31, %v8114_v36  ;;  %v8448_v43 = vmul.f32 %v8320_v48, %v8192_v51  ;;  %v7960_v36 = vpop.permute.xlu0 %7959  ;;  %v16132_v20 = vmax.f32 %v19578_v29, %v7648_v17  ;;  %v8843_v31 = vmul.f32 %v9856_v58, %v8192_v51  ;;  %v8322_v48 = vld [vmem:[%s17626_s4 + $0x40] sm:$0xff]  ;;  %v19583_v58 = vld [vmem:[#allocation430_spill] sm:$0xff]  ;;  %v19587_v29 = vld [vmem:[#allocation188_spill] sm:$0xff] }
 0x610   : > { %7949 = vrot.lane.b32.xlu1 %v16065_v14, %s10074_s19  ;;  %v8968_v10 = vadd.f32 %v8967_v16, %v8841_v53  ;;  %19577 = vst [vmem:[#allocation309_spill] sm:$0xff] %v16119_v35  ;;  %v8321_v53 = vld [vmem:[%s17626_s4 + $0x38] sm:$0xff]  ;;  %v8106_v16 = vsel %vm8057_vm2, %v7928_v6, %v7944_v13  ;;  %v19580_v6 = vld [vmem:[#allocation438_spill] sm:$0xff]  ;;  %v8098_v17 = vsel %vm8057_vm2, %v7944_v13, %v7960_v36  ;;  %v9858_v51 = vld [vmem:[%s17626_s4 + $0x440] sm:$0xff] }
 0x611   : > { %19579 = vst [vmem:[#allocation71_spill] sm:$0xff] %v16132_v20  ;;  %v8449_v42 = vmul.f32 %v8321_v53, %v8193_v21  ;;  %v19586_v13 = vld [vmem:[#allocation292_spill] sm:$0xff] }
 0x612   : > { %7965 = vrot.lane.b32.xlu0 %v16079_v37, %s10074_s19  ;;  %v8842_v37 = vmul.f32 %v9855_v23, %v8191_v9  ;;  %v8574_v9 = vadd.f32 %v8573_v59, %v8447_v3  ;;  %v9857_v23 = vld [vmem:[%s17626_s4 + $0x438] sm:$0xff] }
 0x613   : > { %v8844_v3 = vmul.f32 %v9857_v23, %v8193_v21  ;;  %v8195_v23 = vmax.f32 %v19586_v13, %v8098_v17 }
 0x614   : > { %7981 = vrot.lane.b32.xlu1 %v16086_v8, %s10074_s19  ;;  %v8969_v63 = vadd.f32 %v8968_v10, %v8842_v37  ;;  %v19581_v8 = vld [vmem:[#allocation38_spill] sm:$0xff]  ;;  %v8575_v37 = vadd.f32 %v8574_v9, %v8448_v43  ;;  %v7976_v10 = vpop.permute.xlu1 %7975 }
 0x616   : > { %7997 = vrot.lane.b32.xlu0 %v16099_v56, %s10074_s19  ;;  %v8194_v56 = vmax.f32 %v19580_v6, %v8106_v16  ;;  %v8970_v21 = vadd.f32 %v8969_v63, %v8843_v31  ;;  %v8576_v53 = vadd.f32 %v8575_v37, %v8449_v42  ;;  %v19588_v6 = vld [vmem:[#allocation412_spill] sm:$0xff]  ;;  %v8090_v63 = vsel %vm8057_vm2, %v7960_v36, %v7976_v10  ;;  %v9859_v31 = vld [vmem:[%s17626_s4 + $0x448] sm:$0xff]  ;;  %v19590_v42 = vld [vmem:[#allocation39_spill] sm:$0xff] }
 0x617   : > { %v16160_v9 = vmax.f32 %v19588_v6, %v19587_v29  ;;  %v19593_v37 = vld [vmem:[#allocation197_spill] sm:$0xff]  ;;  %v8846_v13 = vmul.f32 %v9859_v31, %v8195_v23  ;;  %v8324_v29 = vld [vmem:[%s17626_s4 + $0x50] sm:$0xff] }
 0x618   : > { %8013 = vrot.lane.b32.xlu1 %v16107_v50, %s10074_s19  ;;  %v19582_v50 = vld [vmem:[#allocation170_spill] sm:$0xff]  ;;  %v8450_v16 = vmul.f32 %v8322_v48, %v8194_v56  ;;  %v8971_v43 = vadd.f32 %v8970_v21, %v8844_v3  ;;  %v19591_v48 = vld [vmem:[#allocation413_spill] sm:$0xff] }
 0x619   : > { %v16139_v59 = vmax.f32 %v19582_v50, %v19581_v8  ;;  %v19584_v8 = vld [vmem:[#allocation171_spill] sm:$0xff]  ;;  %19589 = vst [vmem:[#allocation311_spill] sm:$0xff] %v16160_v9  ;;  %v16174_v17 = vmax.f32 %v19591_v48, %v19590_v42  ;;  %v19595_v36 = vld [vmem:[#allocation177_spill] sm:$0xff] }
 0x61a   : > { %8029 = vrot.lane.b32.xlu0 %v16119_v35, %s10074_s19  ;;  %v16153_v50 = vmax.f32 %v19584_v8, %v19583_v58  ;;  %v8323_v35 = vld [vmem:[%s17626_s4 + $0x48] sm:$0xff]  ;;  %v19594_v58 = vld [vmem:[#allocation47_spill] sm:$0xff] }
 0x61b   : > { %19592 = vst [vmem:[#allocation73_spill] sm:$0xff] %v16174_v17  ;;  %v8451_v3 = vmul.f32 %v8323_v35, %v8195_v23  ;;  %v16181_v8 = vmax.f32 %v19595_v36, %v19594_v58  ;;  %v19597_v35 = vld [vmem:[#allocation435_spill] sm:$0xff]  ;;  %v8325_v58 = vld [vmem:[%s17626_s4 + $0x58] sm:$0xff] }
 0x61c   : > { %8045 = vrot.lane.b32.xlu1 %v16132_v20, %s10074_s19  ;;  %19585 = vst [vmem:[#allocation72_spill] sm:$0xff] %v16153_v50  ;;  %v8845_v20 = vmul.f32 %v9858_v51, %v8194_v56  ;;  %v8577_v56 = vadd.f32 %v8576_v53, %v8450_v16  ;;  %v8196_v51 = vmax.f32 %v19593_v37, %v8090_v63  ;;  %v9860_v53 = vld [vmem:[%s17626_s4 + $0x450] sm:$0xff]  ;;  %v9861_v36 = vld [vmem:[%s17626_s4 + $0x458] sm:$0xff] }
 0x61d   : > { %19596 = vst [vmem:[#allocation312_spill] sm:$0xff] %v16181_v8  ;;  %v19598_v16 = vld [vmem:[#allocation251_spill] sm:$0xff] }
 0x61e   : > { %7807 = vrot.lane.b32.xlu0 %v16139_v59, %s10074_s19  ;;  %v8972_v21 = vadd.f32 %v8971_v43, %v8845_v20  ;;  %v16193_v6 = vmax.f32 %v19598_v16, %v19597_v35  ;;  %v8578_v20 = vadd.f32 %v8577_v56, %v8451_v3  ;;  %v8452_v23 = vmul.f32 %v8324_v29, %v8196_v51  ;;  %v19600_v43 = vld [vmem:[#allocation193_spill] sm:$0xff]  ;;  %v19601_v63 = vld [vmem:[#allocation419_spill] sm:$0xff]  ;;  %v19603_v3 = vld [vmem:[#allocation286_spill] sm:$0xff] }
 0x61f   : > { %v16199_v31 = vmax.f32 %v19601_v63, %v19600_v43  ;;  %v8847_v48 = vmul.f32 %v9860_v53, %v8196_v51  ;;  %v19604_v29 = vld [vmem:[#allocation178_spill] sm:$0xff]  ;;  %v19605_v51 = vld [vmem:[#allocation439_spill] sm:$0xff]  ;;  %v19607_v16 = vld [vmem:[#allocation20_spill] sm:$0xff] }
 0x620   : > { %7823 = vrot.lane.b32.xlu1 %v16153_v50, %s10074_s19  ;;  %19599 = vst [vmem:[#allocation313_spill] sm:$0xff] %v16193_v6  ;;  %v8973_v42 = vadd.f32 %v8972_v21, %v8846_v13  ;;  %v16213_v35 = vmax.f32 %v19604_v29, %v19603_v3  ;;  %v19606_v53 = vld [vmem:[#allocation295_spill] sm:$0xff]  ;;  %v8579_v63 = vadd.f32 %v8578_v20, %v8452_v23  ;;  %v19608_v20 = vld [vmem:[#allocation198_spill] sm:$0xff]  ;;  %v19609_v23 = vld [vmem:[#allocation21_spill] sm:$0xff] }
 0x621   : > { %19602 = vst [vmem:[#allocation203_spill] sm:$0xff] %v16199_v31  ;;  %v16220_v43 = vmax.f32 %v19607_v16, %v19606_v53  ;;  %v16235_v53 = vmax.f32 %v19609_v23, %v19608_v20 }
 0x622   : > { %7839 = vrot.lane.b32.xlu0 %v16160_v9, %s10074_s19  ;;  %v8974_v3 = vadd.f32 %v8973_v42, %v8847_v48  ;;  %v8327_v42 = vld [vmem:[%s17626_s4 + $0x68] sm:$0xff] }
 0x624   : > { %7855 = vrot.lane.b32.xlu1 %v16174_v17, %s10074_s19 }
 0x626   : > { %7871 = vrot.lane.b32.xlu0 %v16181_v8, %s10074_s19 }
 0x628   : > { %v7992_v37 = vpop.permute.xlu0 %7991  ;;  %7887 = vrot.lane.b32.xlu1 %v16193_v6, %s10074_s19  ;;  %v8326_v6 = vld [vmem:[%s17626_s4 + $0x60] sm:$0xff] }
 0x629   : > { %v8082_v56 = vsel %vm8057_vm2, %v7976_v10, %v7992_v37  ;;  %v9862_v10 = vld [vmem:[%s17626_s4 + $0x460] sm:$0xff] }
 0x62a   : > { %v8197_v21 = vmax.f32 %v19605_v51, %v8082_v56  ;;  %v8008_v13 = vpop.permute.xlu1 %8007  ;;  %7903 = vrot.lane.b32.xlu0 %v16199_v31, %s10074_s19 }
 0x62b   : > { %v8074_v56 = vsel %vm8057_vm2, %v7992_v37, %v8008_v13 }
 0x62c   : > { %v8453_v29 = vmul.f32 %v8325_v58, %v8197_v21  ;;  %v8848_v51 = vmul.f32 %v9861_v36, %v8197_v21  ;;  %v8198_v31 = vmax.f32 %v15765_v40, %v8074_v56  ;;  %v8024_v8 = vpop.permute.xlu0 %8023  ;;  %7919 = vrot.lane.b32.xlu1 %v16213_v35, %s10074_s19  ;;  %v9863_v40 = vld [vmem:[%s17626_s4 + $0x468] sm:$0xff]  ;;  %v19610_v58 = vld [vmem:[#allocation57_spill] sm:$0xff]  ;;  %v19611_v36 = vld [vmem:[#allocation259_spill] sm:$0xff] }
 0x62d   : > { %v8066_v16 = vsel %vm8057_vm2, %v8008_v13, %v8024_v8  ;;  %v16249_v21 = vmax.f32 %v19611_v36, %v19610_v58  ;;  %v7579_v13 = vpop.f32.mrf.mxu0  ;;  %v19612_v58 = vld [vmem:[#allocation440_spill] sm:$0xff]  ;;  %v19613_v36 = vld [vmem:[#allocation22_spill] sm:$0xff] }
 0x62e   : > { %v8580_v17 = vadd.f32 %v8579_v63, %v8453_v29  ;;  %v8975_v9 = vadd.f32 %v8974_v3, %v8848_v51  ;;  %v8454_v50 = vmul.f32 %v8326_v6, %v8198_v31  ;;  %v8849_v37 = vmul.f32 %v9862_v10, %v8198_v31  ;;  %v8040_v48 = vpop.permute.xlu1 %8039  ;;  %7935 = vrot.lane.b32.xlu0 %v16220_v43, %s10074_s19  ;;  %v8328_v31 = vld [vmem:[%s17626_s4 + $0x70] sm:$0xff] }
 0x62f   : > { %v8199_v6 = vmax.f32 %v15768_v7, %v8066_v16  ;;  %v9864_v63 = vld [vmem:[%s17626_s4 + $0x470] sm:$0xff]  ;;  %v8058_v10 = vsel %vm8057_vm2, %v8024_v8, %v8040_v48  ;;  %v8178_v56 = vsel %vm8057_vm2, %v8040_v48, %v15953_v49  ;;  %v8329_v8 = vld [vmem:[%s17626_s4 + $0x78] sm:$0xff]  ;;  %v16274_v49 = vmax.f32 %v19613_v36, %v19612_v58  ;;  %v8330_v48 = vld [vmem:[%s17626_s4 + $0x80] sm:$0xff] }
 0x630   : > { %v8581_v3 = vadd.f32 %v8580_v17, %v8454_v50  ;;  %v8976_v29 = vadd.f32 %v8975_v9, %v8849_v37  ;;  %v8200_v51 = vmax.f32 %v15773_v27, %v8058_v10  ;;  %v8201_v7 = vmax.f32 %v15778_v38, %v8178_v56  ;;  %v16265_v20 = vpop.permute.xlu0 %7801  ;;  %7951 = vrot.lane.b32.xlu1 %v16235_v53, %s10074_s19  ;;  %v9865_v27 = vld [vmem:[%s17626_s4 + $0x478] sm:$0xff]  ;;  %v7652_v17 = vpop.f32.mrf.mxu1  ;;  %v8331_v58 = vld [vmem:[%s17626_s4 + $0x88] sm:$0xff] }
 0x631   : > { %v8455_v23 = vmul.f32 %v8327_v42, %v8199_v6  ;;  %v8850_v16 = vmul.f32 %v9863_v40, %v8199_v6  ;;  %v7581_v37 = vpop.f32.mrf.mxu0  ;;  %v9866_v6 = vld [vmem:[%s17626_s4 + $0x480] sm:$0xff]  ;;  %v9867_v36 = vld [vmem:[%s17626_s4 + $0x488] sm:$0xff] }
 0x632   : > { %v8456_v38 = vmul.f32 %v8328_v31, %v8200_v51  ;;  %v8851_v50 = vmul.f32 %v9864_v63, %v8200_v51  ;;  %v7818_v9 = vpop.permute.xlu1 %7817  ;;  %7967 = vrot.lane.b32.xlu0 %v16249_v21, %s10074_s19  ;;  %v19614_v63 = vld [vmem:[#allocation268_spill] sm:$0xff]  ;;  %v8457_v56 = vmul.f32 %v8329_v8, %v8201_v7  ;;  %v19615_v8 = vld [vmem:[#allocation269_spill] sm:$0xff] }
 0x633   : > { %v8582_v42 = vadd.f32 %v8581_v3, %v8455_v23  ;;  %v8977_v40 = vadd.f32 %v8976_v29, %v8850_v16  ;;  %v8171_v31 = vsel %vm8057_vm2, %v16265_v20, %v7818_v9  ;;  %v16291_v10 = vmax.f32 %v19614_v63, %v7579_v13 }
 0x634   : > { %v8202_v51 = vmax.f32 %v15784_v52, %v8171_v31  ;;  %v7834_v3 = vpop.permute.xlu0 %7833  ;;  %7983 = vrot.lane.b32.xlu1 %v16274_v49, %s10074_s19  ;;  %v8852_v23 = vmul.f32 %v9865_v27, %v8201_v7  ;;  %v16305_v52 = vmax.f32 %v19615_v8, %v7581_v37  ;;  %v7654_v27 = vpop.f32.mrf.mxu1 }
 0x635   : > { %v8583_v29 = vadd.f32 %v8582_v42, %v8456_v38  ;;  %v8978_v16 = vadd.f32 %v8977_v40, %v8851_v50  ;;  %v8163_v13 = vsel %vm8057_vm2, %v7818_v9, %v7834_v3  ;;  %v8332_v40 = vld [vmem:[%s17626_s4 + $0x90] sm:$0xff] }
 0x636   : > { %v8458_v31 = vmul.f32 %v8330_v48, %v8202_v51  ;;  %v8853_v63 = vmul.f32 %v9866_v6, %v8202_v51  ;;  %v8203_v38 = vmax.f32 %v15790_v12, %v8163_v13  ;;  %v7850_v7 = vpop.permute.xlu1 %7849  ;;  %7999 = vrot.lane.b32.xlu0 %v16291_v10, %s10074_s19  ;;  %v9868_v9 = vld [vmem:[%s17626_s4 + $0x490] sm:$0xff]  ;;  %v19616_v48 = vld [vmem:[#allocation30_spill] sm:$0xff] }
 0x637   : > { %v8584_v50 = vadd.f32 %v8583_v29, %v8457_v56  ;;  %v8979_v42 = vadd.f32 %v8978_v16, %v8852_v23  ;;  %v8155_v37 = vsel %vm8057_vm2, %v7834_v3, %v7850_v7  ;;  %v16319_v12 = vmax.f32 %v19616_v48, %v7652_v17  ;;  %v8333_v16 = vld [vmem:[%s17626_s4 + $0x98] sm:$0xff] }
 0x638   : > { %v8459_v6 = vmul.f32 %v8331_v58, %v8203_v38  ;;  %v8854_v51 = vmul.f32 %v9867_v36, %v8203_v38  ;;  %v8204_v13 = vmax.f32 %v15796_v4, %v8155_v37  ;;  %v7866_v56 = vpop.permute.xlu0 %7865  ;;  %8015 = vrot.lane.b32.xlu1 %v16305_v52, %s10074_s19  ;;  %v9869_v3 = vld [vmem:[%s17626_s4 + $0x498] sm:$0xff]  ;;  %v19617_v58 = vld [vmem:[#allocation270_spill] sm:$0xff] }
 0x639   : > { %v8585_v29 = vadd.f32 %v8584_v50, %v8458_v31  ;;  %v8980_v23 = vadd.f32 %v8979_v42, %v8853_v63  ;;  %v8147_v17 = vsel %vm8057_vm2, %v7850_v7, %v7866_v56  ;;  %v16333_v36 = vmax.f32 %v19617_v58, %v7654_v27  ;;  %v8334_v42 = vld [vmem:[%s17626_s4 + $0xa0] sm:$0xff] }
 0x63a   : > { %v8460_v4 = vmul.f32 %v8332_v40, %v8204_v13  ;;  %v8855_v8 = vmul.f32 %v9868_v9, %v8204_v13  ;;  %v8205_v38 = vmax.f32 %v15802_v28, %v8147_v17  ;;  %v7882_v31 = vpop.permute.xlu1 %7881  ;;  %8031 = vrot.lane.b32.xlu0 %v16319_v12, %s10074_s19  ;;  %v9870_v7 = vld [vmem:[%s17626_s4 + $0x4a0] sm:$0xff]  ;;  %v19618_v40 = vld [vmem:[#allocation278_spill] sm:$0xff]  ;;  %v19619_v9 = vld [vmem:[#allocation172_spill] sm:$0xff] }
 0x63b   : > { %v8586_v63 = vadd.f32 %v8585_v29, %v8459_v6  ;;  %v8981_v50 = vadd.f32 %v8980_v23, %v8854_v51  ;;  %v8139_v27 = vsel %vm8057_vm2, %v7866_v56, %v7882_v31  ;;  %v16348_v28 = vmax.f32 %v19619_v9, %v19618_v40  ;;  %v8335_v23 = vld [vmem:[%s17626_s4 + $0xa8] sm:$0xff]  ;;  %v19621_v17 = vld [vmem:[#allocation173_spill] sm:$0xff] }
 0x63c   : > { %v8461_v37 = vmul.f32 %v8333_v16, %v8205_v38  ;;  %v8856_v48 = vmul.f32 %v9869_v3, %v8205_v38  ;;  %v8206_v6 = vmax.f32 %v15808_v54, %v8139_v27  ;;  %v7898_v51 = vpop.permute.xlu0 %7897  ;;  %8047 = vrot.lane.b32.xlu1 %v16333_v36, %s10074_s19  ;;  %v9871_v56 = vld [vmem:[%s17626_s4 + $0x4a8] sm:$0xff]  ;;  %v19620_v3 = vld [vmem:[#allocation41_spill] sm:$0xff]  ;;  %v8336_v27 = vld [vmem:[%s17626_s4 + $0xb0] sm:$0xff] }
 0x63d   : > { %v8587_v13 = vadd.f32 %v8586_v63, %v8460_v4  ;;  %v8982_v29 = vadd.f32 %v8981_v50, %v8855_v8  ;;  %v8131_v16 = vsel %vm8057_vm2, %v7882_v31, %v7898_v51  ;;  %v16363_v54 = vmax.f32 %v19621_v17, %v19620_v3  ;;  %v9872_v31 = vld [vmem:[%s17626_s4 + $0x4b0] sm:$0xff]  ;;  %v19623_v40 = vld [vmem:[#allocation414_spill] sm:$0xff] }
 0x63e   : > { %v8462_v58 = vmul.f32 %v8334_v42, %v8206_v6  ;;  %v8857_v38 = vmul.f32 %v9870_v7, %v8206_v6  ;;  %v8207_v4 = vmax.f32 %v15814_v41, %v8131_v16  ;;  %v7914_v8 = vpop.permute.xlu1 %7913  ;;  %7809 = vrot.lane.b32.xlu0 %v16348_v28, %s10074_s19  ;;  %v19622_v7 = vld [vmem:[#allocation40_spill] sm:$0xff]  ;;  %v19625_v3 = vld [vmem:[#allocation415_spill] sm:$0xff] }
 0x63f   : > { %v8588_v63 = vadd.f32 %v8587_v13, %v8461_v37  ;;  %v8983_v50 = vadd.f32 %v8982_v29, %v8856_v48  ;;  %v8123_v42 = vsel %vm8057_vm2, %v7898_v51, %v7914_v8  ;;  %v16378_v41 = vmax.f32 %v19623_v40, %v19622_v7  ;;  %v8337_v16 = vld [vmem:[%s17626_s4 + $0xb8] sm:$0xff] }
 0x640   : > { %v8463_v9 = vmul.f32 %v8335_v23, %v8207_v4  ;;  %v8858_v6 = vmul.f32 %v9871_v56, %v8207_v4  ;;  %v8208_v37 = vmax.f32 %v15820_v44, %v8123_v42  ;;  %v7930_v48 = vpop.permute.xlu0 %7929  ;;  %7825 = vrot.lane.b32.xlu1 %v16363_v54, %s10074_s19  ;;  %v9873_v51 = vld [vmem:[%s17626_s4 + $0x4b8] sm:$0xff]  ;;  %v8338_v42 = vld [vmem:[%s17626_s4 + $0xc0] sm:$0xff] }
 0x641   : > { %v8589_v13 = vadd.f32 %v8588_v63, %v8462_v58  ;;  %v8984_v29 = vadd.f32 %v8983_v50, %v8857_v38  ;;  %v8115_v23 = vsel %vm8057_vm2, %v7914_v8, %v7930_v48  ;;  %v19624_v56 = vld [vmem:[#allocation280_spill] sm:$0xff]  ;;  %v9874_v8 = vld [vmem:[%s17626_s4 + $0x4c0] sm:$0xff] }
 0x642   : > { %v16393_v44 = vmax.f32 %v19625_v3, %v19624_v56  ;;  %v8464_v17 = vmul.f32 %v8336_v27, %v8208_v37  ;;  %v8859_v4 = vmul.f32 %v9872_v31, %v8208_v37  ;;  %v8209_v58 = vmax.f32 %v15826_v18, %v8115_v23  ;;  %v7946_v38 = vpop.permute.xlu1 %7945  ;;  %7841 = vrot.lane.b32.xlu0 %v16378_v41, %s10074_s19  ;;  %v19626_v31 = vld [vmem:[#allocation194_spill] sm:$0xff]  ;;  %v19627_v7 = vld [vmem:[#allocation420_spill] sm:$0xff] }
 0x643   : > { %v8590_v63 = vadd.f32 %v8589_v13, %v8463_v9  ;;  %v8985_v50 = vadd.f32 %v8984_v29, %v8858_v6  ;;  %v8107_v27 = vsel %vm8057_vm2, %v7930_v48, %v7946_v38  ;;  %v16408_v18 = vmax.f32 %v19627_v7, %v19626_v31  ;;  %v8339_v23 = vld [vmem:[%s17626_s4 + $0xc8] sm:$0xff]  ;;  %v19629_v56 = vld [vmem:[#allocation252_spill] sm:$0xff]  ;;  %v19631_v31 = vld [vmem:[#allocation13_spill] sm:$0xff] }
 0x644   : > { %v8465_v40 = vmul.f32 %v8337_v16, %v8209_v58  ;;  %v8860_v37 = vmul.f32 %v9873_v51, %v8209_v58  ;;  %v8210_v9 = vmax.f32 %v15831_v5, %v8107_v27  ;;  %v7962_v6 = vpop.permute.xlu0 %7961  ;;  %7857 = vrot.lane.b32.xlu1 %v16393_v44, %s10074_s19  ;;  %v9875_v48 = vld [vmem:[%s17626_s4 + $0x4c8] sm:$0xff]  ;;  %v19628_v51 = vld [vmem:[#allocation287_spill] sm:$0xff] }
 0x645   : > { %v8591_v13 = vadd.f32 %v8590_v63, %v8464_v17  ;;  %v8986_v29 = vadd.f32 %v8985_v50, %v8859_v4  ;;  %v8099_v16 = vsel %vm8057_vm2, %v7946_v38, %v7962_v6  ;;  %v16423_v5 = vmax.f32 %v19629_v56, %v19628_v51  ;;  %v8340_v27 = vld [vmem:[%s17626_s4 + $0xd0] sm:$0xff]  ;;  %v19633_v51 = vld [vmem:[#allocation337_spill] sm:$0xff] }
 0x646   : > { %v8466_v3 = vmul.f32 %v8338_v42, %v8210_v9  ;;  %v8861_v58 = vmul.f32 %v9874_v8, %v8210_v9  ;;  %v8211_v17 = vmax.f32 %v15836_v30, %v8099_v16  ;;  %v7978_v4 = vpop.permute.xlu1 %7977  ;;  %7873 = vrot.lane.b32.xlu0 %v16408_v18, %s10074_s19  ;;  %v9876_v38 = vld [vmem:[%s17626_s4 + $0x4d0] sm:$0xff]  ;;  %v19630_v8 = vld [vmem:[#allocation436_spill] sm:$0xff] }
 0x647   : > { %v8592_v63 = vadd.f32 %v8591_v13, %v8465_v40  ;;  %v8987_v50 = vadd.f32 %v8986_v29, %v8860_v37  ;;  %v8091_v42 = vsel %vm8057_vm2, %v7962_v6, %v7978_v4  ;;  %v16438_v30 = vmax.f32 %v19631_v31, %v19630_v8  ;;  %v8341_v16 = vld [vmem:[%s17626_s4 + $0xd8] sm:$0xff]  ;;  %v19635_v8 = vld [vmem:[#allocation62_spill] sm:$0xff] }
 0x648   : > { %v8467_v7 = vmul.f32 %v8339_v23, %v8211_v17  ;;  %v8862_v9 = vmul.f32 %v9875_v48, %v8211_v17  ;;  %v8212_v40 = vmax.f32 %v15842_v57, %v8091_v42  ;;  %v7994_v37 = vpop.permute.xlu0 %7993  ;;  %7889 = vrot.lane.b32.xlu1 %v16423_v5, %s10074_s19  ;;  %v9877_v6 = vld [vmem:[%s17626_s4 + $0x4d8] sm:$0xff]  ;;  %v19632_v48 = vld [vmem:[#allocation49_spill] sm:$0xff] }
 0x649   : > { %v8593_v13 = vadd.f32 %v8592_v63, %v8466_v3  ;;  %v8988_v29 = vadd.f32 %v8987_v50, %v8861_v58  ;;  %v8083_v23 = vsel %vm8057_vm2, %v7978_v4, %v7994_v37  ;;  %v16453_v57 = vmax.f32 %v19633_v51, %v19632_v48  ;;  %v8342_v42 = vld [vmem:[%s17626_s4 + $0xe0] sm:$0xff] }
 0x64a   : > { %v8468_v56 = vmul.f32 %v8340_v27, %v8212_v40  ;;  %v8863_v17 = vmul.f32 %v9876_v38, %v8212_v40  ;;  %v8213_v3 = vmax.f32 %v15847_v46, %v8083_v23  ;;  %v8010_v58 = vpop.permute.xlu1 %8009  ;;  %7905 = vrot.lane.b32.xlu0 %v16438_v30, %s10074_s19  ;;  %v9878_v4 = vld [vmem:[%s17626_s4 + $0x4e0] sm:$0xff]  ;;  %v19634_v38 = vld [vmem:[#allocation296_spill] sm:$0xff] }
 0x64b   : > { %v8594_v63 = vadd.f32 %v8593_v13, %v8467_v7  ;;  %v8989_v50 = vadd.f32 %v8988_v29, %v8862_v9  ;;  %v8075_v27 = vsel %vm8057_vm2, %v7994_v37, %v8010_v58  ;;  %v16468_v46 = vmax.f32 %v19635_v8, %v19634_v38  ;;  %v19636_v13 = vld [vmem:[#allocation199_spill] sm:$0xff]  ;;  %v19637_v29 = vld [vmem:[#allocation261_spill] sm:$0xff]  ;;  %v8343_v37 = vld [vmem:[%s17626_s4 + $0xe8] sm:$0xff] }
 0x64c   : > { %v8469_v31 = vmul.f32 %v8341_v16, %v8213_v3  ;;  %v8864_v40 = vmul.f32 %v9877_v6, %v8213_v3  ;;  %v8214_v7 = vmax.f32 %v15852_v0, %v8075_v27  ;;  %v8026_v9 = vpop.permute.xlu0 %8025  ;;  %7921 = vrot.lane.b32.xlu1 %v16453_v57, %s10074_s19  ;;  %v16475_v23 = vmax.f32 %v19637_v29, %v19636_v13  ;;  %v9879_v16 = vld [vmem:[%s17626_s4 + $0x4e8] sm:$0xff]  ;;  %v19638_v6 = vld [vmem:[#allocation441_spill] sm:$0xff]  ;;  %v19639_v3 = vld [vmem:[#allocation23_spill] sm:$0xff] }
 0x64d   : > { %v8595_v48 = vadd.f32 %v8594_v63, %v8468_v56  ;;  %v8990_v51 = vadd.f32 %v8989_v50, %v8863_v17  ;;  %v8067_v0 = vsel %vm8057_vm2, %v8010_v58, %v8026_v9  ;;  %v16487_v27 = vmax.f32 %v19639_v3, %v19638_v6  ;;  %v7583_v63 = vpop.f32.mrf.mxu0  ;;  %v8344_v29 = vld [vmem:[%s17626_s4 + $0xf0] sm:$0xff]  ;;  %v19640_v6 = vld [vmem:[#allocation297_spill] sm:$0xff]  ;;  %v19641_v3 = vld [vmem:[#allocation262_spill] sm:$0xff] }
 0x64e   : > { %v8470_v38 = vmul.f32 %v8342_v42, %v8214_v7  ;;  %v8865_v8 = vmul.f32 %v9878_v4, %v8214_v7  ;;  %v8215_v56 = vmax.f32 %v15857_v39, %v8067_v0  ;;  %v8042_v17 = vpop.permute.xlu1 %8041  ;;  %7937 = vrot.lane.b32.xlu0 %v16468_v46, %s10074_s19  ;;  %v9880_v58 = vld [vmem:[%s17626_s4 + $0x4f0] sm:$0xff] }
 0x64f   : > { %v8596_v50 = vadd.f32 %v8595_v48, %v8469_v31  ;;  %v8991_v13 = vadd.f32 %v8990_v51, %v8864_v40  ;;  %v8059_v42 = vsel %vm8057_vm2, %v8026_v9, %v8042_v17  ;;  %v8179_v39 = vsel %vm8057_vm2, %v8042_v17, %v16265_v20  ;;  %v8345_v9 = vld [vmem:[%s17626_s4 + $0xf8] sm:$0xff] }
 0x650   : > { %v8471_v4 = vmul.f32 %v8343_v37, %v8215_v56  ;;  %v8866_v7 = vmul.f32 %v9879_v16, %v8215_v56  ;;  %v8216_v31 = vmax.f32 %v15862_v33, %v8059_v42  ;;  %v8217_v40 = vmax.f32 %v15867_v1, %v8179_v39  ;;  %v16505_v48 = vpop.permute.xlu0 %7803  ;;  %7953 = vrot.lane.b32.xlu1 %v16487_v27, %s10074_s19  ;;  %v9881_v33 = vld [vmem:[%s17626_s4 + $0x4f8] sm:$0xff] }
 0x651   : > { %v8597_v51 = vadd.f32 %v8596_v50, %v8470_v38  ;;  %v8992_v0 = vadd.f32 %v8991_v13, %v8865_v8  ;;  %v16514_v20 = vmax.f32 %v19641_v3, %v19640_v6  ;;  %v7656_v38 = vpop.f32.mrf.mxu1  ;;  %v7585_v8 = vpop.f32.mrf.mxu0  ;;  %v8346_v50 = vld [vmem:[%s17626_s4 + $0x100] sm:$0xff]  ;;  %v8347_v6 = vld [vmem:[%s17626_s4 + $0x108] sm:$0xff] }
 0x652   : > { %v8472_v1 = vmul.f32 %v8344_v29, %v8216_v31  ;;  %v8867_v37 = vmul.f32 %v9880_v58, %v8216_v31  ;;  %v7820_v16 = vpop.permute.xlu1 %7819  ;;  %7969 = vrot.lane.b32.xlu0 %v16475_v23, %s10074_s19  ;;  %v9882_v13 = vld [vmem:[%s17626_s4 + $0x500] sm:$0xff]  ;;  %v19642_v58 = vld [vmem:[#allocation32_spill] sm:$0xff]  ;;  %v8473_v39 = vmul.f32 %v8345_v9, %v8217_v40  ;;  %v9883_v3 = vld [vmem:[%s17626_s4 + $0x508] sm:$0xff] }
 0x653   : > { %v8598_v56 = vadd.f32 %v8597_v51, %v8471_v4  ;;  %v8993_v17 = vadd.f32 %v8992_v0, %v8866_v7  ;;  %v8172_v29 = vsel %vm8057_vm2, %v16505_v48, %v7820_v16  ;;  %v16531_v42 = vmax.f32 %v19642_v58, %v7583_v63  ;;  %v19643_v9 = vld [vmem:[#allocation425_spill] sm:$0xff] }
 0x654   : > { %v8218_v31 = vmax.f32 %v15873_v60, %v8172_v29  ;;  %v7836_v4 = vpop.permute.xlu0 %7835  ;;  %7985 = vrot.lane.b32.xlu1 %v16514_v20, %s10074_s19  ;;  %v8868_v51 = vmul.f32 %v9881_v33, %v8217_v40  ;;  %v16545_v60 = vmax.f32 %v19643_v9, %v7585_v8  ;;  %v7658_v33 = vpop.f32.mrf.mxu1 }
 0x655   : > { %v8599_v7 = vadd.f32 %v8598_v56, %v8472_v1  ;;  %v8994_v0 = vadd.f32 %v8993_v17, %v8867_v37  ;;  %v8164_v63 = vsel %vm8057_vm2, %v7820_v16, %v7836_v4  ;;  %v8348_v17 = vld [vmem:[%s17626_s4 + $0x110] sm:$0xff] }
 0x656   : > { %v8474_v29 = vmul.f32 %v8346_v50, %v8218_v31  ;;  %v8869_v58 = vmul.f32 %v9882_v13, %v8218_v31  ;;  %v8219_v1 = vmax.f32 %v15879_v15, %v8164_v63  ;;  %v7852_v40 = vpop.permute.xlu1 %7851  ;;  %8001 = vrot.lane.b32.xlu0 %v16531_v42, %s10074_s19  ;;  %v9884_v16 = vld [vmem:[%s17626_s4 + $0x510] sm:$0xff] }
 0x657   : > { %v8600_v37 = vadd.f32 %v8599_v7, %v8473_v39  ;;  %v8995_v56 = vadd.f32 %v8994_v0, %v8868_v51  ;;  %v8156_v8 = vsel %vm8057_vm2, %v7836_v4, %v7852_v40  ;;  %v19644_v50 = vld [vmem:[#allocation183_spill] sm:$0xff]  ;;  %v8349_v0 = vld [vmem:[%s17626_s4 + $0x118] sm:$0xff] }
 0x658   : > { %v16559_v15 = vmax.f32 %v19644_v50, %v7656_v38  ;;  %v8475_v13 = vmul.f32 %v8347_v6, %v8219_v1  ;;  %v8870_v31 = vmul.f32 %v9883_v3, %v8219_v1  ;;  %v8220_v63 = vmax.f32 %v15885_v19, %v8156_v8  ;;  %v7868_v39 = vpop.permute.xlu0 %7867  ;;  %8017 = vrot.lane.b32.xlu1 %v16545_v60, %s10074_s19  ;;  %v9885_v4 = vld [vmem:[%s17626_s4 + $0x518] sm:$0xff]  ;;  %v19645_v6 = vld [vmem:[#allocation271_spill] sm:$0xff] }
 0x659   : > { %v8601_v7 = vadd.f32 %v8600_v37, %v8474_v29  ;;  %v8996_v51 = vadd.f32 %v8995_v56, %v8869_v58  ;;  %v8148_v38 = vsel %vm8057_vm2, %v7852_v40, %v7868_v39  ;;  %v16573_v3 = vmax.f32 %v19645_v6, %v7658_v33  ;;  %v8350_v56 = vld [vmem:[%s17626_s4 + $0x120] sm:$0xff] }
 0x65a   : > { %v8476_v19 = vmul.f32 %v8348_v17, %v8220_v63  ;;  %v8871_v9 = vmul.f32 %v9884_v16, %v8220_v63  ;;  %v8221_v1 = vmax.f32 %v15891_v55, %v8148_v38  ;;  %v7884_v29 = vpop.permute.xlu1 %7883  ;;  %8033 = vrot.lane.b32.xlu0 %v16559_v15, %s10074_s19  ;;  %v9886_v40 = vld [vmem:[%s17626_s4 + $0x520] sm:$0xff]  ;;  %v19646_v17 = vld [vmem:[#allocation42_spill] sm:$0xff]  ;;  %v19649_v38 = vld [vmem:[#allocation416_spill] sm:$0xff] }
 0x65b   : > { %v8602_v58 = vadd.f32 %v8601_v7, %v8475_v13  ;;  %v8997_v37 = vadd.f32 %v8996_v51, %v8870_v31  ;;  %v8140_v33 = vsel %vm8057_vm2, %v7868_v39, %v7884_v29  ;;  %v19647_v16 = vld [vmem:[#allocation246_spill] sm:$0xff] }
 0x65c   : > { %v16588_v55 = vmax.f32 %v19647_v16, %v19646_v17  ;;  %v8477_v8 = vmul.f32 %v8349_v0, %v8221_v1  ;;  %v8872_v50 = vmul.f32 %v9885_v4, %v8221_v1  ;;  %v8222_v13 = vmax.f32 %v15897_v24, %v8140_v33  ;;  %v7900_v31 = vpop.permute.xlu0 %7899  ;;  %8049 = vrot.lane.b32.xlu1 %v16573_v3, %s10074_s19  ;;  %v8351_v51 = vld [vmem:[%s17626_s4 + $0x128] sm:$0xff]  ;;  %v19648_v4 = vld [vmem:[#allocation431_spill] sm:$0xff] }
 0x65d   : > { %v8603_v63 = vadd.f32 %v8602_v58, %v8476_v19  ;;  %v8998_v7 = vadd.f32 %v8997_v37, %v8871_v9  ;;  %v9887_v39 = vld [vmem:[%s17626_s4 + $0x528] sm:$0xff]  ;;  %v8132_v0 = vsel %vm8057_vm2, %v7884_v29, %v7900_v31  ;;  %v16603_v24 = vmax.f32 %v19649_v38, %v19648_v4  ;;  %v8352_v33 = vld [vmem:[%s17626_s4 + $0x130] sm:$0xff]  ;;  %v19653_v4 = vld [vmem:[#allocation8_spill] sm:$0xff] }
 0x65e   : > { %v8478_v6 = vmul.f32 %v8350_v56, %v8222_v13  ;;  %v8873_v1 = vmul.f32 %v9886_v40, %v8222_v13  ;;  %v8223_v19 = vmax.f32 %v15903_v26, %v8132_v0  ;;  %v7916_v9 = vpop.permute.xlu1 %7915  ;;  %7811 = vrot.lane.b32.xlu0 %v16588_v55, %s10074_s19  ;;  %v9888_v29 = vld [vmem:[%s17626_s4 + $0x530] sm:$0xff]  ;;  %v19650_v40 = vld [vmem:[#allocation189_spill] sm:$0xff]  ;;  %v19651_v17 = vld [vmem:[#allocation174_spill] sm:$0xff] }
 0x65f   : > { %v8604_v58 = vadd.f32 %v8603_v63, %v8477_v8  ;;  %v8999_v37 = vadd.f32 %v8998_v7, %v8872_v50  ;;  %v8124_v56 = vsel %vm8057_vm2, %v7900_v31, %v7916_v9  ;;  %v16618_v26 = vmax.f32 %v19651_v17, %v19650_v40  ;;  %v8353_v0 = vld [vmem:[%s17626_s4 + $0x138] sm:$0xff]  ;;  %v19655_v40 = vld [vmem:[#allocation253_spill] sm:$0xff] }
 0x660   : > { %v8479_v16 = vmul.f32 %v8351_v51, %v8223_v19  ;;  %v8874_v13 = vmul.f32 %v9887_v39, %v8223_v19  ;;  %v8224_v8 = vmax.f32 %v15909_v32, %v8124_v56  ;;  %v7932_v50 = vpop.permute.xlu0 %7931  ;;  %7827 = vrot.lane.b32.xlu1 %v16603_v24, %s10074_s19  ;;  %v9889_v31 = vld [vmem:[%s17626_s4 + $0x538] sm:$0xff]  ;;  %v19652_v39 = vld [vmem:[#allocation281_spill] sm:$0xff] }
 0x661   : > { %v8605_v63 = vadd.f32 %v8604_v58, %v8478_v6  ;;  %v9000_v7 = vadd.f32 %v8999_v37, %v8873_v1  ;;  %v8116_v51 = vsel %vm8057_vm2, %v7916_v9, %v7932_v50  ;;  %v16633_v32 = vmax.f32 %v19653_v4, %v19652_v39  ;;  %v8354_v56 = vld [vmem:[%s17626_s4 + $0x140] sm:$0xff]  ;;  %v19657_v39 = vld [vmem:[#allocation254_spill] sm:$0xff] }
 0x662   : > { %v8480_v38 = vmul.f32 %v8352_v33, %v8224_v8  ;;  %v8875_v19 = vmul.f32 %v9888_v29, %v8224_v8  ;;  %v8225_v6 = vmax.f32 %v15915_v45, %v8116_v51  ;;  %v7948_v1 = vpop.permute.xlu1 %7947  ;;  %7843 = vrot.lane.b32.xlu0 %v16618_v26, %s10074_s19  ;;  %v9890_v9 = vld [vmem:[%s17626_s4 + $0x540] sm:$0xff]  ;;  %v19654_v29 = vld [vmem:[#allocation288_spill] sm:$0xff]  ;;  %v8355_v51 = vld [vmem:[%s17626_s4 + $0x148] sm:$0xff] }
 0x663   : > { %v8606_v58 = vadd.f32 %v8605_v63, %v8479_v16  ;;  %v9001_v37 = vadd.f32 %v9000_v7, %v8874_v13  ;;  %v8108_v33 = vsel %vm8057_vm2, %v7932_v50, %v7948_v1  ;;  %v16648_v45 = vmax.f32 %v19655_v40, %v19654_v29  ;;  %v9891_v50 = vld [vmem:[%s17626_s4 + $0x548] sm:$0xff]  ;;  %v19659_v29 = vld [vmem:[#allocation15_spill] sm:$0xff] }
 0x664   : > { %v8481_v17 = vmul.f32 %v8353_v0, %v8225_v6  ;;  %v8876_v8 = vmul.f32 %v9889_v31, %v8225_v6  ;;  %v8226_v16 = vmax.f32 %v15921_v47, %v8108_v33  ;;  %v7964_v13 = vpop.permute.xlu0 %7963  ;;  %7859 = vrot.lane.b32.xlu1 %v16633_v32, %s10074_s19  ;;  %v19656_v31 = vld [vmem:[#allocation290_spill] sm:$0xff]  ;;  %v8356_v33 = vld [vmem:[%s17626_s4 + $0x150] sm:$0xff] }
 0x665   : > { %v8607_v63 = vadd.f32 %v8606_v58, %v8480_v38  ;;  %v9002_v7 = vadd.f32 %v9001_v37, %v8875_v19  ;;  %v8100_v0 = vsel %vm8057_vm2, %v7948_v1, %v7964_v13  ;;  %v16663_v47 = vmax.f32 %v19657_v39, %v19656_v31  ;;  %v9892_v1 = vld [vmem:[%s17626_s4 + $0x550] sm:$0xff]  ;;  %v19661_v31 = vld [vmem:[#allocation16_spill] sm:$0xff] }
 0x666   : > { %v8482_v4 = vmul.f32 %v8354_v56, %v8226_v16  ;;  %v8877_v6 = vmul.f32 %v9890_v9, %v8226_v16  ;;  %v8227_v38 = vmax.f32 %v15927_v22, %v8100_v0  ;;  %v7980_v19 = vpop.permute.xlu1 %7979  ;;  %7875 = vrot.lane.b32.xlu0 %v16648_v45, %s10074_s19  ;;  %v19658_v9 = vld [vmem:[#allocation51_spill] sm:$0xff]  ;;  %v8357_v0 = vld [vmem:[%s17626_s4 + $0x158] sm:$0xff] }
 0x667   : > { %v8608_v58 = vadd.f32 %v8607_v63, %v8481_v17  ;;  %v9003_v37 = vadd.f32 %v9002_v7, %v8876_v8  ;;  %v8092_v56 = vsel %vm8057_vm2, %v7964_v13, %v7980_v19  ;;  %v16678_v22 = vmax.f32 %v19659_v29, %v19658_v9  ;;  %v9893_v13 = vld [vmem:[%s17626_s4 + $0x558] sm:$0xff]  ;;  %v19663_v9 = vld [vmem:[#allocation263_spill] sm:$0xff] }
 0x668   : > { %v8483_v40 = vmul.f32 %v8355_v51, %v8227_v38  ;;  %v8878_v16 = vmul.f32 %v9891_v50, %v8227_v38  ;;  %v8228_v17 = vmax.f32 %v15933_v62, %v8092_v56  ;;  %v7996_v8 = vpop.permute.xlu0 %7995  ;;  %7891 = vrot.lane.b32.xlu1 %v16663_v47, %s10074_s19  ;;  %v19660_v50 = vld [vmem:[#allocation52_spill] sm:$0xff]  ;;  %v8358_v56 = vld [vmem:[%s17626_s4 + $0x160] sm:$0xff] }
 0x669   : > { %v8609_v63 = vadd.f32 %v8608_v58, %v8482_v4  ;;  %v9004_v7 = vadd.f32 %v9003_v37, %v8877_v6  ;;  %v8084_v51 = vsel %vm8057_vm2, %v7980_v19, %v7996_v8  ;;  %v16693_v62 = vmax.f32 %v19661_v31, %v19660_v50  ;;  %v9894_v19 = vld [vmem:[%s17626_s4 + $0x560] sm:$0xff] }
 0x66a   : > { %v8484_v39 = vmul.f32 %v8356_v33, %v8228_v17  ;;  %v8879_v38 = vmul.f32 %v9892_v1, %v8228_v17  ;;  %v8229_v4 = vmax.f32 %v15939_v34, %v8084_v51  ;;  %v8012_v6 = vpop.permute.xlu1 %8011  ;;  %7907 = vrot.lane.b32.xlu0 %v16678_v22, %s10074_s19  ;;  %v19662_v1 = vld [vmem:[#allocation59_spill] sm:$0xff] }
 0x66b   : > { %v8610_v58 = vadd.f32 %v8609_v63, %v8483_v40  ;;  %v9005_v37 = vadd.f32 %v9004_v7, %v8878_v16  ;;  %v8076_v33 = vsel %vm8057_vm2, %v7996_v8, %v8012_v6  ;;  %v16708_v34 = vmax.f32 %v19663_v9, %v19662_v1  ;;  %v19665_v63 = vld [vmem:[#allocation60_spill] sm:$0xff]  ;;  %v19666_v7 = vld [vmem:[#allocation25_spill] sm:$0xff]  ;;  %v8359_v8 = vld [vmem:[%s17626_s4 + $0x168] sm:$0xff] }
 0x66c   : > { %v8485_v29 = vmul.f32 %v8357_v0, %v8229_v4  ;;  %v8880_v17 = vmul.f32 %v9893_v13, %v8229_v4  ;;  %v8230_v40 = vmax.f32 %v15944_v11, %v8076_v33  ;;  %v8028_v16 = vpop.permute.xlu0 %8027  ;;  %7923 = vrot.lane.b32.xlu1 %v16693_v62, %s10074_s19  ;;  %v16715_v51 = vmax.f32 %v19666_v7, %v19665_v63  ;;  %v9895_v0 = vld [vmem:[%s17626_s4 + $0x568] sm:$0xff]  ;;  %v19668_v13 = vld [vmem:[#allocation264_spill] sm:$0xff]  ;;  %v8360_v63 = vld [vmem:[%s17626_s4 + $0x170] sm:$0xff] }
 0x66d   : > { %19664 = vst [vmem:[#allocation445_spill] sm:$0xff] %v16708_v34  ;;  %v8611_v50 = vadd.f32 %v8610_v58, %v8484_v39  ;;  %v9006_v31 = vadd.f32 %v9005_v37, %v8879_v38  ;;  %v8068_v11 = vsel %vm8057_vm2, %v8012_v6, %v8028_v16  ;;  %v16727_v4 = vmax.f32 %v19668_v13, %v15752_v61  ;;  %v7589_v58 = vpop.f32.mrf.mxu0  ;;  %v9896_v61 = vld [vmem:[%s17626_s4 + $0x570] sm:$0xff] }
 0x66e   : > { %19667 = vst [vmem:[#allocation75_spill] sm:$0xff] %v16715_v51  ;;  %v8486_v33 = vmul.f32 %v8358_v56, %v8230_v40  ;;  %v8881_v1 = vmul.f32 %v9894_v19, %v8230_v40  ;;  %v8231_v39 = vmax.f32 %v15949_v25, %v8068_v11  ;;  %v8044_v38 = vpop.permute.xlu1 %8043  ;;  %7939 = vrot.lane.b32.xlu0 %v16708_v34, %s10074_s19  ;;  %v19669_v40 = vld [vmem:[#allocation303_spill] sm:$0xff]  ;;  %v19672_v34 = vld [vmem:[#allocation26_spill] sm:$0xff] }
 0x66f   : > { %v8612_v37 = vadd.f32 %v8611_v50, %v8485_v29  ;;  %v9007_v9 = vadd.f32 %v9006_v31, %v8880_v17  ;;  %v8060_v6 = vsel %vm8057_vm2, %v8028_v16, %v8044_v38  ;;  %v8180_v25 = vsel %vm8057_vm2, %v8044_v38, %v16505_v48  ;;  %v19670_v17 = vld [vmem:[#allocation65_spill] sm:$0xff]  ;;  %v8361_v16 = vld [vmem:[%s17626_s4 + $0x178] sm:$0xff]  ;;  %v19671_v13 = vld [vmem:[#allocation299_spill] sm:$0xff] }
 0x670   : > { %v8487_v56 = vmul.f32 %v8359_v8, %v8231_v39  ;;  %v8882_v19 = vmul.f32 %v9895_v0, %v8231_v39  ;;  %v8232_v29 = vmax.f32 %v19669_v40, %v8060_v6  ;;  %v8233_v7 = vmax.f32 %v19670_v17, %v8180_v25  ;;  %v16745_v50 = vpop.permute.xlu0 %7805  ;;  %7955 = vrot.lane.b32.xlu1 %v16727_v4, %s10074_s19  ;;  %v9897_v8 = vld [vmem:[%s17626_s4 + $0x578] sm:$0xff]  ;;  %v8362_v6 = vld [vmem:[%s17626_s4 + $0x180] sm:$0xff] }
 0x671   : > { %v8613_v31 = vadd.f32 %v8612_v37, %v8486_v33  ;;  %v9008_v11 = vadd.f32 %v9007_v9, %v8881_v1  ;;  %v16754_v48 = vmax.f32 %v19672_v34, %v19671_v13  ;;  %v7662_v33 = vpop.f32.mrf.mxu1  ;;  %v7591_v1 = vpop.f32.mrf.mxu0  ;;  %v9898_v34 = vld [vmem:[%s17626_s4 + $0x580] sm:$0xff]  ;;  %v8363_v13 = vld [vmem:[%s17626_s4 + $0x188] sm:$0xff] }
 0x672   : > { %v8488_v0 = vmul.f32 %v8360_v63, %v8232_v29  ;;  %v8883_v39 = vmul.f32 %v9896_v61, %v8232_v29  ;;  %v7822_v38 = vpop.permute.xlu1 %7821  ;;  %7971 = vrot.lane.b32.xlu0 %v16715_v51, %s10074_s19  ;;  %v19674_v61 = vld [vmem:[#allocation184_spill] sm:$0xff]  ;;  %v8489_v40 = vmul.f32 %v8361_v16, %v8233_v7  ;;  %v9899_v51 = vld [vmem:[%s17626_s4 + $0x588] sm:$0xff]  ;;  %v19677_v16 = vld [vmem:[#allocation33_spill] sm:$0xff] }
 0x673   : > { %19673 = vst [vmem:[#allocation204_spill] sm:$0xff] %v16754_v48  ;;  %v8614_v37 = vadd.f32 %v8613_v31, %v8487_v56  ;;  %v9009_v9 = vadd.f32 %v9008_v11, %v8882_v19  ;;  %v8173_v63 = vsel %vm8057_vm2, %v16745_v50, %v7822_v38  ;;  %v16771_v25 = vmax.f32 %v19674_v61, %v7589_v58  ;;  %v19676_v29 = vld [vmem:[#allocation304_spill] sm:$0xff] }
 0x674   : > { %v8234_v17 = vmax.f32 %v19676_v29, %v8173_v63  ;;  %v7838_v56 = vpop.permute.xlu0 %7837  ;;  %7987 = vrot.lane.b32.xlu1 %v16754_v48, %s10074_s19  ;;  %v8884_v31 = vmul.f32 %v9897_v8, %v8233_v7  ;;  %v16785_v63 = vmax.f32 %v19677_v16, %v7591_v1  ;;  %v19679_v48 = vld [vmem:[#allocation66_spill] sm:$0xff]  ;;  %v7664_v8 = vpop.f32.mrf.mxu1 }
 0x675   : > { %19675 = vst [vmem:[#allocation446_spill] sm:$0xff] %v16771_v25  ;;  %v8615_v19 = vadd.f32 %v8614_v37, %v8488_v0  ;;  %v9010_v11 = vadd.f32 %v9009_v9, %v8883_v39  ;;  %v8165_v58 = vsel %vm8057_vm2, %v7822_v38, %v7838_v56  ;;  %v8364_v9 = vld [vmem:[%s17626_s4 + $0x190] sm:$0xff] }
 0x676   : > { %19678 = vst [vmem:[#allocation314_spill] sm:$0xff] %v16785_v63  ;;  %v8490_v61 = vmul.f32 %v8362_v6, %v8234_v17  ;;  %v8885_v29 = vmul.f32 %v9898_v34, %v8234_v17  ;;  %v8235_v0 = vmax.f32 %v19679_v48, %v8165_v58  ;;  %v7854_v7 = vpop.permute.xlu1 %7853  ;;  %8003 = vrot.lane.b32.xlu0 %v16771_v25, %s10074_s19  ;;  %v9900_v38 = vld [vmem:[%s17626_s4 + $0x590] sm:$0xff]  ;;  %v19680_v6 = vld [vmem:[#allocation426_spill] sm:$0xff]  ;;  %v19729_v25 = vld [vmem:[#allocation181_spill] sm:$0xff] }
 0x677   : > { %v8616_v39 = vadd.f32 %v8615_v19, %v8489_v40  ;;  %v9011_v37 = vadd.f32 %v9010_v11, %v8884_v31  ;;  %v8157_v1 = vsel %vm8057_vm2, %v7838_v56, %v7854_v7  ;;  %v16799_v48 = vmax.f32 %v19680_v6, %v7662_v33  ;;  %v19682_v58 = vld [vmem:[#allocation67_spill] sm:$0xff]  ;;  %v8365_v11 = vld [vmem:[%s17626_s4 + $0x198] sm:$0xff] }
 0x678   : > { %v8491_v34 = vmul.f32 %v8363_v13, %v8235_v0  ;;  %v8886_v17 = vmul.f32 %v9899_v51, %v8235_v0  ;;  %v8236_v16 = vmax.f32 %v19682_v58, %v8157_v1  ;;  %v7870_v40 = vpop.permute.xlu0 %7869  ;;  %8019 = vrot.lane.b32.xlu1 %v16785_v63, %s10074_s19  ;;  %v9901_v56 = vld [vmem:[%s17626_s4 + $0x598] sm:$0xff]  ;;  %v19683_v51 = vld [vmem:[#allocation185_spill] sm:$0xff] }
 0x679   : > { %19681 = vst [vmem:[#allocation205_spill] sm:$0xff] %v16799_v48  ;;  %v8617_v19 = vadd.f32 %v8616_v39, %v8490_v61  ;;  %v9012_v31 = vadd.f32 %v9011_v37, %v8885_v29  ;;  %v8149_v33 = vsel %vm8057_vm2, %v7854_v7, %v7870_v40  ;;  %v16813_v13 = vmax.f32 %v19683_v51, %v7664_v8  ;;  %v19685_v6 = vld [vmem:[#allocation68_spill] sm:$0xff]  ;;  %v8366_v37 = vld [vmem:[%s17626_s4 + $0x1a0] sm:$0xff] }
 0x67a   : > { %v8492_v0 = vmul.f32 %v8364_v9, %v8236_v16  ;;  %v8887_v1 = vmul.f32 %v9900_v38, %v8236_v16  ;;  %v8237_v58 = vmax.f32 %v19685_v6, %v8149_v33  ;;  %v7886_v61 = vpop.permute.xlu1 %7885  ;;  %8035 = vrot.lane.b32.xlu0 %v16799_v48, %s10074_s19  ;;  %v9902_v7 = vld [vmem:[%s17626_s4 + $0x5a0] sm:$0xff]  ;;  %v19686_v9 = vld [vmem:[#allocation190_spill] sm:$0xff]  ;;  %v19687_v38 = vld [vmem:[#allocation175_spill] sm:$0xff] }
 0x67b   : > { %19684 = vst [vmem:[#allocation243_spill] sm:$0xff] %v16813_v13  ;;  %v8618_v29 = vadd.f32 %v8617_v19, %v8491_v34  ;;  %v9013_v39 = vadd.f32 %v9012_v31, %v8886_v17  ;;  %v8141_v8 = vsel %vm8057_vm2, %v7870_v40, %v7886_v61  ;;  %v16828_v16 = vmax.f32 %v19687_v38, %v19686_v9  ;;  %v19689_v6 = vld [vmem:[#allocation307_spill] sm:$0xff]  ;;  %v8367_v48 = vld [vmem:[%s17626_s4 + $0x1a8] sm:$0xff] }
 0x67c   : > { %v8493_v33 = vmul.f32 %v8365_v11, %v8237_v58  ;;  %v8888_v51 = vmul.f32 %v9901_v56, %v8237_v58  ;;  %v8238_v34 = vmax.f32 %v19689_v6, %v8141_v8  ;;  %v7902_v17 = vpop.permute.xlu0 %7901  ;;  %8051 = vrot.lane.b32.xlu1 %v16813_v13, %s10074_s19  ;;  %v9903_v40 = vld [vmem:[%s17626_s4 + $0x5a8] sm:$0xff]  ;;  %v19691_v58 = vld [vmem:[#allocation247_spill] sm:$0xff]  ;;  %v19693_v6 = vld [vmem:[#allocation200_spill] sm:$0xff] }
 0x67d   : > { %19688 = vst [vmem:[#allocation76_spill] sm:$0xff] %v16828_v16  ;;  %v8619_v19 = vadd.f32 %v8618_v29, %v8492_v0  ;;  %v9014_v31 = vadd.f32 %v9013_v39, %v8887_v1  ;;  %v8133_v11 = vsel %vm8057_vm2, %v7886_v61, %v7902_v17  ;;  %v19690_v56 = vld [vmem:[#allocation282_spill] sm:$0xff]  ;;  %v8368_v13 = vld [vmem:[%s17626_s4 + $0x1b0] sm:$0xff] }
 0x67e   : > { %v16843_v8 = vmax.f32 %v19691_v58, %v19690_v56  ;;  %v8494_v9 = vmul.f32 %v8366_v37, %v8238_v34  ;;  %v8889_v38 = vmul.f32 %v9902_v7, %v8238_v34  ;;  %v8239_v0 = vmax.f32 %v19693_v6, %v8133_v11  ;;  %v7918_v1 = vpop.permute.xlu1 %7917  ;;  %7813 = vrot.lane.b32.xlu0 %v16828_v16, %s10074_s19  ;;  %v9904_v61 = vld [vmem:[%s17626_s4 + $0x5b0] sm:$0xff]  ;;  %v19694_v7 = vld [vmem:[#allocation432_spill] sm:$0xff]  ;;  %v19695_v34 = vld [vmem:[#allocation417_spill] sm:$0xff] }
 0x67f   : > { %v8620_v29 = vadd.f32 %v8619_v19, %v8493_v33  ;;  %v9015_v39 = vadd.f32 %v9014_v31, %v8888_v51  ;;  %v8125_v37 = vsel %vm8057_vm2, %v7902_v17, %v7918_v1  ;;  %v16858_v11 = vmax.f32 %v19695_v34, %v19694_v7  ;;  %v19697_v6 = vld [vmem:[#allocation442_spill] sm:$0xff]  ;;  %v8369_v16 = vld [vmem:[%s17626_s4 + $0x1b8] sm:$0xff] }
 0x680   : > { %19692 = vst [vmem:[#allocation77_spill] sm:$0xff] %v16843_v8  ;;  %v8495_v56 = vmul.f32 %v8367_v48, %v8239_v0  ;;  %v8890_v58 = vmul.f32 %v9903_v40, %v8239_v0  ;;  %v8240_v33 = vmax.f32 %v19697_v6, %v8125_v37  ;;  %v7934_v51 = vpop.permute.xlu0 %7933  ;;  %7829 = vrot.lane.b32.xlu1 %v16843_v8, %s10074_s19  ;;  %v9905_v17 = vld [vmem:[%s17626_s4 + $0x5b8] sm:$0xff]  ;;  %v19698_v40 = vld [vmem:[#allocation191_spill] sm:$0xff]  ;;  %v19701_v6 = vld [vmem:[#allocation69_spill] sm:$0xff] }
 0x681   : > { %19696 = vst [vmem:[#allocation316_spill] sm:$0xff] %v16858_v11  ;;  %v8621_v19 = vadd.f32 %v8620_v29, %v8494_v9  ;;  %v9016_v31 = vadd.f32 %v9015_v39, %v8889_v38  ;;  %v8117_v48 = vsel %vm8057_vm2, %v7918_v1, %v7934_v51  ;;  %v19699_v0 = vld [vmem:[#allocation328_spill] sm:$0xff]  ;;  %v8370_v8 = vld [vmem:[%s17626_s4 + $0x1c0] sm:$0xff] }
 0x682   : > { %v16873_v37 = vmax.f32 %v19699_v0, %v19698_v40  ;;  %v8496_v7 = vmul.f32 %v8368_v13, %v8240_v33  ;;  %v8891_v34 = vmul.f32 %v9904_v61, %v8240_v33  ;;  %v8241_v9 = vmax.f32 %v19701_v6, %v8117_v48  ;;  %v7950_v38 = vpop.permute.xlu1 %7949  ;;  %7845 = vrot.lane.b32.xlu0 %v16858_v11, %s10074_s19  ;;  %v9906_v1 = vld [vmem:[%s17626_s4 + $0x5c0] sm:$0xff]  ;;  %v19702_v61 = vld [vmem:[#allocation195_spill] sm:$0xff]  ;;  %v8371_v11 = vld [vmem:[%s17626_s4 + $0x1c8] sm:$0xff] }
 0x683   : > { %v8622_v29 = vadd.f32 %v8621_v19, %v8495_v56  ;;  %v9017_v39 = vadd.f32 %v9016_v31, %v8890_v58  ;;  %v8109_v13 = vsel %vm8057_vm2, %v7934_v51, %v7950_v38  ;;  %v19703_v33 = vld [vmem:[#allocation17_spill] sm:$0xff]  ;;  %v9907_v51 = vld [vmem:[%s17626_s4 + $0x5c8] sm:$0xff] }
 0x684   : > { %19700 = vst [vmem:[#allocation78_spill] sm:$0xff] %v16873_v37  ;;  %v16888_v48 = vmax.f32 %v19703_v33, %v19702_v61  ;;  %v8497_v40 = vmul.f32 %v8369_v16, %v8241_v9  ;;  %v8892_v0 = vmul.f32 %v9905_v17, %v8241_v9  ;;  %v19705_v6 = vld [vmem:[#allocation201_spill] sm:$0xff]  ;;  %v7966_v58 = vpop.permute.xlu0 %7965  ;;  %7861 = vrot.lane.b32.xlu1 %v16873_v37, %s10074_s19  ;;  %v19706_v17 = vld [vmem:[#allocation291_spill] sm:$0xff] }
 0x685   : > { %v8242_v56 = vmax.f32 %v19705_v6, %v8109_v13  ;;  %v8623_v19 = vadd.f32 %v8622_v29, %v8496_v7  ;;  %v9018_v31 = vadd.f32 %v9017_v39, %v8891_v34  ;;  %v8101_v16 = vsel %vm8057_vm2, %v7950_v38, %v7966_v58  ;;  %v19707_v9 = vld [vmem:[#allocation421_spill] sm:$0xff]  ;;  %v8372_v6 = vld [vmem:[%s17626_s4 + $0x1d0] sm:$0xff] }
 0x686   : > { %19704 = vst [vmem:[#allocation317_spill] sm:$0xff] %v16888_v48  ;;  %v16903_v13 = vmax.f32 %v19707_v9, %v19706_v17  ;;  %v8243_v7 = vmax.f32 %v16065_v14, %v8101_v16  ;;  %v7982_v34 = vpop.permute.xlu1 %7981  ;;  %7877 = vrot.lane.b32.xlu0 %v16888_v48, %s10074_s19  ;;  %v9908_v38 = vld [vmem:[%s17626_s4 + $0x5d0] sm:$0xff]  ;;  %v8373_v48 = vld [vmem:[%s17626_s4 + $0x1d8] sm:$0xff] }
 0x687   : > { %v8498_v61 = vmul.f32 %v8370_v8, %v8242_v56  ;;  %v8893_v33 = vmul.f32 %v9906_v1, %v8242_v56  ;;  %v8624_v29 = vadd.f32 %v8623_v19, %v8497_v40  ;;  %v9019_v39 = vadd.f32 %v9018_v31, %v8892_v0  ;;  %v19709_v1 = vld [vmem:[#allocation437_spill] sm:$0xff]  ;;  %v19710_v56 = vld [vmem:[#allocation179_spill] sm:$0xff] }
 0x688   : > { %19708 = vst [vmem:[#allocation318_spill] sm:$0xff] %v16903_v13  ;;  %v8093_v8 = vsel %vm8057_vm2, %v7966_v58, %v7982_v34  ;;  %v16918_v14 = vmax.f32 %v19710_v56, %v19709_v1  ;;  %v8499_v16 = vmul.f32 %v8371_v11, %v8243_v7  ;;  %v8894_v17 = vmul.f32 %v9907_v51, %v8243_v7  ;;  %v19712_v9 = vld [vmem:[#allocation443_spill] sm:$0xff]  ;;  %v7998_v0 = vpop.permute.xlu0 %7997  ;;  %v9909_v58 = vld [vmem:[%s17626_s4 + $0x5d8] sm:$0xff] }
 0x689   : > { %v8244_v40 = vmax.f32 %v19712_v9, %v8093_v8  ;;  %7893 = vrot.lane.b32.xlu1 %v16903_v13, %s10074_s19  ;;  %v8625_v19 = vadd.f32 %v8624_v29, %v8498_v61  ;;  %v9020_v31 = vadd.f32 %v9019_v39, %v8893_v33  ;;  %v8085_v11 = vsel %vm8057_vm2, %v7982_v34, %v7998_v0  ;;  %v19713_v51 = vld [vmem:[#allocation196_spill] sm:$0xff]  ;;  %v19716_v9 = vld [vmem:[#allocation70_spill] sm:$0xff]  ;;  %v8374_v13 = vld [vmem:[%s17626_s4 + $0x1e0] sm:$0xff] }
 0x68a   : > { %19711 = vst [vmem:[#allocation206_spill] sm:$0xff] %v16918_v14  ;;  %v19714_v7 = vld [vmem:[#allocation256_spill] sm:$0xff]  ;;  %v8245_v61 = vmax.f32 %v19716_v9, %v8085_v11  ;;  %v8014_v33 = vpop.permute.xlu1 %8013  ;;  %7909 = vrot.lane.b32.xlu0 %v16918_v14, %s10074_s19  ;;  %v9910_v34 = vld [vmem:[%s17626_s4 + $0x5e0] sm:$0xff]  ;;  %v19720_v9 = vld [vmem:[#allocation202_spill] sm:$0xff] }
 0x68b   : > { %v16933_v8 = vmax.f32 %v19714_v7, %v19713_v51  ;;  %v8500_v1 = vmul.f32 %v8372_v6, %v8244_v40  ;;  %v8895_v56 = vmul.f32 %v9908_v38, %v8244_v40  ;;  %v8626_v29 = vadd.f32 %v8625_v19, %v8499_v16  ;;  %v19717_v38 = vld [vmem:[#allocation61_spill] sm:$0xff]  ;;  %v19718_v40 = vld [vmem:[#allocation180_spill] sm:$0xff] }
 0x68c   : > { %v9021_v39 = vadd.f32 %v9020_v31, %v8894_v17  ;;  %v8077_v6 = vsel %vm8057_vm2, %v7998_v0, %v8014_v33  ;;  %v16948_v11 = vmax.f32 %v19718_v40, %v19717_v38  ;;  %v8501_v51 = vmul.f32 %v8373_v48, %v8245_v61  ;;  %v8030_v17 = vpop.permute.xlu0 %8029  ;;  %v19721_v19 = vld [vmem:[#allocation301_spill] sm:$0xff]  ;;  %v19722_v31 = vld [vmem:[#allocation422_spill] sm:$0xff] }
 0x68d   : > { %19715 = vst [vmem:[#allocation5_spill] sm:$0xff] %v16933_v8  ;;  %v8896_v7 = vmul.f32 %v9909_v58, %v8245_v61  ;;  %v8246_v16 = vmax.f32 %v19720_v9, %v8077_v6  ;;  %7925 = vrot.lane.b32.xlu1 %v16933_v8, %s10074_s19  ;;  %v16955_v14 = vmax.f32 %v19722_v31, %v19721_v19  ;;  %v8375_v0 = vld [vmem:[%s17626_s4 + $0x1e8] sm:$0xff]  ;;  %v19723_v61 = vld [vmem:[#allocation63_spill] sm:$0xff]  ;;  %v19725_v19 = vld [vmem:[#allocation444_spill] sm:$0xff] }
 0x68e   : > { %19719 = vst [vmem:[#allocation80_spill] sm:$0xff] %v16948_v11  ;;  %v8627_v37 = vadd.f32 %v8626_v29, %v8500_v1  ;;  %v9022_v63 = vadd.f32 %v9021_v39, %v8895_v56  ;;  %v9911_v48 = vld [vmem:[%s17626_s4 + $0x5e8] sm:$0xff]  ;;  %v8069_v58 = vsel %vm8057_vm2, %v8014_v33, %v8030_v17  ;;  %v19724_v6 = vld [vmem:[#allocation27_spill] sm:$0xff]  ;;  %v8046_v56 = vpop.permute.xlu1 %8045  ;;  %7941 = vrot.lane.b32.xlu0 %v16948_v11, %s10074_s19  ;;  %v7593_v29 = vpop.f32.mrf.mxu0 }
 0x68f   : > { %v16967_v38 = vmax.f32 %v19724_v6, %v19723_v61  ;;  %v8502_v40 = vmul.f32 %v8374_v13, %v8246_v16  ;;  %v8897_v9 = vmul.f32 %v9910_v34, %v8246_v16  ;;  %v8247_v1 = vmax.f32 %v19725_v19, %v8069_v58  ;;  %v8376_v8 = vld [vmem:[%s17626_s4 + $0x1f0] sm:$0xff]  ;;  %v19726_v61 = vld [vmem:[#allocation309_spill] sm:$0xff]  ;;  %v19728_v11 = vld [vmem:[#allocation302_spill] sm:$0xff] }
 0x690   : > { %v8628_v39 = vadd.f32 %v8627_v37, %v8501_v51  ;;  %v9023_v31 = vadd.f32 %v9022_v63, %v8896_v7  ;;  %v9912_v33 = vld [vmem:[%s17626_s4 + $0x5f0] sm:$0xff]  ;;  %v8061_v13 = vsel %vm8057_vm2, %v8030_v17, %v8046_v56  ;;  %v8181_v34 = vsel %vm8057_vm2, %v8046_v56, %v16745_v50  ;;  %v16985_v7 = vpop.permute.xlu0 %7807  ;;  %v8377_v17 = vld [vmem:[%s17626_s4 + $0x1f8] sm:$0xff] }
 0x691   : > { %v8503_v16 = vmul.f32 %v8375_v0, %v8247_v1  ;;  %v8898_v58 = vmul.f32 %v9911_v48, %v8247_v1  ;;  %v8248_v37 = vmax.f32 %v19726_v61, %v8061_v13  ;;  %v19727_v63 = vld [vmem:[#allocation71_spill] sm:$0xff]  ;;  %7957 = vrot.lane.b32.xlu1 %v16967_v38, %s10074_s19  ;;  %v16994_v50 = vmax.f32 %v19729_v25, %v19728_v11  ;;  %v9913_v0 = vld [vmem:[%s17626_s4 + $0x5f8] sm:$0xff]  ;;  %v8378_v13 = vld [vmem:[%s17626_s4 + $0x200] sm:$0xff] }
 0x692   : > { %v8249_v51 = vmax.f32 %v19727_v63, %v8181_v34  ;;  %v8629_v6 = vadd.f32 %v8628_v39, %v8502_v40  ;;  %v9024_v19 = vadd.f32 %v9023_v31, %v8897_v9  ;;  %v7824_v56 = vpop.permute.xlu1 %7823  ;;  %7973 = vrot.lane.b32.xlu0 %v16955_v14, %s10074_s19  ;;  %v7666_v40 = vpop.f32.mrf.mxu1  ;;  %v9914_v25 = vld [vmem:[%s17626_s4 + $0x600] sm:$0xff]  ;;  %v19731_v11 = vld [vmem:[#allocation427_spill] sm:$0xff] }
 0x693   : > { %19730 = vst [vmem:[#allocation207_spill] sm:$0xff] %v16994_v50  ;;  %v8504_v48 = vmul.f32 %v8376_v8, %v8248_v37  ;;  %v8899_v1 = vmul.f32 %v9912_v33, %v8248_v37  ;;  %v7595_v9 = vpop.f32.mrf.mxu0  ;;  %v8174_v8 = vsel %vm8057_vm2, %v16985_v7, %v7824_v56  ;;  %v17011_v33 = vmax.f32 %v19731_v11, %v7593_v29 }
 0x694   : > { %v8630_v39 = vadd.f32 %v8629_v6, %v8503_v16  ;;  %v9025_v31 = vadd.f32 %v9024_v19, %v8898_v58  ;;  %v8505_v34 = vmul.f32 %v8377_v17, %v8249_v51  ;;  %v8250_v61 = vmax.f32 %v16139_v59, %v8174_v8  ;;  %v7840_v16 = vpop.permute.xlu0 %7839  ;;  %v8379_v6 = vld [vmem:[%s17626_s4 + $0x208] sm:$0xff]  ;;  %v19732_v17 = vld [vmem:[#allocation273_spill] sm:$0xff] }
 0x695   : > { %7989 = vrot.lane.b32.xlu1 %v16994_v50, %s10074_s19  ;;  %v8900_v37 = vmul.f32 %v9913_v0, %v8249_v51  ;;  %v9915_v19 = vld [vmem:[%s17626_s4 + $0x608] sm:$0xff]  ;;  %v8166_v29 = vsel %vm8057_vm2, %v7824_v56, %v7840_v16  ;;  %v17025_v59 = vmax.f32 %v19732_v17, %v7595_v9  ;;  %v19733_v50 = vld [vmem:[#allocation72_spill] sm:$0xff]  ;;  %v7668_v0 = vpop.f32.mrf.mxu1  ;;  %v9916_v56 = vld [vmem:[%s17626_s4 + $0x610] sm:$0xff] }
 0x696   : > { %v8631_v58 = vadd.f32 %v8630_v39, %v8504_v48  ;;  %v9026_v63 = vadd.f32 %v9025_v31, %v8899_v1  ;;  %v8506_v8 = vmul.f32 %v8378_v13, %v8250_v61  ;;  %v8901_v11 = vmul.f32 %v9914_v25, %v8250_v61  ;;  %v7856_v51 = vpop.permute.xlu1 %7855  ;;  %8005 = vrot.lane.b32.xlu0 %v17011_v33, %s10074_s19  ;;  %v8380_v31 = vld [vmem:[%s17626_s4 + $0x210] sm:$0xff]  ;;  %v19734_v13 = vld [vmem:[#allocation34_spill] sm:$0xff] }
 0x697   : > { %v8251_v48 = vmax.f32 %v19733_v50, %v8166_v29  ;;  %v8158_v9 = vsel %vm8057_vm2, %v7840_v16, %v7856_v51  ;;  %v17039_v50 = vmax.f32 %v19734_v13, %v7666_v40  ;;  %v19735_v29 = vld [vmem:[#allocation311_spill] sm:$0xff]  ;;  %v9917_v16 = vld [vmem:[%s17626_s4 + $0x618] sm:$0xff]  ;;  %v19738_v13 = vld [vmem:[#allocation73_spill] sm:$0xff] }
 0x698   : > { %v8632_v1 = vadd.f32 %v8631_v58, %v8505_v34  ;;  %v9027_v39 = vadd.f32 %v9026_v63, %v8900_v37  ;;  %v8252_v17 = vmax.f32 %v19735_v29, %v8158_v9  ;;  %v7872_v34 = vpop.permute.xlu0 %7871  ;;  %v8381_v63 = vld [vmem:[%s17626_s4 + $0x218] sm:$0xff] }
 0x699   : > { %v8507_v25 = vmul.f32 %v8379_v6, %v8251_v48  ;;  %v8902_v61 = vmul.f32 %v9915_v19, %v8251_v48  ;;  %8021 = vrot.lane.b32.xlu1 %v17025_v59, %s10074_s19  ;;  %v8150_v40 = vsel %vm8057_vm2, %v7856_v51, %v7872_v34  ;;  %v19736_v6 = vld [vmem:[#allocation35_spill] sm:$0xff]  ;;  %v9918_v51 = vld [vmem:[%s17626_s4 + $0x620] sm:$0xff] }
 0x69a   : > { %v8633_v58 = vadd.f32 %v8632_v1, %v8506_v8  ;;  %v9028_v37 = vadd.f32 %v9027_v39, %v8901_v11  ;;  %v17053_v19 = vmax.f32 %v19736_v6, %v7668_v0  ;;  %v8508_v48 = vmul.f32 %v8380_v31, %v8252_v17  ;;  %v7888_v8 = vpop.permute.xlu1 %7887  ;;  %8037 = vrot.lane.b32.xlu0 %v17039_v50, %s10074_s19  ;;  %v8382_v39 = vld [vmem:[%s17626_s4 + $0x220] sm:$0xff] }
 0x69b   : > { %v8903_v9 = vmul.f32 %v9916_v56, %v8252_v17  ;;  %v8253_v29 = vmax.f32 %v19738_v13, %v8150_v40  ;;  %v8142_v0 = vsel %vm8057_vm2, %v7872_v34, %v7888_v8  ;;  %v19739_v17 = vld [vmem:[#allocation312_spill] sm:$0xff]  ;;  %v19740_v13 = vld [vmem:[#allocation313_spill] sm:$0xff] }
 0x69c   : > { %19737 = vst [vmem:[#allocation244_spill] sm:$0xff] %v17053_v19  ;;  %v8634_v11 = vadd.f32 %v8633_v58, %v8507_v25  ;;  %v9029_v1 = vadd.f32 %v9028_v37, %v8902_v61  ;;  %v8254_v40 = vmax.f32 %v19739_v17, %v8142_v0  ;;  %v7904_v6 = vpop.permute.xlu0 %7903  ;;  %v8383_v58 = vld [vmem:[%s17626_s4 + $0x228] sm:$0xff] }
 0x69d   : > { %v8509_v31 = vmul.f32 %v8381_v63, %v8253_v29  ;;  %v8904_v56 = vmul.f32 %v9917_v16, %v8253_v29  ;;  %8053 = vrot.lane.b32.xlu1 %v17053_v19, %s10074_s19  ;;  %v9919_v37 = vld [vmem:[%s17626_s4 + $0x628] sm:$0xff]  ;;  %v8134_v34 = vsel %vm8057_vm2, %v7888_v8, %v7904_v6 }
 0x69e   : > { %v8635_v25 = vadd.f32 %v8634_v11, %v8508_v48  ;;  %v9030_v61 = vadd.f32 %v9029_v1, %v8903_v9  ;;  %v8510_v63 = vmul.f32 %v8382_v39, %v8254_v40  ;;  %v8905_v16 = vmul.f32 %v9918_v51, %v8254_v40  ;;  %v7920_v0 = vpop.permute.xlu1 %7919  ;;  %v8384_v48 = vld [vmem:[%s17626_s4 + $0x230] sm:$0xff] }
 0x69f   : > { %v8255_v29 = vmax.f32 %v19740_v13, %v8134_v34  ;;  %v9920_v9 = vld [vmem:[%s17626_s4 + $0x630] sm:$0xff]  ;;  %v8126_v11 = vsel %vm8057_vm2, %v7904_v6, %v7920_v0 }
 0x6a0   : > { %v8636_v17 = vadd.f32 %v8635_v25, %v8509_v31  ;;  %v9031_v19 = vadd.f32 %v9030_v61, %v8904_v56  ;;  %v19741_v39 = vld [vmem:[#allocation203_spill] sm:$0xff]  ;;  %v7936_v40 = vpop.permute.xlu0 %7935  ;;  %v8385_v31 = vld [vmem:[%s17626_s4 + $0x238] sm:$0xff] }
 0x6a1   : > { %v8511_v1 = vmul.f32 %v8383_v58, %v8255_v29  ;;  %v8906_v8 = vmul.f32 %v9919_v37, %v8255_v29  ;;  %v8256_v51 = vmax.f32 %v19741_v39, %v8126_v11  ;;  %v9921_v56 = vld [vmem:[%s17626_s4 + $0x638] sm:$0xff]  ;;  %v8118_v25 = vsel %vm8057_vm2, %v7920_v0, %v7936_v40 }
 0x6a2   : > { %v8637_v34 = vadd.f32 %v8636_v17, %v8510_v63  ;;  %v9032_v13 = vadd.f32 %v9031_v19, %v8905_v16  ;;  %v8257_v58 = vmax.f32 %v16213_v35, %v8118_v25  ;;  %v7952_v37 = vpop.permute.xlu1 %7951  ;;  %v8386_v19 = vld [vmem:[%s17626_s4 + $0x240] sm:$0xff]  ;;  %v8388_v25 = vld [vmem:[%s17626_s4 + $0x250] sm:$0xff] }
 0x6a3   : > { %v8512_v61 = vmul.f32 %v8384_v48, %v8256_v51  ;;  %v8907_v6 = vmul.f32 %v9920_v9, %v8256_v51  ;;  %v9922_v63 = vld [vmem:[%s17626_s4 + $0x640] sm:$0xff]  ;;  %v8110_v16 = vsel %vm8057_vm2, %v7936_v40, %v7952_v37 }
 0x6a4   : > { %v8638_v29 = vadd.f32 %v8637_v34, %v8511_v1  ;;  %v9033_v11 = vadd.f32 %v9032_v13, %v8906_v8  ;;  %v8513_v17 = vmul.f32 %v8385_v31, %v8257_v58  ;;  %v8908_v0 = vmul.f32 %v9921_v56, %v8257_v58  ;;  %v7968_v9 = vpop.permute.xlu0 %7967  ;;  %v8387_v1 = vld [vmem:[%s17626_s4 + $0x248] sm:$0xff] }
 0x6a5   : > { %v8258_v48 = vmax.f32 %v16220_v43, %v8110_v16  ;;  %v9923_v8 = vld [vmem:[%s17626_s4 + $0x648] sm:$0xff]  ;;  %v8102_v51 = vsel %vm8057_vm2, %v7952_v37, %v7968_v9  ;;  %v9925_v16 = vld [vmem:[%s17626_s4 + $0x658] sm:$0xff] }
 0x6a6   : > { %v8639_v35 = vadd.f32 %v8638_v29, %v8512_v61  ;;  %v9034_v39 = vadd.f32 %v9033_v11, %v8907_v6  ;;  %v8259_v13 = vmax.f32 %v16235_v53, %v8102_v51  ;;  %v7984_v31 = vpop.permute.xlu1 %7983  ;;  %v9924_v61 = vld [vmem:[%s17626_s4 + $0x650] sm:$0xff] }
 0x6a7   : > { %v8514_v34 = vmul.f32 %v8386_v19, %v8258_v48  ;;  %v8909_v40 = vmul.f32 %v9922_v63, %v8258_v48  ;;  %v8094_v6 = vsel %vm8057_vm2, %v7968_v9, %v7984_v31  ;;  %v8389_v63 = vld [vmem:[%s17626_s4 + $0x258] sm:$0xff] }
 0x6a8   : > { %v8640_v43 = vadd.f32 %v8639_v35, %v8513_v17  ;;  %v9035_v56 = vadd.f32 %v9034_v39, %v8908_v0  ;;  %v8515_v58 = vmul.f32 %v8387_v1, %v8259_v13  ;;  %v8910_v37 = vmul.f32 %v9923_v8, %v8259_v13  ;;  %v8000_v11 = vpop.permute.xlu0 %7999  ;;  %v8390_v1 = vld [vmem:[%s17626_s4 + $0x260] sm:$0xff] }
 0x6a9   : > { %v8260_v29 = vmax.f32 %v16249_v21, %v8094_v6  ;;  %v8086_v17 = vsel %vm8057_vm2, %v7984_v31, %v8000_v11  ;;  %v9926_v8 = vld [vmem:[%s17626_s4 + $0x660] sm:$0xff] }
 0x6aa   : > { %v8641_v53 = vadd.f32 %v8640_v43, %v8514_v34  ;;  %v9036_v19 = vadd.f32 %v9035_v56, %v8909_v40  ;;  %v8261_v9 = vmax.f32 %v16274_v49, %v8086_v17  ;;  %v8016_v35 = vpop.permute.xlu1 %8015  ;;  %v8391_v56 = vld [vmem:[%s17626_s4 + $0x268] sm:$0xff] }
 0x6ab   : > { %v8516_v0 = vmul.f32 %v8388_v25, %v8260_v29  ;;  %v8911_v48 = vmul.f32 %v9924_v61, %v8260_v29  ;;  %v8078_v51 = vsel %vm8057_vm2, %v8000_v11, %v8016_v35  ;;  %v9927_v25 = vld [vmem:[%s17626_s4 + $0x668] sm:$0xff] }
 0x6ac   : > { %v8642_v21 = vadd.f32 %v8641_v53, %v8515_v58  ;;  %v9037_v39 = vadd.f32 %v9036_v19, %v8910_v37  ;;  %v8517_v34 = vmul.f32 %v8389_v63, %v8261_v9  ;;  %v8912_v40 = vmul.f32 %v9925_v16, %v8261_v9  ;;  %v8032_v31 = vpop.permute.xlu0 %8031  ;;  %v8392_v53 = vld [vmem:[%s17626_s4 + $0x270] sm:$0xff] }
 0x6ad   : > { %v8262_v13 = vmax.f32 %v16291_v10, %v8078_v51  ;;  %v8070_v61 = vsel %vm8057_vm2, %v8016_v35, %v8032_v31  ;;  %v9928_v19 = vld [vmem:[%s17626_s4 + $0x670] sm:$0xff] }
 0x6ae   : > { %v8643_v49 = vadd.f32 %v8642_v21, %v8516_v0  ;;  %v9038_v43 = vadd.f32 %v9037_v39, %v8911_v48  ;;  %v8263_v37 = vmax.f32 %v16305_v52, %v8070_v61  ;;  %v8048_v29 = vpop.permute.xlu1 %8047  ;;  %v8393_v39 = vld [vmem:[%s17626_s4 + $0x278] sm:$0xff] }
 0x6af   : > { %v8518_v6 = vmul.f32 %v8390_v1, %v8262_v13  ;;  %v8913_v58 = vmul.f32 %v9926_v8, %v8262_v13  ;;  %v8062_v63 = vsel %vm8057_vm2, %v8032_v31, %v8048_v29  ;;  %v8182_v16 = vsel %vm8057_vm2, %v8048_v29, %v16985_v7  ;;  %v9929_v1 = vld [vmem:[%s17626_s4 + $0x678] sm:$0xff] }
 0x6b0   : > { %v8644_v10 = vadd.f32 %v8643_v49, %v8517_v34  ;;  %v9039_v11 = vadd.f32 %v9038_v43, %v8912_v40  ;;  %v8519_v17 = vmul.f32 %v8391_v56, %v8263_v37  ;;  %v8914_v52 = vmul.f32 %v9927_v25, %v8263_v37  ;;  %v17163_v9 = vpop.permute.xlu0 %7809 }
 0x6b1   : > { %v8264_v0 = vmax.f32 %v16319_v12, %v8062_v63  ;;  %v8265_v48 = vmax.f32 %v16333_v36, %v8182_v16  ;;  %v8394_v12 = vld [vmem:[%s17626_s4 + $0x280] sm:$0xff]  ;;  %v8396_v63 = vld [vmem:[%s17626_s4 + $0x290] sm:$0xff] }
 0x6b2   : > { %v8645_v35 = vadd.f32 %v8644_v10, %v8518_v6  ;;  %v9040_v21 = vadd.f32 %v9039_v11, %v8913_v58  ;;  %v7826_v51 = vpop.permute.xlu1 %7825  ;;  %v9930_v36 = vld [vmem:[%s17626_s4 + $0x680] sm:$0xff]  ;;  %v8395_v6 = vld [vmem:[%s17626_s4 + $0x288] sm:$0xff]  ;;  %v9932_v16 = vld [vmem:[%s17626_s4 + $0x690] sm:$0xff] }
 0x6b3   : > { %v8520_v8 = vmul.f32 %v8392_v53, %v8264_v0  ;;  %v8915_v7 = vmul.f32 %v9928_v19, %v8264_v0  ;;  %v8175_v13 = vsel %vm8057_vm2, %v17163_v9, %v7826_v51  ;;  %v8521_v31 = vmul.f32 %v8393_v39, %v8265_v48  ;;  %v9931_v58 = vld [vmem:[%s17626_s4 + $0x688] sm:$0xff]  ;;  %v8397_v39 = vld [vmem:[%s17626_s4 + $0x298] sm:$0xff] }
 0x6b4   : > { %v8646_v34 = vadd.f32 %v8645_v35, %v8519_v17  ;;  %v9041_v40 = vadd.f32 %v9040_v21, %v8914_v52  ;;  %v8266_v49 = vmax.f32 %v16348_v28, %v8175_v13  ;;  %v7842_v43 = vpop.permute.xlu0 %7841  ;;  %v8916_v25 = vmul.f32 %v9929_v1, %v8265_v48  ;;  %v9933_v1 = vld [vmem:[%s17626_s4 + $0x698] sm:$0xff]  ;;  %v9934_v13 = vld [vmem:[%s17626_s4 + $0x6a0] sm:$0xff] }
 0x6b5   : > { %v8167_v37 = vsel %vm8057_vm2, %v7826_v51, %v7842_v43 }
 0x6b6   : > { %v8647_v56 = vadd.f32 %v8646_v34, %v8520_v8  ;;  %v9042_v61 = vadd.f32 %v9041_v40, %v8915_v7  ;;  %v8522_v29 = vmul.f32 %v8394_v12, %v8266_v49  ;;  %v8917_v10 = vmul.f32 %v9930_v36, %v8266_v49  ;;  %v7858_v28 = vpop.permute.xlu1 %7857  ;;  %v8398_v36 = vld [vmem:[%s17626_s4 + $0x2a0] sm:$0xff] }
 0x6b7   : > { %v8267_v11 = vmax.f32 %v16363_v54, %v8167_v37  ;;  %v8159_v17 = vsel %vm8057_vm2, %v7842_v43, %v7858_v28 }
 0x6b8   : > { %v8648_v53 = vadd.f32 %v8647_v56, %v8521_v31  ;;  %v9043_v19 = vadd.f32 %v9042_v61, %v8916_v25  ;;  %v8268_v48 = vmax.f32 %v16378_v41, %v8159_v17  ;;  %v7874_v35 = vpop.permute.xlu0 %7873 }
 0x6b9   : > { %v8523_v52 = vmul.f32 %v8395_v6, %v8267_v11  ;;  %v8918_v0 = vmul.f32 %v9931_v58, %v8267_v11  ;;  %v8151_v8 = vsel %vm8057_vm2, %v7858_v28, %v7874_v35  ;;  %v8399_v6 = vld [vmem:[%s17626_s4 + $0x2a8] sm:$0xff] }
 0x6ba   : > { %v8649_v54 = vadd.f32 %v8648_v53, %v8522_v29  ;;  %v9044_v21 = vadd.f32 %v9043_v19, %v8917_v10  ;;  %v8524_v7 = vmul.f32 %v8396_v63, %v8268_v48  ;;  %v8919_v51 = vmul.f32 %v9932_v16, %v8268_v48  ;;  %v7890_v40 = vpop.permute.xlu1 %7889  ;;  %v9935_v58 = vld [vmem:[%s17626_s4 + $0x6a8] sm:$0xff]  ;;  %v8400_v19 = vld [vmem:[%s17626_s4 + $0x2b0] sm:$0xff] }
 0x6bb   : > { %v8269_v34 = vmax.f32 %v16393_v44, %v8151_v8  ;;  %v8143_v31 = vsel %vm8057_vm2, %v7874_v35, %v7890_v40  ;;  %v9936_v63 = vld [vmem:[%s17626_s4 + $0x6b0] sm:$0xff] }
 0x6bc   : > { %v8650_v41 = vadd.f32 %v8649_v54, %v8523_v52  ;;  %v9045_v12 = vadd.f32 %v9044_v21, %v8918_v0  ;;  %v8270_v56 = vmax.f32 %v16408_v18, %v8143_v31  ;;  %v7906_v25 = vpop.permute.xlu0 %7905  ;;  %v8401_v54 = vld [vmem:[%s17626_s4 + $0x2b8] sm:$0xff] }
 0x6bd   : > { %v8525_v49 = vmul.f32 %v8397_v39, %v8269_v34  ;;  %v8920_v43 = vmul.f32 %v9933_v1, %v8269_v34  ;;  %v8135_v37 = vsel %vm8057_vm2, %v7890_v40, %v7906_v25  ;;  %v9937_v21 = vld [vmem:[%s17626_s4 + $0x6b8] sm:$0xff]  ;;  %v8402_v40 = vld [vmem:[%s17626_s4 + $0x2c0] sm:$0xff] }
 0x6be   : > { %v8651_v44 = vadd.f32 %v8650_v41, %v8524_v7  ;;  %v9046_v61 = vadd.f32 %v9045_v12, %v8919_v51  ;;  %v8526_v29 = vmul.f32 %v8398_v36, %v8270_v56  ;;  %v8921_v10 = vmul.f32 %v9934_v13, %v8270_v56  ;;  %v7922_v28 = vpop.permute.xlu1 %7921  ;;  %v9938_v41 = vld [vmem:[%s17626_s4 + $0x6c0] sm:$0xff]  ;;  %v8403_v56 = vld [vmem:[%s17626_s4 + $0x2c8] sm:$0xff] }
 0x6bf   : > { %v8271_v11 = vmax.f32 %v16423_v5, %v8135_v37  ;;  %v8127_v16 = vsel %vm8057_vm2, %v7906_v25, %v7922_v28  ;;  %v9939_v25 = vld [vmem:[%s17626_s4 + $0x6c8] sm:$0xff] }
 0x6c0   : > { %v8652_v18 = vadd.f32 %v8651_v44, %v8525_v49  ;;  %v9047_v53 = vadd.f32 %v9046_v61, %v8920_v43  ;;  %v8272_v0 = vmax.f32 %v16438_v30, %v8127_v16  ;;  %v7938_v48 = vpop.permute.xlu0 %7937 }
 0x6c1   : > { %v8527_v17 = vmul.f32 %v8399_v6, %v8271_v11  ;;  %v8922_v52 = vmul.f32 %v9935_v58, %v8271_v11  ;;  %v8119_v39 = vsel %vm8057_vm2, %v7922_v28, %v7938_v48  ;;  %v9940_v11 = vld [vmem:[%s17626_s4 + $0x6d0] sm:$0xff] }
 0x6c2   : > { %v8653_v5 = vadd.f32 %v8652_v18, %v8526_v29  ;;  %v9048_v35 = vadd.f32 %v9047_v53, %v8921_v10  ;;  %v8528_v1 = vmul.f32 %v8400_v19, %v8272_v0  ;;  %v8923_v8 = vmul.f32 %v9936_v63, %v8272_v0  ;;  %v7954_v51 = vpop.permute.xlu1 %7953  ;;  %v8404_v10 = vld [vmem:[%s17626_s4 + $0x2d0] sm:$0xff] }
 0x6c3   : > { %v8273_v7 = vmax.f32 %v16453_v57, %v8119_v39  ;;  %v8111_v12 = vsel %vm8057_vm2, %v7938_v48, %v7954_v51  ;;  %v8406_v39 = vld [vmem:[%s17626_s4 + $0x2e0] sm:$0xff] }
 0x6c4   : > { %v8654_v30 = vadd.f32 %v8653_v5, %v8527_v17  ;;  %v9049_v34 = vadd.f32 %v9048_v35, %v8922_v52  ;;  %v8274_v31 = vmax.f32 %v16468_v46, %v8111_v12  ;;  %v7970_v49 = vpop.permute.xlu0 %7969  ;;  %v8405_v17 = vld [vmem:[%s17626_s4 + $0x2d8] sm:$0xff]  ;;  %v9943_v12 = vld [vmem:[%s17626_s4 + $0x6e8] sm:$0xff] }
 0x6c5   : > { %v8529_v36 = vmul.f32 %v8401_v54, %v8273_v7  ;;  %v8924_v13 = vmul.f32 %v9937_v21, %v8273_v7  ;;  %v8103_v44 = vsel %vm8057_vm2, %v7954_v51, %v7970_v49  ;;  %v9941_v52 = vld [vmem:[%s17626_s4 + $0x6d8] sm:$0xff] }
 0x6c6   : > { %v8655_v57 = vadd.f32 %v8654_v30, %v8528_v1  ;;  %v9050_v43 = vadd.f32 %v9049_v34, %v8923_v8  ;;  %v8530_v61 = vmul.f32 %v8402_v40, %v8274_v31  ;;  %v8925_v6 = vmul.f32 %v9938_v41, %v8274_v31  ;;  %v7986_v37 = vpop.permute.xlu1 %7985  ;;  %v9942_v1 = vld [vmem:[%s17626_s4 + $0x6e0] sm:$0xff]  ;;  %v8407_v41 = vld [vmem:[%s17626_s4 + $0x2e8] sm:$0xff] }
 0x6c7   : > { %v8275_v58 = vmax.f32 %v16487_v27, %v8103_v44  ;;  %v8095_v28 = vsel %vm8057_vm2, %v7970_v49, %v7986_v37 }
 0x6c8   : > { %v8656_v46 = vadd.f32 %v8655_v57, %v8529_v36  ;;  %v9051_v29 = vadd.f32 %v9050_v43, %v8924_v13  ;;  %v8276_v19 = vmax.f32 %v16475_v23, %v8095_v28  ;;  %v8002_v63 = vpop.permute.xlu0 %8001  ;;  %v9945_v28 = vld [vmem:[%s17626_s4 + $0x6f8] sm:$0xff] }
 0x6c9   : > { %v8531_v18 = vmul.f32 %v8403_v56, %v8275_v58  ;;  %v8926_v53 = vmul.f32 %v9939_v25, %v8275_v58  ;;  %v8087_v0 = vsel %vm8057_vm2, %v7986_v37, %v8002_v63  ;;  %v8408_v56 = vld [vmem:[%s17626_s4 + $0x2f0] sm:$0xff] }
 0x6ca   : > { %v8657_v27 = vadd.f32 %v8656_v46, %v8530_v61  ;;  %v9052_v16 = vadd.f32 %v9051_v29, %v8925_v6  ;;  %v8532_v48 = vmul.f32 %v8404_v10, %v8276_v19  ;;  %v8927_v5 = vmul.f32 %v9940_v11, %v8276_v19  ;;  %v8018_v54 = vpop.permute.xlu1 %8017  ;;  %v9944_v25 = vld [vmem:[%s17626_s4 + $0x6f0] sm:$0xff]  ;;  %v8409_v11 = vld [vmem:[%s17626_s4 + $0x2f8] sm:$0xff] }
 0x6cb   : > { %v8277_v35 = vmax.f32 %v16514_v20, %v8087_v0  ;;  %v8079_v8 = vsel %vm8057_vm2, %v8002_v63, %v8018_v54 }
 0x6cc   : > { %v8658_v23 = vadd.f32 %v8657_v27, %v8531_v18  ;;  %v9053_v21 = vadd.f32 %v9052_v16, %v8926_v53  ;;  %v8278_v30 = vmax.f32 %v16531_v42, %v8079_v8  ;;  %v8034_v34 = vpop.permute.xlu0 %8033 }
 0x6cd   : > { %v8533_v7 = vmul.f32 %v8405_v17, %v8277_v35  ;;  %v8928_v51 = vmul.f32 %v9941_v52, %v8277_v35  ;;  %v8071_v36 = vsel %vm8057_vm2, %v8018_v54, %v8034_v34  ;;  %v8411_v35 = vld [vmem:[%s17626_s4 + $0x308] sm:$0xff] }
 0x6ce   : > { %v8659_v20 = vadd.f32 %v8658_v23, %v8532_v48  ;;  %v9054_v40 = vadd.f32 %v9053_v21, %v8927_v5  ;;  %v8534_v13 = vmul.f32 %v8406_v39, %v8278_v30  ;;  %v8929_v31 = vmul.f32 %v9942_v1, %v8278_v30  ;;  %v8050_v57 = vpop.permute.xlu1 %8049  ;;  %v9947_v54 = vld [vmem:[%s17626_s4 + $0x708] sm:$0xff]  ;;  %v9948_v30 = vld [vmem:[%s17626_s4 + $0x710] sm:$0xff] }
 0x6cf   : > { %v8279_v49 = vmax.f32 %v16545_v60, %v8071_v36  ;;  %v8063_v44 = vsel %vm8057_vm2, %v8034_v34, %v8050_v57  ;;  %v8183_v61 = vsel %vm8057_vm2, %v8050_v57, %v17163_v9 }
 0x6d0   : > { %v8660_v42 = vadd.f32 %v8659_v20, %v8533_v7  ;;  %v9055_v43 = vadd.f32 %v9054_v40, %v8928_v51  ;;  %v8280_v58 = vmax.f32 %v16559_v15, %v8063_v44  ;;  %v8281_v37 = vmax.f32 %v16573_v3, %v8183_v61  ;;  %v17311_v46 = vpop.permute.xlu0 %7811  ;;  %v8410_v15 = vld [vmem:[%s17626_s4 + $0x300] sm:$0xff]  ;;  %v8412_v51 = vld [vmem:[%s17626_s4 + $0x310] sm:$0xff] }
 0x6d1   : > { %v8535_v6 = vmul.f32 %v8407_v41, %v8279_v49  ;;  %v8930_v60 = vmul.f32 %v9943_v12, %v8279_v49  ;;  %v9946_v3 = vld [vmem:[%s17626_s4 + $0x700] sm:$0xff] }
 0x6d2   : > { %v8661_v29 = vadd.f32 %v8660_v42, %v8534_v13  ;;  %v9056_v10 = vadd.f32 %v9055_v43, %v8929_v31  ;;  %v8536_v18 = vmul.f32 %v8408_v56, %v8280_v58  ;;  %v8931_v9 = vmul.f32 %v9944_v25, %v8280_v58  ;;  %v7828_v53 = vpop.permute.xlu1 %7827  ;;  %v8413_v13 = vld [vmem:[%s17626_s4 + $0x318] sm:$0xff]  ;;  %v8414_v44 = vld [vmem:[%s17626_s4 + $0x320] sm:$0xff] }
 0x6d3   : > { %v8176_v27 = vsel %vm8057_vm2, %v17311_v46, %v7828_v53  ;;  %v8537_v16 = vmul.f32 %v8409_v11, %v8281_v37  ;;  %v8932_v48 = vmul.f32 %v9945_v28, %v8281_v37  ;;  %v9949_v31 = vld [vmem:[%s17626_s4 + $0x718] sm:$0xff]  ;;  %v9950_v61 = vld [vmem:[%s17626_s4 + $0x720] sm:$0xff]  ;;  %v8415_v11 = vld [vmem:[%s17626_s4 + $0x328] sm:$0xff] }
 0x6d4   : > { %v8662_v19 = vadd.f32 %v8661_v29, %v8535_v6  ;;  %v9057_v63 = vadd.f32 %v9056_v10, %v8930_v60  ;;  %v8282_v17 = vmax.f32 %v16588_v55, %v8176_v27  ;;  %v7844_v52 = vpop.permute.xlu0 %7843  ;;  %v9951_v28 = vld [vmem:[%s17626_s4 + $0x728] sm:$0xff]  ;;  %v9952_v27 = vld [vmem:[%s17626_s4 + $0x730] sm:$0xff] }
 0x6d5   : > { %v8168_v23 = vsel %vm8057_vm2, %v7828_v53, %v7844_v52 }
 0x6d6   : > { %v8663_v0 = vadd.f32 %v8662_v19, %v8536_v18  ;;  %v9058_v5 = vadd.f32 %v9057_v63, %v8931_v9  ;;  %v8538_v21 = vmul.f32 %v8410_v15, %v8282_v17  ;;  %v8933_v39 = vmul.f32 %v9946_v3, %v8282_v17  ;;  %v7860_v55 = vpop.permute.xlu1 %7859  ;;  %v8416_v3 = vld [vmem:[%s17626_s4 + $0x330] sm:$0xff] }
 0x6d7   : > { %v8283_v1 = vmax.f32 %v16603_v24, %v8168_v23  ;;  %v8160_v34 = vsel %vm8057_vm2, %v7844_v52, %v7860_v55 }
 0x6d8   : > { %v8664_v8 = vadd.f32 %v8663_v0, %v8537_v16  ;;  %v9059_v7 = vadd.f32 %v9058_v5, %v8932_v48  ;;  %v8284_v41 = vmax.f32 %v16618_v26, %v8160_v34  ;;  %v7876_v12 = vpop.permute.xlu0 %7875 }
 0x6d9   : > { %v8539_v20 = vmul.f32 %v8411_v35, %v8283_v1  ;;  %v8934_v40 = vmul.f32 %v9947_v54, %v8283_v1  ;;  %v8152_v49 = vsel %vm8057_vm2, %v7860_v55, %v7876_v12  ;;  %v8417_v35 = vld [vmem:[%s17626_s4 + $0x338] sm:$0xff] }
 0x6da   : > { %v8665_v24 = vadd.f32 %v8664_v8, %v8538_v21  ;;  %v9060_v36 = vadd.f32 %v9059_v7, %v8933_v39  ;;  %v8540_v57 = vmul.f32 %v8412_v51, %v8284_v41  ;;  %v8935_v42 = vmul.f32 %v9948_v30, %v8284_v41  ;;  %v7892_v56 = vpop.permute.xlu1 %7891  ;;  %v9953_v54 = vld [vmem:[%s17626_s4 + $0x738] sm:$0xff]  ;;  %v8418_v7 = vld [vmem:[%s17626_s4 + $0x340] sm:$0xff] }
 0x6db   : > { %v8285_v43 = vmax.f32 %v16633_v32, %v8152_v49  ;;  %v8144_v6 = vsel %vm8057_vm2, %v7876_v12, %v7892_v56  ;;  %v9954_v51 = vld [vmem:[%s17626_s4 + $0x740] sm:$0xff] }
 0x6dc   : > { %v8666_v26 = vadd.f32 %v8665_v24, %v8539_v20  ;;  %v9061_v25 = vadd.f32 %v9060_v36, %v8934_v40  ;;  %v8286_v37 = vmax.f32 %v16648_v45, %v8144_v6  ;;  %v7908_v29 = vpop.permute.xlu0 %7907  ;;  %v19742_v40 = vld [vmem:[#allocation445_spill] sm:$0xff]  ;;  %v8419_v36 = vld [vmem:[%s17626_s4 + $0x348] sm:$0xff] }
 0x6dd   : > { %v8541_v60 = vmul.f32 %v8413_v13, %v8285_v43  ;;  %v8936_v58 = vmul.f32 %v9949_v31, %v8285_v43  ;;  %v8136_v18 = vsel %vm8057_vm2, %v7892_v56, %v7908_v29  ;;  %v9955_v13 = vld [vmem:[%s17626_s4 + $0x748] sm:$0xff] }
 0x6de   : > { %v8667_v32 = vadd.f32 %v8666_v26, %v8540_v57  ;;  %v9062_v10 = vadd.f32 %v9061_v25, %v8935_v42  ;;  %v8542_v9 = vmul.f32 %v8414_v44, %v8286_v37  ;;  %v8937_v53 = vmul.f32 %v9950_v61, %v8286_v37  ;;  %v7924_v63 = vpop.permute.xlu1 %7923  ;;  %v8420_v25 = vld [vmem:[%s17626_s4 + $0x350] sm:$0xff] }
 0x6df   : > { %v8287_v19 = vmax.f32 %v16663_v47, %v8136_v18  ;;  %v8128_v16 = vsel %vm8057_vm2, %v7908_v29, %v7924_v63  ;;  %v9956_v44 = vld [vmem:[%s17626_s4 + $0x750] sm:$0xff] }
 0x6e0   : > { %v8668_v45 = vadd.f32 %v8667_v32, %v8541_v60  ;;  %v9063_v15 = vadd.f32 %v9062_v10, %v8936_v58  ;;  %v8288_v0 = vmax.f32 %v16678_v22, %v8128_v16  ;;  %v7940_v48 = vpop.permute.xlu0 %7939  ;;  %v19743_v58 = vld [vmem:[#allocation75_spill] sm:$0xff]  ;;  %v8421_v10 = vld [vmem:[%s17626_s4 + $0x358] sm:$0xff] }
 0x6e1   : > { %v8543_v17 = vmul.f32 %v8415_v11, %v8287_v19  ;;  %v8938_v52 = vmul.f32 %v9951_v28, %v8287_v19  ;;  %v8120_v23 = vsel %vm8057_vm2, %v7924_v63, %v7940_v48  ;;  %v9957_v11 = vld [vmem:[%s17626_s4 + $0x758] sm:$0xff] }
 0x6e2   : > { %v8669_v47 = vadd.f32 %v8668_v45, %v8542_v9  ;;  %v9064_v5 = vadd.f32 %v9063_v15, %v8937_v53  ;;  %v8544_v21 = vmul.f32 %v8416_v3, %v8288_v0  ;;  %v8939_v39 = vmul.f32 %v9952_v27, %v8288_v0  ;;  %v7956_v55 = vpop.permute.xlu1 %7955  ;;  %v19744_v53 = vld [vmem:[#allocation204_spill] sm:$0xff]  ;;  %v8422_v3 = vld [vmem:[%s17626_s4 + $0x360] sm:$0xff]  ;;  %v19745_v0 = vld [vmem:[#allocation446_spill] sm:$0xff] }
 0x6e3   : > { %v8289_v1 = vmax.f32 %v16693_v62, %v8120_v23  ;;  %v8112_v30 = vsel %vm8057_vm2, %v7940_v48, %v7956_v55  ;;  %v9958_v27 = vld [vmem:[%s17626_s4 + $0x760] sm:$0xff]  ;;  %v9959_v23 = vld [vmem:[%s17626_s4 + $0x768] sm:$0xff] }
 0x6e4   : > { %v8670_v22 = vadd.f32 %v8669_v47, %v8543_v17  ;;  %v9065_v8 = vadd.f32 %v9064_v5, %v8938_v52  ;;  %v8290_v41 = vmax.f32 %v19742_v40, %v8112_v30  ;;  %v7972_v12 = vpop.permute.xlu0 %7971  ;;  %v8424_v30 = vld [vmem:[%s17626_s4 + $0x370] sm:$0xff] }
 0x6e5   : > { %v8545_v34 = vmul.f32 %v8417_v35, %v8289_v1  ;;  %v8940_v20 = vmul.f32 %v9953_v54, %v8289_v1  ;;  %v8104_v31 = vsel %vm8057_vm2, %v7956_v55, %v7972_v12  ;;  %v8423_v54 = vld [vmem:[%s17626_s4 + $0x368] sm:$0xff] }
 0x6e6   : > { %v8671_v62 = vadd.f32 %v8670_v22, %v8544_v21  ;;  %v9066_v24 = vadd.f32 %v9065_v8, %v8939_v39  ;;  %v8546_v49 = vmul.f32 %v8418_v7, %v8290_v41  ;;  %v8941_v57 = vmul.f32 %v9954_v51, %v8290_v41  ;;  %v7988_v43 = vpop.permute.xlu1 %7987  ;;  %v19746_v55 = vld [vmem:[#allocation314_spill] sm:$0xff] }
 0x6e7   : > { %v8291_v42 = vmax.f32 %v16727_v4, %v8104_v31  ;;  %v8096_v61 = vsel %vm8057_vm2, %v7972_v12, %v7988_v43 }
 0x6e8   : > { %v8672_v56 = vadd.f32 %v8671_v62, %v8545_v34  ;;  %v9067_v26 = vadd.f32 %v9066_v24, %v8940_v20  ;;  %v8292_v37 = vmax.f32 %v19743_v58, %v8096_v61  ;;  %v8004_v29 = vpop.permute.xlu0 %8003  ;;  %v9960_v34 = vld [vmem:[%s17626_s4 + $0x770] sm:$0xff]  ;;  %v19747_v62 = vld [vmem:[#allocation205_spill] sm:$0xff] }
 0x6e9   : > { %v8547_v6 = vmul.f32 %v8419_v36, %v8291_v42  ;;  %v8942_v60 = vmul.f32 %v9955_v13, %v8291_v42  ;;  %v8088_v28 = vsel %vm8057_vm2, %v7988_v43, %v8004_v29  ;;  %v19748_v36 = vld [vmem:[#allocation243_spill] sm:$0xff]  ;;  %v8425_v42 = vld [vmem:[%s17626_s4 + $0x378] sm:$0xff]  ;;  %v8426_v61 = vld [vmem:[%s17626_s4 + $0x380] sm:$0xff] }
 0x6ea   : > { %v8673_v4 = vadd.f32 %v8672_v56, %v8546_v49  ;;  %v9068_v32 = vadd.f32 %v9067_v26, %v8941_v57  ;;  %v8548_v18 = vmul.f32 %v8420_v25, %v8292_v37  ;;  %v8943_v9 = vmul.f32 %v9956_v44, %v8292_v37  ;;  %v8020_v63 = vpop.permute.xlu1 %8019  ;;  %v9961_v43 = vld [vmem:[%s17626_s4 + $0x778] sm:$0xff] }
 0x6eb   : > { %v8293_v19 = vmax.f32 %v19744_v53, %v8088_v28  ;;  %v8080_v16 = vsel %vm8057_vm2, %v8004_v29, %v8020_v63  ;;  %v19749_v37 = vld [vmem:[#allocation76_spill] sm:$0xff]  ;;  %v8427_v28 = vld [vmem:[%s17626_s4 + $0x388] sm:$0xff] }
 0x6ec   : > { %v8674_v45 = vadd.f32 %v8673_v4, %v8547_v6  ;;  %v9069_v15 = vadd.f32 %v9068_v32, %v8942_v60  ;;  %v8294_v48 = vmax.f32 %v19745_v0, %v8080_v16  ;;  %v8036_v47 = vpop.permute.xlu0 %8035  ;;  %v9962_v6 = vld [vmem:[%s17626_s4 + $0x780] sm:$0xff]  ;;  %v8428_v16 = vld [vmem:[%s17626_s4 + $0x390] sm:$0xff] }
 0x6ed   : > { %v8549_v17 = vmul.f32 %v8421_v10, %v8293_v19  ;;  %v8944_v52 = vmul.f32 %v9957_v11, %v8293_v19  ;;  %v8072_v21 = vsel %vm8057_vm2, %v8020_v63, %v8036_v47  ;;  %v19750_v63 = vld [vmem:[#allocation77_spill] sm:$0xff] }
 0x6ee   : > { %v8675_v5 = vadd.f32 %v8674_v45, %v8548_v18  ;;  %v9070_v35 = vadd.f32 %v9069_v15, %v8943_v9  ;;  %v8550_v39 = vmul.f32 %v8422_v3, %v8294_v48  ;;  %v8945_v1 = vmul.f32 %v9958_v27, %v8294_v48  ;;  %v8052_v8 = vpop.permute.xlu1 %8051  ;;  %v9963_v18 = vld [vmem:[%s17626_s4 + $0x788] sm:$0xff] }
 0x6ef   : > { %v8295_v22 = vmax.f32 %v19746_v55, %v8072_v21  ;;  %v8064_v20 = vsel %vm8057_vm2, %v8036_v47, %v8052_v8  ;;  %v8184_v40 = vsel %vm8057_vm2, %v8052_v8, %v17311_v46  ;;  %v19751_v47 = vld [vmem:[#allocation316_spill] sm:$0xff]  ;;  %v19752_v8 = vld [vmem:[#allocation78_spill] sm:$0xff] }
 0x6f0   : > { %v8676_v7 = vadd.f32 %v8675_v5, %v8549_v17  ;;  %v9071_v51 = vadd.f32 %v9070_v35, %v8944_v52  ;;  %v8296_v24 = vmax.f32 %v19747_v62, %v8064_v20  ;;  %v8297_v13 = vmax.f32 %v19748_v36, %v8184_v40  ;;  %v17459_v31 = vpop.permute.xlu0 %7813  ;;  %v9964_v17 = vld [vmem:[%s17626_s4 + $0x790] sm:$0xff]  ;;  %v8429_v21 = vld [vmem:[%s17626_s4 + $0x398] sm:$0xff]  ;;  %v8430_v20 = vld [vmem:[%s17626_s4 + $0x3a0] sm:$0xff] }
 0x6f1   : > { %v8551_v41 = vmul.f32 %v8423_v54, %v8295_v22  ;;  %v8946_v12 = vmul.f32 %v9959_v23, %v8295_v22  ;;  %v9966_v40 = vld [vmem:[%s17626_s4 + $0x7a0] sm:$0xff] }
 0x6f2   : > { %v8677_v49 = vadd.f32 %v8676_v7, %v8550_v39  ;;  %v9072_v57 = vadd.f32 %v9071_v51, %v8945_v1  ;;  %v8552_v56 = vmul.f32 %v8424_v30, %v8296_v24  ;;  %v8947_v46 = vmul.f32 %v9960_v34, %v8296_v24  ;;  %v7830_v26 = vpop.permute.xlu1 %7829  ;;  %v9965_v39 = vld [vmem:[%s17626_s4 + $0x798] sm:$0xff]  ;;  %v19753_v24 = vld [vmem:[#allocation317_spill] sm:$0xff] }
 0x6f3   : > { %v8177_v60 = vsel %vm8057_vm2, %v17459_v31, %v7830_v26  ;;  %v8553_v58 = vmul.f32 %v8425_v42, %v8297_v13  ;;  %v8948_v10 = vmul.f32 %v9961_v43, %v8297_v13  ;;  %v8431_v42 = vld [vmem:[%s17626_s4 + $0x3a8] sm:$0xff] }
 0x6f4   : > { %v8678_v25 = vadd.f32 %v8677_v49, %v8551_v41  ;;  %v9073_v44 = vadd.f32 %v9072_v57, %v8946_v12  ;;  %v8298_v29 = vmax.f32 %v19749_v37, %v8177_v60  ;;  %v7846_v4 = vpop.permute.xlu0 %7845  ;;  %v9967_v43 = vld [vmem:[%s17626_s4 + $0x7a8] sm:$0xff]  ;;  %v9968_v37 = vld [vmem:[%s17626_s4 + $0x7b0] sm:$0xff] }
 0x6f5   : > { %v8169_v9 = vsel %vm8057_vm2, %v7830_v26, %v7846_v4 }
 0x6f6   : > { %v8679_v32 = vadd.f32 %v8678_v25, %v8552_v56  ;;  %v9074_v11 = vadd.f32 %v9073_v44, %v8947_v46  ;;  %v8554_v53 = vmul.f32 %v8426_v61, %v8298_v29  ;;  %v8949_v19 = vmul.f32 %v9962_v6, %v8298_v29  ;;  %v7862_v15 = vpop.permute.xlu1 %7861  ;;  %v19754_v25 = vld [vmem:[#allocation318_spill] sm:$0xff] }
 0x6f7   : > { %v8299_v45 = vmax.f32 %v19750_v63, %v8169_v9  ;;  %v8161_v52 = vsel %vm8057_vm2, %v7846_v4, %v7862_v15 }
 0x6f8   : > { %v8680_v3 = vadd.f32 %v8679_v32, %v8553_v58  ;;  %v9075_v27 = vadd.f32 %v9074_v11, %v8948_v10  ;;  %v8300_v5 = vmax.f32 %v19751_v47, %v8161_v52  ;;  %v7878_v35 = vpop.permute.xlu0 %7877  ;;  %v8432_v58 = vld [vmem:[%s17626_s4 + $0x3b0] sm:$0xff]  ;;  %v19755_v10 = vld [vmem:[#allocation206_spill] sm:$0xff] }
 0x6f9   : > { %v8555_v0 = vmul.f32 %v8427_v28, %v8299_v45  ;;  %v8950_v48 = vmul.f32 %v9963_v18, %v8299_v45  ;;  %v8153_v1 = vsel %vm8057_vm2, %v7862_v15, %v7878_v35 }
 0x6fa   : > { %v8681_v54 = vadd.f32 %v8680_v3, %v8554_v53  ;;  %v9076_v23 = vadd.f32 %v9075_v27, %v8949_v19  ;;  %v8556_v55 = vmul.f32 %v8428_v16, %v8300_v5  ;;  %v8951_v22 = vmul.f32 %v9964_v17, %v8300_v5  ;;  %v8433_v53 = vld [vmem:[%s17626_s4 + $0x3b8] sm:$0xff]  ;;  %v19756_v3 = vld [vmem:[#allocation5_spill] sm:$0xff] }
 0x6fb   : > { %v8301_v7 = vmax.f32 %v19752_v8, %v8153_v1  ;;  %v7894_v51 = vpop.permute.xlu1 %7893  ;;  %v9969_v19 = vld [vmem:[%s17626_s4 + $0x7b8] sm:$0xff] }
 0x6fc   : > { %v8682_v30 = vadd.f32 %v8681_v54, %v8555_v0  ;;  %v9077_v34 = vadd.f32 %v9076_v23, %v8950_v48  ;;  %v8145_v41 = vsel %vm8057_vm2, %v7878_v35, %v7894_v51  ;;  %v7910_v13 = vpop.permute.xlu0 %7909  ;;  %v8434_v0 = vld [vmem:[%s17626_s4 + $0x3c0] sm:$0xff]  ;;  %v19757_v54 = vld [vmem:[#allocation80_spill] sm:$0xff] }
 0x6fd   : > { %v8557_v12 = vmul.f32 %v8429_v21, %v8301_v7  ;;  %v8952_v62 = vmul.f32 %v9965_v39, %v8301_v7  ;;  %v8302_v36 = vmax.f32 %v19753_v24, %v8145_v41  ;;  %v8137_v56 = vsel %vm8057_vm2, %v7894_v51, %v7910_v13  ;;  %v9970_v48 = vld [vmem:[%s17626_s4 + $0x7c0] sm:$0xff]  ;;  %v8436_v41 = vld [vmem:[%s17626_s4 + $0x3d0] sm:$0xff] }
 0x6fe   : > { %v8683_v49 = vadd.f32 %v8682_v30, %v8556_v55  ;;  %v9078_v57 = vadd.f32 %v9077_v34, %v8951_v22  ;;  %v8303_v44 = vmax.f32 %v19754_v25, %v8137_v56  ;;  %v8435_v55 = vld [vmem:[%s17626_s4 + $0x3c8] sm:$0xff]  ;;  %v19758_v25 = vld [vmem:[#allocation207_spill] sm:$0xff] }
 0x6ff   : > { %v8558_v46 = vmul.f32 %v8430_v20, %v8302_v36  ;;  %v8953_v26 = vmul.f32 %v9966_v40, %v8302_v36  ;;  %v7926_v61 = vpop.permute.xlu1 %7925  ;;  %v9971_v22 = vld [vmem:[%s17626_s4 + $0x7c8] sm:$0xff] }
 0x700   : > { %v8684_v6 = vadd.f32 %v8683_v49, %v8557_v12  ;;  %v9079_v60 = vadd.f32 %v9078_v57, %v8952_v62  ;;  %v8129_v29 = vsel %vm8057_vm2, %v7910_v13, %v7926_v61  ;;  %v8559_v4 = vmul.f32 %v8431_v42, %v8303_v44  ;;  %v7942_v28 = vpop.permute.xlu0 %7941  ;;  %v9972_v12 = vld [vmem:[%s17626_s4 + $0x7d0] sm:$0xff]  ;;  %v8437_v42 = vld [vmem:[%s17626_s4 + $0x3d8] sm:$0xff] }
 0x701   : > { %v8954_v32 = vmul.f32 %v9967_v43, %v8303_v44  ;;  %v8304_v11 = vmax.f32 %v19755_v10, %v8129_v29  ;;  %v8121_v63 = vsel %vm8057_vm2, %v7926_v61, %v7942_v28  ;;  %v9973_v43 = vld [vmem:[%s17626_s4 + $0x7d8] sm:$0xff] }
 0x702   : > { %v8685_v18 = vadd.f32 %v8684_v6, %v8558_v46  ;;  %v9080_v9 = vadd.f32 %v9079_v60, %v8953_v26  ;;  %v8305_v27 = vmax.f32 %v19756_v3, %v8121_v63  ;;  %v8438_v60 = vld [vmem:[%s17626_s4 + $0x3e0] sm:$0xff] }
 0x703   : > { %v8560_v45 = vmul.f32 %v8432_v58, %v8304_v11  ;;  %v8955_v15 = vmul.f32 %v9968_v37, %v8304_v11  ;;  %v7958_v16 = vpop.permute.xlu1 %7957  ;;  %v9974_v58 = vld [vmem:[%s17626_s4 + $0x7e0] sm:$0xff] }
 0x704   : > { %v8686_v17 = vadd.f32 %v8685_v18, %v8559_v4  ;;  %v9081_v52 = vadd.f32 %v9080_v9, %v8954_v32  ;;  %v8113_v47 = vsel %vm8057_vm2, %v7942_v28, %v7958_v16  ;;  %v8561_v5 = vmul.f32 %v8433_v53, %v8305_v27  ;;  %v7974_v21 = vpop.permute.xlu0 %7973  ;;  %v8439_v18 = vld [vmem:[%s17626_s4 + $0x3e8] sm:$0xff] }
 0x705   : > { %v8956_v35 = vmul.f32 %v9969_v19, %v8305_v27  ;;  %v8306_v23 = vmax.f32 %v19757_v54, %v8113_v47  ;;  %v8105_v8 = vsel %vm8057_vm2, %v7958_v16, %v7974_v21  ;;  %v9975_v9 = vld [vmem:[%s17626_s4 + $0x7e8] sm:$0xff]  ;;  %v8440_v27 = vld [vmem:[%s17626_s4 + $0x3f0] sm:$0xff] }
 0x706   : > { %v8687_v39 = vadd.f32 %v8686_v17, %v8560_v45  ;;  %v9082_v1 = vadd.f32 %v9081_v52, %v8955_v15  ;;  %v8307_v30 = vmax.f32 %v16967_v38, %v8105_v8  ;;  %v9976_v16 = vld [vmem:[%s17626_s4 + $0x7f0] sm:$0xff] }
 0x707   : > { %v8562_v7 = vmul.f32 %v8434_v0, %v8306_v23  ;;  %v8957_v51 = vmul.f32 %v9970_v48, %v8306_v23  ;;  %v7990_v34 = vpop.permute.xlu1 %7989  ;;  %v8441_v23 = vld [vmem:[%s17626_s4 + $0x3f8] sm:$0xff] }
 0x708   : > { %v8688_v20 = vadd.f32 %v8687_v39, %v8561_v5  ;;  %v9083_v40 = vadd.f32 %v9082_v1, %v8956_v35  ;;  %v8097_v62 = vsel %vm8057_vm2, %v7974_v21, %v7990_v34  ;;  %v8563_v24 = vmul.f32 %v8435_v55, %v8307_v30  ;;  %v8006_v49 = vpop.permute.xlu0 %8005  ;;  %v19759_v35 = vld [vmem:[#allocation244_spill] sm:$0xff] }
 0x709   : > { %v8958_v36 = vmul.f32 %v9971_v22, %v8307_v30  ;;  %v8308_v13 = vmax.f32 %v16955_v14, %v8097_v62  ;;  %v8089_v56 = vsel %vm8057_vm2, %v7990_v34, %v8006_v49  ;;  %v9977_v21 = vld [vmem:[%s17626_s4 + $0x7f8] sm:$0xff] }
 0x70a   : > { %v8689_v38 = vadd.f32 %v8688_v20, %v8562_v7  ;;  %v9084_v57 = vadd.f32 %v9083_v40, %v8957_v51  ;;  %v8309_v44 = vmax.f32 %v19758_v25, %v8089_v56 }
 0x70b   : > { %v8564_v46 = vmul.f32 %v8436_v41, %v8308_v13  ;;  %v8959_v26 = vmul.f32 %v9972_v12, %v8308_v13  ;;  %v8022_v61 = vpop.permute.xlu1 %8021 }
 0x70c   : > { %v8690_v14 = vadd.f32 %v8689_v38, %v8563_v24  ;;  %v9085_v6 = vadd.f32 %v9084_v57, %v8958_v36  ;;  %v8081_v37 = vsel %vm8057_vm2, %v8006_v49, %v8022_v61  ;;  %v8565_v29 = vmul.f32 %v8437_v42, %v8309_v44  ;;  %v8038_v10 = vpop.permute.xlu0 %8037 }
 0x70d   : > { %v8960_v4 = vmul.f32 %v9973_v43, %v8309_v44  ;;  %v8310_v32 = vmax.f32 %v17011_v33, %v8081_v37  ;;  %v8073_v53 = vsel %vm8057_vm2, %v8022_v61, %v8038_v10 }
 0x70e   : > { %v8691_v11 = vadd.f32 %v8690_v14, %v8564_v46  ;;  %v9086_v28 = vadd.f32 %v9085_v6, %v8959_v26  ;;  %v8311_v45 = vmax.f32 %v17025_v59, %v8073_v53 }
 0x70f   : > { %v8566_v19 = vmul.f32 %v8438_v60, %v8310_v32  ;;  %v8961_v63 = vmul.f32 %v9974_v58, %v8310_v32  ;;  %v8054_v15 = vpop.permute.xlu1 %8053 }
 0x710   : > { %v8692_v33 = vadd.f32 %v8691_v11, %v8565_v29  ;;  %v9087_v3 = vadd.f32 %v9086_v28, %v8960_v4  ;;  %v8065_v17 = vsel %vm8057_vm2, %v8038_v10, %v8054_v15  ;;  %v8185_v52 = vsel %vm8057_vm2, %v8054_v15, %v17459_v31 }
 0x711   : > { %v8567_v0 = vmul.f32 %v8439_v18, %v8311_v45  ;;  %v8962_v59 = vmul.f32 %v9975_v9, %v8311_v45  ;;  %v8312_v48 = vmax.f32 %v17039_v50, %v8065_v17  ;;  %v8313_v54 = vmax.f32 %v19759_v35, %v8185_v52 }
 0x712   : > { %v8693_v47 = vadd.f32 %v8692_v33, %v8566_v19  ;;  %v9088_v5 = vadd.f32 %v9087_v3, %v8961_v63 }
 0x713   : > { %v8568_v39 = vmul.f32 %v8440_v27, %v8312_v48  ;;  %v8963_v1 = vmul.f32 %v9976_v16, %v8312_v48  ;;  %v8569_v22 = vmul.f32 %v8441_v23, %v8313_v54  ;;  %v8964_v8 = vmul.f32 %v9977_v21, %v8313_v54 }
 0x714   : > { %v8694_v55 = vadd.f32 %v8693_v47, %v8567_v0  ;;  %v9089_v31 = vadd.f32 %v9088_v5, %v8962_v59 }
 0x716   : > { %v9090_v7 = vadd.f32 %v9089_v31, %v8963_v1  ;;  %v8695_v50 = vadd.f32 %v8694_v55, %v8568_v39 }
 0x718   : > { %v9091_v51 = vadd.f32 %v9090_v7, %v8964_v8  ;;  %v8696_v30 = vadd.f32 %v8695_v50, %v8569_v22 }
 0x71a   : > { %9092 = vadd.xlane.f32.xlu1 %v9091_v51  ;;  %8697 = vadd.xlane.f32.xlu0 %v8696_v30 }
 0x7a3   : > { %v9093_v34 = vpop.xlane.xlu1 %9092  ;;  %v8698_v20 = vpop.xlane.xlu0 %8697 }
 0x7a4   : > { %v9094_v40 = vrot.slane %v9093_v34, 4  ;;  %v8699_v41 = vrot.slane %v8698_v20, 4 }
 0x7a6   : > { %v9095_v12 = vadd.f32 %v9094_v40, %v9093_v34  ;;  %v8700_v62 = vadd.f32 %v8699_v41, %v8698_v20 }
 0x7a8   : > { %v9096_v24 = vrot.slane %v9095_v12, 2  ;;  %v8701_v36 = vrot.slane %v8700_v62, 2 }
 0x7aa   : > { %v9097_v13 = vadd.f32 %v9096_v24, %v9095_v12  ;;  %v8702_v49 = vadd.f32 %v8701_v36, %v8700_v62 }
 0x7ac   : > { %v8703_v38 = vrot.slane %v8702_v49, 1  ;;  %v9098_v57 = vrot.slane %v9097_v13, 1 }
 0x7ae   : > { %v8704_v42 = vadd.f32 %v8703_v38, %v8702_v49  ;;  %v9099_v43 = vadd.f32 %v9098_v57, %v9097_v13 }
 0x7b0   : > { %9982 = vpush %v8704_v42 }
 0x7b1   : > { %9984 = vpush %v9099_v43 }
 0x7e1   : > { %s9983_s18 = spop %9982 }
 0x7e2   : > { %s8707_s23 = sadd.f32 %s9983_s18, %s8706_s16  ;;  %s9985_s24 = spop %9984 }
 0x7e3   : > { %s9102_s25 = sadd.f32 %s9985_s24, %s9978_s17 }
 0x7e4   : > { %v9107_v56 = vstv %s8707_s23 }
 0x7e5   : > { %v9105_v46 = vstv %s9102_s25 }
 0x7e6   : > { %v9106_v26 = vsel %vm9104_vm3, %v9105_v46, 0.0 }
 0x7e7   : > { %v9108_v25 = vsel %vm9103_vm4, %v9107_v56, %v9106_v26 }
 0x7e8   : > { %9109 = vst [vmem:[%s263_s28] sm:$0xff] %v9108_v25 }
 0x7e9 PF: > { %s17_s21 = sadd.s32 1, %s10070_s21  }
 0x7ea   : > { %p14_p1 = scmp.ge.s32.totalorder %s17_s21, 4  }
 0x7ec   :  { %16 = sbr.rel (!%p14_p1) target bundleno = 1 (0x1), region = 83 }
 0x7f1   :  { %9129 = vsyncpa [#allocation3], 1 }
 0x7f2   :  { %9131 = vsyncpa [#allocation3 + $0x1], 1 }

</bundles_post_ra>
